<compile_context>
chip_gen: v6e
topology: v6e:2x2x1
jax: 0.10.0
libtpu: 0.0.40
codegen_flags: <defaults>
</compile_context>

<pallas_src>
import functools

import jax
import jax.numpy as jnp
from jax import lax
from jax.experimental import pallas as pl
from jax.experimental.pallas import tpu as pltpu


# ------------------------------ small helpers -------------------------------

def _round_up(x, m):
    return (x + m - 1) // m * m


def _pick_tile_h(h, w, cp, wout, cbytes):
    """Largest divisor of H whose (TILE_H * W) rows fit a VMEM-friendly budget
    (double-buffered blocked operands + halo scratch), sized to also fit v7x."""
    per_row = (3 * cp * cbytes + wout * 4) * 2          # x, halo, conv1, out (x2 buf)
    target_rows = max(w, (8 << 20) // max(per_row, 1))  # ~8 MiB for row-tiles
    best = 1
    for t in range(1, h + 1):
        if h % t == 0 and t * w <= target_rows:
            best = t
    return best


def _vmem_limit(block_bytes, scratch_bytes):
    est = 2 * block_bytes + scratch_bytes + (4 << 20)
    return int(min(max(est, 32 << 20), 48 << 20))       # stay well under v7x 64 MiB


# ------------------------------ Pallas kernels ------------------------------

def _conv1_stats_kernel(xp_hbm, w1_ref, b1_ref, conv1_ref, stats_ref,
                        xbuf, sem, *, tile_h, w_img, cp):
    """Conv3x3(x) + bias over one H-tile (with halo), plus per-tile BN partial
    sums (sum, sum_sq) for the two-pass batch-norm reduction."""
    n = pl.program_id(0)
    hb = pl.program_id(1)
    h0 = hb * tile_h                     # first halo row in the padded input

    cpy = pltpu.make_async_copy(xp_hbm.at[n, pl.ds(h0, tile_h + 2)], xbuf, sem)
    cpy.start()
    cpy.wait()

    xb = xbuf[...]                                        # (tile_h+2, w+2, cp)
    rows = tile_h * w_img
    acc = jnp.zeros((rows, cp), jnp.float32)
    for dh in range(3):
        for dw in range(3):
            patch = xb[dh:dh + tile_h, dw:dw + w_img, :].reshape(rows, cp)
            acc = acc + jnp.dot(patch, w1_ref[dh * 3 + dw],
                                preferred_element_type=jnp.float32)
    acc = acc + b1_ref[...]

    conv1_ref[...] = acc.reshape(1, tile_h, w_img, cp).astype(conv1_ref.dtype)
    s = jnp.sum(acc, axis=0, keepdims=True)               # (1, cp)
    ss = jnp.sum(acc * acc, axis=0, keepdims=True)        # (1, cp)
    stats_ref[...] = jnp.concatenate([s, ss], axis=0)[None]
    # TODO(synk): BatchNorm running-stat updates are a training side effect and
    # do not affect the forward output; they are not reproduced here.


def _fused_tail_kernel(c1p_hbm, x_ref, a_ref, b_ref, w2_ref, b2_ref,
                       wt_ref, bt_ref, out_ref, cbuf, sem,
                       *, tile_h, h_img, w_img, cp, wout, cdtype):
    """BN(affine-folded)+ReLU of conv1 (halo tile), Conv3x3 + bias, residual
    add + ReLU, then ConvTranspose2d(2,2,stride 2) as a (C, 4*Co) matmul."""
    n = pl.program_id(0)
    hb = pl.program_id(1)
    h0 = hb * tile_h

    cpy = pltpu.make_async_copy(c1p_hbm.at[n, pl.ds(h0, tile_h + 2)], cbuf, sem)
    cpy.start()
    cpy.wait()

    c1 = cbuf[...].astype(jnp.float32)                    # (tile_h+2, w+2, cp)
    t = jnp.maximum(c1 * a_ref[...] + b_ref[...], 0.0)    # BN (folded) + ReLU
    # Zero the rows/cols that are conv "same" padding: BN+ReLU of the padded
    # zeros is generally nonzero, but conv2 must see zero padding.
    rows_g = h0 + lax.broadcasted_iota(jnp.int32, t.shape, 0)
    cols_g = lax.broadcasted_iota(jnp.int32, t.shape, 1)
    valid = ((rows_g >= 1) & (rows_g <= h_img) &
             (cols_g >= 1) & (cols_g <= w_img))
    t = jnp.where(valid, t, 0.0).astype(cdtype)

    rows = tile_h * w_img
    acc = jnp.zeros((rows, cp), jnp.float32)
    for dh in range(3):
        for dw in range(3):
            patch = t[dh:dh + tile_h, dw:dw + w_img, :].reshape(rows, cp)
            acc = acc + jnp.dot(patch, w2_ref[dh * 3 + dw],
                                preferred_element_type=jnp.float32)
    conv2 = acc + b2_ref[...]

    xin = x_ref[...].reshape(rows, cp).astype(jnp.float32)
    res = jnp.maximum(xin + conv2, 0.0)                    # residual + ReLU

    up = jnp.dot(res.astype(cdtype), wt_ref[...],
                 preferred_element_type=jnp.float32) + bt_ref[...]
    out_ref[...] = jnp.maximum(up, 0.0).reshape(
        1, tile_h, w_img, wout).astype(out_ref.dtype)


# ------------------------------ module wrapper ------------------------------

def init_params(key, c_in, c_out):
    ks = jax.random.split(key, 8)
    f32 = jnp.float32
    return {
        # Conv2d(c_in, c_in, 3, padding=1) : weight (O, I, kH, kW)
        "w1": jax.random.normal(ks[0], (c_in, c_in, 3, 3), f32) * 0.1,
        "b1": jax.random.normal(ks[1], (c_in,), f32) * 0.1,
        # BatchNorm2d(c_in)
        "gamma": 1.0 + jax.random.normal(ks[2], (c_in,), f32) * 0.1,
        "beta": jax.random.normal(ks[3], (c_in,), f32) * 0.1,
        # Conv2d(c_in, c_in, 3, padding=1)
        "w2": jax.random.normal(ks[4], (c_in, c_in, 3, 3), f32) * 0.1,
        "b2": jax.random.normal(ks[5], (c_in,), f32) * 0.1,
        # ConvTranspose2d(c_in, c_out, 2, stride=2) : weight (I, O, kH, kW)
        "wt": jax.random.normal(ks[6], (c_in, c_out, 2, 2), f32) * 0.1,
        "bt": jax.random.normal(ks[7], (c_out,), f32) * 0.1,
    }


def deconvx2_res_forward(x_nchw, params, compute_dtype=jnp.bfloat16):
    f32 = jnp.float32
    n, c, h, w = x_nchw.shape
    co = params["wt"].shape[1]

    cp = _round_up(c, 128)                # channels padded to lane width
    wout = _round_up(4 * co, 128)         # deconv output columns, lane-dense
    cbytes = jnp.dtype(compute_dtype).itemsize
    tile_h = _pick_tile_h(h, w, cp, wout, cbytes)
    n_hb = h // tile_h
    grid = (n, n_hb)
    dimsem = ("parallel", "parallel")

    # ---------------- layout / padding glue (pure XLA, cheap) ---------------
    x_nhwc = jnp.transpose(x_nchw, (0, 2, 3, 1)).astype(f32)
    x_nhwc = jnp.pad(x_nhwc, ((0, 0), (0, 0), (0, 0), (0, cp - c)))
    x_cd = x_nhwc.astype(compute_dtype)                    # (N, H, W, Cp)
    xp = jnp.pad(x_cd, ((0, 0), (1, 1), (1, 1), (0, 0)))   # (N, H+2, W+2, Cp)

    def conv_w(w_oikk):   # (O, I, 3, 3) -> (9, Cp, Cp), tap index = kh*3 + kw
        wm = jnp.transpose(w_oikk, (2, 3, 1, 0)).astype(f32)   # (3, 3, I, O)
        wm = jnp.pad(wm, ((0, 0), (0, 0), (0, cp - c), (0, cp - c)))
        return wm.reshape(9, cp, cp).astype(compute_dtype)

    w1m = conv_w(params["w1"])
    w2m = conv_w(params["w2"])
    b1 = jnp.pad(params["b1"].astype(f32), (0, cp - c)).reshape(1, cp)
    b2 = jnp.pad(params["b2"].astype(f32), (0, cp - c)).reshape(1, cp)
    gamma = jnp.pad(params["gamma"].astype(f32), (0, cp - c))
    beta = jnp.pad(params["beta"].astype(f32), (0, cp - c))

    # ConvTranspose2d weight (I, O, 2, 2) -> (Cp, Wout); column = (kh*2+kw)*Co + o
    wtm = jnp.transpose(params["wt"], (0, 2, 3, 1)).astype(f32).reshape(c, 4 * co)
    wtm = jnp.pad(wtm, ((0, cp - c), (0, wout - 4 * co))).astype(compute_dtype)
    btm = jnp.pad(jnp.tile(params["bt"].astype(f32), 4),
                  (0, wout - 4 * co)).reshape(1, wout)

    # ---------------- kernel 1: conv1 + per-tile BN partial sums ------------
    k1_blocks = ((9 * cp * cp) * cbytes + cp * 4
                 + tile_h * w * cp * cbytes + 2 * cp * 4)
    k1_scratch = (tile_h + 2) * (w + 2) * cp * cbytes
    conv1, stats = pl.pallas_call(
        functools.partial(_conv1_stats_kernel, tile_h=tile_h, w_img=w, cp=cp),
        grid_spec=pltpu.PrefetchScalarGridSpec(
            num_scalar_prefetch=0,
            grid=grid,
            in_specs=[
                pl.BlockSpec(memory_space=pl.ANY),                   # xp (halo DMA)
                pl.BlockSpec((9, cp, cp), lambda i, j: (0, 0, 0)),   # w1 (resident)
                pl.BlockSpec((1, cp), lambda i, j: (0, 0)),          # b1 (resident)
            ],
            out_specs=(
                pl.BlockSpec((1, tile_h, w, cp), lambda i, j: (i, j, 0, 0)),
                pl.BlockSpec((1, 2, cp), lambda i, j: (i * n_hb + j, 0, 0)),
            ),
            scratch_shapes=[
                pltpu.VMEM((tile_h + 2, w + 2, cp), compute_dtype),
                pltpu.SemaphoreType.DMA(()),
            ]),
        out_shape=(
            jax.ShapeDtypeStruct((n, h, w, cp), compute_dtype),
            jax.ShapeDtypeStruct((n * n_hb, 2, cp), f32),
        ),
        compiler_params=pltpu.CompilerParams(
            dimension_semantics=dimsem,
            vmem_limit_bytes=_vmem_limit(k1_blocks, k1_scratch)),
    )(xp, w1m, b1)

    # BN finalize (tiny): batch stats -> folded affine  t = relu(a*conv1 + b)
    count = jnp.array(n * h * w, f32)
    tot = jnp.sum(stats, axis=0)                            # (2, Cp)
    mean = tot[0] / count
    var = jnp.maximum(tot[1] / count - mean * mean, 0.0)
    rstd = lax.rsqrt(var + 1e-5)
    bn_a = (gamma * rstd).reshape(1, cp)
    bn_b = (beta - mean * gamma * rstd).reshape(1, cp)

    # Spatially pad conv1 once so kernel 2's halo DMA sees zero borders.
    conv1p = jnp.pad(conv1, ((0, 0), (1, 1), (1, 1), (0, 0)))

    # ------- kernel 2: BN+ReLU, conv2, residual ReLU, deconv(2,2) + ReLU ----
    k2_blocks = (tile_h * w * cp * cbytes + 4 * cp * 4
                 + (9 * cp * cp) * cbytes + cp * wout * cbytes + wout * 4
                 + tile_h * w * wout * 4)
    k2_scratch = (tile_h + 2) * (w + 2) * cp * cbytes
    up = pl.pallas_call(
        functools.partial(_fused_tail_kernel, tile_h=tile_h, h_img=h, w_img=w,
                          cp=cp, wout=wout, cdtype=compute_dtype),
        grid_spec=pltpu.PrefetchScalarGridSpec(
            num_scalar_prefetch=0,
            grid=grid,
            in_specs=[
                pl.BlockSpec(memory_space=pl.ANY),                    # conv1 (padded)
                pl.BlockSpec((1, tile_h, w, cp), lambda i, j: (i, j, 0, 0)),  # x
                pl.BlockSpec((1, cp), lambda i, j: (0, 0)),           # bn scale
                pl.BlockSpec((1, cp), lambda i, j: (0, 0)),           # bn shift
                pl.BlockSpec((9, cp, cp), lambda i, j: (0, 0, 0)),    # w2
                pl.BlockSpec((1, cp), lambda i, j: (0, 0)),           # b2
                pl.BlockSpec((cp, wout), lambda i, j: (0, 0)),        # wt
                pl.BlockSpec((1, wout), lambda i, j: (0, 0)),         # bt
            ],
            out_specs=pl.BlockSpec((1, tile_h, w, wout),
                                   lambda i, j: (i, j, 0, 0)),
            scratch_shapes=[
                pltpu.VMEM((tile_h + 2, w + 2, cp), compute_dtype),
                pltpu.SemaphoreType.DMA(()),
            ]),
        out_shape=jax.ShapeDtypeStruct((n, h, w, wout), f32),
        compiler_params=pltpu.CompilerParams(
            dimension_semantics=dimsem,
            vmem_limit_bytes=_vmem_limit(k2_blocks, k2_scratch)),
    )(conv1p, x_cd, bn_a, bn_b, w2m, b2, wtm, btm)

    # Scatter the 4 sub-pixel column groups back to the 2x upsampled grid
    # (kept lane-dense inside the kernel; this is layout plumbing in XLA).
    up = up[..., :4 * co].reshape(n, h, w, 2, 2, co)        # (..., kh, kw, co)
    up = jnp.transpose(up, (0, 1, 3, 2, 4, 5)).reshape(n, 2 * h, 2 * w, co)
    return jnp.transpose(up, (0, 3, 1, 2))                  # NHWC -> NCHW


# ---------------------------- pure-JAX reference -----------------------------

def reference_forward(x, params):
    n, c, h, w = x.shape
    co = params["wt"].shape[1]
    dn = ("NCHW", "OIHW", "NCHW")
    conv1 = lax.conv_general_dilated(
        x, params["w1"], (1, 1), ((1, 1), (1, 1)), dimension_numbers=dn)
    conv1 = conv1 + params["b1"][None, :, None, None]
    mean = jnp.mean(conv1, axis=(0, 2, 3), keepdims=True)
    var = jnp.mean((conv1 - mean) ** 2, axis=(0, 2, 3), keepdims=True)
    t = (conv1 - mean) * lax.rsqrt(var + 1e-5)
    t = t * params["gamma"][None, :, None, None] + params["beta"][None, :, None, None]
    t = jnp.maximum(t, 0.0)
    conv2 = lax.conv_general_dilated(
        t, params["w2"], (1, 1), ((1, 1), (1, 1)), dimension_numbers=dn)
    conv2 = conv2 + params["b2"][None, :, None, None]
    res = jnp.maximum(x + conv2, 0.0)
    up = jnp.einsum("nchw,cokl->nohwkl", res, params["wt"])
    up = jnp.transpose(up, (0, 1, 2, 4, 3, 5)).reshape(n, co, 2 * h, 2 * w)
    up = up + params["bt"][None, :, None, None]
    return jnp.maximum(up, 0.0)


# ------------------------------------ main -----------------------------------

if __name__ == "__main__":
    key = jax.random.PRNGKey(0)
    k_x, k_p = jax.random.split(key)

    N, C_IN, C_OUT, H, W = 2, 4, 8, 16, 16
    x = jax.random.normal(k_x, (N, C_IN, H, W), jnp.float32)
    params = init_params(k_p, C_IN, C_OUT)

    fwd = jax.jit(deconvx2_res_forward, static_argnames=("compute_dtype",))
    ref = jax.block_until_ready(reference_forward(x, params))

    # f32 path: tight check of the kernel math against the reference.
    out_f32 = jax.block_until_ready(fwd(x, params, compute_dtype=jnp.float32))
    assert out_f32.shape == (N, C_OUT, 2 * H, 2 * W), out_f32.shape
    assert jnp.allclose(out_f32, ref, atol=1e-3, rtol=1e-3), (
        float(jnp.max(jnp.abs(out_f32 - ref))))

    # bf16 path: the performance configuration (bf16 MXU operands, f32 accum).
    out_bf16 = jax.block_until_ready(fwd(x, params, compute_dtype=jnp.bfloat16))
    assert out_bf16.shape == (N, C_OUT, 2 * H, 2 * W), out_bf16.shape
    assert jnp.allclose(out_bf16, ref, atol=5e-2, rtol=5e-2), (
        float(jnp.max(jnp.abs(out_bf16 - ref))))

    print("KERNEL_OK")
</pallas_src>

<mosaic_0001>
module attributes {stable_mosaic.version = 11 : i64} {
  func.func @_conv1_stats_kernel(%arg0: i32, %arg1: i32, %arg2: memref<2x18x18x128xf32, #tpu.memory_space<any>>, %arg3: memref<9x128x128xf32, #tpu.memory_space<vmem>>, %arg4: memref<1x128xf32, #tpu.memory_space<vmem>>, %arg5: memref<1x16x16x128xf32, #tpu.memory_space<vmem>>, %arg6: memref<1x2x128xf32, #tpu.memory_space<vmem>>, %arg7: memref<18x18x128xf32, #tpu.memory_space<vmem>>, %arg8: memref<!tpu.dma_semaphore, #tpu.memory_space<semaphore_mem>>) attributes {dimension_semantics = [#tpu.dimension_semantics<parallel>, #tpu.dimension_semantics<parallel>], iteration_bounds = array<i64: 2, 1>, scalar_prefetch = 0 : i64, scratch_operands = 2 : i64, tpu.core_type = #tpu.core_type<tc>, window_params = [{}, {pipeline_mode = #tpu.pipeline_mode<synchronous>, transform_indices = @transform_1, window_bounds = array<i64: 9, 128, 128>}, {pipeline_mode = #tpu.pipeline_mode<synchronous>, transform_indices = @transform_2, window_bounds = array<i64: 1, 128>}, {transform_indices = @transform_3, window_bounds = array<i64: 1, 16, 16, 128>}, {transform_indices = @transform_4, window_bounds = array<i64: 1, 2, 128>}]} {
    %c16_i32 = arith.constant 16 : i32
    %0 = arith.muli %arg1, %c16_i32 : i32
    %c0_i32 = arith.constant 0 : i32
    %c0_i32_0 = arith.constant 0 : i32
    %1 = tpu.memref_slice %arg2[%arg0, %0, %c0_i32, %c0_i32_0] : memref<2x18x18x128xf32, #tpu.memory_space<any>> -> memref<1x18x18x128xf32, #tpu.memory_space<any>>
    %2 = tpu.memref_squeeze %1 : memref<1x18x18x128xf32, #tpu.memory_space<any>> -> memref<18x18x128xf32, #tpu.memory_space<any>>
    tpu.enqueue_dma source(%2 : memref<18x18x128xf32, #tpu.memory_space<any>>) target(%arg7 : memref<18x18x128xf32, #tpu.memory_space<vmem>>) target_semaphore(%arg8 : memref<!tpu.dma_semaphore, #tpu.memory_space<semaphore_mem>>)
    %c0_i32_1 = arith.constant 0 : i32
    %c0_i32_2 = arith.constant 0 : i32
    %3 = tpu.memref_slice %arg2[%arg0, %0, %c0_i32_1, %c0_i32_2] : memref<2x18x18x128xf32, #tpu.memory_space<any>> -> memref<1x18x18x128xf32, #tpu.memory_space<any>>
    %4 = tpu.memref_squeeze %3 : memref<1x18x18x128xf32, #tpu.memory_space<any>> -> memref<18x18x128xf32, #tpu.memory_space<any>>
    tpu.wait_dma2 semaphore(%arg8 : memref<!tpu.dma_semaphore, #tpu.memory_space<semaphore_mem>>) src(%4 : memref<18x18x128xf32, #tpu.memory_space<any>>) dst(%arg7 : memref<18x18x128xf32, #tpu.memory_space<vmem>>)
    %c0 = arith.constant 0 : index
    %c0_3 = arith.constant 0 : index
    %c0_4 = arith.constant 0 : index
    %5 = vector.load %arg7[%c0, %c0_3, %c0_4] : memref<18x18x128xf32, #tpu.memory_space<vmem>>, vector<18x18x128xf32>
    %cst = arith.constant 0.000000e+00 : f32
    %6 = vector.broadcast %cst : f32 to vector<256x128xf32>
    %7 = vector.extract_strided_slice %5 {offsets = [0, 0, 0], sizes = [16, 16, 128], strides = [1, 1, 1]} : vector<18x18x128xf32> to vector<16x16x128xf32>
    %8 = vector.shape_cast %7 : vector<16x16x128xf32> to vector<256x128xf32>
    %c0_5 = arith.constant 0 : index
    %c0_6 = arith.constant 0 : index
    %c0_7 = arith.constant 0 : index
    %9 = vector.load %arg3[%c0_5, %c0_6, %c0_7] : memref<9x128x128xf32, #tpu.memory_space<vmem>>, vector<1x128x128xf32>
    %10 = vector.shape_cast %9 : vector<1x128x128xf32> to vector<128x128xf32>
    %cst_8 = arith.constant dense<0.000000e+00> : vector<256x128xf32>
    %11 = tpu.matmul %8, %10, %cst_8 {dimension_numbers = #tpu.dot_dimension_numbers<[1], [0], [0], [1], [0, 0, 1, 1], [], []>} : vector<256x128xf32>, vector<128x128xf32>, vector<256x128xf32> -> vector<256x128xf32>
    %12 = arith.addf %6, %11 : vector<256x128xf32>
    %13 = vector.extract_strided_slice %5 {offsets = [0, 1, 0], sizes = [16, 16, 128], strides = [1, 1, 1]} : vector<18x18x128xf32> to vector<16x16x128xf32>
    %14 = vector.shape_cast %13 : vector<16x16x128xf32> to vector<256x128xf32>
    %c1 = arith.constant 1 : index
    %c0_9 = arith.constant 0 : index
    %c0_10 = arith.constant 0 : index
    %15 = vector.load %arg3[%c1, %c0_9, %c0_10] : memref<9x128x128xf32, #tpu.memory_space<vmem>>, vector<1x128x128xf32>
    %16 = vector.shape_cast %15 : vector<1x128x128xf32> to vector<128x128xf32>
    %cst_11 = arith.constant dense<0.000000e+00> : vector<256x128xf32>
    %17 = tpu.matmul %14, %16, %cst_11 {dimension_numbers = #tpu.dot_dimension_numbers<[1], [0], [0], [1], [0, 0, 1, 1], [], []>} : vector<256x128xf32>, vector<128x128xf32>, vector<256x128xf32> -> vector<256x128xf32>
    %18 = arith.addf %12, %17 : vector<256x128xf32>
    %19 = vector.extract_strided_slice %5 {offsets = [0, 2, 0], sizes = [16, 16, 128], strides = [1, 1, 1]} : vector<18x18x128xf32> to vector<16x16x128xf32>
    %20 = vector.shape_cast %19 : vector<16x16x128xf32> to vector<256x128xf32>
    %c2 = arith.constant 2 : index
    %c0_12 = arith.constant 0 : index
    %c0_13 = arith.constant 0 : index
    %21 = vector.load %arg3[%c2, %c0_12, %c0_13] : memref<9x128x128xf32, #tpu.memory_space<vmem>>, vector<1x128x128xf32>
    %22 = vector.shape_cast %21 : vector<1x128x128xf32> to vector<128x128xf32>
    %cst_14 = arith.constant dense<0.000000e+00> : vector<256x128xf32>
    %23 = tpu.matmul %20, %22, %cst_14 {dimension_numbers = #tpu.dot_dimension_numbers<[1], [0], [0], [1], [0, 0, 1, 1], [], []>} : vector<256x128xf32>, vector<128x128xf32>, vector<256x128xf32> -> vector<256x128xf32>
    %24 = arith.addf %18, %23 : vector<256x128xf32>
    %25 = vector.extract_strided_slice %5 {offsets = [1, 0, 0], sizes = [16, 16, 128], strides = [1, 1, 1]} : vector<18x18x128xf32> to vector<16x16x128xf32>
    %26 = vector.shape_cast %25 : vector<16x16x128xf32> to vector<256x128xf32>
    %c3 = arith.constant 3 : index
    %c0_15 = arith.constant 0 : index
    %c0_16 = arith.constant 0 : index
    %27 = vector.load %arg3[%c3, %c0_15, %c0_16] : memref<9x128x128xf32, #tpu.memory_space<vmem>>, vector<1x128x128xf32>
    %28 = vector.shape_cast %27 : vector<1x128x128xf32> to vector<128x128xf32>
    %cst_17 = arith.constant dense<0.000000e+00> : vector<256x128xf32>
    %29 = tpu.matmul %26, %28, %cst_17 {dimension_numbers = #tpu.dot_dimension_numbers<[1], [0], [0], [1], [0, 0, 1, 1], [], []>} : vector<256x128xf32>, vector<128x128xf32>, vector<256x128xf32> -> vector<256x128xf32>
    %30 = arith.addf %24, %29 : vector<256x128xf32>
    %31 = vector.extract_strided_slice %5 {offsets = [1, 1, 0], sizes = [16, 16, 128], strides = [1, 1, 1]} : vector<18x18x128xf32> to vector<16x16x128xf32>
    %32 = vector.shape_cast %31 : vector<16x16x128xf32> to vector<256x128xf32>
    %c4 = arith.constant 4 : index
    %c0_18 = arith.constant 0 : index
    %c0_19 = arith.constant 0 : index
    %33 = vector.load %arg3[%c4, %c0_18, %c0_19] : memref<9x128x128xf32, #tpu.memory_space<vmem>>, vector<1x128x128xf32>
    %34 = vector.shape_cast %33 : vector<1x128x128xf32> to vector<128x128xf32>
    %cst_20 = arith.constant dense<0.000000e+00> : vector<256x128xf32>
    %35 = tpu.matmul %32, %34, %cst_20 {dimension_numbers = #tpu.dot_dimension_numbers<[1], [0], [0], [1], [0, 0, 1, 1], [], []>} : vector<256x128xf32>, vector<128x128xf32>, vector<256x128xf32> -> vector<256x128xf32>
    %36 = arith.addf %30, %35 : vector<256x128xf32>
    %37 = vector.extract_strided_slice %5 {offsets = [1, 2, 0], sizes = [16, 16, 128], strides = [1, 1, 1]} : vector<18x18x128xf32> to vector<16x16x128xf32>
    %38 = vector.shape_cast %37 : vector<16x16x128xf32> to vector<256x128xf32>
    %c5 = arith.constant 5 : index
    %c0_21 = arith.constant 0 : index
    %c0_22 = arith.constant 0 : index
    %39 = vector.load %arg3[%c5, %c0_21, %c0_22] : memref<9x128x128xf32, #tpu.memory_space<vmem>>, vector<1x128x128xf32>
    %40 = vector.shape_cast %39 : vector<1x128x128xf32> to vector<128x128xf32>
    %cst_23 = arith.constant dense<0.000000e+00> : vector<256x128xf32>
    %41 = tpu.matmul %38, %40, %cst_23 {dimension_numbers = #tpu.dot_dimension_numbers<[1], [0], [0], [1], [0, 0, 1, 1], [], []>} : vector<256x128xf32>, vector<128x128xf32>, vector<256x128xf32> -> vector<256x128xf32>
    %42 = arith.addf %36, %41 : vector<256x128xf32>
    %43 = vector.extract_strided_slice %5 {offsets = [2, 0, 0], sizes = [16, 16, 128], strides = [1, 1, 1]} : vector<18x18x128xf32> to vector<16x16x128xf32>
    %44 = vector.shape_cast %43 : vector<16x16x128xf32> to vector<256x128xf32>
    %c6 = arith.constant 6 : index
    %c0_24 = arith.constant 0 : index
    %c0_25 = arith.constant 0 : index
    %45 = vector.load %arg3[%c6, %c0_24, %c0_25] : memref<9x128x128xf32, #tpu.memory_space<vmem>>, vector<1x128x128xf32>
    %46 = vector.shape_cast %45 : vector<1x128x128xf32> to vector<128x128xf32>
    %cst_26 = arith.constant dense<0.000000e+00> : vector<256x128xf32>
    %47 = tpu.matmul %44, %46, %cst_26 {dimension_numbers = #tpu.dot_dimension_numbers<[1], [0], [0], [1], [0, 0, 1, 1], [], []>} : vector<256x128xf32>, vector<128x128xf32>, vector<256x128xf32> -> vector<256x128xf32>
    %48 = arith.addf %42, %47 : vector<256x128xf32>
    %49 = vector.extract_strided_slice %5 {offsets = [2, 1, 0], sizes = [16, 16, 128], strides = [1, 1, 1]} : vector<18x18x128xf32> to vector<16x16x128xf32>
    %50 = vector.shape_cast %49 : vector<16x16x128xf32> to vector<256x128xf32>
    %c7 = arith.constant 7 : index
    %c0_27 = arith.constant 0 : index
    %c0_28 = arith.constant 0 : index
    %51 = vector.load %arg3[%c7, %c0_27, %c0_28] : memref<9x128x128xf32, #tpu.memory_space<vmem>>, vector<1x128x128xf32>
    %52 = vector.shape_cast %51 : vector<1x128x128xf32> to vector<128x128xf32>
    %cst_29 = arith.constant dense<0.000000e+00> : vector<256x128xf32>
    %53 = tpu.matmul %50, %52, %cst_29 {dimension_numbers = #tpu.dot_dimension_numbers<[1], [0], [0], [1], [0, 0, 1, 1], [], []>} : vector<256x128xf32>, vector<128x128xf32>, vector<256x128xf32> -> vector<256x128xf32>
    %54 = arith.addf %48, %53 : vector<256x128xf32>
    %55 = vector.extract_strided_slice %5 {offsets = [2, 2, 0], sizes = [16, 16, 128], strides = [1, 1, 1]} : vector<18x18x128xf32> to vector<16x16x128xf32>
    %56 = vector.shape_cast %55 : vector<16x16x128xf32> to vector<256x128xf32>
    %c8 = arith.constant 8 : index
    %c0_30 = arith.constant 0 : index
    %c0_31 = arith.constant 0 : index
    %57 = vector.load %arg3[%c8, %c0_30, %c0_31] : memref<9x128x128xf32, #tpu.memory_space<vmem>>, vector<1x128x128xf32>
    %58 = vector.shape_cast %57 : vector<1x128x128xf32> to vector<128x128xf32>
    %cst_32 = arith.constant dense<0.000000e+00> : vector<256x128xf32>
    %59 = tpu.matmul %56, %58, %cst_32 {dimension_numbers = #tpu.dot_dimension_numbers<[1], [0], [0], [1], [0, 0, 1, 1], [], []>} : vector<256x128xf32>, vector<128x128xf32>, vector<256x128xf32> -> vector<256x128xf32>
    %60 = arith.addf %54, %59 : vector<256x128xf32>
    %c0_33 = arith.constant 0 : index
    %c0_34 = arith.constant 0 : index
    %61 = vector.load %arg4[%c0_33, %c0_34] : memref<1x128xf32, #tpu.memory_space<vmem>>, vector<1x128xf32>
    %62 = vector.broadcast %61 : vector<1x128xf32> to vector<256x128xf32>
    %63 = arith.addf %60, %62 : vector<256x128xf32>
    %64 = vector.shape_cast %63 : vector<256x128xf32> to vector<1x16x16x128xf32>
    %c0_35 = arith.constant 0 : index
    %c0_36 = arith.constant 0 : index
    %c0_37 = arith.constant 0 : index
    %c0_38 = arith.constant 0 : index
    %65 = vector.load %arg5[%c0_35, %c0_36, %c0_37, %c0_38] : memref<1x16x16x128xf32, #tpu.memory_space<vmem>>, vector<1x16x16x128xf32>
    tpu.vector_store %arg5[%c0_35, %c0_36, %c0_37, %c0_38], %64 {strides = array<i32>} : memref<1x16x16x128xf32, #tpu.memory_space<vmem>>, vector<1x16x16x128xf32>,
    %cst_39 = arith.constant dense<0.000000e+00> : vector<128xf32>
    %66 = vector.multi_reduction <add>, %63, %cst_39 [0] : vector<256x128xf32> to vector<128xf32>
    %67 = vector.shape_cast %66 : vector<128xf32> to vector<1x128xf32>
    %68 = arith.mulf %63, %63 : vector<256x128xf32>
    %cst_40 = arith.constant dense<0.000000e+00> : vector<128xf32>
    %69 = vector.multi_reduction <add>, %68, %cst_40 [0] : vector<256x128xf32> to vector<128xf32>
    %70 = vector.shape_cast %69 : vector<128xf32> to vector<1x128xf32>
    %71 = tpu.concatenate %67, %70 in 0 : vector<1x128xf32>, vector<1x128xf32> -> vector<2x128xf32>
    %72 = vector.shape_cast %71 : vector<2x128xf32> to vector<1x2x128xf32>
    %c0_41 = arith.constant 0 : index
    %c0_42 = arith.constant 0 : index
    %c0_43 = arith.constant 0 : index
    %73 = vector.load %arg6[%c0_41, %c0_42, %c0_43] : memref<1x2x128xf32, #tpu.memory_space<vmem>>, vector<1x2x128xf32>
    tpu.vector_store %arg6[%c0_41, %c0_42, %c0_43], %72 {strides = array<i32>} : memref<1x2x128xf32, #tpu.memory_space<vmem>>, vector<1x2x128xf32>,
    return
  }
  func.func @transform_1(%arg0: i32, %arg1: i32) -> (i32, i32, i32) {
    %c0_i32 = arith.constant 0 : i32
    %c0_i32_0 = arith.constant 0 : i32
    %c0_i32_1 = arith.constant 0 : i32
    %c0_i32_2 = arith.constant 0 : i32
    return %c0_i32, %c0_i32_0, %c0_i32_1 : i32, i32, i32
  }
  func.func @transform_2(%arg0: i32, %arg1: i32) -> (i32, i32) {
    %c0_i32 = arith.constant 0 : i32
    %c0_i32_0 = arith.constant 0 : i32
    %c0_i32_1 = arith.constant 0 : i32
    return %c0_i32, %c0_i32_0 : i32, i32
  }
  func.func @transform_3(%arg0: i32, %arg1: i32) -> (i32, i32, i32, i32) {
    %c0_i32 = arith.constant 0 : i32
    %c0_i32_0 = arith.constant 0 : i32
    %c0_i32_1 = arith.constant 0 : i32
    return %arg0, %arg1, %c0_i32, %c0_i32_0 : i32, i32, i32, i32
  }
  func.func @transform_4(%arg0: i32, %arg1: i32) -> (i32, i32, i32) {
    %c1_i32 = arith.constant 1 : i32
    %0 = arith.muli %arg0, %c1_i32 : i32
    %1 = arith.addi %0, %arg1 : i32
    %c0_i32 = arith.constant 0 : i32
    %c0_i32_0 = arith.constant 0 : i32
    %c0_i32_1 = arith.constant 0 : i32
    return %1, %c0_i32, %c0_i32_0 : i32, i32, i32
  }
}

module attributes {stable_mosaic.version = 11 : i64} {
  func.func @_fused_tail_kernel(%arg0: i32, %arg1: i32, %arg2: memref<2x18x18x128xf32, #tpu.memory_space<any>>, %arg3: memref<1x16x16x128xf32, #tpu.memory_space<vmem>>, %arg4: memref<1x128xf32, #tpu.memory_space<vmem>>, %arg5: memref<1x128xf32, #tpu.memory_space<vmem>>, %arg6: memref<9x128x128xf32, #tpu.memory_space<vmem>>, %arg7: memref<1x128xf32, #tpu.memory_space<vmem>>, %arg8: memref<128x128xf32, #tpu.memory_space<vmem>>, %arg9: memref<1x128xf32, #tpu.memory_space<vmem>>, %arg10: memref<1x16x16x128xf32, #tpu.memory_space<vmem>>, %arg11: memref<18x18x128xf32, #tpu.memory_space<vmem>>, %arg12: memref<!tpu.dma_semaphore, #tpu.memory_space<semaphore_mem>>) attributes {dimension_semantics = [#tpu.dimension_semantics<parallel>, #tpu.dimension_semantics<parallel>], iteration_bounds = array<i64: 2, 1>, scalar_prefetch = 0 : i64, scratch_operands = 2 : i64, tpu.core_type = #tpu.core_type<tc>, window_params = [{}, {transform_indices = @transform_1, window_bounds = array<i64: 1, 16, 16, 128>}, {pipeline_mode = #tpu.pipeline_mode<synchronous>, transform_indices = @transform_2, window_bounds = array<i64: 1, 128>}, {pipeline_mode = #tpu.pipeline_mode<synchronous>, transform_indices = @transform_3, window_bounds = array<i64: 1, 128>}, {pipeline_mode = #tpu.pipeline_mode<synchronous>, transform_indices = @transform_4, window_bounds = array<i64: 9, 128, 128>}, {pipeline_mode = #tpu.pipeline_mode<synchronous>, transform_indices = @transform_5, window_bounds = array<i64: 1, 128>}, {pipeline_mode = #tpu.pipeline_mode<synchronous>, transform_indices = @transform_6, window_bounds = array<i64: 128, 128>}, {pipeline_mode = #tpu.pipeline_mode<synchronous>, transform_indices = @transform_7, window_bounds = array<i64: 1, 128>}, {transform_indices = @transform_8, window_bounds = array<i64: 1, 16, 16, 128>}]} {
    %c16_i32 = arith.constant 16 : i32
    %0 = arith.muli %arg1, %c16_i32 : i32
    %c0_i32 = arith.constant 0 : i32
    %c0_i32_0 = arith.constant 0 : i32
    %1 = tpu.memref_slice %arg2[%arg0, %0, %c0_i32, %c0_i32_0] : memref<2x18x18x128xf32, #tpu.memory_space<any>> -> memref<1x18x18x128xf32, #tpu.memory_space<any>>
    %2 = tpu.memref_squeeze %1 : memref<1x18x18x128xf32, #tpu.memory_space<any>> -> memref<18x18x128xf32, #tpu.memory_space<any>>
    tpu.enqueue_dma source(%2 : memref<18x18x128xf32, #tpu.memory_space<any>>) target(%arg11 : memref<18x18x128xf32, #tpu.memory_space<vmem>>) target_semaphore(%arg12 : memref<!tpu.dma_semaphore, #tpu.memory_space<semaphore_mem>>)
    %c0_i32_1 = arith.constant 0 : i32
    %c0_i32_2 = arith.constant 0 : i32
    %3 = tpu.memref_slice %arg2[%arg0, %0, %c0_i32_1, %c0_i32_2] : memref<2x18x18x128xf32, #tpu.memory_space<any>> -> memref<1x18x18x128xf32, #tpu.memory_space<any>>
    %4 = tpu.memref_squeeze %3 : memref<1x18x18x128xf32, #tpu.memory_space<any>> -> memref<18x18x128xf32, #tpu.memory_space<any>>
    tpu.wait_dma2 semaphore(%arg12 : memref<!tpu.dma_semaphore, #tpu.memory_space<semaphore_mem>>) src(%4 : memref<18x18x128xf32, #tpu.memory_space<any>>) dst(%arg11 : memref<18x18x128xf32, #tpu.memory_space<vmem>>)
    %c0 = arith.constant 0 : index
    %c0_3 = arith.constant 0 : index
    %c0_4 = arith.constant 0 : index
    %5 = vector.load %arg11[%c0, %c0_3, %c0_4] : memref<18x18x128xf32, #tpu.memory_space<vmem>>, vector<18x18x128xf32>
    %c0_5 = arith.constant 0 : index
    %c0_6 = arith.constant 0 : index
    %6 = vector.load %arg4[%c0_5, %c0_6] : memref<1x128xf32, #tpu.memory_space<vmem>>, vector<1x128xf32>
    %7 = vector.shape_cast %6 : vector<1x128xf32> to vector<1x1x128xf32>
    %8 = vector.broadcast %7 : vector<1x1x128xf32> to vector<18x18x128xf32>
    %9 = arith.mulf %5, %8 : vector<18x18x128xf32>
    %c0_7 = arith.constant 0 : index
    %c0_8 = arith.constant 0 : index
    %10 = vector.load %arg5[%c0_7, %c0_8] : memref<1x128xf32, #tpu.memory_space<vmem>>, vector<1x128xf32>
    %11 = vector.shape_cast %10 : vector<1x128xf32> to vector<1x1x128xf32>
    %12 = vector.broadcast %11 : vector<1x1x128xf32> to vector<18x18x128xf32>
    %13 = arith.addf %9, %12 : vector<18x18x128xf32>
    %cst = arith.constant 0.000000e+00 : f32
    %14 = vector.broadcast %cst : f32 to vector<18x18x128xf32>
    %15 = arith.maximumf %13, %14 : vector<18x18x128xf32>
    %16 = tpu.iota {dimensions = array<i32: 0>} : vector<18x18x128xi32>
    %17 = vector.broadcast %0 : i32 to vector<18x18x128xi32>
    %18 = arith.addi %17, %16 : vector<18x18x128xi32>
    %19 = tpu.iota {dimensions = array<i32: 1>} : vector<18x18x128xi32>
    %c1_i32 = arith.constant 1 : i32
    %20 = vector.broadcast %c1_i32 : i32 to vector<18x18x128xi32>
    %21 = arith.cmpi sge, %18, %20 : vector<18x18x128xi32>
    %c16_i32_9 = arith.constant 16 : i32
    %22 = vector.broadcast %c16_i32_9 : i32 to vector<18x18x128xi32>
    %23 = arith.cmpi sle, %18, %22 : vector<18x18x128xi32>
    %24 = arith.andi %21, %23 : vector<18x18x128xi1>
    %c1_i32_10 = arith.constant 1 : i32
    %25 = vector.broadcast %c1_i32_10 : i32 to vector<18x18x128xi32>
    %26 = arith.cmpi sge, %19, %25 : vector<18x18x128xi32>
    %27 = arith.andi %24, %26 : vector<18x18x128xi1>
    %c16_i32_11 = arith.constant 16 : i32
    %28 = vector.broadcast %c16_i32_11 : i32 to vector<18x18x128xi32>
    %29 = arith.cmpi sle, %19, %28 : vector<18x18x128xi32>
    %30 = arith.andi %27, %29 : vector<18x18x128xi1>
    %cst_12 = arith.constant 0.000000e+00 : f32
    %31 = vector.broadcast %cst_12 : f32 to vector<18x18x128xf32>
    %32 = arith.select %30, %15, %31 : vector<18x18x128xi1>, vector<18x18x128xf32>
    %cst_13 = arith.constant 0.000000e+00 : f32
    %33 = vector.broadcast %cst_13 : f32 to vector<256x128xf32>
    %34 = vector.extract_strided_slice %32 {offsets = [0, 0, 0], sizes = [16, 16, 128], strides = [1, 1, 1]} : vector<18x18x128xf32> to vector<16x16x128xf32>
    %35 = vector.shape_cast %34 : vector<16x16x128xf32> to vector<256x128xf32>
    %c0_14 = arith.constant 0 : index
    %c0_15 = arith.constant 0 : index
    %c0_16 = arith.constant 0 : index
    %36 = vector.load %arg6[%c0_14, %c0_15, %c0_16] : memref<9x128x128xf32, #tpu.memory_space<vmem>>, vector<1x128x128xf32>
    %37 = vector.shape_cast %36 : vector<1x128x128xf32> to vector<128x128xf32>
    %cst_17 = arith.constant dense<0.000000e+00> : vector<256x128xf32>
    %38 = tpu.matmul %35, %37, %cst_17 {dimension_numbers = #tpu.dot_dimension_numbers<[1], [0], [0], [1], [0, 0, 1, 1], [], []>} : vector<256x128xf32>, vector<128x128xf32>, vector<256x128xf32> -> vector<256x128xf32>
    %39 = arith.addf %33, %38 : vector<256x128xf32>
    %40 = vector.extract_strided_slice %32 {offsets = [0, 1, 0], sizes = [16, 16, 128], strides = [1, 1, 1]} : vector<18x18x128xf32> to vector<16x16x128xf32>
    %41 = vector.shape_cast %40 : vector<16x16x128xf32> to vector<256x128xf32>
    %c1 = arith.constant 1 : index
    %c0_18 = arith.constant 0 : index
    %c0_19 = arith.constant 0 : index
    %42 = vector.load %arg6[%c1, %c0_18, %c0_19] : memref<9x128x128xf32, #tpu.memory_space<vmem>>, vector<1x128x128xf32>
    %43 = vector.shape_cast %42 : vector<1x128x128xf32> to vector<128x128xf32>
    %cst_20 = arith.constant dense<0.000000e+00> : vector<256x128xf32>
    %44 = tpu.matmul %41, %43, %cst_20 {dimension_numbers = #tpu.dot_dimension_numbers<[1], [0], [0], [1], [0, 0, 1, 1], [], []>} : vector<256x128xf32>, vector<128x128xf32>, vector<256x128xf32> -> vector<256x128xf32>
    %45 = arith.addf %39, %44 : vector<256x128xf32>
    %46 = vector.extract_strided_slice %32 {offsets = [0, 2, 0], sizes = [16, 16, 128], strides = [1, 1, 1]} : vector<18x18x128xf32> to vector<16x16x128xf32>
    %47 = vector.shape_cast %46 : vector<16x16x128xf32> to vector<256x128xf32>
    %c2 = arith.constant 2 : index
    %c0_21 = arith.constant 0 : index
    %c0_22 = arith.constant 0 : index
    %48 = vector.load %arg6[%c2, %c0_21, %c0_22] : memref<9x128x128xf32, #tpu.memory_space<vmem>>, vector<1x128x128xf32>
    %49 = vector.shape_cast %48 : vector<1x128x128xf32> to vector<128x128xf32>
    %cst_23 = arith.constant dense<0.000000e+00> : vector<256x128xf32>
    %50 = tpu.matmul %47, %49, %cst_23 {dimension_numbers = #tpu.dot_dimension_numbers<[1], [0], [0], [1], [0, 0, 1, 1], [], []>} : vector<256x128xf32>, vector<128x128xf32>, vector<256x128xf32> -> vector<256x128xf32>
    %51 = arith.addf %45, %50 : vector<256x128xf32>
    %52 = vector.extract_strided_slice %32 {offsets = [1, 0, 0], sizes = [16, 16, 128], strides = [1, 1, 1]} : vector<18x18x128xf32> to vector<16x16x128xf32>
    %53 = vector.shape_cast %52 : vector<16x16x128xf32> to vector<256x128xf32>
    %c3 = arith.constant 3 : index
    %c0_24 = arith.constant 0 : index
    %c0_25 = arith.constant 0 : index
    %54 = vector.load %arg6[%c3, %c0_24, %c0_25] : memref<9x128x128xf32, #tpu.memory_space<vmem>>, vector<1x128x128xf32>
    %55 = vector.shape_cast %54 : vector<1x128x128xf32> to vector<128x128xf32>
    %cst_26 = arith.constant dense<0.000000e+00> : vector<256x128xf32>
    %56 = tpu.matmul %53, %55, %cst_26 {dimension_numbers = #tpu.dot_dimension_numbers<[1], [0], [0], [1], [0, 0, 1, 1], [], []>} : vector<256x128xf32>, vector<128x128xf32>, vector<256x128xf32> -> vector<256x128xf32>
    %57 = arith.addf %51, %56 : vector<256x128xf32>
    %58 = vector.extract_strided_slice %32 {offsets = [1, 1, 0], sizes = [16, 16, 128], strides = [1, 1, 1]} : vector<18x18x128xf32> to vector<16x16x128xf32>
    %59 = vector.shape_cast %58 : vector<16x16x128xf32> to vector<256x128xf32>
    %c4 = arith.constant 4 : index
    %c0_27 = arith.constant 0 : index
    %c0_28 = arith.constant 0 : index
    %60 = vector.load %arg6[%c4, %c0_27, %c0_28] : memref<9x128x128xf32, #tpu.memory_space<vmem>>, vector<1x128x128xf32>
    %61 = vector.shape_cast %60 : vector<1x128x128xf32> to vector<128x128xf32>
    %cst_29 = arith.constant dense<0.000000e+00> : vector<256x128xf32>
    %62 = tpu.matmul %59, %61, %cst_29 {dimension_numbers = #tpu.dot_dimension_numbers<[1], [0], [0], [1], [0, 0, 1, 1], [], []>} : vector<256x128xf32>, vector<128x128xf32>, vector<256x128xf32> -> vector<256x128xf32>
    %63 = arith.addf %57, %62 : vector<256x128xf32>
    %64 = vector.extract_strided_slice %32 {offsets = [1, 2, 0], sizes = [16, 16, 128], strides = [1, 1, 1]} : vector<18x18x128xf32> to vector<16x16x128xf32>
    %65 = vector.shape_cast %64 : vector<16x16x128xf32> to vector<256x128xf32>
    %c5 = arith.constant 5 : index
    %c0_30 = arith.constant 0 : index
    %c0_31 = arith.constant 0 : index
    %66 = vector.load %arg6[%c5, %c0_30, %c0_31] : memref<9x128x128xf32, #tpu.memory_space<vmem>>, vector<1x128x128xf32>
    %67 = vector.shape_cast %66 : vector<1x128x128xf32> to vector<128x128xf32>
    %cst_32 = arith.constant dense<0.000000e+00> : vector<256x128xf32>
    %68 = tpu.matmul %65, %67, %cst_32 {dimension_numbers = #tpu.dot_dimension_numbers<[1], [0], [0], [1], [0, 0, 1, 1], [], []>} : vector<256x128xf32>, vector<128x128xf32>, vector<256x128xf32> -> vector<256x128xf32>
    %69 = arith.addf %63, %68 : vector<256x128xf32>
    %70 = vector.extract_strided_slice %32 {offsets = [2, 0, 0], sizes = [16, 16, 128], strides = [1, 1, 1]} : vector<18x18x128xf32> to vector<16x16x128xf32>
    %71 = vector.shape_cast %70 : vector<16x16x128xf32> to vector<256x128xf32>
    %c6 = arith.constant 6 : index
    %c0_33 = arith.constant 0 : index
    %c0_34 = arith.constant 0 : index
    %72 = vector.load %arg6[%c6, %c0_33, %c0_34] : memref<9x128x128xf32, #tpu.memory_space<vmem>>, vector<1x128x128xf32>
    %73 = vector.shape_cast %72 : vector<1x128x128xf32> to vector<128x128xf32>
    %cst_35 = arith.constant dense<0.000000e+00> : vector<256x128xf32>
    %74 = tpu.matmul %71, %73, %cst_35 {dimension_numbers = #tpu.dot_dimension_numbers<[1], [0], [0], [1], [0, 0, 1, 1], [], []>} : vector<256x128xf32>, vector<128x128xf32>, vector<256x128xf32> -> vector<256x128xf32>
    %75 = arith.addf %69, %74 : vector<256x128xf32>
    %76 = vector.extract_strided_slice %32 {offsets = [2, 1, 0], sizes = [16, 16, 128], strides = [1, 1, 1]} : vector<18x18x128xf32> to vector<16x16x128xf32>
    %77 = vector.shape_cast %76 : vector<16x16x128xf32> to vector<256x128xf32>
    %c7 = arith.constant 7 : index
    %c0_36 = arith.constant 0 : index
    %c0_37 = arith.constant 0 : index
    %78 = vector.load %arg6[%c7, %c0_36, %c0_37] : memref<9x128x128xf32, #tpu.memory_space<vmem>>, vector<1x128x128xf32>
    %79 = vector.shape_cast %78 : vector<1x128x128xf32> to vector<128x128xf32>
    %cst_38 = arith.constant dense<0.000000e+00> : vector<256x128xf32>
    %80 = tpu.matmul %77, %79, %cst_38 {dimension_numbers = #tpu.dot_dimension_numbers<[1], [0], [0], [1], [0, 0, 1, 1], [], []>} : vector<256x128xf32>, vector<128x128xf32>, vector<256x128xf32> -> vector<256x128xf32>
    %81 = arith.addf %75, %80 : vector<256x128xf32>
    %82 = vector.extract_strided_slice %32 {offsets = [2, 2, 0], sizes = [16, 16, 128], strides = [1, 1, 1]} : vector<18x18x128xf32> to vector<16x16x128xf32>
    %83 = vector.shape_cast %82 : vector<16x16x128xf32> to vector<256x128xf32>
    %c8 = arith.constant 8 : index
    %c0_39 = arith.constant 0 : index
    %c0_40 = arith.constant 0 : index
    %84 = vector.load %arg6[%c8, %c0_39, %c0_40] : memref<9x128x128xf32, #tpu.memory_space<vmem>>, vector<1x128x128xf32>
    %85 = vector.shape_cast %84 : vector<1x128x128xf32> to vector<128x128xf32>
    %cst_41 = arith.constant dense<0.000000e+00> : vector<256x128xf32>
    %86 = tpu.matmul %83, %85, %cst_41 {dimension_numbers = #tpu.dot_dimension_numbers<[1], [0], [0], [1], [0, 0, 1, 1], [], []>} : vector<256x128xf32>, vector<128x128xf32>, vector<256x128xf32> -> vector<256x128xf32>
    %87 = arith.addf %81, %86 : vector<256x128xf32>
    %c0_42 = arith.constant 0 : index
    %c0_43 = arith.constant 0 : index
    %88 = vector.load %arg7[%c0_42, %c0_43] : memref<1x128xf32, #tpu.memory_space<vmem>>, vector<1x128xf32>
    %89 = vector.broadcast %88 : vector<1x128xf32> to vector<256x128xf32>
    %90 = arith.addf %87, %89 : vector<256x128xf32>
    %c0_44 = arith.constant 0 : index
    %c0_45 = arith.constant 0 : index
    %c0_46 = arith.constant 0 : index
    %c0_47 = arith.constant 0 : index
    %91 = vector.load %arg3[%c0_44, %c0_45, %c0_46, %c0_47] : memref<1x16x16x128xf32, #tpu.memory_space<vmem>>, vector<1x16x16x128xf32>
    %92 = vector.shape_cast %91 : vector<1x16x16x128xf32> to vector<256x128xf32>
    %93 = arith.addf %92, %90 : vector<256x128xf32>
    %cst_48 = arith.constant 0.000000e+00 : f32
    %94 = vector.broadcast %cst_48 : f32 to vector<256x128xf32>
    %95 = arith.maximumf %93, %94 : vector<256x128xf32>
    %c0_49 = arith.constant 0 : index
    %c0_50 = arith.constant 0 : index
    %96 = vector.load %arg8[%c0_49, %c0_50] : memref<128x128xf32, #tpu.memory_space<vmem>>, vector<128x128xf32>
    %cst_51 = arith.constant dense<0.000000e+00> : vector<256x128xf32>
    %97 = tpu.matmul %95, %96, %cst_51 {dimension_numbers = #tpu.dot_dimension_numbers<[1], [0], [0], [1], [0, 0, 1, 1], [], []>} : vector<256x128xf32>, vector<128x128xf32>, vector<256x128xf32> -> vector<256x128xf32>
    %c0_52 = arith.constant 0 : index
    %c0_53 = arith.constant 0 : index
    %98 = vector.load %arg9[%c0_52, %c0_53] : memref<1x128xf32, #tpu.memory_space<vmem>>, vector<1x128xf32>
    %99 = vector.broadcast %98 : vector<1x128xf32> to vector<256x128xf32>
    %100 = arith.addf %97, %99 : vector<256x128xf32>
    %cst_54 = arith.constant 0.000000e+00 : f32
    %101 = vector.broadcast %cst_54 : f32 to vector<256x128xf32>
    %102 = arith.maximumf %100, %101 : vector<256x128xf32>
    %103 = vector.shape_cast %102 : vector<256x128xf32> to vector<1x16x16x128xf32>
    %c0_55 = arith.constant 0 : index
    %c0_56 = arith.constant 0 : index
    %c0_57 = arith.constant 0 : index
    %c0_58 = arith.constant 0 : index
    %104 = vector.load %arg10[%c0_55, %c0_56, %c0_57, %c0_58] : memref<1x16x16x128xf32, #tpu.memory_space<vmem>>, vector<1x16x16x128xf32>
    tpu.vector_store %arg10[%c0_55, %c0_56, %c0_57, %c0_58], %103 {strides = array<i32>} : memref<1x16x16x128xf32, #tpu.memory_space<vmem>>, vector<1x16x16x128xf32>,
    return
  }
  func.func @transform_1(%arg0: i32, %arg1: i32) -> (i32, i32, i32, i32) {
    %c0_i32 = arith.constant 0 : i32
    %c0_i32_0 = arith.constant 0 : i32
    %c0_i32_1 = arith.constant 0 : i32
    return %arg0, %arg1, %c0_i32, %c0_i32_0 : i32, i32, i32, i32
  }
  func.func @transform_2(%arg0: i32, %arg1: i32) -> (i32, i32) {
    %c0_i32 = arith.constant 0 : i32
    %c0_i32_0 = arith.constant 0 : i32
    %c0_i32_1 = arith.constant 0 : i32
    return %c0_i32, %c0_i32_0 : i32, i32
  }
  func.func @transform_3(%arg0: i32, %arg1: i32) -> (i32, i32) {
    %c0_i32 = arith.constant 0 : i32
    %c0_i32_0 = arith.constant 0 : i32
    %c0_i32_1 = arith.constant 0 : i32
    return %c0_i32, %c0_i32_0 : i32, i32
  }
  func.func @transform_4(%arg0: i32, %arg1: i32) -> (i32, i32, i32) {
    %c0_i32 = arith.constant 0 : i32
    %c0_i32_0 = arith.constant 0 : i32
    %c0_i32_1 = arith.constant 0 : i32
    %c0_i32_2 = arith.constant 0 : i32
    return %c0_i32, %c0_i32_0, %c0_i32_1 : i32, i32, i32
  }
  func.func @transform_5(%arg0: i32, %arg1: i32) -> (i32, i32) {
    %c0_i32 = arith.constant 0 : i32
    %c0_i32_0 = arith.constant 0 : i32
    %c0_i32_1 = arith.constant 0 : i32
    return %c0_i32, %c0_i32_0 : i32, i32
  }
  func.func @transform_6(%arg0: i32, %arg1: i32) -> (i32, i32) {
    %c0_i32 = arith.constant 0 : i32
    %c0_i32_0 = arith.constant 0 : i32
    %c0_i32_1 = arith.constant 0 : i32
    return %c0_i32, %c0_i32_0 : i32, i32
  }
  func.func @transform_7(%arg0: i32, %arg1: i32) -> (i32, i32) {
    %c0_i32 = arith.constant 0 : i32
    %c0_i32_0 = arith.constant 0 : i32
    %c0_i32_1 = arith.constant 0 : i32
    return %c0_i32, %c0_i32_0 : i32, i32
  }
  func.func @transform_8(%arg0: i32, %arg1: i32) -> (i32, i32, i32, i32) {
    %c0_i32 = arith.constant 0 : i32
    %c0_i32_0 = arith.constant 0 : i32
    %c0_i32_1 = arith.constant 0 : i32
    return %arg0, %arg1, %c0_i32, %c0_i32_0 : i32, i32, i32, i32
  }
}

</mosaic_0001>

<bundles_post_ra>
// kernel: tile.8
= control target key start
LH: loop header
LB: loop body
LE: loop exit
PB: predicated region body
PF: predicated region fallthrough
CT: control target
= control target key end

     0   :  { %s22_s0 = inlined_call_operand.vmem [shape: f32[8], index: 0, kind: input, shape index: {}]   ;;  %s23_s1 = inlined_call_operand.vmem [shape: f32[4,8], index: 1, kind: output, shape index: {}]  }
   0x1   :  { %v4_v0 = vld [vmem:[%s22_s0] ss:$0 sm:$0xff] }
   0x2   :  { %5 = vst [vmem:[%s23_s1] sm:$0xf] %v4_v0 }

// kernel: tile.9
= control target key start
LH: loop header
LB: loop body
LE: loop exit
PB: predicated region body
PF: predicated region fallthrough
CT: control target
= control target key end

     0   :  { %vm8_vm0 = vcmask 64512   ;;  %s40_s8 = smov 8   ;;  %s41_s9 = smov 16   ;;  %vm14_vm1 = vcmask 261312   ;;  %vm20_vm2 = vcmask 195712   ;;  %vm26_vm3 = vcmask 130112   ;;  %s58_s0 = inlined_call_operand.vmem [shape: f32[4,8], index: 0, kind: input, shape index: {}]   ;;  %s59_s1 = inlined_call_operand.vmem [shape: f32[32], index: 1, kind: output, shape index: {}]  }
   0x1   :  { %v5_v0 = vld [vmem:[%s58_s0] sm:$0xf]  ;;  %s39_s0 = smov 24  }
   0x2   :  { %6 = vst [vmem:[#allocation1] sm:$0xf] %v5_v0 }
   0x9   :  { %v11_v1 = vld [vmem:[#allocation1 + $0x3] sm:$0x1]   ;;  %v23_v2 = vld [vmem:[#allocation1 + $0x1] sm:$0x1]   ;;  %v7_v3 = vld [vmem:[#allocation1] sm:$0x1]  }
   0xa   :  { %12 = vrot.lane.b32.xlu0 %v11_v1, %s39_s0  ;;  %24 = vrot.lane.b32.xlu1 %v23_v2, %s40_s8  ;;  %v17_v4 = vld [vmem:[#allocation1 + $0x2] sm:$0x1]   ;;  %9 = vst.msk [vmem:[#allocation0] sm:$0x1] %vm8_vm0, %v7_v3  }
   0xe   :  { %18 = vrot.lane.b32.xlu0 %v17_v4, %s41_s9 }
  0x7c   :  { %v13_v5 = vpop.permute.xlu0 %12   ;;  %v25_v6 = vpop.permute.xlu1 %24  }
  0x7d   :  { %15 = vst.msk [vmem:[#allocation0] sm:$0x1] %vm14_vm1, %v13_v5  }
  0x80   :  { %v19_v7 = vpop.permute.xlu0 %18  }
  0x81   :  { %21 = vst.msk [vmem:[#allocation0] sm:$0x1] %vm20_vm2, %v19_v7  }
  0x82   :  { %27 = vst.msk [vmem:[#allocation0] sm:$0x1] %vm26_vm3, %v25_v6  }
  0x89   :  { %v32_v8 = vld [vmem:[#allocation0] sm:$0x1] }
  0x8a   :  { %35 = vst [vmem:[%s59_s1] sm:$0x1] %v32_v8 }

// kernel: deconvx2_res_forward.2
= control target key start
LH: loop header
LB: loop body
LE: loop exit
PB: predicated region body
PF: predicated region fallthrough
CT: control target
= control target key end

     0   :  { %s4917_s15 = smov 0   ;;  %s4919_s16 = smov 0   ;;  %s6677_s0 = inlined_call_operand.vmem [shape: f32[2,18,18,128], index: 0, kind: input, shape index: {}]   ;;  %s6678_s1 = inlined_call_operand.vmem [shape: f32[9,128,128], index: 1, kind: input, shape index: {}]   ;;  %s6679_s2 = inlined_call_operand.vmem [shape: f32[1,128], index: 2, kind: input, shape index: {}]   ;;  %s6680_s3 = inlined_call_operand.vmem [shape: f32[2,16,16,128], index: 3, kind: output, shape index: {0}]   ;;  %s6681_s4 = inlined_call_operand.vmem [shape: f32[2,2,128], index: 4, kind: output, shape index: {1}]  }
   0x1   :  { %s4921_s17 = smov 0  }
   0x2 LB: > { %s27_s18 = sadd.s32 1, %s4886_s16  ;;  %p3475_p0 = scmp.ge.s32.totalorder %s4890_s17, 1  ;;  %s4890_s17 = sphi %s4921_s17, %s15_s17   ;;  %s4886_s16 = sphi %s4919_s16, %s6949_s16   ;;  %s4882_s15 = sphi %s4917_s15, %s6948_s15  }
   0x3   : > { %p29_p1 = scmp.ge.s32.totalorder %s27_s18, 2  ;;  %p147_p2 = scmp.lt.s32.totalorder %s4890_s17, 3 }
   0x5   : > { %s6951_s18 = smov (%p29_p1, %s27_s18), 0  ;;  %p148_p3 = pnand %p3475_p0, %p147_p2 }
   0x7   : > { %151 = sbr.rel (%p148_p3) target bundleno = 603 (0x25b), region = 28 }
   0xc   : > { %p177_p4 = scmp.lt.s32.totalorder %s4882_s15, 1  ;;  %s195_s19 = smul.u32 432, %s4882_s15 }
   0xe   : > { %s6953_s15 = smov (!%p177_p4, %s4882_s15), 1  ;;  %s4938_s22 = scalar_lea.vmem %s6677_s0, %s195_s19 }
   0xf   : > { %s3629_s23 = sshll.u32 %s6953_s15, 8  ;;  %s3478_s24 = sshll.u32 %s6953_s15, 1  ;;  %v270_v0 = vld [vmem:[%s4938_s22] sm:$0xff]  ;;  %v272_v1 = vld [vmem:[%s4938_s22 + $0x8] sm:$0xff]  ;;  %v274_v2 = vld [vmem:[%s4938_s22 + $0x18] sm:$0xff] }
  0x10   : > { %s4946_s27 = scalar_lea.vmem %s6680_s3, %s3629_s23  ;;  %s4951_s30 = scalar_lea.vmem %s6681_s4, %s3478_s24  ;;  %271 = vst [vmem:[#allocation2 + $0x108] sm:$0xff] %v270_v0  ;;  %273 = vst [vmem:[#allocation2 + $0x138] sm:$0xff] %v272_v1  ;;  %v276_v3 = vld [vmem:[%s4938_s22 + $0x20] sm:$0xff]  ;;  %v278_v4 = vld [vmem:[%s4938_s22 + $0x30] sm:$0xff] }
  0x11   : > { %275 = vst [vmem:[#allocation2 + $0x18] sm:$0xff] %v274_v2  ;;  %v280_v5 = vld [vmem:[%s4938_s22 + $0x38] sm:$0xff]  ;;  %277 = vst [vmem:[#allocation2 + $0x68] sm:$0xff] %v276_v3  ;;  %v282_v6 = vld [vmem:[%s4938_s22 + $0x48] sm:$0xff] }
  0x12   : > { %279 = vst [vmem:[#allocation2 + $0xd0] sm:$0xff] %v278_v4  ;;  %281 = vst [vmem:[#allocation2 + $0x28] sm:$0xff] %v280_v5  ;;  %v284_v7 = vld [vmem:[%s4938_s22 + $0x50] sm:$0xff]  ;;  %v286_v8 = vld [vmem:[%s4938_s22 + $0x60] sm:$0xff] }
  0x13   : > { %283 = vst [vmem:[#allocation2 + $0x60] sm:$0xff] %v282_v6  ;;  %285 = vst [vmem:[#allocation2 + $0x118] sm:$0xff] %v284_v7  ;;  %v288_v9 = vld [vmem:[%s4938_s22 + $0x68] sm:$0xff]  ;;  %v290_v10 = vld [vmem:[%s4938_s22 + $0x78] sm:$0xff] }
  0x14   : > { %287 = vst [vmem:[#allocation2 + $0x188] sm:$0xff] %v286_v8  ;;  %v292_v11 = vld [vmem:[%s4938_s22 + $0x80] sm:$0xff]  ;;  %289 = vst [vmem:[#allocation2 + $0x198] sm:$0xff] %v288_v9  ;;  %v294_v12 = vld [vmem:[%s4938_s22 + $0x90] sm:$0xff] }
  0x15   : > { %291 = vst [vmem:[#allocation2 + $0xd8] sm:$0xff] %v290_v10  ;;  %293 = vst [vmem:[#allocation2 + $0x1a0] sm:$0xff] %v292_v11  ;;  %v296_v13 = vld [vmem:[%s4938_s22 + $0x98] sm:$0xff]  ;;  %v298_v14 = vld [vmem:[%s4938_s22 + $0xa8] sm:$0xff] }
  0x16   : > { %295 = vst [vmem:[#allocation2 + $0x88] sm:$0xff] %v294_v12  ;;  %297 = vst [vmem:[#allocation2 + $0x180] sm:$0xff] %v296_v13  ;;  %v300_v15 = vld [vmem:[%s4938_s22 + $0xb0] sm:$0xff]  ;;  %v302_v16 = vld [vmem:[%s4938_s22 + $0xc0] sm:$0xff] }
  0x17   : > { %299 = vst [vmem:[#allocation2 + $0x80] sm:$0xff] %v298_v14  ;;  %v304_v17 = vld [vmem:[%s4938_s22 + $0xc8] sm:$0xff]  ;;  %301 = vst [vmem:[#allocation2 + $0x140] sm:$0xff] %v300_v15  ;;  %v306_v18 = vld [vmem:[%s4938_s22 + $0xd8] sm:$0xff] }
  0x18   : > { %303 = vst [vmem:[#allocation2 + $0x130] sm:$0xff] %v302_v16  ;;  %305 = vst [vmem:[#allocation2 + $0x40] sm:$0xff] %v304_v17  ;;  %v308_v19 = vld [vmem:[%s4938_s22 + $0xe0] sm:$0xff]  ;;  %v310_v20 = vld [vmem:[%s4938_s22 + $0xf0] sm:$0xff] }
  0x19   : > { %307 = vst [vmem:[#allocation2 + $0x58] sm:$0xff] %v306_v18  ;;  %309 = vst [vmem:[#allocation2 + $0xb0] sm:$0xff] %v308_v19  ;;  %v312_v21 = vld [vmem:[%s4938_s22 + $0xf8] sm:$0xff]  ;;  %v314_v22 = vld [vmem:[%s4938_s22 + $0x108] sm:$0xff] }
  0x1a   : > { %311 = vst [vmem:[#allocation2 + $0x190] sm:$0xff] %v310_v20  ;;  %v316_v23 = vld [vmem:[%s4938_s22 + $0x110] sm:$0xff]  ;;  %313 = vst [vmem:[#allocation2 + $0xb8] sm:$0xff] %v312_v21  ;;  %v318_v24 = vld [vmem:[%s4938_s22 + $0x120] sm:$0xff] }
  0x1b   : > { %315 = vst [vmem:[#allocation2 + $0xe0] sm:$0xff] %v314_v22  ;;  %317 = vst [vmem:[#allocation2 + $0x158] sm:$0xff] %v316_v23  ;;  %v320_v25 = vld [vmem:[%s4938_s22 + $0x128] sm:$0xff]  ;;  %v322_v26 = vld [vmem:[%s4938_s22 + $0x138] sm:$0xff] }
  0x1c   : > { %319 = vst [vmem:[#allocation2 + $0xc0] sm:$0xff] %v318_v24  ;;  %321 = vst [vmem:[#allocation2 + $0xf8] sm:$0xff] %v320_v25  ;;  %v324_v27 = vld [vmem:[%s4938_s22 + $0x140] sm:$0xff]  ;;  %v326_v28 = vld [vmem:[%s4938_s22 + $0x150] sm:$0xff] }
  0x1d   : > { %323 = vst [vmem:[#allocation2 + $0x38] sm:$0xff] %v322_v26  ;;  %v328_v29 = vld [vmem:[%s4938_s22 + $0x158] sm:$0xff]  ;;  %325 = vst [vmem:[#allocation2] sm:$0xff] %v324_v27  ;;  %v330_v30 = vld [vmem:[%s4938_s22 + $0x168] sm:$0xff] }
  0x1e   : > { %327 = vst [vmem:[#allocation2 + $0xe8] sm:$0xff] %v326_v28  ;;  %329 = vst [vmem:[#allocation2 + $0x110] sm:$0xff] %v328_v29  ;;  %v332_v31 = vld [vmem:[%s4938_s22 + $0x170] sm:$0xff]  ;;  %v334_v32 = vld [vmem:[%s4938_s22 + $0x180] sm:$0xff] }
  0x1f   : > { %331 = vst [vmem:[#allocation2 + $0x1a8] sm:$0xff] %v330_v30  ;;  %333 = vst [vmem:[#allocation2 + $0x70] sm:$0xff] %v332_v31  ;;  %v336_v33 = vld [vmem:[%s4938_s22 + $0x188] sm:$0xff]  ;;  %v338_v34 = vld [vmem:[%s4938_s22 + $0x198] sm:$0xff] }
  0x20   : > { %335 = vst [vmem:[#allocation2 + $0x78] sm:$0xff] %v334_v32  ;;  %v340_v35 = vld [vmem:[%s4938_s22 + $0x1a0] sm:$0xff]  ;;  %337 = vst [vmem:[#allocation2 + $0xf0] sm:$0xff] %v336_v33  ;;  %v3479_v36 = vld [vmem:[%s4938_s22 + $0x10] sm:$0x3] }
  0x21   : > { %339 = vst [vmem:[#allocation2 + $0x100] sm:$0xff] %v338_v34  ;;  %341 = vst [vmem:[#allocation2 + $0x178] sm:$0xff] %v340_v35  ;;  %v3480_v37 = vld [vmem:[%s4938_s22 + $0x28] sm:$0x3]  ;;  %v3481_v38 = vld [vmem:[%s4938_s22 + $0x40] sm:$0x3] }
  0x22   : > { %353 = vst [vmem:[#allocation2 + $0x120] sm:$0x3] %v3479_v36  ;;  %355 = vst [vmem:[#allocation2 + $0x160] sm:$0x3] %v3480_v37  ;;  %v3482_v39 = vld [vmem:[%s4938_s22 + $0x58] sm:$0x3] }
  0x23   : > { %357 = vst [vmem:[#allocation2 + $0x128] sm:$0x3] %v3481_v38  ;;  %v3483_v40 = vld [vmem:[%s4938_s22 + $0x70] sm:$0x3]  ;;  %v3484_v41 = vld [vmem:[%s4938_s22 + $0x88] sm:$0x3] }
  0x24   : > { %359 = vst [vmem:[#allocation2 + $0x168] sm:$0x3] %v3482_v39  ;;  %361 = vst [vmem:[#allocation2 + $0xa0] sm:$0x3] %v3483_v40  ;;  %v3485_v42 = vld [vmem:[%s4938_s22 + $0xa0] sm:$0x3] }
  0x25   : > { %363 = vst [vmem:[#allocation2 + $0x48] sm:$0x3] %v3484_v41  ;;  %v3486_v43 = vld [vmem:[%s4938_s22 + $0xb8] sm:$0x3]  ;;  %v3487_v44 = vld [vmem:[%s4938_s22 + $0xd0] sm:$0x3] }
  0x26   : > { %365 = vst [vmem:[#allocation2 + $0x170] sm:$0x3] %v3485_v42  ;;  %367 = vst [vmem:[#allocation2 + $0x20] sm:$0x3] %v3486_v43  ;;  %v3488_v45 = vld [vmem:[%s4938_s22 + $0xe8] sm:$0x3] }
  0x27   : > { %369 = vst [vmem:[#allocation2 + $0x8] sm:$0x3] %v3487_v44  ;;  %v3489_v46 = vld [vmem:[%s4938_s22 + $0x100] sm:$0x3]  ;;  %v3490_v47 = vld [vmem:[%s4938_s22 + $0x118] sm:$0x3] }
  0x28   : > { %371 = vst [vmem:[#allocation2 + $0x90] sm:$0x3] %v3488_v45  ;;  %373 = vst [vmem:[#allocation2 + $0xa8] sm:$0x3] %v3489_v46  ;;  %v3491_v48 = vld [vmem:[%s4938_s22 + $0x130] sm:$0x3] }
  0x29   : > { %375 = vst [vmem:[#allocation2 + $0x98] sm:$0x3] %v3490_v47  ;;  %v3492_v49 = vld [vmem:[%s4938_s22 + $0x148] sm:$0x3]  ;;  %v3493_v50 = vld [vmem:[%s4938_s22 + $0x160] sm:$0x3] }
  0x2a   : > { %377 = vst [vmem:[#allocation2 + $0x50] sm:$0x3] %v3491_v48  ;;  %379 = vst [vmem:[#allocation2 + $0x30] sm:$0x3] %v3492_v49  ;;  %v3494_v51 = vld [vmem:[%s4938_s22 + $0x178] sm:$0x3] }
  0x2b   : > { %381 = vst [vmem:[#allocation2 + $0xc8] sm:$0x3] %v3493_v50  ;;  %v3495_v52 = vld [vmem:[%s4938_s22 + $0x190] sm:$0x3]  ;;  %v3496_v53 = vld [vmem:[%s4938_s22 + $0x1a8] sm:$0x3] }
  0x2c   : > { %383 = vst [vmem:[#allocation2 + $0x150] sm:$0x3] %v3494_v51  ;;  %385 = vst [vmem:[#allocation2 + $0x10] sm:$0x3] %v3495_v52 }
  0x2d   : > { %387 = vst [vmem:[#allocation2 + $0x148] sm:$0x3] %v3496_v53 }
  0x2e   : > { %391 = vsyncadd [#allocation3], 5184 }
  0x2f   : > { %4878 = dma.done.wait [#allocation3], 5184 }
  0x30   : > { %4879 = vsyncadd [#allocation3], 4294962112  ;;  %v3512_v54 = vld [vmem:[%s6678_s1 + $0xf8] sm:$0xff]  ;;  %v3511_v55 = vld [vmem:[%s6678_s1 + $0xf0] sm:$0xff]  ;;  %vm514_vm0 = vcmask 1046528   ;;  %vm1094_vm1 = vcmask 1045504  }
  0x31   : > { %4782 = vmatprep.subr.mxu1 %v3512_v54  ;;  %4062 = vmatprep.subr.mxu0 %v3512_v54  ;;  %v3510_v56 = vld [vmem:[%s6678_s1 + $0xe8] sm:$0xff]  ;;  %v3509_v57 = vld [vmem:[%s6678_s1 + $0xe0] sm:$0xff]  ;;  %v3508_v58 = vld [vmem:[%s6678_s1 + $0xd8] sm:$0xff]  ;;  %vm3336_vm2 = vcmask 1040384  }
  0x32   : > { %4798 = vmatpush3.msra.mxu1 %v3512_v54  ;;  %4063 = vmatpush3.msra.mxu0 %v3512_v54  ;;  %v3507_v59 = vld [vmem:[%s6678_s1 + $0xd0] sm:$0xff]  ;;  %v3506_v60 = vld [vmem:[%s6678_s1 + $0xc8] sm:$0xff]  ;;  %v3505_v61 = vld [vmem:[%s6678_s1 + $0xc0] sm:$0xff] }
  0x33   : > { %4783 = vmatprep.subr.mxu1 %v3511_v55  ;;  %4064 = vmatprep.subr.mxu0 %v3511_v55  ;;  %v3504_v62 = vld [vmem:[%s6678_s1 + $0xb8] sm:$0xff]  ;;  %v3503_v63 = vld [vmem:[%s6678_s1 + $0xb0] sm:$0xff]  ;;  %v3502_v0 = vld [vmem:[%s6678_s1 + $0xa8] sm:$0xff] }
  0x34   : > { %4799 = vmatpush3.msra.mxu1 %v3511_v55  ;;  %4065 = vmatpush3.msra.mxu0 %v3511_v55  ;;  %v3501_v1 = vld [vmem:[%s6678_s1 + $0xa0] sm:$0xff]  ;;  %v3500_v2 = vld [vmem:[%s6678_s1 + $0x98] sm:$0xff]  ;;  %v5043_v3 = vld [vmem:[#allocation2 + $0x130] sm:$0xff] }
  0x35   : > { %4784 = vmatprep.subr.mxu1 %v3510_v56  ;;  %4066 = vmatprep.subr.mxu0 %v3510_v56  ;;  %v5045_v4 = vld [vmem:[#allocation2 + $0x40] sm:$0xff]  ;;  %v5047_v5 = vld [vmem:[#allocation2 + $0x108] sm:$0xff]  ;;  %v5049_v6 = vld [vmem:[#allocation2 + $0x138] sm:$0xff]  ;;  %v555_v9 = vrot.slane %v5043_v3, 1 }
  0x36   : > { %4800 = vmatpush3.msra.mxu1 %v3510_v56  ;;  %4067 = vmatpush3.msra.mxu0 %v3510_v56  ;;  %v3499_v7 = vld [vmem:[%s6678_s1 + $0x90] sm:$0xff]  ;;  %v5054_v8 = vld [vmem:[#allocation2 + $0x8] sm:$0x3]  ;;  %v556_v10 = vrot.slane %v5045_v4, 1  ;;  %v5058_v11 = vld [vmem:[#allocation2 + $0x120] sm:$0x3] }
  0x37   : > { %4785 = vmatprep.subr.mxu1 %v3509_v57  ;;  %4068 = vmatprep.subr.mxu0 %v3509_v57  ;;  %v3498_v12 = vld [vmem:[%s6678_s1 + $0x88] sm:$0xff]  ;;  %v515_v13 = vrot.slane %v5047_v5, 1  ;;  %v516_v14 = vrot.slane %v5049_v6, 1  ;;  %v558_v15 = vrot.slane %v5054_v8, 1  ;;  %v5066_v16 = vld [vmem:[#allocation2 + $0x58] sm:$0xff]  ;;  %v5068_v17 = vld [vmem:[#allocation2 + $0xb0] sm:$0xff] }
  0x38   : > { %4801 = vmatpush3.msra.mxu1 %v3509_v57  ;;  %4069 = vmatpush3.msra.mxu0 %v3509_v57  ;;  %v3497_v18 = vld [vmem:[%s6678_s1 + $0x80] sm:$0xff]  ;;  %v518_v19 = vrot.slane %v5058_v11, 1  ;;  %v5075_v20 = vsel %vm514_vm0, %v555_v9, %v556_v10  ;;  %v5077_v21 = vld [vmem:[#allocation2 + $0x18] sm:$0xff]  ;;  %v5079_v22 = vld [vmem:[#allocation2 + $0x68] sm:$0xff]  ;;  %v560_v25 = vrot.slane %v5066_v16, 1  ;;  %v561_v26 = vrot.slane %v5068_v17, 1 }
  0x39   : > { %4786 = vmatprep.subr.mxu1 %v3508_v58  ;;  %4070 = vmatprep.subr.mxu0 %v3508_v58  ;;  %6747 = vst [vmem:[#allocation6_spill] sm:$0xff] %v5075_v20  ;;  %v5081_v23 = vld [vmem:[#allocation2 + $0x90] sm:$0x3]  ;;  %v517_v24 = vsel %vm514_vm0, %v515_v13, %v516_v14  ;;  %v5087_v27 = vsel %vm514_vm0, %v556_v10, %v558_v15  ;;  %v465_v28 = vld [vmem:[%s6678_s1 + $0x78] sm:$0xff]  ;;  %v5092_v29 = vld [vmem:[#allocation2 + $0x160] sm:$0x3] }
  0x3a   : > { %4802 = vmatpush3.msra.mxu1 %v3508_v58  ;;  %4071 = vmatpush3.msra.mxu0 %v3508_v58  ;;  %6748 = vst [vmem:[#allocation7_spill] sm:$0xff] %v5087_v27  ;;  %v519_v30 = vsel %vm514_vm0, %v516_v14, %v518_v19  ;;  %v3528_v31 = vld [vmem:[%s6678_s1 + $0x178] sm:$0xff]  ;;  %v520_v32 = vrot.slane %v5077_v21, 1  ;;  %v521_v33 = vrot.slane %v5079_v22, 1  ;;  %v563_v34 = vrot.slane %v5081_v23, 1  ;;  %v464_v35 = vld [vmem:[%s6678_s1 + $0x70] sm:$0xff] }
  0x3b   : > { %4787 = vmatprep.subr.mxu1 %v3507_v59  ;;  %4072 = vmatprep.subr.mxu0 %v3507_v59  ;;  %v5105_v36 = vld [vmem:[#allocation2 + $0x190] sm:$0xff]  ;;  %v5107_v37 = vld [vmem:[#allocation2 + $0xb8] sm:$0xff]  ;;  %v5111_v38 = vsel %vm514_vm0, %v560_v25, %v561_v26  ;;  %v523_v40 = vrot.slane %v5092_v29, 1  ;;  %v5119_v42 = vld [vmem:[#allocation2 + $0x28] sm:$0xff] }
  0x3c   : > { %4803 = vmatpush3.msra.mxu1 %v3507_v59  ;;  %4073 = vmatpush3.msra.mxu0 %v3507_v59  ;;  %6749 = vst [vmem:[#allocation8_spill] sm:$0xff] %v5111_v38  ;;  %v3527_v39 = vld [vmem:[%s6678_s1 + $0x170] sm:$0xff]  ;;  %v5121_v43 = vld [vmem:[#allocation2 + $0xa8] sm:$0x3]  ;;  %v5124_v44 = vsel %vm514_vm0, %v520_v32, %v521_v33  ;;  %v5127_v45 = vsel %vm514_vm0, %v561_v26, %v563_v34  ;;  %v565_v46 = vrot.slane %v5105_v36, 1  ;;  %v566_v47 = vrot.slane %v5107_v37, 1 }
  0x3d   : > { %4788 = vmatprep.subr.mxu1 %v3506_v60  ;;  %4074 = vmatprep.subr.mxu0 %v3506_v60  ;;  %v5117_v41 = vld [vmem:[#allocation2 + $0xd0] sm:$0xff]  ;;  %6750 = vst [vmem:[#allocation9_spill] sm:$0xff] %v5127_v45  ;;  %v463_v48 = vld [vmem:[%s6678_s1 + $0x68] sm:$0xff]  ;;  %v5138_v50 = vsel %vm514_vm0, %v521_v33, %v523_v40  ;;  %v526_v53 = vrot.slane %v5119_v42, 1  ;;  %v568_v54 = vrot.slane %v5121_v43, 1  ;;  %v462_v55 = vld [vmem:[%s6678_s1 + $0x60] sm:$0xff] }
  0x3e   : > { %4804 = vmatpush3.msra.mxu1 %v3506_v60  ;;  %4075 = vmatpush3.msra.mxu0 %v3506_v60  ;;  %v5135_v49 = vld [vmem:[#allocation2 + $0x128] sm:$0x3]  ;;  %6751 = vst [vmem:[#allocation10_spill] sm:$0xff] %v5138_v50  ;;  %v525_v52 = vrot.slane %v5117_v41, 1  ;;  %v5151_v56 = vld [vmem:[#allocation2 + $0xe0] sm:$0xff]  ;;  %v5153_v57 = vld [vmem:[#allocation2 + $0x158] sm:$0xff]  ;;  %v5156_v58 = vsel %vm514_vm0, %v565_v46, %v566_v47 }
  0x3f   : > { %4789 = vmatprep.subr.mxu1 %v3505_v61  ;;  %4076 = vmatprep.subr.mxu0 %v3505_v61  ;;  %v3526_v51 = vld [vmem:[%s6678_s1 + $0x168] sm:$0xff]  ;;  %6752 = vst [vmem:[#allocation11_spill] sm:$0xff] %v5156_v58  ;;  %v3525_v59 = vld [vmem:[%s6678_s1 + $0x160] sm:$0xff]  ;;  %v528_v60 = vrot.slane %v5135_v49, 1  ;;  %v461_v9 = vld [vmem:[%s6678_s1 + $0x58] sm:$0xff] }
  0x40   : > { %4805 = vmatpush3.msra.mxu1 %v3505_v61  ;;  %4077 = vmatpush3.msra.mxu0 %v3505_v61  ;;  %v5163_v61 = vld [vmem:[#allocation2 + $0x60] sm:$0xff]  ;;  %v5181_v10 = vld [vmem:[#allocation2 + $0x168] sm:$0x3]  ;;  %v3524_v13 = vld [vmem:[%s6678_s1 + $0x158] sm:$0xff] }
  0x41   : > { %4790 = vmatprep.subr.mxu1 %v3504_v62  ;;  %4078 = vmatprep.subr.mxu0 %v3504_v62  ;;  %v530_v14 = vrot.slane %v5163_v61, 1  ;;  %v460_v19 = vld [vmem:[%s6678_s1 + $0x50] sm:$0xff]  ;;  %v5199_v25 = vld [vmem:[#allocation2 + $0xf8] sm:$0xff]  ;;  %v459_v46 = vld [vmem:[%s6678_s1 + $0x48] sm:$0xff] }
  0x42   : > { %4806 = vmatpush3.msra.mxu1 %v3504_v62  ;;  %4079 = vmatpush3.msra.mxu0 %v3504_v62  ;;  %v5165_v62 = vld [vmem:[#allocation2 + $0x118] sm:$0xff]  ;;  %v5213_v33 = vld [vmem:[#allocation2 + $0x50] sm:$0x3]  ;;  %v576_v40 = vrot.slane %v5199_v25, 1 }
  0x43   : > { %4791 = vmatprep.subr.mxu1 %v3503_v63  ;;  %4080 = vmatprep.subr.mxu0 %v3503_v63  ;;  %v531_v15 = vrot.slane %v5165_v62, 1  ;;  %v5211_v32 = vld [vmem:[#allocation2 + $0x198] sm:$0xff] }
  0x44   : > { %4807 = vmatpush3.msra.mxu1 %v3503_v63  ;;  %4081 = vmatpush3.msra.mxu0 %v3503_v63  ;;  %v5167_v63 = vld [vmem:[#allocation2 + $0x98] sm:$0x3] }
  0x45   : > { %4792 = vmatprep.subr.mxu1 %v3502_v0  ;;  %4082 = vmatprep.subr.mxu0 %v3502_v0  ;;  %v5216_v34 = vsel %vm514_vm0, %v530_v14, %v531_v15  ;;  %v5257_v14 = vld [vmem:[#allocation2 + $0x1a0] sm:$0xff] }
  0x46   : > { %4808 = vmatpush3.msra.mxu1 %v3502_v0  ;;  %4083 = vmatpush3.msra.mxu0 %v3502_v0  ;;  %v5170_v0 = vsel %vm514_vm0, %v525_v52, %v526_v53  ;;  %6757 = vst [vmem:[#allocation16_spill] sm:$0xff] %v5216_v34 }
  0x47   : > { %4793 = vmatprep.subr.mxu1 %v3501_v1  ;;  %4084 = vmatprep.subr.mxu0 %v3501_v1  ;;  %6753 = vst [vmem:[#allocation12_spill] sm:$0xff] %v5170_v0 }
  0x48   : > { %4809 = vmatpush3.msra.mxu1 %v3501_v1  ;;  %4085 = vmatpush3.msra.mxu0 %v3501_v1  ;;  %v5173_v1 = vsel %vm514_vm0, %v566_v47, %v568_v54  ;;  %v5227_v47 = vld [vmem:[#allocation2 + $0xa0] sm:$0x3]  ;;  %v578_v54 = vrot.slane %v5213_v33, 1 }
  0x49   : > { %4794 = vmatprep.subr.mxu1 %v3500_v2  ;;  %4086 = vmatprep.subr.mxu0 %v3500_v2  ;;  %6754 = vst [vmem:[#allocation13_spill] sm:$0xff] %v5173_v1 }
  0x4a   : > { %4810 = vmatpush3.msra.mxu1 %v3500_v2  ;;  %4087 = vmatpush3.msra.mxu0 %v3500_v2  ;;  %v570_v2 = vrot.slane %v5151_v56, 1 }
  0x4b   : > { %4795 = vmatprep.subr.mxu1 %v3499_v7  ;;  %4088 = vmatprep.subr.mxu0 %v3499_v7 }
  0x4c   : > { %4811 = vmatpush3.msra.mxu1 %v3499_v7  ;;  %4089 = vmatpush3.msra.mxu0 %v3499_v7  ;;  %v571_v7 = vrot.slane %v5153_v57, 1 }
  0x4d   : > { %4796 = vmatprep.subr.mxu1 %v3498_v12  ;;  %4090 = vmatprep.subr.mxu0 %v3498_v12 }
  0x4e   : > { %4812 = vmatpush3.msra.mxu1 %v3498_v12  ;;  %4091 = vmatpush3.msra.mxu0 %v3498_v12  ;;  %v5184_v12 = vsel %vm514_vm0, %v526_v53, %v528_v60  ;;  %v5202_v26 = vsel %vm514_vm0, %v570_v2, %v571_v7  ;;  %v536_v53 = vrot.slane %v5211_v32, 1  ;;  %v5245_v60 = vld [vmem:[#allocation2] sm:$0xff] }
  0x4f   : > { %4797 = vmatprep.subr.mxu1 %v3497_v18  ;;  %4092 = vmatprep.subr.mxu0 %v3497_v18  ;;  %6755 = vst [vmem:[#allocation14_spill] sm:$0xff] %v5184_v12  ;;  %6756 = vst [vmem:[#allocation15_spill] sm:$0xff] %v5202_v26 }
  0x50   : > { %4813 = vmatpush3.msra.mxu1 %v3497_v18  ;;  %4118 = vmatprep.mubr.f32.mxu1 %v5075_v20  ;;  %v5319_v20 = vld [vmem:[#allocation2 + $0x170] sm:$0x3] }
  0x51   : > { %4093 = vmatpush3.msra.mxu0 %v3497_v18  ;;  %4094 = vmatprep.mubr.f32.mxu0 %v517_v24  ;;  %v573_v18 = vrot.slane %v5167_v63, 1  ;;  %v5197_v24 = vld [vmem:[#allocation2 + $0xc0] sm:$0xff] }
  0x52   : > { %4119 = vmatmul.mubr.f32.vlgmr.msra.gmra.mxu1 %v5087_v27  ;;  %4142 = vmatprep.subr.mxu1 %v465_v28 }
  0x53   : > { %4095 = vmatmul.mubr.f32.vlgmr.msra.gmra.mxu0 %v519_v30  ;;  %4143 = vmatpush3.msra.mxu1 %v465_v28  ;;  %v3523_v28 = vld [vmem:[%s6678_s1 + $0x150] sm:$0xff]  ;;  %v533_v30 = vrot.slane %v5181_v10, 1 }
  0x54   : > { %4222 = vmatprep.subr.mxu0 %v3528_v31  ;;  %4144 = vmatprep.subr.mxu1 %v464_v35 }
  0x55   : > { %4223 = vmatpush3.msra.mxu0 %v3528_v31  ;;  %4121 = vmatprep.mubr.f32.mxu1 %v5111_v38  ;;  %v5209_v31 = vld [vmem:[#allocation2 + $0x188] sm:$0xff] }
  0x56   : > { %4145 = vmatpush3.msra.mxu1 %v464_v35  ;;  %4224 = vmatprep.subr.mxu0 %v3527_v39  ;;  %v5219_v35 = vsel %vm514_vm0, %v571_v7, %v573_v18  ;;  %v535_v52 = vrot.slane %v5209_v31, 1  ;;  %v3521_v7 = vld [vmem:[%s6678_s1 + $0x140] sm:$0xff] }
  0x57   : > { %4097 = vmatprep.mubr.f32.mxu0 %v5124_v44  ;;  %4122 = vmatmul.mubr.f32.gmra.mxu1 %v5127_v45  ;;  %6758 = vst [vmem:[#allocation17_spill] sm:$0xff] %v5219_v35  ;;  %v5305_v45 = vld [vmem:[#allocation2 + $0xc8] sm:$0x3] }
  0x58   : > { %4146 = vmatprep.subr.mxu1 %v463_v48  ;;  %4225 = vmatpush3.msra.mxu0 %v3527_v39  ;;  %v575_v39 = vrot.slane %v5197_v24, 1  ;;  %v5262_v18 = vsel %vm514_vm0, %v535_v52, %v536_v53 }
  0x59   : > { %4098 = vmatmul.mubr.f32.gmra.mxu0 %v5138_v50  ;;  %4147 = vmatpush3.msra.mxu1 %v463_v48  ;;  %v5230_v48 = vsel %vm514_vm0, %v531_v15, %v533_v30  ;;  %v5259_v15 = vld [vmem:[#allocation2 + $0x30] sm:$0x3]  ;;  %6761 = vst [vmem:[#allocation20_spill] sm:$0xff] %v5262_v18  ;;  %v581_v30 = vrot.slane %v5245_v60, 1 }
  0x5a   : > { %4226 = vmatprep.subr.mxu0 %v3526_v51  ;;  %4148 = vmatprep.subr.mxu1 %v462_v55  ;;  %6759 = vst [vmem:[#allocation18_spill] sm:$0xff] %v5230_v48  ;;  %v5248_v2 = vsel %vm514_vm0, %v575_v39, %v576_v40  ;;  %v457_v39 = vld [vmem:[%s6678_s1 + $0x38] sm:$0xff] }
  0x5b   : > { %4227 = vmatpush3.msra.mxu0 %v3526_v51  ;;  %4124 = vmatprep.mubr.f32.mxu1 %v5156_v58  ;;  %v3522_v51 = vld [vmem:[%s6678_s1 + $0x148] sm:$0xff]  ;;  %6760 = vst [vmem:[#allocation19_spill] sm:$0xff] %v5248_v2  ;;  %v5303_v58 = vld [vmem:[#allocation2 + $0x180] sm:$0xff] }
  0x5c   : > { %4149 = vmatpush3.msra.mxu1 %v462_v55  ;;  %4228 = vmatprep.subr.mxu0 %v3525_v59  ;;  %v458_v55 = vld [vmem:[%s6678_s1 + $0x40] sm:$0xff] }
  0x5d   : > { %4100 = vmatprep.mubr.f32.mxu0 %v5170_v0  ;;  %4125 = vmatmul.mubr.f32.gmra.mxu1 %v5173_v1 }
  0x5e   : > { %4150 = vmatprep.subr.mxu1 %v461_v9  ;;  %4229 = vmatpush3.msra.mxu0 %v3525_v59  ;;  %v5243_v59 = vld [vmem:[#allocation2 + $0x38] sm:$0xff] }
  0x5f   : > { %4101 = vmatmul.mubr.f32.gmra.mxu0 %v5184_v12  ;;  %4151 = vmatpush3.msra.mxu1 %v461_v9  ;;  %v538_v9 = vrot.slane %v5227_v47, 1 }
  0x60   : > { %4230 = vmatprep.subr.mxu0 %v3524_v13  ;;  %4152 = vmatprep.subr.mxu1 %v460_v19 }
  0x61   : > { %4231 = vmatpush3.msra.mxu0 %v3524_v13  ;;  %4127 = vmatprep.mubr.f32.mxu1 %v5202_v26  ;;  %v5255_v13 = vld [vmem:[#allocation2 + $0xd8] sm:$0xff]  ;;  %v5276_v52 = vsel %vm514_vm0, %v536_v53, %v538_v9  ;;  %v5289_v53 = vld [vmem:[#allocation2 + $0xe8] sm:$0xff]  ;;  %v5291_v9 = vld [vmem:[#allocation2 + $0x110] sm:$0xff] }
  0x62   : > { %4153 = vmatpush3.msra.mxu1 %v460_v19  ;;  %4232 = vmatprep.subr.mxu0 %v3523_v28  ;;  %v5265_v19 = vsel %vm514_vm0, %v576_v40, %v578_v54  ;;  %6763 = vst [vmem:[#allocation22_spill] sm:$0xff] %v5276_v52  ;;  %v3520_v40 = vld [vmem:[%s6678_s1 + $0x138] sm:$0xff]  ;;  %v540_v54 = vrot.slane %v5255_v13, 1  ;;  %v3519_v26 = vld [vmem:[%s6678_s1 + $0x130] sm:$0xff]  ;;  %v585_v38 = vrot.slane %v5289_v53, 1  ;;  %v586_v27 = vrot.slane %v5291_v9, 1 }
  0x63   : > { %4103 = vmatprep.mubr.f32.mxu0 %v5216_v34  ;;  %4128 = vmatmul.mubr.f32.gmra.mxu1 %v5219_v35  ;;  %6762 = vst [vmem:[#allocation21_spill] sm:$0xff] %v5265_v19  ;;  %v5351_v34 = vld [vmem:[#allocation2 + $0x150] sm:$0x3] }
  0x64   : > { %4154 = vmatprep.subr.mxu1 %v459_v46  ;;  %4233 = vmatpush3.msra.mxu0 %v3523_v28  ;;  %v580_v28 = vrot.slane %v5243_v59, 1  ;;  %v593_v50 = vrot.slane %v5351_v34, 1 }
  0x65   : > { %4104 = vmatmul.mubr.f32.gmra.mxu0 %v5230_v48  ;;  %4155 = vmatpush3.msra.mxu1 %v459_v46  ;;  %v5273_v46 = vld [vmem:[#allocation2 + $0x48] sm:$0x3]  ;;  %v5349_v48 = vld [vmem:[#allocation2 + $0x140] sm:$0xff] }
  0x66   : > { %4234 = vmatprep.subr.mxu0 %v3522_v51  ;;  %4156 = vmatprep.subr.mxu1 %v458_v55  ;;  %v5294_v35 = vsel %vm514_vm0, %v580_v28, %v581_v30  ;;  %v543_v1 = vrot.slane %v5273_v46, 1 }
  0x67   : > { %4235 = vmatpush3.msra.mxu0 %v3522_v51  ;;  %4130 = vmatprep.mubr.f32.mxu1 %v5248_v2  ;;  %v541_v51 = vrot.slane %v5257_v14, 1  ;;  %v583_v2 = vrot.slane %v5259_v15, 1  ;;  %6764 = vst [vmem:[#allocation23_spill] sm:$0xff] %v5294_v35 }
  0x68   : > { %4157 = vmatpush3.msra.mxu1 %v458_v55  ;;  %4236 = vmatprep.subr.mxu0 %v3521_v7  ;;  %v456_v55 = vld [vmem:[%s6678_s1 + $0x30] sm:$0xff] }
  0x69   : > { %4106 = vmatprep.mubr.f32.mxu0 %v5262_v18  ;;  %4131 = vmatmul.mubr.f32.gmra.mxu1 %v5265_v19  ;;  %v5301_v19 = vld [vmem:[#allocation2 + $0x88] sm:$0xff]  ;;  %v5311_v28 = vsel %vm514_vm0, %v581_v30, %v583_v2  ;;  %v3517_v18 = vld [vmem:[%s6678_s1 + $0x120] sm:$0xff] }
  0x6a   : > { %4158 = vmatprep.subr.mxu1 %v457_v39  ;;  %4237 = vmatpush3.msra.mxu0 %v3521_v7  ;;  %v5308_v7 = vsel %vm514_vm0, %v540_v54, %v541_v51  ;;  %6766 = vst [vmem:[#allocation25_spill] sm:$0xff] %v5311_v28  ;;  %v5322_v54 = vsel %vm514_vm0, %v541_v51, %v543_v1  ;;  %v3518_v2 = vld [vmem:[%s6678_s1 + $0x128] sm:$0xff]  ;;  %v545_v30 = vrot.slane %v5301_v19, 1  ;;  %v5337_v51 = vld [vmem:[#allocation2 + $0x70] sm:$0xff] }
  0x6b   : > { %4107 = vmatmul.mubr.f32.gmra.mxu0 %v5276_v52  ;;  %4159 = vmatpush3.msra.mxu1 %v457_v39  ;;  %6765 = vst [vmem:[#allocation24_spill] sm:$0xff] %v5308_v7  ;;  %v455_v39 = vld [vmem:[%s6678_s1 + $0x28] sm:$0xff]  ;;  %6767 = vst [vmem:[#allocation26_spill] sm:$0xff] %v5322_v54  ;;  %v5340_v52 = vsel %vm514_vm0, %v585_v38, %v586_v27  ;;  %v591_v0 = vrot.slane %v5337_v51, 1 }
  0x6c   : > { %4238 = vmatprep.subr.mxu0 %v3520_v40  ;;  %4160 = vmatprep.subr.mxu1 %v456_v55  ;;  %v5335_v1 = vld [vmem:[#allocation2 + $0x1a8] sm:$0xff]  ;;  %6768 = vst [vmem:[#allocation27_spill] sm:$0xff] %v5340_v52 }
  0x6d   : > { %4239 = vmatpush3.msra.mxu0 %v3520_v40  ;;  %4133 = vmatprep.mubr.f32.mxu1 %v5294_v35  ;;  %v546_v40 = vrot.slane %v5303_v58, 1  ;;  %v588_v35 = vrot.slane %v5305_v45, 1  ;;  %v590_v12 = vrot.slane %v5335_v1, 1 }
  0x6e   : > { %4161 = vmatpush3.msra.mxu1 %v456_v55  ;;  %4240 = vmatprep.subr.mxu0 %v3519_v26  ;;  %v454_v55 = vld [vmem:[%s6678_s1 + $0x20] sm:$0xff] }
  0x6f   : > { %4109 = vmatprep.mubr.f32.mxu0 %v5308_v7  ;;  %4134 = vmatmul.mubr.f32.gmra.mxu1 %v5311_v28  ;;  %v548_v7 = vrot.slane %v5319_v20, 1  ;;  %v5347_v28 = vld [vmem:[#allocation2 + $0x80] sm:$0xff]  ;;  %v5354_v38 = vsel %vm514_vm0, %v545_v30, %v546_v40 }
  0x70   : > { %4162 = vmatprep.subr.mxu1 %v455_v39  ;;  %4241 = vmatpush3.msra.mxu0 %v3519_v26  ;;  %6769 = vst [vmem:[#allocation28_spill] sm:$0xff] %v5354_v38  ;;  %v5357_v26 = vsel %vm514_vm0, %v586_v27, %v588_v35  ;;  %v550_v27 = vrot.slane %v5347_v28, 1  ;;  %v551_v35 = vrot.slane %v5349_v48, 1 }
  0x71   : > { %4110 = vmatmul.mubr.f32.gmra.mxu0 %v5322_v54  ;;  %4163 = vmatpush3.msra.mxu1 %v455_v39  ;;  %6770 = vst [vmem:[#allocation29_spill] sm:$0xff] %v5357_v26  ;;  %v453_v39 = vld [vmem:[%s6678_s1 + $0x18] sm:$0xff]  ;;  %v5365_v54 = vld [vmem:[#allocation2 + $0x20] sm:$0x3]  ;;  %v5368_v30 = vsel %vm514_vm0, %v546_v40, %v548_v7  ;;  %v5382_v7 = vsel %vm514_vm0, %v590_v12, %v591_v0  ;;  %v451_v12 = vld [vmem:[%s6678_s1 + $0x8] sm:$0xff] }
  0x72   : > { %4242 = vmatprep.subr.mxu0 %v3518_v2  ;;  %4164 = vmatprep.subr.mxu1 %v454_v55  ;;  %6771 = vst [vmem:[#allocation30_spill] sm:$0xff] %v5382_v7  ;;  %v553_v40 = vrot.slane %v5365_v54, 1 }
  0x73   : > { %4243 = vmatpush3.msra.mxu0 %v3518_v2  ;;  %4136 = vmatprep.mubr.f32.mxu1 %v5340_v52  ;;  %v3516_v2 = vld [vmem:[%s6678_s1 + $0x118] sm:$0xff]  ;;  %v5390_v52 = vsel %vm514_vm0, %v550_v27, %v551_v35  ;;  %v1096_v27 = vrot.slane %v5049_v6, 2 }
  0x74   : > { %4165 = vmatpush3.msra.mxu1 %v454_v55  ;;  %4244 = vmatprep.subr.mxu0 %v3517_v18  ;;  %v452_v55 = vld [vmem:[%s6678_s1 + $0x10] sm:$0xff] }
  0x75   : > { %4112 = vmatprep.mubr.f32.mxu0 %v5354_v38  ;;  %4137 = vmatmul.mubr.f32.gmra.mxu1 %v5357_v26  ;;  %v3515_v26 = vld [vmem:[%s6678_s1 + $0x110] sm:$0xff]  ;;  %v5393_v38 = vsel %vm514_vm0, %v591_v0, %v593_v50  ;;  %v3514_v50 = vld [vmem:[%s6678_s1 + $0x108] sm:$0xff]  ;;  %v450_v0 = vld [vmem:[%s6678_s1] sm:$0xff] }
  0x76   : > { %4166 = vmatprep.subr.mxu1 %v453_v39  ;;  %4245 = vmatpush3.msra.mxu0 %v3517_v18  ;;  %6772 = vst [vmem:[#allocation31_spill] sm:$0xff] %v5393_v38  ;;  %v5400_v18 = vsel %vm514_vm0, %v551_v35, %v553_v40  ;;  %v3513_v35 = vld [vmem:[%s6678_s1 + $0x100] sm:$0xff]  ;;  %v1101_v40 = vrot.slane %v5079_v22, 2 }
  0x77   : > { %4113 = vmatmul.mubr.f32.gmra.mxu0 %v5368_v30  ;;  %4167 = vmatpush3.msra.mxu1 %v453_v39  ;;  %v1095_v39 = vrot.slane %v5047_v5, 2 }
  0x78   : > { %4246 = vmatprep.subr.mxu0 %v3516_v2  ;;  %4168 = vmatprep.subr.mxu1 %v452_v55 }
  0x79   : > { %4247 = vmatpush3.msra.mxu0 %v3516_v2  ;;  %4139 = vmatprep.mubr.f32.mxu1 %v5382_v7  ;;  %v1098_v2 = vrot.slane %v5058_v11, 2  ;;  %v3544_v11 = vld [vmem:[%s6678_s1 + $0x1f8] sm:$0xff] }
  0x7a   : > { %4169 = vmatpush3.msra.mxu1 %v452_v55  ;;  %4248 = vmatprep.subr.mxu0 %v3515_v26  ;;  %v1097_v55 = vsel %vm1094_vm1, %v1095_v39, %v1096_v27 }
  0x7b   : > { %4115 = vmatprep.mubr.f32.mxu0 %v5390_v52  ;;  %4140 = vmatmul.mubr.f32.gmra.mxu1 %v5393_v38  ;;  %v1103_v38 = vrot.slane %v5092_v29, 2  ;;  %v1105_v29 = vrot.slane %v5117_v41, 2 }
  0x7c   : > { %4170 = vmatprep.subr.mxu1 %v451_v12  ;;  %4249 = vmatpush3.msra.mxu0 %v3515_v26  ;;  %v1100_v26 = vrot.slane %v5077_v21, 2 }
  0x7d   : > { %4116 = vmatmul.mubr.f32.gmra.mxu0 %v5400_v18  ;;  %4171 = vmatpush3.msra.mxu1 %v451_v12  ;;  %v1099_v12 = vsel %vm1094_vm1, %v1096_v27, %v1098_v2  ;;  %v5440_v39 = vsel %vm1094_vm1, %v1101_v40, %v1103_v38  ;;  %v1108_v27 = vrot.slane %v5135_v49, 2  ;;  %v3559_v2 = vld [vmem:[%s6678_s1 + $0x270] sm:$0xff]  ;;  %v3542_v49 = vld [vmem:[%s6678_s1 + $0x1e8] sm:$0xff]  ;;  %v1110_v38 = vrot.slane %v5163_v61, 2 }
  0x7e   : > { %4250 = vmatprep.subr.mxu0 %v3514_v50  ;;  %4172 = vmatprep.subr.mxu1 %v450_v0 }
  0x7f   : > { %4251 = vmatpush3.msra.mxu0 %v3514_v50  ;;  %4173 = vmatpush3.msra.mxu1 %v450_v0  ;;  %v3560_v50 = vld [vmem:[%s6678_s1 + $0x278] sm:$0xff]  ;;  %v5431_v0 = vsel %vm1094_vm1, %v1100_v26, %v1101_v40  ;;  %v1113_v26 = vrot.slane %v5181_v10, 2  ;;  %v3558_v40 = vld [vmem:[%s6678_s1 + $0x268] sm:$0xff]  ;;  %v3541_v10 = vld [vmem:[%s6678_s1 + $0x1e0] sm:$0xff] }
  0x80   : > { %4174 = vmatprep.mubr.f32.mxu1 %v5047_v5  ;;  %4252 = vmatprep.subr.mxu0 %v3513_v35  ;;  %v3543_v5 = vld [vmem:[%s6678_s1 + $0x1f0] sm:$0xff] }
  0x81   : > { %4175 = vmatmul.mubr.f32.vlgmr.msra.gmra.mxu1 %v5049_v6  ;;  %4253 = vmatpush3.msra.mxu0 %v3513_v35  ;;  %v1106_v6 = vrot.slane %v5119_v42, 2 }
  0x82   : > { %4254 = vmatprep.mubr.f32.mxu0 %v1097_v55  ;;  %4302 = vmatprep.subr.mxu1 %v3544_v11  ;;  %v1111_v55 = vrot.slane %v5165_v62, 2 }
  0x83   : > { %4255 = vmatmul.mubr.f32.vlgmr.msra.gmra.mxu0 %v1099_v12  ;;  %4303 = vmatpush3.msra.mxu1 %v3544_v11  ;;  %v5450_v35 = vsel %vm1094_vm1, %v1105_v29, %v1106_v6  ;;  %v5459_v11 = vsel %vm1094_vm1, %v1106_v6, %v1108_v27  ;;  %v1118_v6 = vrot.slane %v5227_v47, 2  ;;  %v3557_v27 = vld [vmem:[%s6678_s1 + $0x260] sm:$0xff]  ;;  %v3540_v47 = vld [vmem:[%s6678_s1 + $0x1d8] sm:$0xff] }
  0x84   : > { %4382 = vmatprep.subr.mxu0 %v3560_v50  ;;  %4177 = vmatprep.mubr.f32.mxu1 %v5077_v21  ;;  %v5469_v12 = vsel %vm1094_vm1, %v1110_v38, %v1111_v55  ;;  %v5478_v29 = vsel %vm1094_vm1, %v1111_v55, %v1113_v26  ;;  %v1121_v38 = vrot.slane %v5257_v14, 2  ;;  %v1123_v26 = vrot.slane %v5273_v46, 2  ;;  %v3539_v46 = vld [vmem:[%s6678_s1 + $0x1d0] sm:$0xff] }
  0x85   : > { %4383 = vmatpush3.msra.mxu0 %v3560_v50  ;;  %4178 = vmatmul.mubr.f32.gmra.mxu1 %v5079_v22  ;;  %v1115_v50 = vrot.slane %v5209_v31, 2 }
  0x86   : > { %4257 = vmatprep.mubr.f32.mxu0 %v5431_v0  ;;  %4304 = vmatprep.subr.mxu1 %v3543_v5 }
  0x87   : > { %4258 = vmatmul.mubr.f32.gmra.mxu0 %v5440_v39  ;;  %4305 = vmatpush3.msra.mxu1 %v3543_v5  ;;  %v1116_v5 = vrot.slane %v5211_v32, 2 }
  0x88   : > { %4384 = vmatprep.subr.mxu0 %v3559_v2  ;;  %4180 = vmatprep.mubr.f32.mxu1 %v5117_v41 }
  0x89   : > { %4385 = vmatpush3.msra.mxu0 %v3559_v2  ;;  %4181 = vmatmul.mubr.f32.gmra.mxu1 %v5119_v42  ;;  %v5488_v2 = vsel %vm1094_vm1, %v1115_v50, %v1116_v5  ;;  %v5497_v55 = vsel %vm1094_vm1, %v1116_v5, %v1118_v6  ;;  %v1125_v50 = vrot.slane %v5301_v19, 2  ;;  %v1126_v5 = vrot.slane %v5303_v58, 2 }
  0x8a   : > { %4260 = vmatprep.mubr.f32.mxu0 %v5450_v35  ;;  %4306 = vmatprep.subr.mxu1 %v3542_v49  ;;  %v5516_v6 = vsel %vm1094_vm1, %v1121_v38, %v1123_v26  ;;  %v1131_v26 = vrot.slane %v5349_v48, 2 }
  0x8b   : > { %4261 = vmatmul.mubr.f32.gmra.mxu0 %v5459_v11  ;;  %4307 = vmatpush3.msra.mxu1 %v3542_v49  ;;  %v1120_v49 = vrot.slane %v5255_v13, 2  ;;  %6773 = vst [vmem:[#allocation32_spill] sm:$0xff] %v5516_v6 }
  0x8c   : > { %4386 = vmatprep.subr.mxu0 %v3558_v40  ;;  %4183 = vmatprep.mubr.f32.mxu1 %v5163_v61 }
  0x8d   : > { %4387 = vmatpush3.msra.mxu0 %v3558_v40  ;;  %4184 = vmatmul.mubr.f32.gmra.mxu1 %v5165_v62  ;;  %v3556_v40 = vld [vmem:[%s6678_s1 + $0x258] sm:$0xff] }
  0x8e   : > { %4263 = vmatprep.mubr.f32.mxu0 %v5469_v12  ;;  %4308 = vmatprep.subr.mxu1 %v3541_v10 }
  0x8f   : > { %4264 = vmatmul.mubr.f32.gmra.mxu0 %v5478_v29  ;;  %4309 = vmatpush3.msra.mxu1 %v3541_v10  ;;  %v5507_v10 = vsel %vm1094_vm1, %v1120_v49, %v1121_v38  ;;  %v5526_v49 = vsel %vm1094_vm1, %v1125_v50, %v1126_v5  ;;  %v1130_v38 = vrot.slane %v5347_v28, 2 }
  0x90   : > { %4388 = vmatprep.subr.mxu0 %v3557_v27  ;;  %4186 = vmatprep.mubr.f32.mxu1 %v5209_v31 }
  0x91   : > { %4389 = vmatpush3.msra.mxu0 %v3557_v27  ;;  %4187 = vmatmul.mubr.f32.gmra.mxu1 %v5211_v32  ;;  %v1128_v27 = vrot.slane %v5319_v20, 2  ;;  %v3538_v20 = vld [vmem:[%s6678_s1 + $0x1c8] sm:$0xff]  ;;  %v5545_v50 = vsel %vm1094_vm1, %v1130_v38, %v1131_v26 }
  0x92   : > { %4266 = vmatprep.mubr.f32.mxu0 %v5488_v2  ;;  %4310 = vmatprep.subr.mxu1 %v3540_v47 }
  0x93   : > { %4267 = vmatmul.mubr.f32.gmra.mxu0 %v5497_v55  ;;  %4311 = vmatpush3.msra.mxu1 %v3540_v47  ;;  %v3555_v47 = vld [vmem:[%s6678_s1 + $0x250] sm:$0xff] }
  0x94   : > { %4390 = vmatprep.subr.mxu0 %v3556_v40  ;;  %4189 = vmatprep.mubr.f32.mxu1 %v5255_v13 }
  0x95   : > { %4391 = vmatpush3.msra.mxu0 %v3556_v40  ;;  %4190 = vmatmul.mubr.f32.gmra.mxu1 %v5257_v14  ;;  %v5535_v40 = vsel %vm1094_vm1, %v1126_v5, %v1128_v27  ;;  %v1135_v5 = vrot.slane %v5043_v3, 2  ;;  %v1136_v27 = vrot.slane %v5045_v4, 2 }
  0x96   : > { %4269 = vmatprep.mubr.f32.mxu0 %v5507_v10  ;;  %4312 = vmatprep.subr.mxu1 %v3539_v46  ;;  %6774 = vst [vmem:[#allocation33_spill] sm:$0xff] %v5535_v40 }
  0x97   : > { %4270 = vmatmul.mubr.f32.gmra.mxu0 %v5516_v6  ;;  %4313 = vmatpush3.msra.mxu1 %v3539_v46  ;;  %v1133_v6 = vrot.slane %v5365_v54, 2  ;;  %v3554_v46 = vld [vmem:[%s6678_s1 + $0x248] sm:$0xff]  ;;  %v3537_v54 = vld [vmem:[%s6678_s1 + $0x1c0] sm:$0xff]  ;;  %v5564_v38 = vsel %vm1094_vm1, %v1135_v5, %v1136_v27 }
  0x98   : > { %4392 = vmatprep.subr.mxu0 %v3555_v47  ;;  %4192 = vmatprep.mubr.f32.mxu1 %v5301_v19 }
  0x99   : > { %4393 = vmatpush3.msra.mxu0 %v3555_v47  ;;  %4193 = vmatmul.mubr.f32.gmra.mxu1 %v5303_v58  ;;  %v5554_v47 = vsel %vm1094_vm1, %v1131_v26, %v1133_v6  ;;  %v1140_v6 = vrot.slane %v5066_v16, 2  ;;  %v1141_v26 = vrot.slane %v5068_v17, 2 }
  0x9a   : > { %4272 = vmatprep.mubr.f32.mxu0 %v5526_v49  ;;  %4314 = vmatprep.subr.mxu1 %v3538_v20  ;;  %6775 = vst [vmem:[#allocation34_spill] sm:$0xff] %v5554_v47 }
  0x9b   : > { %4273 = vmatmul.mubr.f32.gmra.mxu0 %v5535_v40  ;;  %4315 = vmatpush3.msra.mxu1 %v3538_v20  ;;  %v1138_v40 = vrot.slane %v5054_v8, 2  ;;  %v3553_v20 = vld [vmem:[%s6678_s1 + $0x240] sm:$0xff]  ;;  %v3536_v8 = vld [vmem:[%s6678_s1 + $0x1b8] sm:$0xff] }
  0x9c   : > { %4394 = vmatprep.subr.mxu0 %v3554_v46  ;;  %4195 = vmatprep.mubr.f32.mxu1 %v5347_v28 }
  0x9d   : > { %4395 = vmatpush3.msra.mxu0 %v3554_v46  ;;  %4196 = vmatmul.mubr.f32.gmra.mxu1 %v5349_v48  ;;  %v5573_v46 = vsel %vm1094_vm1, %v1136_v27, %v1138_v40  ;;  %v1145_v40 = vrot.slane %v5105_v36, 2  ;;  %v1148_v27 = vrot.slane %v5121_v43, 2  ;;  %v3534_v43 = vld [vmem:[%s6678_s1 + $0x1a8] sm:$0xff] }
  0x9e   : > { %4275 = vmatprep.mubr.f32.mxu0 %v5545_v50  ;;  %4316 = vmatprep.subr.mxu1 %v3537_v54 }
  0x9f   : > { %4276 = vmatmul.mubr.f32.gmra.mxu0 %v5554_v47  ;;  %4317 = vmatpush3.msra.mxu1 %v3537_v54  ;;  %v1143_v47 = vrot.slane %v5081_v23, 2  ;;  %v3552_v54 = vld [vmem:[%s6678_s1 + $0x238] sm:$0xff]  ;;  %v3535_v23 = vld [vmem:[%s6678_s1 + $0x1b0] sm:$0xff] }
  0xa0   : > { %4396 = vmatprep.subr.mxu0 %v3553_v20  ;;  %4198 = vmatprep.mubr.f32.mxu1 %v5043_v3  ;;  %v5583_v3 = vsel %vm1094_vm1, %v1140_v6, %v1141_v26  ;;  %v1153_v6 = vrot.slane %v5167_v63, 2  ;;  %v3533_v63 = vld [vmem:[%s6678_s1 + $0x1a0] sm:$0xff] }
  0xa1   : > { %4397 = vmatpush3.msra.mxu0 %v3553_v20  ;;  %4199 = vmatmul.mubr.f32.gmra.mxu1 %v5045_v4  ;;  %v1146_v4 = vrot.slane %v5107_v37, 2  ;;  %v5592_v5 = vsel %vm1094_vm1, %v1141_v26, %v1143_v47  ;;  %v3551_v20 = vld [vmem:[%s6678_s1 + $0x230] sm:$0xff]  ;;  %v1150_v47 = vrot.slane %v5151_v56, 2  ;;  %v3550_v26 = vld [vmem:[%s6678_s1 + $0x228] sm:$0xff] }
  0xa2   : > { %4278 = vmatprep.mubr.f32.mxu0 %v5564_v38  ;;  %4318 = vmatprep.subr.mxu1 %v3536_v8 }
  0xa3   : > { %4279 = vmatmul.mubr.f32.gmra.mxu0 %v5573_v46  ;;  %4319 = vmatpush3.msra.mxu1 %v3536_v8  ;;  %v5611_v8 = vsel %vm1094_vm1, %v1146_v4, %v1148_v27  ;;  %v1160_v27 = vrot.slane %v5243_v59, 2 }
  0xa4   : > { %4398 = vmatprep.subr.mxu0 %v3552_v54  ;;  %4201 = vmatprep.mubr.f32.mxu1 %v5066_v16  ;;  %v5602_v16 = vsel %vm1094_vm1, %v1145_v40, %v1146_v4  ;;  %v1158_v40 = vrot.slane %v5213_v33, 2  ;;  %v3549_v4 = vld [vmem:[%s6678_s1 + $0x220] sm:$0xff]  ;;  %v3532_v33 = vld [vmem:[%s6678_s1 + $0x198] sm:$0xff] }
  0xa5   : > { %4399 = vmatpush3.msra.mxu0 %v3552_v54  ;;  %4202 = vmatmul.mubr.f32.gmra.mxu1 %v5068_v17  ;;  %v1151_v17 = vrot.slane %v5153_v57, 2  ;;  %v1155_v54 = vrot.slane %v5197_v24, 2 }
  0xa6   : > { %4281 = vmatprep.mubr.f32.mxu0 %v5583_v3  ;;  %4320 = vmatprep.subr.mxu1 %v3535_v23 }
  0xa7   : > { %4282 = vmatmul.mubr.f32.gmra.mxu0 %v5592_v5  ;;  %4321 = vmatpush3.msra.mxu1 %v3535_v23  ;;  %v5630_v23 = vsel %vm1094_vm1, %v1151_v17, %v1153_v6  ;;  %v1165_v6 = vrot.slane %v5289_v53, 2 }
  0xa8   : > { %4400 = vmatprep.subr.mxu0 %v3551_v20  ;;  %4204 = vmatprep.mubr.f32.mxu1 %v5105_v36  ;;  %v5621_v36 = vsel %vm1094_vm1, %v1150_v47, %v1151_v17  ;;  %v3548_v47 = vld [vmem:[%s6678_s1 + $0x218] sm:$0xff] }
  0xa9   : > { %4401 = vmatpush3.msra.mxu0 %v3551_v20  ;;  %4205 = vmatmul.mubr.f32.gmra.mxu1 %v5107_v37  ;;  %v1156_v37 = vrot.slane %v5199_v25, 2 }
  0xaa   : > { %4284 = vmatprep.mubr.f32.mxu0 %v5602_v16  ;;  %4322 = vmatprep.subr.mxu1 %v3534_v43 }
  0xab   : > { %4285 = vmatmul.mubr.f32.gmra.mxu0 %v5611_v8  ;;  %4323 = vmatpush3.msra.mxu1 %v3534_v43  ;;  %v5649_v20 = vsel %vm1094_vm1, %v1156_v37, %v1158_v40  ;;  %v1163_v43 = vrot.slane %v5259_v15, 2  ;;  %v3531_v15 = vld [vmem:[%s6678_s1 + $0x190] sm:$0xff]  ;;  %v1170_v40 = vrot.slane %v5335_v1, 2 }
  0xac   : > { %4402 = vmatprep.subr.mxu0 %v3550_v26  ;;  %4207 = vmatprep.mubr.f32.mxu1 %v5151_v56  ;;  %v5640_v56 = vsel %vm1094_vm1, %v1155_v54, %v1156_v37  ;;  %6777 = vst [vmem:[#allocation36_spill] sm:$0xff] %v5649_v20  ;;  %v3547_v54 = vld [vmem:[%s6678_s1 + $0x210] sm:$0xff] }
  0xad   : > { %4403 = vmatpush3.msra.mxu0 %v3550_v26  ;;  %4208 = vmatmul.mubr.f32.gmra.mxu1 %v5153_v57  ;;  %6776 = vst [vmem:[#allocation35_spill] sm:$0xff] %v5640_v56  ;;  %v1161_v57 = vrot.slane %v5245_v60, 2 }
  0xae   : > { %4287 = vmatprep.mubr.f32.mxu0 %v5621_v36  ;;  %4324 = vmatprep.subr.mxu1 %v3533_v63 }
  0xaf   : > { %4288 = vmatmul.mubr.f32.gmra.mxu0 %v5630_v23  ;;  %4325 = vmatpush3.msra.mxu1 %v3533_v63  ;;  %v5659_v17 = vsel %vm1094_vm1, %v1160_v27, %v1161_v57  ;;  %v5668_v26 = vsel %vm1094_vm1, %v1161_v57, %v1163_v43  ;;  %v1168_v63 = vrot.slane %v5305_v45, 2  ;;  %v3530_v45 = vld [vmem:[%s6678_s1 + $0x188] sm:$0xff]  ;;  %v1173_v27 = vrot.slane %v5351_v34, 2  ;;  %v3529_v34 = vld [vmem:[%s6678_s1 + $0x180] sm:$0xff] }
  0xb0   : > { %4404 = vmatprep.subr.mxu0 %v3549_v4  ;;  %4210 = vmatprep.mubr.f32.mxu1 %v5197_v24  ;;  %6778 = vst [vmem:[#allocation37_spill] sm:$0xff] %v5659_v17  ;;  %6779 = vst [vmem:[#allocation38_spill] sm:$0xff] %v5668_v26  ;;  %v3546_v57 = vld [vmem:[%s6678_s1 + $0x208] sm:$0xff] }
  0xb1   : > { %4405 = vmatpush3.msra.mxu0 %v3549_v4  ;;  %4211 = vmatmul.mubr.f32.gmra.mxu1 %v5199_v25  ;;  %v1166_v25 = vrot.slane %v5291_v9, 2  ;;  %v1171_v4 = vrot.slane %v5337_v51, 2 }
  0xb2   : > { %4290 = vmatprep.mubr.f32.mxu0 %v5640_v56  ;;  %4326 = vmatprep.subr.mxu1 %v3532_v33 }
  0xb3   : > { %4291 = vmatmul.mubr.f32.gmra.mxu0 %v5649_v20  ;;  %4327 = vmatpush3.msra.mxu1 %v3532_v33  ;;  %v5678_v37 = vsel %vm1094_vm1, %v1165_v6, %v1166_v25  ;;  %v5687_v33 = vsel %vm1094_vm1, %v1166_v25, %v1168_v63  ;;  %v5697_v43 = vsel %vm1094_vm1, %v1170_v40, %v1171_v4  ;;  %v3576_v6 = vld [vmem:[%s6678_s1 + $0x2f8] sm:$0xff]  ;;  %v6782_v63 = vld [vmem:[#allocation10_spill] sm:$0xff] }
  0xb4   : > { %4406 = vmatprep.subr.mxu0 %v3548_v47  ;;  %4213 = vmatprep.mubr.f32.mxu1 %v5243_v59  ;;  %6780 = vst [vmem:[#allocation39_spill] sm:$0xff] %v5678_v37  ;;  %6781 = vst [vmem:[#allocation40_spill] sm:$0xff] %v5687_v33  ;;  %v3592_v25 = vld [vmem:[%s6678_s1 + $0x378] sm:$0xff]  ;;  %v6786_v40 = vld [vmem:[#allocation18_spill] sm:$0xff] }
  0xb5   : > { %4407 = vmatpush3.msra.mxu0 %v3548_v47  ;;  %4214 = vmatmul.mubr.f32.gmra.mxu1 %v5245_v60  ;;  %v5704_v47 = vsel %vm1094_vm1, %v1171_v4, %v1173_v27  ;;  %v3573_v4 = vld [vmem:[%s6678_s1 + $0x2e0] sm:$0xff]  ;;  %v6788_v27 = vld [vmem:[#allocation22_spill] sm:$0xff] }
  0xb6   : > { %4293 = vmatprep.mubr.f32.mxu0 %v5659_v17  ;;  %4328 = vmatprep.subr.mxu1 %v3531_v15 }
  0xb7   : > { %4294 = vmatmul.mubr.f32.gmra.mxu0 %v5668_v26  ;;  %4329 = vmatpush3.msra.mxu1 %v3531_v15  ;;  %v3545_v15 = vld [vmem:[%s6678_s1 + $0x200] sm:$0xff] }
  0xb8   : > { %4408 = vmatprep.subr.mxu0 %v3547_v54  ;;  %4216 = vmatprep.mubr.f32.mxu1 %v5289_v53 }
  0xb9   : > { %4409 = vmatpush3.msra.mxu0 %v3547_v54  ;;  %4217 = vmatmul.mubr.f32.gmra.mxu1 %v5291_v9  ;;  %v3575_v54 = vld [vmem:[%s6678_s1 + $0x2f0] sm:$0xff] }
  0xba   : > { %4296 = vmatprep.mubr.f32.mxu0 %v5678_v37  ;;  %4330 = vmatprep.subr.mxu1 %v3530_v45 }
  0xbb   : > { %4297 = vmatmul.mubr.f32.gmra.mxu0 %v5687_v33  ;;  %4331 = vmatpush3.msra.mxu1 %v3530_v45  ;;  %v3574_v45 = vld [vmem:[%s6678_s1 + $0x2e8] sm:$0xff] }
  0xbc   : > { %4410 = vmatprep.subr.mxu0 %v3546_v57  ;;  %4219 = vmatprep.mubr.f32.mxu1 %v5335_v1 }
  0xbd   : > { %4411 = vmatpush3.msra.mxu0 %v3546_v57  ;;  %4220 = vmatmul.mubr.f32.gmra.mxu1 %v5337_v51  ;;  %v3572_v57 = vld [vmem:[%s6678_s1 + $0x2d8] sm:$0xff] }
  0xbe   : > { %4299 = vmatprep.mubr.f32.mxu0 %v5697_v43  ;;  %4332 = vmatprep.subr.mxu1 %v3529_v34 }
  0xbf   : > { %4300 = vmatmul.mubr.f32.gmra.mxu0 %v5704_v47  ;;  %4333 = vmatpush3.msra.mxu1 %v3529_v34  ;;  %v6790_v34 = vld [vmem:[#allocation26_spill] sm:$0xff] }
  0xc0   : > { %4412 = vmatprep.subr.mxu0 %v3545_v15  ;;  %4334 = vmatprep.mubr.f32.mxu1 %v5077_v21  ;;  %v3591_v21 = vld [vmem:[%s6678_s1 + $0x370] sm:$0xff] }
  0xc1   : > { %4413 = vmatpush3.msra.mxu0 %v3545_v15  ;;  %4335 = vmatmul.mubr.f32.vlgmr.msra.gmra.mxu1 %v5079_v22  ;;  %v6783_v22 = vld [vmem:[#allocation12_spill] sm:$0xff]  ;;  %v3571_v15 = vld [vmem:[%s6678_s1 + $0x2d0] sm:$0xff] }
  0xc2   : > { %4414 = vmatprep.mubr.f32.mxu0 %v5124_v44  ;;  %4462 = vmatprep.subr.mxu1 %v3576_v6  ;;  %v6784_v44 = vld [vmem:[#allocation14_spill] sm:$0xff] }
  0xc3   : > { %4415 = vmatmul.mubr.f32.vlgmr.msra.gmra.mxu0 %v6782_v63  ;;  %4463 = vmatpush3.msra.mxu1 %v3576_v6  ;;  %v3570_v6 = vld [vmem:[%s6678_s1 + $0x2c8] sm:$0xff]  ;;  %v6792_v63 = vld [vmem:[#allocation6_spill] sm:$0xff] }
  0xc4   : > { %4542 = vmatprep.subr.mxu0 %v3592_v25  ;;  %4337 = vmatprep.mubr.f32.mxu1 %v5117_v41  ;;  %v3590_v41 = vld [vmem:[%s6678_s1 + $0x368] sm:$0xff] }
  0xc5   : > { %4543 = vmatpush3.msra.mxu0 %v3592_v25  ;;  %4338 = vmatmul.mubr.f32.gmra.mxu1 %v5119_v42  ;;  %v6785_v42 = vld [vmem:[#allocation16_spill] sm:$0xff]  ;;  %v5785_v25 = vld [vmem:[#allocation2 + $0x130] sm:$0xff] }
  0xc6   : > { %4417 = vmatprep.mubr.f32.mxu0 %v6783_v22  ;;  %4464 = vmatprep.subr.mxu1 %v3575_v54 }
  0xc7   : > { %4418 = vmatmul.mubr.f32.gmra.mxu0 %v6784_v44  ;;  %4465 = vmatpush3.msra.mxu1 %v3575_v54  ;;  %v6793_v54 = vld [vmem:[#allocation7_spill] sm:$0xff] }
  0xc8   : > { %4544 = vmatprep.subr.mxu0 %v3591_v21  ;;  %4340 = vmatprep.mubr.f32.mxu1 %v5163_v61  ;;  %v3589_v61 = vld [vmem:[%s6678_s1 + $0x360] sm:$0xff] }
  0xc9   : > { %4545 = vmatpush3.msra.mxu0 %v3591_v21  ;;  %4341 = vmatmul.mubr.f32.gmra.mxu1 %v5165_v62  ;;  %v6787_v62 = vld [vmem:[#allocation20_spill] sm:$0xff]  ;;  %v3568_v21 = vld [vmem:[%s6678_s1 + $0x2b8] sm:$0xff] }
  0xca   : > { %4420 = vmatprep.mubr.f32.mxu0 %v6785_v42  ;;  %4466 = vmatprep.subr.mxu1 %v3574_v45 }
  0xcb   : > { %4421 = vmatmul.mubr.f32.gmra.mxu0 %v6786_v40  ;;  %4467 = vmatpush3.msra.mxu1 %v3574_v45  ;;  %v5799_v45 = vld [vmem:[#allocation2 + $0x58] sm:$0xff] }
  0xcc   : > { %4546 = vmatprep.subr.mxu0 %v3590_v41  ;;  %4343 = vmatprep.mubr.f32.mxu1 %v5209_v31  ;;  %v3588_v31 = vld [vmem:[%s6678_s1 + $0x358] sm:$0xff] }
  0xcd   : > { %4547 = vmatpush3.msra.mxu0 %v3590_v41  ;;  %4344 = vmatmul.mubr.f32.gmra.mxu1 %v5211_v32  ;;  %v6789_v32 = vld [vmem:[#allocation24_spill] sm:$0xff]  ;;  %v5802_v41 = vld [vmem:[#allocation2 + $0xb0] sm:$0xff] }
  0xce   : > { %4423 = vmatprep.mubr.f32.mxu0 %v6787_v62  ;;  %4468 = vmatprep.subr.mxu1 %v3573_v4 }
  0xcf   : > { %4424 = vmatmul.mubr.f32.gmra.mxu0 %v6788_v27  ;;  %4469 = vmatpush3.msra.mxu1 %v3573_v4  ;;  %v3584_v4 = vld [vmem:[%s6678_s1 + $0x338] sm:$0xff] }
  0xd0   : > { %4548 = vmatprep.subr.mxu0 %v3589_v61  ;;  %4346 = vmatprep.mubr.f32.mxu1 %v5255_v13  ;;  %v3587_v13 = vld [vmem:[%s6678_s1 + $0x350] sm:$0xff] }
  0xd1   : > { %4549 = vmatpush3.msra.mxu0 %v3589_v61  ;;  %4347 = vmatmul.mubr.f32.gmra.mxu1 %v5257_v14  ;;  %v6791_v14 = vld [vmem:[#allocation28_spill] sm:$0xff] }
  0xd2   : > { %4426 = vmatprep.mubr.f32.mxu0 %v6789_v32  ;;  %4470 = vmatprep.subr.mxu1 %v3572_v57  ;;  %v6794_v61 = vld [vmem:[#allocation8_spill] sm:$0xff] }
  0xd3   : > { %4427 = vmatmul.mubr.f32.gmra.mxu0 %v6790_v34  ;;  %4471 = vmatpush3.msra.mxu1 %v3572_v57  ;;  %v6795_v57 = vld [vmem:[#allocation9_spill] sm:$0xff] }
  0xd4   : > { %4550 = vmatprep.subr.mxu0 %v3588_v31  ;;  %4349 = vmatprep.mubr.f32.mxu1 %v5301_v19  ;;  %v3569_v19 = vld [vmem:[%s6678_s1 + $0x2c0] sm:$0xff] }
  0xd5   : > { %4551 = vmatpush3.msra.mxu0 %v3588_v31  ;;  %4350 = vmatmul.mubr.f32.gmra.mxu1 %v5303_v58  ;;  %v3586_v58 = vld [vmem:[%s6678_s1 + $0x348] sm:$0xff]  ;;  %v3567_v31 = vld [vmem:[%s6678_s1 + $0x2b0] sm:$0xff] }
  0xd6   : > { %4429 = vmatprep.mubr.f32.mxu0 %v6791_v14  ;;  %4472 = vmatprep.subr.mxu1 %v3571_v15 }
  0xd7   : > { %4430 = vmatmul.mubr.f32.gmra.mxu0 %v5368_v30  ;;  %4473 = vmatpush3.msra.mxu1 %v3571_v15  ;;  %v5813_v15 = vld [vmem:[#allocation2 + $0x190] sm:$0xff] }
  0xd8   : > { %4552 = vmatprep.subr.mxu0 %v3587_v13  ;;  %4352 = vmatprep.mubr.f32.mxu1 %v5347_v28  ;;  %v3585_v28 = vld [vmem:[%s6678_s1 + $0x340] sm:$0xff] }
  0xd9   : > { %4553 = vmatpush3.msra.mxu0 %v3587_v13  ;;  %4353 = vmatmul.mubr.f32.gmra.mxu1 %v5349_v48  ;;  %v5788_v48 = vld [vmem:[#allocation2 + $0x40] sm:$0xff]  ;;  %v5816_v13 = vld [vmem:[#allocation2 + $0xb8] sm:$0xff] }
  0xda   : > { %4432 = vmatprep.mubr.f32.mxu0 %v5390_v52  ;;  %4474 = vmatprep.subr.mxu1 %v3570_v6 }
  0xdb   : > { %4433 = vmatmul.mubr.f32.gmra.mxu0 %v5400_v18  ;;  %4475 = vmatpush3.msra.mxu1 %v3570_v6  ;;  %v3583_v6 = vld [vmem:[%s6678_s1 + $0x330] sm:$0xff] }
  0xdc   : > { %4554 = vmatprep.subr.mxu0 %v3586_v58  ;;  %4355 = vmatprep.mubr.f32.mxu1 %v5785_v25 }
  0xdd   : > { %4555 = vmatpush3.msra.mxu0 %v3586_v58  ;;  %4356 = vmatmul.mubr.f32.gmra.mxu1 %v5788_v48  ;;  %v6796_v58 = vld [vmem:[#allocation11_spill] sm:$0xff] }
  0xde   : > { %4435 = vmatprep.mubr.f32.mxu0 %v6792_v63  ;;  %4476 = vmatprep.subr.mxu1 %v3569_v19 }
  0xdf   : > { %4436 = vmatmul.mubr.f32.gmra.mxu0 %v6793_v54  ;;  %4477 = vmatpush3.msra.mxu1 %v3569_v19  ;;  %v6797_v19 = vld [vmem:[#allocation13_spill] sm:$0xff] }
  0xe0   : > { %4556 = vmatprep.subr.mxu0 %v3585_v28  ;;  %4358 = vmatprep.mubr.f32.mxu1 %v5799_v45 }
  0xe1   : > { %4557 = vmatpush3.msra.mxu0 %v3585_v28  ;;  %4359 = vmatmul.mubr.f32.gmra.mxu1 %v5802_v41  ;;  %v3566_v28 = vld [vmem:[%s6678_s1 + $0x2a8] sm:$0xff] }
  0xe2   : > { %4438 = vmatprep.mubr.f32.mxu0 %v6794_v61  ;;  %4478 = vmatprep.subr.mxu1 %v3568_v21  ;;  %v6800_v61 = vld [vmem:[#allocation19_spill] sm:$0xff] }
  0xe3   : > { %4439 = vmatmul.mubr.f32.gmra.mxu0 %v6795_v57  ;;  %4479 = vmatpush3.msra.mxu1 %v3568_v21  ;;  %v5827_v21 = vld [vmem:[#allocation2 + $0xe0] sm:$0xff] }
  0xe4   : > { %4558 = vmatprep.subr.mxu0 %v3584_v4  ;;  %4361 = vmatprep.mubr.f32.mxu1 %v5813_v15  ;;  %v3565_v57 = vld [vmem:[%s6678_s1 + $0x2a0] sm:$0xff] }
  0xe5   : > { %4559 = vmatpush3.msra.mxu0 %v3584_v4  ;;  %4362 = vmatmul.mubr.f32.gmra.mxu1 %v5816_v13  ;;  %v5830_v4 = vld [vmem:[#allocation2 + $0x158] sm:$0xff] }
  0xe6   : > { %4441 = vmatprep.mubr.f32.mxu0 %v6796_v58  ;;  %4480 = vmatprep.subr.mxu1 %v3567_v31  ;;  %v3582_v58 = vld [vmem:[%s6678_s1 + $0x328] sm:$0xff] }
  0xe7   : > { %4442 = vmatmul.mubr.f32.gmra.mxu0 %v6797_v19  ;;  %4481 = vmatpush3.msra.mxu1 %v3567_v31  ;;  %v6798_v19 = vld [vmem:[#allocation15_spill] sm:$0xff]  ;;  %v6799_v31 = vld [vmem:[#allocation17_spill] sm:$0xff] }
  0xe8   : > { %4560 = vmatprep.subr.mxu0 %v3583_v6  ;;  %4364 = vmatprep.mubr.f32.mxu1 %v5827_v21 }
  0xe9   : > { %4561 = vmatpush3.msra.mxu0 %v3583_v6  ;;  %4365 = vmatmul.mubr.f32.gmra.mxu1 %v5830_v4  ;;  %v5842_v6 = vld [vmem:[#allocation2 + $0xf8] sm:$0xff] }
  0xea   : > { %4444 = vmatprep.mubr.f32.mxu0 %v6798_v19  ;;  %4482 = vmatprep.subr.mxu1 %v3566_v28  ;;  %v3581_v19 = vld [vmem:[%s6678_s1 + $0x320] sm:$0xff] }
  0xeb   : > { %4445 = vmatmul.mubr.f32.gmra.mxu0 %v6799_v31  ;;  %4483 = vmatpush3.msra.mxu1 %v3566_v28  ;;  %v6801_v28 = vld [vmem:[#allocation21_spill] sm:$0xff]  ;;  %v3564_v31 = vld [vmem:[%s6678_s1 + $0x298] sm:$0xff] }
  0xec   : > { %4562 = vmatprep.subr.mxu0 %v3582_v58  ;;  %4367 = vmatprep.mubr.f32.mxu1 %v5197_v24  ;;  %v3580_v24 = vld [vmem:[%s6678_s1 + $0x318] sm:$0xff] }
  0xed   : > { %4563 = vmatpush3.msra.mxu0 %v3582_v58  ;;  %4368 = vmatmul.mubr.f32.gmra.mxu1 %v5842_v6  ;;  %v6802_v58 = vld [vmem:[#allocation23_spill] sm:$0xff] }
  0xee   : > { %4447 = vmatprep.mubr.f32.mxu0 %v6800_v61  ;;  %4484 = vmatprep.subr.mxu1 %v3565_v57  ;;  %v6803_v61 = vld [vmem:[#allocation25_spill] sm:$0xff] }
  0xef   : > { %4448 = vmatmul.mubr.f32.gmra.mxu0 %v6801_v28  ;;  %4485 = vmatpush3.msra.mxu1 %v3565_v57  ;;  %v3563_v57 = vld [vmem:[%s6678_s1 + $0x290] sm:$0xff] }
  0xf0   : > { %4564 = vmatprep.subr.mxu0 %v3581_v19  ;;  %4370 = vmatprep.mubr.f32.mxu1 %v5243_v59  ;;  %v5864_v59 = vld [vmem:[#allocation2 + $0x78] sm:$0xff] }
  0xf1   : > { %4565 = vmatpush3.msra.mxu0 %v3581_v19  ;;  %4371 = vmatmul.mubr.f32.gmra.mxu1 %v5245_v60  ;;  %v5866_v60 = vld [vmem:[#allocation2 + $0xf0] sm:$0xff] }
  0xf2   : > { %4450 = vmatprep.mubr.f32.mxu0 %v6802_v58  ;;  %4486 = vmatprep.subr.mxu1 %v3564_v31  ;;  %v3579_v19 = vld [vmem:[%s6678_s1 + $0x310] sm:$0xff]  ;;  %v6805_v58 = vld [vmem:[#allocation29_spill] sm:$0xff] }
  0xf3   : > { %4451 = vmatmul.mubr.f32.gmra.mxu0 %v6803_v61  ;;  %4487 = vmatpush3.msra.mxu1 %v3564_v31  ;;  %v5872_v61 = vld [vmem:[#allocation2 + $0x10] sm:$0x3]  ;;  %v6804_v31 = vld [vmem:[#allocation27_spill] sm:$0xff] }
  0xf4   : > { %4566 = vmatprep.subr.mxu0 %v3580_v24  ;;  %4373 = vmatprep.mubr.f32.mxu1 %v5289_v53  ;;  %v3562_v53 = vld [vmem:[%s6678_s1 + $0x288] sm:$0xff]  ;;  %v1761_v28 = vrot.slane %v5872_v61, 1 }
  0xf5   : > { %4567 = vmatpush3.msra.mxu0 %v3580_v24  ;;  %4374 = vmatmul.mubr.f32.gmra.mxu1 %v5291_v9  ;;  %v1758_v24 = vrot.slane %v5864_v59, 1  ;;  %v1759_v9 = vrot.slane %v5866_v60, 1 }
  0xf6   : > { %4453 = vmatprep.mubr.f32.mxu0 %v6804_v31  ;;  %4488 = vmatprep.subr.mxu1 %v3563_v57 }
  0xf7   : > { %4454 = vmatmul.mubr.f32.gmra.mxu0 %v6805_v58  ;;  %4489 = vmatpush3.msra.mxu1 %v3563_v57  ;;  %v3578_v57 = vld [vmem:[%s6678_s1 + $0x308] sm:$0xff]  ;;  %v6806_v58 = vld [vmem:[#allocation31_spill] sm:$0xff]  ;;  %v5890_v31 = vsel %vm514_vm0, %v1758_v24, %v1759_v9  ;;  %v4847_v24 = vld [vmem:[#allocation2 + $0xd0] sm:$0xff] }
  0xf8   : > { %4568 = vmatprep.subr.mxu0 %v3579_v19  ;;  %4376 = vmatprep.mubr.f32.mxu1 %v5335_v1  ;;  %6807 = vst [vmem:[#allocation10_spill] sm:$0xff] %v5890_v31  ;;  %v3561_v1 = vld [vmem:[%s6678_s1 + $0x280] sm:$0xff] }
  0xf9   : > { %4569 = vmatpush3.msra.mxu0 %v3579_v19  ;;  %4377 = vmatmul.mubr.f32.gmra.mxu1 %v5337_v51  ;;  %v5897_v51 = vsel %vm514_vm0, %v1759_v9, %v1761_v28  ;;  %v3577_v19 = vld [vmem:[%s6678_s1 + $0x300] sm:$0xff]  ;;  %v3624_v28 = vld [vmem:[%s6678_s1 + $0x478] sm:$0xff]  ;;  %v4848_v9 = vld [vmem:[#allocation2 + $0x28] sm:$0xff] }
  0xfa   : > { %4456 = vmatprep.mubr.f32.mxu0 %v5382_v7  ;;  %4490 = vmatprep.subr.mxu1 %v3562_v53  ;;  %6808 = vst [vmem:[#allocation12_spill] sm:$0xff] %v5897_v51 }
  0xfb   : > { %4457 = vmatmul.mubr.f32.gmra.mxu0 %v6806_v58  ;;  %4491 = vmatpush3.msra.mxu1 %v3562_v53  ;;  %v3608_v53 = vld [vmem:[%s6678_s1 + $0x3f8] sm:$0xff]  ;;  %v3602_v58 = vld [vmem:[%s6678_s1 + $0x3c8] sm:$0xff] }
  0xfc   : > { %4570 = vmatprep.subr.mxu0 %v3578_v57  ;;  %4379 = vmatprep.mubr.f32.mxu1 %v5864_v59 }
  0xfd   : > { %4571 = vmatpush3.msra.mxu0 %v3578_v57  ;;  %4380 = vmatmul.mubr.f32.gmra.mxu1 %v5866_v60  ;;  %v3607_v57 = vld [vmem:[%s6678_s1 + $0x3f0] sm:$0xff] }
  0xfe   : > { %4459 = vmatprep.mubr.f32.mxu0 %v5890_v31  ;;  %4492 = vmatprep.subr.mxu1 %v3561_v1  ;;  %v4858_v31 = vld [vmem:[#allocation2 + $0x140] sm:$0xff] }
  0xff   : > { %4460 = vmatmul.mubr.f32.gmra.mxu0 %v5897_v51  ;;  %4493 = vmatpush3.msra.mxu1 %v3561_v1  ;;  %v4850_v1 = vld [vmem:[#allocation2 + $0x118] sm:$0xff]  ;;  %v6811_v51 = vld [vmem:[#allocation33_spill] sm:$0xff] }
 0x100   : > { %4572 = vmatprep.subr.mxu0 %v3577_v19  ;;  %4494 = vmatprep.mubr.f32.mxu1 %v5431_v0  ;;  %v3623_v0 = vld [vmem:[%s6678_s1 + $0x470] sm:$0xff] }
 0x101   : > { %4573 = vmatpush3.msra.mxu0 %v3577_v19  ;;  %4495 = vmatmul.mubr.f32.vlgmr.msra.gmra.mxu1 %v5440_v39  ;;  %v4849_v39 = vld [vmem:[#allocation2 + $0x60] sm:$0xff]  ;;  %v3606_v19 = vld [vmem:[%s6678_s1 + $0x3e8] sm:$0xff] }
 0x102   : > { %4574 = vmatprep.mubr.f32.mxu0 %v4847_v24  ;;  %4622 = vmatprep.subr.mxu1 %v3608_v53  ;;  %v4852_v24 = vld [vmem:[#allocation2 + $0x198] sm:$0xff] }
 0x103   : > { %4575 = vmatmul.mubr.f32.vlgmr.msra.gmra.mxu0 %v4848_v9  ;;  %4623 = vmatpush3.msra.mxu1 %v3608_v53  ;;  %v3622_v53 = vld [vmem:[%s6678_s1 + $0x468] sm:$0xff]  ;;  %v3605_v9 = vld [vmem:[%s6678_s1 + $0x3e0] sm:$0xff] }
 0x104   : > { %4702 = vmatprep.subr.mxu0 %v3624_v28  ;;  %4497 = vmatprep.mubr.f32.mxu1 %v5450_v35 }
 0x105   : > { %4703 = vmatpush3.msra.mxu0 %v3624_v28  ;;  %4498 = vmatmul.mubr.f32.gmra.mxu1 %v5459_v11  ;;  %v4851_v28 = vld [vmem:[#allocation2 + $0x188] sm:$0xff] }
 0x106   : > { %4577 = vmatprep.mubr.f32.mxu0 %v4849_v39  ;;  %4624 = vmatprep.subr.mxu1 %v3607_v57  ;;  %v4854_v39 = vld [vmem:[#allocation2 + $0x1a0] sm:$0xff] }
 0x107   : > { %4578 = vmatmul.mubr.f32.gmra.mxu0 %v4850_v1  ;;  %4625 = vmatpush3.msra.mxu1 %v3607_v57  ;;  %v3621_v57 = vld [vmem:[%s6678_s1 + $0x460] sm:$0xff]  ;;  %v3604_v1 = vld [vmem:[%s6678_s1 + $0x3d8] sm:$0xff] }
 0x108   : > { %4704 = vmatprep.subr.mxu0 %v3623_v0  ;;  %4500 = vmatprep.mubr.f32.mxu1 %v5469_v12 }
 0x109   : > { %4705 = vmatpush3.msra.mxu0 %v3623_v0  ;;  %4501 = vmatmul.mubr.f32.gmra.mxu1 %v5478_v29  ;;  %v4853_v0 = vld [vmem:[#allocation2 + $0xd8] sm:$0xff] }
 0x10a   : > { %4580 = vmatprep.mubr.f32.mxu0 %v4851_v28  ;;  %4626 = vmatprep.subr.mxu1 %v3606_v19  ;;  %v4855_v28 = vld [vmem:[#allocation2 + $0x88] sm:$0xff] }
 0x10b   : > { %4581 = vmatmul.mubr.f32.gmra.mxu0 %v4852_v24  ;;  %4627 = vmatpush3.msra.mxu1 %v3606_v19  ;;  %v6809_v19 = vld [vmem:[#allocation32_spill] sm:$0xff] }
 0x10c   : > { %4706 = vmatprep.subr.mxu0 %v3622_v53  ;;  %4503 = vmatprep.mubr.f32.mxu1 %v5488_v2 }
 0x10d   : > { %4707 = vmatpush3.msra.mxu0 %v3622_v53  ;;  %4504 = vmatmul.mubr.f32.gmra.mxu1 %v5497_v55  ;;  %v3620_v53 = vld [vmem:[%s6678_s1 + $0x458] sm:$0xff] }
 0x10e   : > { %4583 = vmatprep.mubr.f32.mxu0 %v4853_v0  ;;  %4628 = vmatprep.subr.mxu1 %v3605_v9  ;;  %v3603_v0 = vld [vmem:[%s6678_s1 + $0x3d0] sm:$0xff] }
 0x10f   : > { %4584 = vmatmul.mubr.f32.gmra.mxu0 %v4854_v39  ;;  %4629 = vmatpush3.msra.mxu1 %v3605_v9  ;;  %v4856_v9 = vld [vmem:[#allocation2 + $0x180] sm:$0xff] }
 0x110   : > { %4708 = vmatprep.subr.mxu0 %v3621_v57  ;;  %4506 = vmatprep.mubr.f32.mxu1 %v5507_v10 }
 0x111   : > { %4709 = vmatpush3.msra.mxu0 %v3621_v57  ;;  %4507 = vmatmul.mubr.f32.gmra.mxu1 %v6809_v19 }
 0x112   : > { %4586 = vmatprep.mubr.f32.mxu0 %v4855_v28  ;;  %4630 = vmatprep.subr.mxu1 %v3604_v1  ;;  %v5945_v24 = vpop.f32.mrf.mxu1  ;;  %v3619_v28 = vld [vmem:[%s6678_s1 + $0x450] sm:$0xff] }
 0x113   : > { %4587 = vmatmul.mubr.f32.gmra.mxu0 %v4856_v9  ;;  %4631 = vmatpush3.msra.mxu1 %v3604_v1  ;;  %v5950_v39 = vpop.f32.mrf.mxu0  ;;  %v4857_v1 = vld [vmem:[#allocation2 + $0x80] sm:$0xff] }
 0x114   : > { %4710 = vmatprep.subr.mxu0 %v3620_v53  ;;  %4509 = vmatprep.mubr.f32.mxu1 %v5526_v49  ;;  %v5953_v57 = vpop.f32.mrf.mxu1 }
 0x115   : > { %6810 = vst [vmem:[#allocation14_spill] sm:$0xff] %v5953_v57  ;;  %4711 = vmatpush3.msra.mxu0 %v3620_v53  ;;  %4510 = vmatmul.mubr.f32.gmra.mxu1 %v6811_v51  ;;  %v5959_v9 = vpop.f32.mrf.mxu0  ;;  %v6812_v53 = vld [vmem:[#allocation34_spill] sm:$0xff] }
 0x116   : > { %4589 = vmatprep.mubr.f32.mxu0 %v4857_v1  ;;  %4632 = vmatprep.subr.mxu1 %v3603_v0  ;;  %v3618_v1 = vld [vmem:[%s6678_s1 + $0x448] sm:$0xff] }
 0x117   : > { %4590 = vmatmul.mubr.f32.gmra.mxu0 %v4858_v31  ;;  %4633 = vmatpush3.msra.mxu1 %v3603_v0  ;;  %v5964_v7 = vpop.f32.mrf.mxu1  ;;  %v3601_v0 = vld [vmem:[%s6678_s1 + $0x3c0] sm:$0xff] }
 0x118   : > { %4712 = vmatprep.subr.mxu0 %v3619_v28  ;;  %4512 = vmatprep.mubr.f32.mxu1 %v5545_v50 }
 0x119   : > { %4713 = vmatpush3.msra.mxu0 %v3619_v28  ;;  %4513 = vmatmul.mubr.f32.gmra.mxu1 %v6812_v53  ;;  %v5971_v57 = vpop.f32.mrf.mxu0  ;;  %v5973_v31 = vpop.f32.mrf.mxu1 }
 0x11a   : > { %6813 = vst [vmem:[#allocation16_spill] sm:$0xff] %v5973_v31  ;;  %4592 = vmatprep.mubr.f32.mxu0 %v5785_v25  ;;  %4634 = vmatprep.subr.mxu1 %v3602_v58  ;;  %v3617_v25 = vld [vmem:[%s6678_s1 + $0x440] sm:$0xff] }
 0x11b   : > { %4593 = vmatmul.mubr.f32.gmra.mxu0 %v5788_v48  ;;  %4635 = vmatpush3.msra.mxu1 %v3602_v58  ;;  %v5980_v28 = vpop.f32.mrf.mxu0  ;;  %v3600_v48 = vld [vmem:[%s6678_s1 + $0x3b8] sm:$0xff] }
 0x11c   : > { %4714 = vmatprep.subr.mxu0 %v3618_v1  ;;  %4515 = vmatprep.mubr.f32.mxu1 %v5564_v38 }
 0x11d   : > { %4715 = vmatpush3.msra.mxu0 %v3618_v1  ;;  %4516 = vmatmul.mubr.f32.gmra.mxu1 %v5573_v46  ;;  %v5987_v31 = vpop.f32.mrf.mxu1 }
 0x11e   : > { %6814 = vst [vmem:[#allocation18_spill] sm:$0xff] %v5987_v31  ;;  %4595 = vmatprep.mubr.f32.mxu0 %v5799_v45  ;;  %4636 = vmatprep.subr.mxu1 %v3601_v0  ;;  %v3616_v45 = vld [vmem:[%s6678_s1 + $0x438] sm:$0xff] }
 0x11f   : > { %4596 = vmatmul.mubr.f32.gmra.mxu0 %v5802_v41  ;;  %4637 = vmatpush3.msra.mxu1 %v3601_v0  ;;  %v5994_v58 = vpop.f32.mrf.mxu0  ;;  %v5996_v1 = vpop.f32.mrf.mxu1  ;;  %v3599_v0 = vld [vmem:[%s6678_s1 + $0x3b0] sm:$0xff] }
 0x120   : > { %6815 = vst [vmem:[#allocation20_spill] sm:$0xff] %v5996_v1  ;;  %4716 = vmatprep.subr.mxu0 %v3617_v25  ;;  %4518 = vmatprep.mubr.f32.mxu1 %v5583_v3 }
 0x121   : > { %4717 = vmatpush3.msra.mxu0 %v3617_v25  ;;  %4519 = vmatmul.mubr.f32.gmra.mxu1 %v5592_v5  ;;  %v6003_v41 = vpop.f32.mrf.mxu0 }
 0x122   : > { %4598 = vmatprep.mubr.f32.mxu0 %v5813_v15  ;;  %4638 = vmatprep.subr.mxu1 %v3600_v48  ;;  %v3615_v15 = vld [vmem:[%s6678_s1 + $0x430] sm:$0xff] }
 0x123   : > { %4599 = vmatmul.mubr.f32.gmra.mxu0 %v5816_v13  ;;  %4639 = vmatpush3.msra.mxu1 %v3600_v48  ;;  %v6010_v1 = vpop.f32.mrf.mxu1  ;;  %v3598_v48 = vld [vmem:[%s6678_s1 + $0x3a8] sm:$0xff] }
 0x124   : > { %6816 = vst [vmem:[#allocation22_spill] sm:$0xff] %v6010_v1  ;;  %4718 = vmatprep.subr.mxu0 %v3616_v45  ;;  %4521 = vmatprep.mubr.f32.mxu1 %v5602_v16 }
 0x125   : > { %4719 = vmatpush3.msra.mxu0 %v3616_v45  ;;  %4522 = vmatmul.mubr.f32.gmra.mxu1 %v5611_v8  ;;  %v6017_v25 = vpop.f32.mrf.mxu0  ;;  %v6019_v13 = vpop.f32.mrf.mxu1 }
 0x126   : > { %6817 = vst [vmem:[#allocation24_spill] sm:$0xff] %v6019_v13  ;;  %4601 = vmatprep.mubr.f32.mxu0 %v5827_v21  ;;  %4640 = vmatprep.subr.mxu1 %v3599_v0  ;;  %v3614_v21 = vld [vmem:[%s6678_s1 + $0x428] sm:$0xff] }
 0x127   : > { %4602 = vmatmul.mubr.f32.gmra.mxu0 %v5830_v4  ;;  %4641 = vmatpush3.msra.mxu1 %v3599_v0  ;;  %v6026_v45 = vpop.f32.mrf.mxu0  ;;  %v4859_v4 = vld [vmem:[#allocation2 + $0xc0] sm:$0xff] }
 0x128   : > { %4720 = vmatprep.subr.mxu0 %v3615_v15  ;;  %4524 = vmatprep.mubr.f32.mxu1 %v5621_v36  ;;  %v3597_v0 = vld [vmem:[%s6678_s1 + $0x3a0] sm:$0xff] }
 0x129   : > { %4721 = vmatpush3.msra.mxu0 %v3615_v15  ;;  %4525 = vmatmul.mubr.f32.gmra.mxu1 %v5630_v23  ;;  %v6033_v13 = vpop.f32.mrf.mxu1 }
 0x12a   : > { %6818 = vst [vmem:[#allocation26_spill] sm:$0xff] %v6033_v13  ;;  %4604 = vmatprep.mubr.f32.mxu0 %v4859_v4  ;;  %4642 = vmatprep.subr.mxu1 %v3598_v48  ;;  %v3613_v4 = vld [vmem:[%s6678_s1 + $0x420] sm:$0xff] }
 0x12b   : > { %4605 = vmatmul.mubr.f32.gmra.mxu0 %v5842_v6  ;;  %4643 = vmatpush3.msra.mxu1 %v3598_v48  ;;  %v6039_v1 = vpop.f32.mrf.mxu0  ;;  %v6041_v15 = vpop.f32.mrf.mxu1  ;;  %v4860_v48 = vld [vmem:[#allocation2 + $0x38] sm:$0xff]  ;;  %v4861_v13 = vld [vmem:[#allocation2] sm:$0xff] }
 0x12c   : > { %6819 = vst [vmem:[#allocation28_spill] sm:$0xff] %v6041_v15  ;;  %4722 = vmatprep.subr.mxu0 %v3614_v21  ;;  %4527 = vmatprep.mubr.f32.mxu1 %v5640_v56  ;;  %v3596_v15 = vld [vmem:[%s6678_s1 + $0x398] sm:$0xff]  ;;  %v4865_v56 = vld [vmem:[#allocation2 + $0x70] sm:$0xff] }
 0x12d   : > { %4723 = vmatpush3.msra.mxu0 %v3614_v21  ;;  %4528 = vmatmul.mubr.f32.gmra.mxu1 %v5649_v20  ;;  %v6048_v6 = vpop.f32.mrf.mxu0  ;;  %v3612_v21 = vld [vmem:[%s6678_s1 + $0x418] sm:$0xff]  ;;  %v4863_v20 = vld [vmem:[#allocation2 + $0x110] sm:$0xff] }
 0x12e   : > { %4607 = vmatprep.mubr.f32.mxu0 %v4860_v48  ;;  %4644 = vmatprep.subr.mxu1 %v3597_v0 }
 0x12f   : > { %4608 = vmatmul.mubr.f32.gmra.mxu0 %v4861_v13  ;;  %4645 = vmatpush3.msra.mxu1 %v3597_v0  ;;  %v6053_v31 = vpop.f32.mrf.mxu1  ;;  %v4862_v0 = vld [vmem:[#allocation2 + $0xe8] sm:$0xff] }
 0x130   : > { %6820 = vst [vmem:[#allocation6_spill] sm:$0xff] %v6053_v31  ;;  %4724 = vmatprep.subr.mxu0 %v3613_v4  ;;  %4530 = vmatprep.mubr.f32.mxu1 %v5659_v17  ;;  %v2042_v17 = vrot.slane %v5872_v61, 2 }
 0x131   : > { %4725 = vmatpush3.msra.mxu0 %v3613_v4  ;;  %4531 = vmatmul.mubr.f32.gmra.mxu1 %v5668_v26  ;;  %v6060_v48 = vpop.f32.mrf.mxu0  ;;  %v6062_v13 = vpop.f32.mrf.mxu1  ;;  %v3595_v4 = vld [vmem:[%s6678_s1 + $0x390] sm:$0xff]  ;;  %v4864_v26 = vld [vmem:[#allocation2 + $0x1a8] sm:$0xff] }
 0x132   : > { %6821 = vst [vmem:[#allocation7_spill] sm:$0xff] %v6062_v13  ;;  %4610 = vmatprep.mubr.f32.mxu0 %v4862_v0  ;;  %4646 = vmatprep.subr.mxu1 %v3596_v15  ;;  %v3611_v0 = vld [vmem:[%s6678_s1 + $0x410] sm:$0xff] }
 0x133   : > { %4611 = vmatmul.mubr.f32.gmra.mxu0 %v4863_v20  ;;  %4647 = vmatpush3.msra.mxu1 %v3596_v15  ;;  %v6067_v31 = vpop.f32.mrf.mxu0  ;;  %v2039_v20 = vrot.slane %v5864_v59, 2  ;;  %v2040_v15 = vrot.slane %v5866_v60, 2 }
 0x134   : > { %4726 = vmatprep.subr.mxu0 %v3612_v21  ;;  %4533 = vmatprep.mubr.f32.mxu1 %v5678_v37 }
 0x135   : > { %4727 = vmatpush3.msra.mxu0 %v3612_v21  ;;  %4534 = vmatmul.mubr.f32.gmra.mxu1 %v5687_v33  ;;  %v6074_v13 = vpop.f32.mrf.mxu1  ;;  %v3594_v21 = vld [vmem:[%s6678_s1 + $0x388] sm:$0xff]  ;;  %v6094_v61 = vsel %vm1094_vm1, %v2039_v20, %v2040_v15  ;;  %v6109_v20 = vld [vmem:[#allocation2 + $0x178] sm:$0xff] }
 0x136   : > { %6822 = vst [vmem:[#allocation32_spill] sm:$0xff] %v6074_v13  ;;  %4613 = vmatprep.mubr.f32.mxu0 %v4864_v26  ;;  %4648 = vmatprep.subr.mxu1 %v3595_v4  ;;  %v3610_v26 = vld [vmem:[%s6678_s1 + $0x408] sm:$0xff]  ;;  %v3593_v13 = vld [vmem:[%s6678_s1 + $0x380] sm:$0xff] }
 0x137   : > { %4614 = vmatmul.mubr.f32.gmra.mxu0 %v4865_v56  ;;  %4649 = vmatpush3.msra.mxu1 %v3595_v4  ;;  %v6082_v33 = vpop.f32.mrf.mxu0  ;;  %v6084_v37 = vpop.f32.mrf.mxu1  ;;  %v6098_v4 = vsel %vm1094_vm1, %v2040_v15, %v2042_v17 }
 0x138   : > { %6823 = vst [vmem:[#allocation33_spill] sm:$0xff] %v6084_v37  ;;  %4728 = vmatprep.subr.mxu0 %v3611_v0  ;;  %4536 = vmatprep.mubr.f32.mxu1 %v5697_v43  ;;  %6824 = vst [vmem:[#allocation34_spill] sm:$0xff] %v6098_v4  ;;  %v6103_v37 = vld [vmem:[#allocation2 + $0x100] sm:$0xff] }
 0x139   : > { %4729 = vmatpush3.msra.mxu0 %v3611_v0  ;;  %4537 = vmatmul.mubr.f32.gmra.mxu1 %v5704_v47  ;;  %v6091_v56 = vpop.f32.mrf.mxu0 }
 0x13a   : > { %4616 = vmatprep.mubr.f32.mxu0 %v5864_v59  ;;  %4650 = vmatprep.subr.mxu1 %v3594_v21 }
 0x13b   : > { %4617 = vmatmul.mubr.f32.gmra.mxu0 %v5866_v60  ;;  %4651 = vmatpush3.msra.mxu1 %v3594_v21  ;;  %v6101_v0 = vpop.f32.mrf.mxu1  ;;  %v3609_v60 = vld [vmem:[%s6678_s1 + $0x400] sm:$0xff] }
 0x13c   : > { %6825 = vst [vmem:[#allocation41_spill] sm:$0xff] %v6101_v0  ;;  %4730 = vmatprep.subr.mxu0 %v3610_v26  ;;  %4539 = vmatprep.mubr.f32.mxu1 %v6094_v61 }
 0x13d   : > { %4731 = vmatpush3.msra.mxu0 %v3610_v26  ;;  %4540 = vmatmul.mubr.f32.gmra.mxu1 %v6098_v4  ;;  %v6112_v17 = vpop.f32.mrf.mxu0  ;;  %v6114_v59 = vpop.f32.mrf.mxu1 }
 0x13e   : > { %6826 = vst [vmem:[#allocation42_spill] sm:$0xff] %v6114_v59  ;;  %4619 = vmatprep.mubr.f32.mxu0 %v6103_v37  ;;  %4652 = vmatprep.subr.mxu1 %v3593_v13 }
 0x13f   : > { %4620 = vmatmul.mubr.f32.gmra.mxu0 %v6109_v20  ;;  %4653 = vmatpush3.msra.mxu1 %v3593_v13  ;;  %v6121_v15 = vpop.f32.mrf.mxu0 }
 0x140   : > { %4732 = vmatprep.subr.mxu0 %v3609_v60  ;;  %4654 = vmatprep.mubr.f32.mxu1 %v6783_v22 }
 0x141   : > { %4733 = vmatpush3.msra.mxu0 %v3609_v60  ;;  %v4176_v21 = vpop.f32.mrf.mxu1  ;;  %4655 = vmatmul.mubr.f32.vlgmr.msra.gmra.mxu1 %v6784_v44 }
 0x142   : > { %v941_v26 = vadd.f32 %v4176_v21, %v5950_v39  ;;  %4734 = vmatprep.mubr.f32.mxu0 %v5450_v35  ;;  %4657 = vmatprep.mubr.f32.mxu1 %v6785_v42 }
 0x143   : > { %v4256_v59 = vpop.f32.mrf.mxu0  ;;  %4735 = vmatmul.mubr.f32.vlgmr.msra.gmra.mxu0 %v5459_v11  ;;  %v935_v0 = vpop.f32.mrf.mxu1 }
 0x144   : > { %v6129_v13 = vadd.f32 %v4256_v59, %v941_v26  ;;  %v936_v4 = vadd.f32 %v935_v0, %v5959_v9  ;;  %4737 = vmatprep.mubr.f32.mxu0 %v5469_v12 }
 0x145   : > { %v1290_v22 = vpop.f32.mrf.mxu0  ;;  %v4179_v60 = vpop.f32.mrf.mxu1  ;;  %4658 = vmatmul.mubr.f32.gmra.mxu1 %v6786_v40 }
 0x146   : > { %v6134_v44 = vadd.f32 %v1290_v22, %v936_v4  ;;  %v951_v35 = vadd.f32 %v4179_v60, %v5971_v57  ;;  %4660 = vmatprep.mubr.f32.mxu1 %v6787_v62 }
 0x147   : > { %v4259_v42 = vpop.f32.mrf.mxu0  ;;  %4738 = vmatmul.mubr.f32.gmra.mxu0 %v5478_v29  ;;  %v945_v11 = vpop.f32.mrf.mxu1 }
 0x148   : > { %v6139_v39 = vadd.f32 %v4259_v42, %v951_v35  ;;  %v946_v9 = vadd.f32 %v945_v11, %v5980_v28  ;;  %4740 = vmatprep.mubr.f32.mxu0 %v5488_v2  ;;  %v6827_v11 = vld [vmem:[#allocation8_spill] sm:$0xff] }
 0x149   : > { %v1300_v12 = vpop.f32.mrf.mxu0  ;;  %v4182_v0 = vpop.f32.mrf.mxu1  ;;  %4661 = vmatmul.mubr.f32.gmra.mxu1 %v6788_v27 }
 0x14a   : > { %v6144_v40 = vadd.f32 %v1300_v12, %v946_v9  ;;  %v961_v57 = vadd.f32 %v4182_v0, %v5994_v58  ;;  %4663 = vmatprep.mubr.f32.mxu1 %v6789_v32  ;;  %v6828_v0 = vld [vmem:[#allocation9_spill] sm:$0xff] }
 0x14b   : > { %v4262_v62 = vpop.f32.mrf.mxu0  ;;  %4741 = vmatmul.mubr.f32.gmra.mxu0 %v5497_v55  ;;  %v955_v29 = vpop.f32.mrf.mxu1 }
 0x14c   : > { %v6149_v4 = vadd.f32 %v4262_v62, %v961_v57  ;;  %v956_v28 = vadd.f32 %v955_v29, %v6003_v41  ;;  %4743 = vmatprep.mubr.f32.mxu0 %v5507_v10  ;;  %v6829_v57 = vld [vmem:[#allocation11_spill] sm:$0xff] }
 0x14d   : > { %v1310_v2 = vpop.f32.mrf.mxu0  ;;  %v4185_v59 = vpop.f32.mrf.mxu1  ;;  %4664 = vmatmul.mubr.f32.gmra.mxu1 %v6790_v34 }
 0x14e   : > { %v6154_v27 = vadd.f32 %v1310_v2, %v956_v28  ;;  %v971_v58 = vadd.f32 %v4185_v59, %v6017_v25  ;;  %4666 = vmatprep.mubr.f32.mxu1 %v6791_v14  ;;  %v6830_v2 = vld [vmem:[#allocation13_spill] sm:$0xff] }
 0x14f   : > { %v4265_v32 = vpop.f32.mrf.mxu0  ;;  %4744 = vmatmul.mubr.f32.gmra.mxu0 %v6809_v19  ;;  %v965_v55 = vpop.f32.mrf.mxu1 }
 0x150   : > { %v6159_v21 = vadd.f32 %v4265_v32, %v971_v58  ;;  %v966_v41 = vadd.f32 %v965_v55, %v6026_v45  ;;  %4746 = vmatprep.mubr.f32.mxu0 %v5526_v49  ;;  %v6831_v58 = vld [vmem:[#allocation15_spill] sm:$0xff] }
 0x151   : > { %v1320_v10 = vpop.f32.mrf.mxu0  ;;  %v4188_v26 = vpop.f32.mrf.mxu1  ;;  %4667 = vmatmul.mubr.f32.gmra.mxu1 %v5368_v30 }
 0x152   : > { %v6164_v34 = vadd.f32 %v1320_v10, %v966_v41  ;;  %v981_v25 = vadd.f32 %v4188_v26, %v6039_v1  ;;  %4669 = vmatprep.mubr.f32.mxu1 %v5390_v52  ;;  %v6832_v41 = vld [vmem:[#allocation14_spill] sm:$0xff]  ;;  %v6833_v26 = vld [vmem:[#allocation17_spill] sm:$0xff] }
 0x153   : > { %v4268_v14 = vpop.f32.mrf.mxu0  ;;  %4747 = vmatmul.mubr.f32.gmra.mxu0 %v6811_v51  ;;  %v975_v19 = vpop.f32.mrf.mxu1 }
 0x154   : > { %v6169_v22 = vadd.f32 %v4268_v14, %v981_v25  ;;  %v976_v45 = vadd.f32 %v975_v19, %v6048_v6  ;;  %4749 = vmatprep.mubr.f32.mxu0 %v5545_v50  ;;  %v6834_v14 = vld [vmem:[#allocation19_spill] sm:$0xff] }
 0x155   : > { %v1330_v49 = vpop.f32.mrf.mxu0  ;;  %v4191_v60 = vpop.f32.mrf.mxu1  ;;  %4670 = vmatmul.mubr.f32.gmra.mxu1 %v5400_v18 }
 0x156   : > { %v6174_v30 = vadd.f32 %v1330_v49, %v976_v45  ;;  %v991_v1 = vadd.f32 %v4191_v60, %v6060_v48  ;;  %4672 = vmatprep.mubr.f32.mxu1 %v6792_v63  ;;  %v6835_v49 = vld [vmem:[#allocation16_spill] sm:$0xff] }
 0x157   : > { %v4271_v52 = vpop.f32.mrf.mxu0  ;;  %4750 = vmatmul.mubr.f32.gmra.mxu0 %v6812_v53  ;;  %v985_v51 = vpop.f32.mrf.mxu1 }
 0x158   : > { %v6179_v35 = vadd.f32 %v4271_v52, %v991_v1  ;;  %v986_v6 = vadd.f32 %v985_v51, %v6067_v31  ;;  %4752 = vmatprep.mubr.f32.mxu0 %v5564_v38  ;;  %v6836_v1 = vld [vmem:[#allocation35_spill] sm:$0xff]  ;;  %v6837_v51 = vld [vmem:[#allocation21_spill] sm:$0xff] }
 0x159   : > { %v1340_v50 = vpop.f32.mrf.mxu0  ;;  %v4194_v42 = vpop.f32.mrf.mxu1  ;;  %4673 = vmatmul.mubr.f32.gmra.mxu1 %v6793_v54 }
 0x15a   : > { %v6184_v18 = vadd.f32 %v1340_v50, %v986_v6  ;;  %v1001_v48 = vadd.f32 %v4194_v42, %v6082_v33  ;;  %4675 = vmatprep.mubr.f32.mxu1 %v6827_v11  ;;  %v6838_v50 = vld [vmem:[#allocation18_spill] sm:$0xff]  ;;  %v6839_v42 = vld [vmem:[#allocation23_spill] sm:$0xff]  ;;  %v6840_v11 = vld [vmem:[#allocation36_spill] sm:$0xff] }
 0x15b   : > { %v4274_v63 = vpop.f32.mrf.mxu0  ;;  %4753 = vmatmul.mubr.f32.gmra.mxu0 %v5573_v46  ;;  %v995_v53 = vpop.f32.mrf.mxu1 }
 0x15c   : > { %v6189_v9 = vadd.f32 %v4274_v63, %v1001_v48  ;;  %v996_v31 = vadd.f32 %v995_v53, %v6091_v56  ;;  %4755 = vmatprep.mubr.f32.mxu0 %v5583_v3  ;;  %v6841_v53 = vld [vmem:[#allocation20_spill] sm:$0xff] }
 0x15d   : > { %v1350_v38 = vpop.f32.mrf.mxu0  ;;  %v4197_v12 = vpop.f32.mrf.mxu1  ;;  %4676 = vmatmul.mubr.f32.gmra.mxu1 %v6828_v0 }
 0x15e   : > { %v6194_v54 = vadd.f32 %v1350_v38, %v996_v31  ;;  %v1011_v33 = vadd.f32 %v4197_v12, %v6112_v17  ;;  %4678 = vmatprep.mubr.f32.mxu1 %v6829_v57  ;;  %v6842_v38 = vld [vmem:[#allocation37_spill] sm:$0xff] }
 0x15f   : > { %v4277_v62 = vpop.f32.mrf.mxu0  ;;  %4756 = vmatmul.mubr.f32.gmra.mxu0 %v5592_v5  ;;  %v1005_v46 = vpop.f32.mrf.mxu1 }
 0x160   : > { %v6199_v29 = vadd.f32 %v4277_v62, %v1011_v33  ;;  %v1006_v56 = vadd.f32 %v1005_v46, %v6121_v15  ;;  %4758 = vmatprep.mubr.f32.mxu0 %v5602_v16  ;;  %v6843_v33 = vld [vmem:[#allocation25_spill] sm:$0xff]  ;;  %v6844_v62 = vld [vmem:[#allocation22_spill] sm:$0xff] }
 0x161   : > { %v1360_v3 = vpop.f32.mrf.mxu0  ;;  %v4200_v28 = vpop.f32.mrf.mxu1  ;;  %4679 = vmatmul.mubr.f32.gmra.mxu1 %v6830_v2 }
 0x162   : > { %v6204_v59 = vadd.f32 %v1360_v3, %v1006_v56  ;;  %v1021_v17 = vadd.f32 %v4200_v28, %v5945_v24  ;;  %4681 = vmatprep.mubr.f32.mxu1 %v6831_v58  ;;  %v6845_v56 = vld [vmem:[#allocation27_spill] sm:$0xff]  ;;  %v6846_v28 = vld [vmem:[#allocation38_spill] sm:$0xff]  ;;  %v6847_v58 = vld [vmem:[#allocation24_spill] sm:$0xff] }
 0x163   : > { %v4280_v32 = vpop.f32.mrf.mxu0  ;;  %4759 = vmatmul.mubr.f32.gmra.mxu0 %v5611_v8  ;;  %v1015_v5 = vpop.f32.mrf.mxu1 }
 0x164   : > { %v6209_v55 = vadd.f32 %v4280_v32, %v1021_v17  ;;  %v1016_v15 = vadd.f32 %v1015_v5, %v6832_v41  ;;  %4761 = vmatprep.mubr.f32.mxu0 %v5621_v36  ;;  %v6848_v5 = vld [vmem:[#allocation39_spill] sm:$0xff] }
 0x165   : > { %v1370_v16 = vpop.f32.mrf.mxu0  ;;  %v4203_v10 = vpop.f32.mrf.mxu1  ;;  %4682 = vmatmul.mubr.f32.gmra.mxu1 %v6833_v26  ;;  %v6850_v26 = vld [vmem:[#allocation26_spill] sm:$0xff] }
 0x166   : > { %v6214_v25 = vadd.f32 %v1370_v16, %v1016_v15  ;;  %v1031_v24 = vadd.f32 %v4203_v10, %v5964_v7  ;;  %4684 = vmatprep.mubr.f32.mxu1 %v6834_v14  ;;  %v6849_v16 = vld [vmem:[#allocation29_spill] sm:$0xff]  ;;  %v6851_v14 = vld [vmem:[#allocation30_spill] sm:$0xff] }
 0x167   : > { %v4283_v19 = vpop.f32.mrf.mxu0  ;;  %4762 = vmatmul.mubr.f32.gmra.mxu0 %v5630_v23  ;;  %v1025_v8 = vpop.f32.mrf.mxu1 }
 0x168   : > { %v6219_v45 = vadd.f32 %v4283_v19, %v1031_v24  ;;  %v1026_v60 = vadd.f32 %v1025_v8, %v6835_v49  ;;  %4764 = vmatprep.mubr.f32.mxu0 %v6836_v1  ;;  %v2597_v19 = vrot.slane %v6103_v37, 1  ;;  %v2598_v8 = vrot.slane %v6109_v20, 1 }
 0x169   : > { %v1380_v36 = vpop.f32.mrf.mxu0  ;;  %v4206_v52 = vpop.f32.mrf.mxu1  ;;  %4685 = vmatmul.mubr.f32.gmra.mxu1 %v6837_v51  ;;  %v6853_v51 = vld [vmem:[#allocation28_spill] sm:$0xff] }
 0x16a   : > { %v6224_v6 = vadd.f32 %v1380_v36, %v1026_v60  ;;  %v1041_v7 = vadd.f32 %v4206_v52, %v6838_v50  ;;  %4687 = vmatprep.mubr.f32.mxu1 %v6839_v42  ;;  %v6852_v60 = vld [vmem:[#allocation40_spill] sm:$0xff]  ;;  %v449_v36 = vld [vmem:[#allocation2 + $0x148] sm:$0x3]  ;;  %v2879_v42 = vrot.slane %v6109_v20, 2  ;;  %v6857_v20 = vld [vmem:[#allocation7_spill] sm:$0xff] }
 0x16b   : > { %v4286_v48 = vpop.f32.mrf.mxu0  ;;  %4765 = vmatmul.mubr.f32.gmra.mxu0 %v6840_v11  ;;  %v1035_v23 = vpop.f32.mrf.mxu1 }
 0x16c   : > { %v6229_v63 = vadd.f32 %v4286_v48, %v1041_v7  ;;  %v1036_v31 = vadd.f32 %v1035_v23, %v6841_v53  ;;  %4767 = vmatprep.mubr.f32.mxu0 %v6842_v38  ;;  %v2878_v7 = vrot.slane %v6103_v37, 2  ;;  %v6854_v23 = vld [vmem:[#allocation31_spill] sm:$0xff] }
 0x16d   : > { %v1390_v12 = vpop.f32.mrf.mxu0  ;;  %v4209_v0 = vpop.f32.mrf.mxu1  ;;  %4688 = vmatmul.mubr.f32.gmra.mxu1 %v6843_v33 }
 0x16e   : > { %v6234_v57 = vadd.f32 %v1390_v12, %v1036_v31  ;;  %v1051_v46 = vadd.f32 %v4209_v0, %v6844_v62  ;;  %4690 = vmatprep.mubr.f32.mxu1 %v6845_v56  ;;  %v6855_v31 = vld [vmem:[#allocation6_spill] sm:$0xff]  ;;  %v2600_v0 = vrot.slane %v449_v36, 1  ;;  %v2881_v56 = vrot.slane %v449_v36, 2  ;;  %v6862_v36 = vld [vmem:[#allocation41_spill] sm:$0xff] }
 0x16f   : > { %v4289_v3 = vpop.f32.mrf.mxu0  ;;  %4768 = vmatmul.mubr.f32.gmra.mxu0 %v6846_v28  ;;  %v1045_v2 = vpop.f32.mrf.mxu1  ;;  %v6856_v12 = vld [vmem:[#allocation10_spill] sm:$0xff] }
 0x170   : > { %v6239_v17 = vadd.f32 %v4289_v3, %v1051_v46  ;;  %v1046_v32 = vadd.f32 %v1045_v2, %v6847_v58  ;;  %4770 = vmatprep.mubr.f32.mxu0 %v6848_v5  ;;  %v6858_v2 = vld [vmem:[#allocation12_spill] sm:$0xff]  ;;  %v2880_v58 = vsel %vm1094_vm1, %v2878_v7, %v2879_v42 }
 0x171   : > { %v1400_v41 = vpop.f32.mrf.mxu0  ;;  %v4212_v15 = vpop.f32.mrf.mxu1  ;;  %4691 = vmatmul.mubr.f32.gmra.mxu1 %v6849_v16  ;;  %v6859_v5 = vld [vmem:[#allocation32_spill] sm:$0xff]  ;;  %v6860_v16 = vld [vmem:[#allocation34_spill] sm:$0xff] }
 0x172   : > { %v6244_v10 = vadd.f32 %v1400_v41, %v1046_v32  ;;  %v1061_v24 = vadd.f32 %v4212_v15, %v6850_v26  ;;  %4693 = vmatprep.mubr.f32.mxu1 %v6851_v14  ;;  %v2601_v41 = vsel %vm514_vm0, %v2598_v8, %v2600_v0 }
 0x173   : > { %v4292_v49 = vpop.f32.mrf.mxu0  ;;  %4771 = vmatmul.mubr.f32.gmra.mxu0 %v6852_v60  ;;  %v1055_v1 = vpop.f32.mrf.mxu1 }
 0x174   : > { %v6251_v52 = vadd.f32 %v4292_v49, %v1061_v24  ;;  %v1056_v50 = vadd.f32 %v1055_v1, %v6853_v51  ;;  %4773 = vmatprep.mubr.f32.mxu0 %v5697_v43  ;;  %v2599_v43 = vsel %vm514_vm0, %v2597_v19, %v2598_v8  ;;  %v2882_v19 = vsel %vm1094_vm1, %v2879_v42, %v2881_v56 }
 0x175   : > { %v1410_v48 = vpop.f32.mrf.mxu0  ;;  %v4215_v11 = vpop.f32.mrf.mxu1  ;;  %4694 = vmatmul.mubr.f32.gmra.mxu1 %v6854_v23 }
 0x176   : > { %v6258_v53 = vadd.f32 %v1410_v48, %v1056_v50  ;;  %v1071_v38 = vadd.f32 %v4215_v11, %v6855_v31  ;;  %4696 = vmatprep.mubr.f32.mxu1 %v6856_v12  ;;  %v6863_v48 = vld [vmem:[#allocation42_spill] sm:$0xff] }
 0x177   : > { %v4295_v33 = vpop.f32.mrf.mxu0  ;;  %4774 = vmatmul.mubr.f32.gmra.mxu0 %v5704_v47  ;;  %v1065_v62 = vpop.f32.mrf.mxu1 }
 0x178   : > { %v6264_v37 = vadd.f32 %v4295_v33, %v1071_v38  ;;  %v1066_v46 = vadd.f32 %v1065_v62, %v6857_v20  ;;  %4776 = vmatprep.mubr.f32.mxu0 %v6094_v61  ;;  %v6861_v61 = vld [vmem:[#allocation33_spill] sm:$0xff] }
 0x179   : > { %v1420_v3 = vpop.f32.mrf.mxu0  ;;  %v4218_v28 = vpop.f32.mrf.mxu1  ;;  %4697 = vmatmul.mubr.f32.gmra.mxu1 %v6858_v2 }
 0x17a   : > { %v6270_v32 = vadd.f32 %v1420_v3, %v1066_v46  ;;  %v1081_v47 = vadd.f32 %v4218_v28, %v6859_v5  ;;  %4699 = vmatprep.mubr.f32.mxu1 %v2599_v43 }
 0x17b   : > { %v4298_v15 = vpop.f32.mrf.mxu0  ;;  %4777 = vmatmul.mubr.f32.gmra.mxu0 %v6860_v16  ;;  %v1075_v26 = vpop.f32.mrf.mxu1 }
 0x17c   : > { %v6275_v24 = vadd.f32 %v4298_v15, %v1081_v47  ;;  %v1076_v14 = vadd.f32 %v1075_v26, %v6861_v61  ;;  %4779 = vmatprep.mubr.f32.mxu0 %v2880_v58 }
 0x17d   : > { %v1430_v49 = vpop.f32.mrf.mxu0  ;;  %v4221_v60 = vpop.f32.mrf.mxu1  ;;  %4700 = vmatmul.mubr.f32.gmra.mxu1 %v2601_v41 }
 0x17e   : > { %v6279_v1 = vadd.f32 %v1430_v49, %v1076_v14  ;;  %v1091_v51 = vadd.f32 %v4221_v60, %v6862_v36 }
 0x17f   : > { %v4301_v50 = vpop.f32.mrf.mxu0  ;;  %4780 = vmatmul.mubr.f32.gmra.mxu0 %v2882_v19  ;;  %v1085_v8 = vpop.f32.mrf.mxu1 }
 0x180   : > { %v6282_v7 = vadd.f32 %v4301_v50, %v1091_v51  ;;  %v1086_v11 = vadd.f32 %v1085_v8, %v6863_v48 }
 0x181   : > { %v1440_v23 = vpop.f32.mrf.mxu0  ;;  %v4336_v31 = vpop.f32.mrf.mxu1 }
 0x182   : > { %v6285_v38 = vadd.f32 %v1440_v23, %v1086_v11  ;;  %v1724_v42 = vadd.f32 %v4336_v31, %v6129_v13 }
 0x183   : > { %v4416_v12 = vpop.f32.mrf.mxu0  ;;  %v1564_v0 = vpop.f32.mrf.mxu1 }
 0x184   : > { %v6288_v33 = vadd.f32 %v4416_v12, %v1724_v42  ;;  %v1723_v62 = vadd.f32 %v1564_v0, %v6134_v44 }
 0x185   : > { %v1848_v43 = vpop.f32.mrf.mxu0  ;;  %v4339_v20 = vpop.f32.mrf.mxu1 }
 0x186   : > { %v6291_v46 = vadd.f32 %v1848_v43, %v1723_v62  ;;  %v1726_v56 = vadd.f32 %v4339_v20, %v6139_v39 }
 0x187   : > { %v4419_v3 = vpop.f32.mrf.mxu0  ;;  %v1574_v28 = vpop.f32.mrf.mxu1 }
 0x188   : > { %v6294_v2 = vadd.f32 %v4419_v3, %v1726_v56  ;;  %v1725_v58 = vadd.f32 %v1574_v28, %v6144_v40 }
 0x189   : > { %v1858_v5 = vpop.f32.mrf.mxu0  ;;  %v4342_v13 = vpop.f32.mrf.mxu1 }
 0x18a   : > { %v6297_v47 = vadd.f32 %v1858_v5, %v1725_v58  ;;  %v1728_v41 = vadd.f32 %v4342_v13, %v6149_v4 }
 0x18b   : > { %v4422_v15 = vpop.f32.mrf.mxu0  ;;  %v1584_v44 = vpop.f32.mrf.mxu1 }
 0x18c   : > { %v6300_v16 = vadd.f32 %v4422_v15, %v1728_v41  ;;  %v1727_v26 = vadd.f32 %v1584_v44, %v6154_v27 }
 0x18d   : > { %v1868_v61 = vpop.f32.mrf.mxu0  ;;  %v4345_v39 = vpop.f32.mrf.mxu1 }
 0x18e   : > { %v6303_v14 = vadd.f32 %v1868_v61, %v1727_v26  ;;  %v1730_v19 = vadd.f32 %v4345_v39, %v6159_v21 }
 0x18f   : > { %v4425_v49 = vpop.f32.mrf.mxu0  ;;  %v1594_v40 = vpop.f32.mrf.mxu1 }
 0x190   : > { %v6306_v60 = vadd.f32 %v4425_v49, %v1730_v19  ;;  %v1729_v36 = vadd.f32 %v1594_v40, %v6164_v34 }
 0x191   : > { %v1878_v51 = vpop.f32.mrf.mxu0  ;;  %v4348_v4 = vpop.f32.mrf.mxu1 }
 0x192   : > { %v6309_v50 = vadd.f32 %v1878_v51, %v1729_v36  ;;  %v1732_v8 = vadd.f32 %v4348_v4, %v6169_v22 }
 0x193   : > { %v4428_v48 = vpop.f32.mrf.mxu0  ;;  %v1604_v27 = vpop.f32.mrf.mxu1 }
 0x194   : > { %v6312_v11 = vadd.f32 %v4428_v48, %v1732_v8  ;;  %v1731_v23 = vadd.f32 %v1604_v27, %v6174_v30 }
 0x195   : > { %v1888_v31 = vpop.f32.mrf.mxu0  ;;  %v4351_v21 = vpop.f32.mrf.mxu1 }
 0x196   : > { %v6315_v42 = vadd.f32 %v1888_v31, %v1731_v23  ;;  %v1734_v12 = vadd.f32 %v4351_v21, %v6179_v35 }
 0x197   : > { %v4431_v0 = vpop.f32.mrf.mxu0  ;;  %v1614_v34 = vpop.f32.mrf.mxu1 }
 0x198   : > { %v6318_v62 = vadd.f32 %v4431_v0, %v1734_v12  ;;  %v1733_v43 = vadd.f32 %v1614_v34, %v6184_v18 }
 0x199   : > { %v1898_v20 = vpop.f32.mrf.mxu0  ;;  %v4354_v22 = vpop.f32.mrf.mxu1 }
 0x19a   : > { %v6321_v56 = vadd.f32 %v1898_v20, %v1733_v43  ;;  %v1736_v3 = vadd.f32 %v4354_v22, %v6189_v9 }
 0x19b   : > { %v4434_v28 = vpop.f32.mrf.mxu0  ;;  %v1624_v30 = vpop.f32.mrf.mxu1 }
 0x19c   : > { %v6324_v58 = vadd.f32 %v4434_v28, %v1736_v3  ;;  %v1735_v5 = vadd.f32 %v1624_v30, %v6194_v54 }
 0x19d   : > { %v1908_v13 = vpop.f32.mrf.mxu0  ;;  %v4357_v35 = vpop.f32.mrf.mxu1 }
 0x19e   : > { %v6327_v41 = vadd.f32 %v1908_v13, %v1735_v5  ;;  %v1738_v15 = vadd.f32 %v4357_v35, %v6199_v29 }
 0x19f   : > { %v4437_v44 = vpop.f32.mrf.mxu0  ;;  %v1634_v18 = vpop.f32.mrf.mxu1 }
 0x1a0   : > { %v6330_v26 = vadd.f32 %v4437_v44, %v1738_v15  ;;  %v1737_v61 = vadd.f32 %v1634_v18, %v6204_v59 }
 0x1a1   : > { %v1918_v39 = vpop.f32.mrf.mxu0  ;;  %v4360_v9 = vpop.f32.mrf.mxu1 }
 0x1a2   : > { %v6333_v19 = vadd.f32 %v1918_v39, %v1737_v61  ;;  %v1740_v49 = vadd.f32 %v4360_v9, %v6209_v55 }
 0x1a3   : > { %v4440_v40 = vpop.f32.mrf.mxu0  ;;  %v1644_v54 = vpop.f32.mrf.mxu1 }
 0x1a4   : > { %v6336_v36 = vadd.f32 %v4440_v40, %v1740_v49  ;;  %v1739_v51 = vadd.f32 %v1644_v54, %v6214_v25 }
 0x1a5   : > { %v1928_v4 = vpop.f32.mrf.mxu0  ;;  %v4363_v29 = vpop.f32.mrf.mxu1 }
 0x1a6   : > { %v6339_v8 = vadd.f32 %v1928_v4, %v1739_v51  ;;  %v1742_v48 = vadd.f32 %v4363_v29, %v6219_v45 }
 0x1a7   : > { %v4443_v27 = vpop.f32.mrf.mxu0  ;;  %v1654_v59 = vpop.f32.mrf.mxu1 }
 0x1a8   : > { %v6342_v23 = vadd.f32 %v4443_v27, %v1742_v48  ;;  %v1741_v31 = vadd.f32 %v1654_v59, %v6224_v6 }
 0x1a9   : > { %v1938_v21 = vpop.f32.mrf.mxu0  ;;  %v4366_v55 = vpop.f32.mrf.mxu1 }
 0x1aa   : > { %6864 = vst [vmem:[#allocation8_spill] sm:$0xff] %v6342_v23  ;;  %v6345_v12 = vadd.f32 %v1938_v21, %v1741_v31  ;;  %v1744_v0 = vadd.f32 %v4366_v55, %v6229_v63 }
 0x1ab   : > { %v4446_v34 = vpop.f32.mrf.mxu0  ;;  %v1664_v25 = vpop.f32.mrf.mxu1 }
 0x1ac   : > { %6865 = vst [vmem:[#allocation9_spill] sm:$0xff] %v6345_v12  ;;  %v6348_v43 = vadd.f32 %v4446_v34, %v1744_v0  ;;  %v1743_v20 = vadd.f32 %v1664_v25, %v6234_v57 }
 0x1ad   : > { %v1948_v22 = vpop.f32.mrf.mxu0  ;;  %v4369_v45 = vpop.f32.mrf.mxu1 }
 0x1ae   : > { %6866 = vst [vmem:[#allocation11_spill] sm:$0xff] %v6348_v43  ;;  %v6351_v3 = vadd.f32 %v1948_v22, %v1743_v20  ;;  %v1746_v28 = vadd.f32 %v4369_v45, %v6239_v17 }
 0x1af   : > { %v4449_v30 = vpop.f32.mrf.mxu0  ;;  %v1674_v6 = vpop.f32.mrf.mxu1 }
 0x1b0   : > { %6867 = vst [vmem:[#allocation13_spill] sm:$0xff] %v6351_v3  ;;  %v6354_v5 = vadd.f32 %v4449_v30, %v1746_v28  ;;  %v1745_v13 = vadd.f32 %v1674_v6, %v6244_v10 }
 0x1b1   : > { %v1958_v35 = vpop.f32.mrf.mxu0  ;;  %v4372_v63 = vpop.f32.mrf.mxu1 }
 0x1b2   : > { %6868 = vst [vmem:[#allocation15_spill] sm:$0xff] %v6354_v5  ;;  %v6357_v15 = vadd.f32 %v1958_v35, %v1745_v13  ;;  %v1748_v44 = vadd.f32 %v4372_v63, %v6251_v52 }
 0x1b3   : > { %v4452_v18 = vpop.f32.mrf.mxu0  ;;  %v1684_v57 = vpop.f32.mrf.mxu1 }
 0x1b4   : > { %6869 = vst [vmem:[#allocation14_spill] sm:$0xff] %v6357_v15  ;;  %v6360_v61 = vadd.f32 %v4452_v18, %v1748_v44  ;;  %v1747_v39 = vadd.f32 %v1684_v57, %v6258_v53 }
 0x1b5   : > { %v1968_v9 = vpop.f32.mrf.mxu0  ;;  %v4375_v17 = vpop.f32.mrf.mxu1 }
 0x1b6   : > { %6870 = vst [vmem:[#allocation17_spill] sm:$0xff] %v6360_v61  ;;  %v6363_v49 = vadd.f32 %v1968_v9, %v1747_v39  ;;  %v1750_v40 = vadd.f32 %v4375_v17, %v6264_v37 }
 0x1b7   : > { %v4455_v54 = vpop.f32.mrf.mxu0  ;;  %v1694_v10 = vpop.f32.mrf.mxu1 }
 0x1b8   : > { %6871 = vst [vmem:[#allocation19_spill] sm:$0xff] %v6363_v49  ;;  %v6366_v51 = vadd.f32 %v4455_v54, %v1750_v40  ;;  %v1749_v4 = vadd.f32 %v1694_v10, %v6270_v32 }
 0x1b9   : > { %v1978_v29 = vpop.f32.mrf.mxu0  ;;  %v4378_v52 = vpop.f32.mrf.mxu1 }
 0x1ba   : > { %6872 = vst [vmem:[#allocation16_spill] sm:$0xff] %v6366_v51  ;;  %v6369_v48 = vadd.f32 %v1978_v29, %v1749_v4  ;;  %v1752_v27 = vadd.f32 %v4378_v52, %v6275_v24 }
 0x1bb   : > { %v4458_v59 = vpop.f32.mrf.mxu0  ;;  %v1704_v53 = vpop.f32.mrf.mxu1 }
 0x1bc   : > { %6873 = vst [vmem:[#allocation35_spill] sm:$0xff] %v6369_v48  ;;  %v6372_v31 = vadd.f32 %v4458_v59, %v1752_v27  ;;  %v1751_v21 = vadd.f32 %v1704_v53, %v6279_v1 }
 0x1bd   : > { %v1988_v55 = vpop.f32.mrf.mxu0  ;;  %v4381_v37 = vpop.f32.mrf.mxu1 }
 0x1be   : > { %6874 = vst [vmem:[#allocation21_spill] sm:$0xff] %v6372_v31  ;;  %v6375_v0 = vadd.f32 %v1988_v55, %v1751_v21  ;;  %v1754_v34 = vadd.f32 %v4381_v37, %v6282_v7 }
 0x1bf   : > { %v4461_v25 = vpop.f32.mrf.mxu0  ;;  %v1714_v32 = vpop.f32.mrf.mxu1 }
 0x1c0   : > { %6875 = vst [vmem:[#allocation18_spill] sm:$0xff] %v6375_v0  ;;  %v6378_v20 = vadd.f32 %v4461_v25, %v1754_v34  ;;  %v1753_v22 = vadd.f32 %v1714_v32, %v6285_v38 }
 0x1c1   : > { %v1998_v45 = vpop.f32.mrf.mxu0  ;;  %v4496_v24 = vpop.f32.mrf.mxu1 }
 0x1c2   : > { %6876 = vst [vmem:[#allocation23_spill] sm:$0xff] %v6378_v20  ;;  %v6381_v28 = vadd.f32 %v1998_v45, %v1753_v22 }
 0x1c3   : > { %v6383_v30 = vpop.f32.mrf.mxu0  ;;  %v2129_v6 = vpop.f32.mrf.mxu1 }
 0x1c4   : > { %6877 = vst [vmem:[#allocation36_spill] sm:$0xff] %v6381_v28 }
 0x1c5   : > { %v6385_v1 = vpop.f32.mrf.mxu0  ;;  %v4499_v13 = vpop.f32.mrf.mxu1 }
 0x1c7   : > { %v6387_v35 = vpop.f32.mrf.mxu0  ;;  %v6389_v63 = vpop.f32.mrf.mxu1 }
 0x1c9   : > { %v6391_v7 = vpop.f32.mrf.mxu0  ;;  %v6393_v44 = vpop.f32.mrf.mxu1 }
 0x1cb   : > { %v6395_v18 = vpop.f32.mrf.mxu0  ;;  %v6397_v38 = vpop.f32.mrf.mxu1 }
 0x1cd   : > { %v6399_v57 = vpop.f32.mrf.mxu0  ;;  %v6401_v39 = vpop.f32.mrf.mxu1 }
 0x1cf   : > { %v6403_v9 = vpop.f32.mrf.mxu0  ;;  %v6405_v17 = vpop.f32.mrf.mxu1 }
 0x1d1   : > { %v6407_v40 = vpop.f32.mrf.mxu0  ;;  %v6409_v54 = vpop.f32.mrf.mxu1 }
 0x1d3   : > { %v6411_v10 = vpop.f32.mrf.mxu0  ;;  %v6413_v4 = vpop.f32.mrf.mxu1 }
 0x1d5   : > { %v6415_v29 = vpop.f32.mrf.mxu0  ;;  %v6417_v52 = vpop.f32.mrf.mxu1 }
 0x1d7   : > { %v6419_v27 = vpop.f32.mrf.mxu0  ;;  %v6421_v59 = vpop.f32.mrf.mxu1 }
 0x1d9   : > { %v6423_v53 = vpop.f32.mrf.mxu0  ;;  %v6425_v21 = vpop.f32.mrf.mxu1 }
 0x1db   : > { %v6427_v55 = vpop.f32.mrf.mxu0  ;;  %v6429_v37 = vpop.f32.mrf.mxu1 }
 0x1dd   : > { %v6431_v34 = vpop.f32.mrf.mxu0  ;;  %v6433_v25 = vpop.f32.mrf.mxu1 }
 0x1df   : > { %v6435_v32 = vpop.f32.mrf.mxu0  ;;  %v6437_v22 = vpop.f32.mrf.mxu1 }
 0x1e1   : > { %v6439_v45 = vpop.f32.mrf.mxu0  ;;  %v6441_v28 = vpop.f32.mrf.mxu1 }
 0x1e3   : > { %v6443_v20 = vpop.f32.mrf.mxu0  ;;  %v6445_v0 = vpop.f32.mrf.mxu1 }
 0x1e5   : > { %v6447_v31 = vpop.f32.mrf.mxu0  ;;  %v6449_v48 = vpop.f32.mrf.mxu1 }
 0x1e6   : > { %6878 = vst [vmem:[#allocation20_spill] sm:$0xff] %v6447_v31  ;;  %6879 = vst [vmem:[#allocation37_spill] sm:$0xff] %v6449_v48 }
 0x1e7   : > { %v6451_v51 = vpop.f32.mrf.mxu0  ;;  %v6453_v49 = vpop.f32.mrf.mxu1 }
 0x1e8   : > { %6880 = vst [vmem:[#allocation25_spill] sm:$0xff] %v6451_v51  ;;  %6881 = vst [vmem:[#allocation22_spill] sm:$0xff] %v6453_v49 }
 0x1e9   : > { %v6455_v61 = vpop.f32.mrf.mxu0  ;;  %v6457_v15 = vpop.f32.mrf.mxu1 }
 0x1ea   : > { %6882 = vst [vmem:[#allocation27_spill] sm:$0xff] %v6455_v61  ;;  %6883 = vst [vmem:[#allocation38_spill] sm:$0xff] %v6457_v15 }
 0x1eb   : > { %v6459_v5 = vpop.f32.mrf.mxu0  ;;  %v6461_v3 = vpop.f32.mrf.mxu1 }
 0x1ec   : > { %6884 = vst [vmem:[#allocation24_spill] sm:$0xff] %v6459_v5  ;;  %6885 = vst [vmem:[#allocation39_spill] sm:$0xff] %v6461_v3 }
 0x1ed   : > { %v6463_v43 = vpop.f32.mrf.mxu0  ;;  %v6465_v12 = vpop.f32.mrf.mxu1 }
 0x1ee   : > { %6886 = vst [vmem:[#allocation29_spill] sm:$0xff] %v6463_v43  ;;  %6887 = vst [vmem:[#allocation26_spill] sm:$0xff] %v6465_v12 }
 0x1ef   : > { %v6467_v23 = vpop.f32.mrf.mxu0  ;;  %v6469_v31 = vpop.f32.mrf.mxu1 }
 0x1f0   : > { %6888 = vst [vmem:[#allocation30_spill] sm:$0xff] %v6467_v23  ;;  %6889 = vst [vmem:[#allocation40_spill] sm:$0xff] %v6469_v31 }
 0x1f1   : > { %v6471_v48 = vpop.f32.mrf.mxu0  ;;  %v6473_v51 = vpop.f32.mrf.mxu1 }
 0x1f2   : > { %6890 = vst [vmem:[#allocation28_spill] sm:$0xff] %v6471_v48  ;;  %6891 = vst [vmem:[#allocation31_spill] sm:$0xff] %v6473_v51 }
 0x1f3   : > { %v6475_v49 = vpop.f32.mrf.mxu0  ;;  %v6477_v61 = vpop.f32.mrf.mxu1 }
 0x1f4   : > { %6892 = vst [vmem:[#allocation6_spill] sm:$0xff] %v6475_v49  ;;  %6893 = vst [vmem:[#allocation10_spill] sm:$0xff] %v6477_v61  ;;  %v2289_v49 = vadd.f32 %v4496_v24, %v6288_v33  ;;  %v2290_v33 = vadd.f32 %v6389_v63, %v6297_v47 }
 0x1f5   : > { %v6479_v15 = vpop.f32.mrf.mxu0  ;;  %v6481_v5 = vpop.f32.mrf.mxu1 }
 0x1f6   : > { %6894 = vst [vmem:[#allocation7_spill] sm:$0xff] %v6479_v15  ;;  %6895 = vst [vmem:[#allocation12_spill] sm:$0xff] %v6481_v5  ;;  %v2288_v5 = vadd.f32 %v2129_v6, %v6291_v46  ;;  %v6515_v46 = vld [vmem:[%s6679_s2] ss:$0 sm:$0xff] }
 0x1f7   : > { %v6483_v3 = vpop.f32.mrf.mxu0  ;;  %v6485_v43 = vpop.f32.mrf.mxu1 }
 0x1f8   : > { %6896 = vst [vmem:[#allocation32_spill] sm:$0xff] %v6483_v3  ;;  %6897 = vst [vmem:[#allocation34_spill] sm:$0xff] %v6485_v43 }
 0x1f9   : > { %v6487_v12 = vpop.f32.mrf.mxu0  ;;  %v6489_v23 = vpop.f32.mrf.mxu1 }
 0x1fa   : > { %6898 = vst [vmem:[#allocation33_spill] sm:$0xff] %v6487_v12  ;;  %6899 = vst [vmem:[#allocation41_spill] sm:$0xff] %v6489_v23  ;;  %v2563_v12 = vadd.f32 %v6383_v30, %v2289_v49  ;;  %v2291_v23 = vadd.f32 %v4499_v13, %v6294_v2  ;;  %v2293_v13 = vadd.f32 %v6393_v44, %v6300_v16 }
 0x1fb   : > { %v6491_v31 = vpop.f32.mrf.mxu0  ;;  %v6493_v48 = vpop.f32.mrf.mxu1 }
 0x1fc   : > { %6900 = vst [vmem:[#allocation42_spill] sm:$0xff] %v6491_v31  ;;  %6901 = vst [vmem:[#allocation43_spill] sm:$0xff] %v6493_v48  ;;  %v2562_v48 = vadd.f32 %v6385_v1, %v2288_v5  ;;  %v2565_v49 = vadd.f32 %v6387_v35, %v2291_v23  ;;  %v2292_v5 = vadd.f32 %v6397_v38, %v6303_v14 }
 0x1fd   : > { %v6496_v51 = vpop.f32.mrf.mxu0  ;;  %v6498_v61 = vpop.f32.mrf.mxu1  ;;  %v2295_v23 = vadd.f32 %v6401_v39, %v6306_v60  ;;  %v2567_v14 = vadd.f32 %v6395_v18, %v2293_v13 }
 0x1fe   : > { %6902 = vst [vmem:[#allocation44_spill] sm:$0xff] %v6498_v61  ;;  %v2566_v35 = vadd.f32 %v6399_v57, %v2292_v5 }
 0x1ff   : > { %v6501_v15 = vpop.f32.mrf.mxu0  ;;  %v6503_v3 = vpop.f32.mrf.mxu1  ;;  %v2569_v57 = vadd.f32 %v6403_v9, %v2295_v23 }
 0x200   : > { %6903 = vst [vmem:[#allocation45_spill] sm:$0xff] %v6501_v15  ;;  %6904 = vst [vmem:[#allocation46_spill] sm:$0xff] %v6503_v3 }
 0x201   : > { %v6507_v43 = vpop.f32.mrf.mxu0  ;;  %v4656_v31 = vpop.f32.mrf.mxu1 }
 0x202   : > { %6905 = vst [vmem:[#allocation47_spill] sm:$0xff] %v6507_v43  ;;  %v2847_v24 = vadd.f32 %v4656_v31, %v2563_v12  ;;  %v2564_v31 = vadd.f32 %v6391_v7, %v2290_v33  ;;  %v2294_v7 = vadd.f32 %v6405_v17, %v6309_v50 }
 0x203   : > { %v4736_v61 = vpop.f32.mrf.mxu0  ;;  %v2687_v6 = vpop.f32.mrf.mxu1 }
 0x204   : > { %v3128_v2 = vadd.f32 %v4736_v61, %v2847_v24  ;;  %v2846_v30 = vadd.f32 %v2687_v6, %v2562_v48 }
 0x205   : > { %v2968_v47 = vpop.f32.mrf.mxu0  ;;  %v4659_v12 = vpop.f32.mrf.mxu1 }
 0x206   : > { %v3167_v1 = vadd.f32 %v6515_v46, %v3128_v2  ;;  %v3127_v63 = vadd.f32 %v2968_v47, %v2846_v30  ;;  %v2849_v43 = vadd.f32 %v4659_v12, %v2565_v49  ;;  %v2568_v2 = vadd.f32 %v6407_v40, %v2294_v7 }
 0x207   : > { %v4739_v15 = vpop.f32.mrf.mxu0  ;;  %v2697_v3 = vpop.f32.mrf.mxu1  ;;  %v2296_v30 = vadd.f32 %v6413_v4, %v6315_v42 }
 0x208   : > { %3199 = vst [vmem:[%s4946_s27 + $0x8] sm:$0xff] %v3167_v1  ;;  %v3166_v16 = vadd.f32 %v6515_v46, %v3127_v63  ;;  %v3130_v61 = vadd.f32 %v4739_v15, %v2849_v43  ;;  %v2848_v48 = vadd.f32 %v2697_v3, %v2564_v31  ;;  %v3268_v44 = vmul.f32 %v3167_v1, %v3167_v1 }
 0x209   : > { %v2978_v38 = vpop.f32.mrf.mxu0  ;;  %v4662_v33 = vpop.f32.mrf.mxu1  ;;  %v2297_v43 = vadd.f32 %v6409_v54, %v6312_v11 }
 0x20a   : > { %3198 = vst [vmem:[%s4946_s27] sm:$0xff] %v3166_v16  ;;  %v3230_v24 = vadd.f32 %v3167_v1, %v3166_v16  ;;  %v3267_v6 = vmul.f32 %v3166_v16, %v3166_v16  ;;  %v3169_v60 = vadd.f32 %v6515_v46, %v3130_v61  ;;  %v3129_v39 = vadd.f32 %v2978_v38, %v2848_v48 }
 0x20b   : > { %v2851_v3 = vadd.f32 %v4662_v33, %v2567_v14  ;;  %v4742_v15 = vpop.f32.mrf.mxu0  ;;  %v2707_v18 = vpop.f32.mrf.mxu1  ;;  %v2571_v9 = vadd.f32 %v6411_v10, %v2297_v43  ;;  %v2299_v1 = vadd.f32 %v6417_v52, %v6318_v62  ;;  %v2570_v14 = vadd.f32 %v6415_v29, %v2296_v30 }
 0x20c   : > { %v3299_v49 = vadd.f32 %v3268_v44, %v3267_v6  ;;  %3201 = vst [vmem:[%s4946_s27 + $0x18] sm:$0xff] %v3169_v60  ;;  %v3168_v50 = vadd.f32 %v6515_v46, %v3129_v39  ;;  %v2850_v17 = vadd.f32 %v2707_v18, %v2566_v35  ;;  %v3270_v63 = vmul.f32 %v3169_v60, %v3169_v60 }
 0x20d   : > { %v3132_v13 = vadd.f32 %v4742_v15, %v2851_v3  ;;  %v2988_v5 = vpop.f32.mrf.mxu0  ;;  %v4665_v47 = vpop.f32.mrf.mxu1  ;;  %v2298_v35 = vadd.f32 %v6421_v59, %v6321_v56  ;;  %v2301_v10 = vadd.f32 %v6425_v21, %v6324_v58  ;;  %v2573_v6 = vadd.f32 %v6419_v27, %v2299_v1 }
 0x20e   : > { %3200 = vst [vmem:[%s4946_s27 + $0x10] sm:$0xff] %v3168_v50  ;;  %v3231_v11 = vadd.f32 %v3230_v24, %v3168_v50  ;;  %v3269_v54 = vmul.f32 %v3168_v50, %v3168_v50  ;;  %v3131_v12 = vadd.f32 %v2988_v5, %v2850_v17  ;;  %v2853_v31 = vadd.f32 %v4665_v47, %v2569_v57 }
 0x20f   : > { %v3171_v40 = vadd.f32 %v6515_v46, %v3132_v13  ;;  %v4745_v23 = vpop.f32.mrf.mxu0  ;;  %v2717_v42 = vpop.f32.mrf.mxu1  ;;  %v2300_v29 = vadd.f32 %v6429_v37, %v6327_v41  ;;  %v2572_v15 = vadd.f32 %v6423_v53, %v2298_v35  ;;  %v2575_v50 = vadd.f32 %v6427_v55, %v2301_v10 }
 0x210   : > { %v3300_v4 = vadd.f32 %v3299_v49, %v3269_v54  ;;  %v3170_v16 = vadd.f32 %v6515_v46, %v3131_v12  ;;  %v3232_v61 = vadd.f32 %v3231_v11, %v3169_v60  ;;  %v3134_v48 = vadd.f32 %v4745_v23, %v2853_v31 }
 0x211   : > { %3203 = vst [vmem:[%s4946_s27 + $0x28] sm:$0xff] %v3171_v40  ;;  %v2852_v62 = vadd.f32 %v2717_v42, %v2568_v2  ;;  %v2998_v52 = vpop.f32.mrf.mxu0  ;;  %v4668_v7 = vpop.f32.mrf.mxu1  ;;  %v3272_v21 = vmul.f32 %v3171_v40, %v3171_v40  ;;  %v2574_v2 = vadd.f32 %v6431_v34, %v2300_v29  ;;  %v2303_v11 = vadd.f32 %v6433_v25, %v6330_v26 }
 0x212   : > { %3202 = vst [vmem:[%s4946_s27 + $0x20] sm:$0xff] %v3170_v16  ;;  %v3233_v44 = vadd.f32 %v3232_v61, %v3170_v16  ;;  %v3271_v38 = vmul.f32 %v3170_v16, %v3170_v16  ;;  %v3301_v33 = vadd.f32 %v3300_v4, %v3270_v63  ;;  %v3173_v24 = vadd.f32 %v6515_v46, %v3134_v48 }
 0x213   : > { %v3133_v56 = vadd.f32 %v2998_v52, %v2852_v62  ;;  %v2855_v59 = vadd.f32 %v4668_v7, %v2571_v9  ;;  %v4748_v60 = vpop.f32.mrf.mxu0  ;;  %v2727_v58 = vpop.f32.mrf.mxu1  ;;  %v2302_v31 = vadd.f32 %v6437_v22, %v6333_v19  ;;  %v2305_v25 = vadd.f32 %v6441_v28, %v6336_v36 }
 0x214   : > { %v3302_v39 = vadd.f32 %v3301_v33, %v3271_v38  ;;  %3205 = vst [vmem:[%s4946_s27 + $0x38] sm:$0xff] %v3173_v24  ;;  %v3234_v43 = vadd.f32 %v3233_v44, %v3171_v40  ;;  %v2854_v3 = vadd.f32 %v2727_v58, %v2570_v14  ;;  %v3274_v9 = vmul.f32 %v3173_v24, %v3173_v24  ;;  %v6907_v58 = vld [vmem:[#allocation8_spill] sm:$0xff] }
 0x215   : > { %v3172_v18 = vadd.f32 %v6515_v46, %v3133_v56  ;;  %v3136_v57 = vadd.f32 %v4748_v60, %v2855_v59  ;;  %v3008_v49 = vpop.f32.mrf.mxu0  ;;  %v4671_v27 = vpop.f32.mrf.mxu1  ;;  %v2304_v16 = vadd.f32 %v6445_v0, %v6339_v8  ;;  %v2577_v14 = vadd.f32 %v6435_v32, %v2303_v11  ;;  %v6913_v11 = vld [vmem:[#allocation13_spill] sm:$0xff] }
 0x216   : > { %v3303_v41 = vadd.f32 %v3302_v39, %v3272_v21  ;;  %v3135_v37 = vadd.f32 %v3008_v49, %v2854_v3  ;;  %v2857_v17 = vadd.f32 %v4671_v27, %v2573_v6  ;;  %v2576_v52 = vadd.f32 %v6439_v45, %v2302_v31  ;;  %v6906_v6 = vld [vmem:[#allocation20_spill] sm:$0xff]  ;;  %v6908_v21 = vld [vmem:[#allocation37_spill] sm:$0xff] }
 0x217   : > { %3204 = vst [vmem:[%s4946_s27 + $0x30] sm:$0xff] %v3172_v18  ;;  %v3235_v30 = vadd.f32 %v3234_v43, %v3172_v18  ;;  %v3273_v13 = vmul.f32 %v3172_v18, %v3172_v18  ;;  %v3175_v5 = vadd.f32 %v6515_v46, %v3136_v57  ;;  %v4751_v53 = vpop.f32.mrf.mxu0  ;;  %v2737_v47 = vpop.f32.mrf.mxu1  ;;  %v2579_v32 = vadd.f32 %v6443_v20, %v2305_v25  ;;  %v6909_v18 = vld [vmem:[#allocation9_spill] sm:$0xff]  ;;  %v6910_v57 = vld [vmem:[#allocation22_spill] sm:$0xff] }
 0x218   : > { %v3174_v54 = vadd.f32 %v6515_v46, %v3135_v37  ;;  %v3138_v55 = vadd.f32 %v4751_v53, %v2857_v17  ;;  %v2856_v12 = vadd.f32 %v2737_v47, %v2572_v15  ;;  %v2578_v29 = vadd.f32 %v6906_v6, %v2304_v16  ;;  %v6912_v53 = vld [vmem:[#allocation38_spill] sm:$0xff] }
 0x219   : > { %v3304_v34 = vadd.f32 %v3303_v41, %v3273_v13  ;;  %3207 = vst [vmem:[%s4946_s27 + $0x48] sm:$0xff] %v3175_v5  ;;  %v3236_v1 = vadd.f32 %v3235_v30, %v3173_v24  ;;  %v3018_v63 = vpop.f32.mrf.mxu0  ;;  %v4674_v40 = vpop.f32.mrf.mxu1  ;;  %v3276_v7 = vmul.f32 %v3175_v5, %v3175_v5  ;;  %v2307_v39 = vadd.f32 %v6908_v21, %v6907_v58 }
 0x21a   : > { %3206 = vst [vmem:[%s4946_s27 + $0x40] sm:$0xff] %v3174_v54  ;;  %v3275_v23 = vmul.f32 %v3174_v54, %v3174_v54  ;;  %v3177_v42 = vadd.f32 %v6515_v46, %v3138_v55  ;;  %v3137_v4 = vadd.f32 %v3018_v63, %v2856_v12  ;;  %v2859_v26 = vadd.f32 %v4674_v40, %v2575_v50 }
 0x21b   : > { %v3237_v19 = vadd.f32 %v3236_v1, %v3174_v54  ;;  %v3305_v22 = vadd.f32 %v3304_v34, %v3274_v9  ;;  %v4754_v61 = vpop.f32.mrf.mxu0  ;;  %v2747_v48 = vpop.f32.mrf.mxu1  ;;  %v2306_v49 = vadd.f32 %v6910_v57, %v6909_v18  ;;  %v6914_v54 = vld [vmem:[#allocation39_spill] sm:$0xff]  ;;  %v6915_v1 = vld [vmem:[#allocation25_spill] sm:$0xff] }
 0x21c   : > { %3209 = vst [vmem:[%s4946_s27 + $0x58] sm:$0xff] %v3177_v42  ;;  %v3176_v35 = vadd.f32 %v6515_v46, %v3137_v4  ;;  %v3140_v10 = vadd.f32 %v4754_v61, %v2859_v26  ;;  %v2858_v62 = vadd.f32 %v2747_v48, %v2574_v2  ;;  %v3278_v27 = vmul.f32 %v3177_v42, %v3177_v42  ;;  %v6916_v4 = vld [vmem:[#allocation27_spill] sm:$0xff] }
 0x21d   : > { %v3306_v44 = vadd.f32 %v3305_v22, %v3275_v23  ;;  %v3238_v36 = vadd.f32 %v3237_v19, %v3175_v5  ;;  %v3028_v28 = vpop.f32.mrf.mxu0  ;;  %v4677_v8 = vpop.f32.mrf.mxu1  ;;  %v6911_v5 = vld [vmem:[#allocation11_spill] sm:$0xff]  ;;  %v2308_v55 = vadd.f32 %v6914_v54, %v6913_v11  ;;  %v2581_v63 = vadd.f32 %v6915_v1, %v2307_v39 }
 0x21e   : > { %3208 = vst [vmem:[%s4946_s27 + $0x50] sm:$0xff] %v3176_v35  ;;  %v3277_v0 = vmul.f32 %v3176_v35, %v3176_v35  ;;  %v3179_v38 = vadd.f32 %v6515_v46, %v3140_v10  ;;  %v3139_v33 = vadd.f32 %v3028_v28, %v2858_v62  ;;  %v2861_v24 = vadd.f32 %v4677_v8, %v2577_v14  ;;  %v6917_v62 = vld [vmem:[#allocation24_spill] sm:$0xff] }
 0x21f   : > { %v3239_v56 = vadd.f32 %v3238_v36, %v3176_v35  ;;  %v3307_v59 = vadd.f32 %v3306_v44, %v3276_v7  ;;  %v4757_v45 = vpop.f32.mrf.mxu0  ;;  %v2757_v60 = vpop.f32.mrf.mxu1  ;;  %v2309_v47 = vadd.f32 %v6912_v53, %v6911_v5  ;;  %v2580_v26 = vadd.f32 %v6916_v4, %v2306_v49  ;;  %v6918_v7 = vld [vmem:[#allocation29_spill] sm:$0xff] }
 0x220   : > { %3211 = vst [vmem:[%s4946_s27 + $0x68] sm:$0xff] %v3179_v38  ;;  %v3178_v43 = vadd.f32 %v6515_v46, %v3139_v33  ;;  %v3142_v3 = vadd.f32 %v4757_v45, %v2861_v24  ;;  %v2860_v15 = vadd.f32 %v2757_v60, %v2576_v52  ;;  %v3280_v25 = vmul.f32 %v3179_v38, %v3179_v38  ;;  %v6919_v33 = vld [vmem:[#allocation15_spill] sm:$0xff]  ;;  %v6920_v24 = vld [vmem:[#allocation26_spill] sm:$0xff]  ;;  %v6923_v49 = vld [vmem:[#allocation17_spill] sm:$0xff] }
 0x221   : > { %v3308_v20 = vadd.f32 %v3307_v59, %v3277_v0  ;;  %v3240_v50 = vadd.f32 %v3239_v56, %v3177_v42  ;;  %v3038_v41 = vpop.f32.mrf.mxu0  ;;  %v4680_v37 = vpop.f32.mrf.mxu1  ;;  %v2583_v52 = vadd.f32 %v6917_v62, %v2309_v47  ;;  %v2582_v44 = vadd.f32 %v6918_v7, %v2308_v55  ;;  %v6921_v56 = vld [vmem:[#allocation14_spill] sm:$0xff]  ;;  %v6922_v59 = vld [vmem:[#allocation40_spill] sm:$0xff] }
 0x222   : > { %3210 = vst [vmem:[%s4946_s27 + $0x60] sm:$0xff] %v3178_v43  ;;  %v3279_v17 = vmul.f32 %v3178_v43, %v3178_v43  ;;  %v3181_v2 = vadd.f32 %v6515_v46, %v3142_v3  ;;  %v3141_v30 = vadd.f32 %v3038_v41, %v2860_v15  ;;  %v2863_v13 = vadd.f32 %v4680_v37, %v2579_v32  ;;  %v6926_v41 = vld [vmem:[#allocation10_spill] sm:$0xff]  ;;  %v6928_v55 = vld [vmem:[#allocation28_spill] sm:$0xff] }
 0x223   : > { %v3241_v12 = vadd.f32 %v3240_v50, %v3178_v43  ;;  %v3309_v31 = vadd.f32 %v3308_v20, %v3278_v27  ;;  %v4760_v9 = vpop.f32.mrf.mxu0  ;;  %v2767_v34 = vpop.f32.mrf.mxu1  ;;  %v2310_v45 = vadd.f32 %v6922_v59, %v6921_v56  ;;  %v6924_v27 = vld [vmem:[#allocation31_spill] sm:$0xff]  ;;  %v6932_v62 = vld [vmem:[#allocation12_spill] sm:$0xff] }
 0x224   : > { %3213 = vst [vmem:[%s4946_s27 + $0x78] sm:$0xff] %v3181_v2  ;;  %v3180_v40 = vadd.f32 %v6515_v46, %v3141_v30  ;;  %v3144_v23 = vadd.f32 %v4760_v9, %v2863_v13  ;;  %v2862_v42 = vadd.f32 %v2767_v34, %v2578_v29  ;;  %v3282_v60 = vmul.f32 %v3181_v2, %v3181_v2  ;;  %v6925_v50 = vld [vmem:[#allocation19_spill] sm:$0xff] }
 0x225   : > { %v3310_v16 = vadd.f32 %v3309_v31, %v3279_v17  ;;  %v3242_v19 = vadd.f32 %v3241_v12, %v3179_v38  ;;  %v3048_v22 = vpop.f32.mrf.mxu0  ;;  %v4683_v61 = vpop.f32.mrf.mxu1  ;;  %v2311_v38 = vadd.f32 %v6920_v24, %v6919_v33  ;;  %v2313_v20 = vadd.f32 %v6924_v27, %v6923_v49 }
 0x226   : > { %3212 = vst [vmem:[%s4946_s27 + $0x70] sm:$0xff] %v3180_v40  ;;  %v3281_v48 = vmul.f32 %v3180_v40, %v3180_v40  ;;  %v3183_v14 = vadd.f32 %v6515_v46, %v3144_v23  ;;  %v3143_v35 = vadd.f32 %v3048_v22, %v2862_v42  ;;  %v2865_v10 = vadd.f32 %v4683_v61, %v2581_v63 }
 0x227   : > { %v3243_v36 = vadd.f32 %v3242_v19, %v3180_v40  ;;  %v3311_v28 = vadd.f32 %v3310_v16, %v3280_v25  ;;  %v4763_v8 = vpop.f32.mrf.mxu0  ;;  %v2777_v0 = vpop.f32.mrf.mxu1  ;;  %v2312_v37 = vadd.f32 %v6926_v41, %v6925_v50  ;;  %v2584_v12 = vadd.f32 %v6928_v55, %v2310_v45  ;;  %v6930_v16 = vld [vmem:[#allocation7_spill] sm:$0xff]  ;;  %v6935_v45 = vld [vmem:[#allocation21_spill] sm:$0xff] }
 0x228   : > { %3215 = vst [vmem:[%s4946_s27 + $0x88] sm:$0xff] %v3183_v14  ;;  %v3182_v32 = vadd.f32 %v6515_v46, %v3143_v35  ;;  %v3146_v6 = vadd.f32 %v4763_v8, %v2865_v10  ;;  %v2864_v29 = vadd.f32 %v2777_v0, %v2580_v26  ;;  %v3284_v31 = vmul.f32 %v3183_v14, %v3183_v14  ;;  %v6929_v26 = vld [vmem:[#allocation6_spill] sm:$0xff]  ;;  %v6931_v10 = vld [vmem:[#allocation16_spill] sm:$0xff] }
 0x229   : > { %v3312_v58 = vadd.f32 %v3311_v28, %v3281_v48  ;;  %v3244_v21 = vadd.f32 %v3243_v36, %v3181_v2  ;;  %v3058_v39 = vpop.f32.mrf.mxu0  ;;  %v4686_v43 = vpop.f32.mrf.mxu1  ;;  %v6927_v2 = vld [vmem:[#allocation30_spill] sm:$0xff]  ;;  %v2587_v25 = vadd.f32 %v6929_v26, %v2313_v20  ;;  %v2586_v19 = vadd.f32 %v6930_v16, %v2312_v37  ;;  %v6933_v36 = vld [vmem:[#allocation35_spill] sm:$0xff]  ;;  %v6940_v37 = vld [vmem:[#allocation33_spill] sm:$0xff] }
 0x22a   : > { %3214 = vst [vmem:[%s4946_s27 + $0x80] sm:$0xff] %v3182_v32  ;;  %v3283_v3 = vmul.f32 %v3182_v32, %v3182_v32  ;;  %v3185_v15 = vadd.f32 %v6515_v46, %v3146_v6  ;;  %v3145_v18 = vadd.f32 %v3058_v39, %v2864_v29  ;;  %v2867_v57 = vadd.f32 %v4686_v43, %v2583_v52  ;;  %v6934_v28 = vld [vmem:[#allocation34_spill] sm:$0xff]  ;;  %v6938_v39 = vld [vmem:[#allocation43_spill] sm:$0xff] }
 0x22b   : > { %v3245_v17 = vadd.f32 %v3244_v21, %v3182_v32  ;;  %v3313_v30 = vadd.f32 %v3312_v58, %v3282_v60  ;;  %v4766_v13 = vpop.f32.mrf.mxu0  ;;  %v2787_v5 = vpop.f32.mrf.mxu1  ;;  %v2585_v53 = vadd.f32 %v6927_v2, %v2311_v38  ;;  %v2314_v8 = vadd.f32 %v6934_v28, %v6933_v36  ;;  %v6936_v60 = vld [vmem:[#allocation41_spill] sm:$0xff]  ;;  %v6937_v21 = vld [vmem:[#allocation18_spill] sm:$0xff] }
 0x22c   : > { %3217 = vst [vmem:[%s4946_s27 + $0x98] sm:$0xff] %v3185_v15  ;;  %v3184_v47 = vadd.f32 %v6515_v46, %v3145_v18  ;;  %v3148_v11 = vadd.f32 %v4766_v13, %v2867_v57  ;;  %v2866_v54 = vadd.f32 %v2787_v5, %v2582_v44  ;;  %v3286_v0 = vmul.f32 %v3185_v15, %v3185_v15 }
 0x22d   : > { %v3314_v9 = vadd.f32 %v3313_v30, %v3283_v3  ;;  %v3246_v34 = vadd.f32 %v3245_v17, %v3183_v14  ;;  %v3068_v1 = vpop.f32.mrf.mxu0  ;;  %v4689_v63 = vpop.f32.mrf.mxu1  ;;  %v2315_v14 = vadd.f32 %v6932_v62, %v6931_v10  ;;  %v2317_v58 = vadd.f32 %v6936_v60, %v6935_v45 }
 0x22e   : > { %3216 = vst [vmem:[%s4946_s27 + $0x90] sm:$0xff] %v3184_v47  ;;  %v3285_v40 = vmul.f32 %v3184_v47, %v3184_v47  ;;  %v3187_v23 = vadd.f32 %v6515_v46, %v3148_v11  ;;  %v3147_v42 = vadd.f32 %v3068_v1, %v2866_v54  ;;  %v2869_v4 = vadd.f32 %v4689_v63, %v2585_v53 }
 0x22f   : > { %v3247_v22 = vadd.f32 %v3246_v34, %v3184_v47  ;;  %v3315_v61 = vadd.f32 %v3314_v9, %v3284_v31  ;;  %v4769_v48 = vpop.f32.mrf.mxu0  ;;  %v2797_v35 = vpop.f32.mrf.mxu1  ;;  %v2316_v43 = vadd.f32 %v6938_v39, %v6937_v21  ;;  %v2588_v17 = vadd.f32 %v6940_v37, %v2314_v8 }
 0x230   : > { %3219 = vst [vmem:[%s4946_s27 + $0xa8] sm:$0xff] %v3187_v23  ;;  %v3186_v52 = vadd.f32 %v6515_v46, %v3147_v42  ;;  %v3150_v7 = vadd.f32 %v4769_v48, %v2869_v4  ;;  %v2868_v44 = vadd.f32 %v2797_v35, %v2584_v12  ;;  %v3288_v30 = vmul.f32 %v3187_v23, %v3187_v23  ;;  %v6941_v12 = vld [vmem:[#allocation42_spill] sm:$0xff]  ;;  %v6942_v42 = vld [vmem:[#allocation23_spill] sm:$0xff]  ;;  %v6943_v4 = vld [vmem:[#allocation44_spill] sm:$0xff] }
 0x231   : > { %v3316_v33 = vadd.f32 %v3315_v61, %v3285_v40  ;;  %v3248_v24 = vadd.f32 %v3247_v22, %v3185_v15  ;;  %v3078_v38 = vpop.f32.mrf.mxu0  ;;  %v4692_v32 = vpop.f32.mrf.mxu1  ;;  %v6939_v15 = vld [vmem:[#allocation32_spill] sm:$0xff]  ;;  %v2591_v31 = vadd.f32 %v6941_v12, %v2317_v58  ;;  %v2590_v9 = vadd.f32 %v6496_v51, %v2316_v43  ;;  %v6945_v22 = vld [vmem:[#allocation46_spill] sm:$0xff] }
 0x232   : > { %3218 = vst [vmem:[%s4946_s27 + $0xa0] sm:$0xff] %v3186_v52  ;;  %v3287_v6 = vmul.f32 %v3186_v52, %v3186_v52  ;;  %v3189_v29 = vadd.f32 %v6515_v46, %v3150_v7  ;;  %v3149_v56 = vadd.f32 %v3078_v38, %v2868_v44  ;;  %v2871_v59 = vadd.f32 %v4692_v32, %v2587_v25 }
 0x233   : > { %v3249_v3 = vadd.f32 %v3248_v24, %v3186_v52  ;;  %v3317_v18 = vadd.f32 %v3316_v33, %v3286_v0  ;;  %v4772_v57 = vpop.f32.mrf.mxu0  ;;  %v2807_v49 = vpop.f32.mrf.mxu1  ;;  %v2589_v27 = vadd.f32 %v6939_v15, %v2315_v14  ;;  %v6946_v33 = vld [vmem:[#allocation45_spill] sm:$0xff] }
 0x234   : > { %3221 = vst [vmem:[%s4946_s27 + $0xb8] sm:$0xff] %v3189_v29  ;;  %v3188_v20 = vadd.f32 %v6515_v46, %v3149_v56  ;;  %v3152_v50 = vadd.f32 %v4772_v57, %v2871_v59  ;;  %v2870_v41 = vadd.f32 %v2807_v49, %v2586_v19  ;;  %v6944_v19 = vld [vmem:[#allocation36_spill] sm:$0xff]  ;;  %v3290_v48 = vmul.f32 %v3189_v29, %v3189_v29 }
 0x235   : > { %v3318_v13 = vadd.f32 %v3317_v18, %v3287_v6  ;;  %v3250_v5 = vadd.f32 %v3249_v3, %v3187_v23  ;;  %v3088_v2 = vpop.f32.mrf.mxu0  ;;  %v4695_v53 = vpop.f32.mrf.mxu1  ;;  %v2319_v23 = vadd.f32 %v6943_v4, %v6942_v42  ;;  %v2318_v61 = vadd.f32 %v6945_v22, %v6944_v19 }
 0x236   : > { %3220 = vst [vmem:[%s4946_s27 + $0xb0] sm:$0xff] %v3188_v20  ;;  %v3289_v47 = vmul.f32 %v3188_v20, %v3188_v20  ;;  %v3191_v11 = vadd.f32 %v6515_v46, %v3152_v50  ;;  %v3151_v54 = vadd.f32 %v3088_v2, %v2870_v41  ;;  %v2873_v55 = vadd.f32 %v4695_v53, %v2589_v27 }
 0x237   : > { %v3251_v34 = vadd.f32 %v3250_v5, %v3188_v20  ;;  %v3319_v1 = vadd.f32 %v3318_v13, %v3288_v30  ;;  %v4775_v63 = vpop.f32.mrf.mxu0  ;;  %v2817_v40 = vpop.f32.mrf.mxu1  ;;  %v2593_v24 = vadd.f32 %v6946_v33, %v2319_v23 }
 0x238   : > { %3223 = vst [vmem:[%s4946_s27 + $0xc8] sm:$0xff] %v3191_v11  ;;  %v3190_v26 = vadd.f32 %v6515_v46, %v3151_v54  ;;  %v3154_v25 = vadd.f32 %v4775_v63, %v2873_v55  ;;  %v2872_v16 = vadd.f32 %v2817_v40, %v2588_v17  ;;  %v3292_v59 = vmul.f32 %v3191_v11, %v3191_v11 }
 0x239   : > { %v3320_v35 = vadd.f32 %v3319_v1, %v3289_v47  ;;  %v3252_v51 = vadd.f32 %v3251_v34, %v3189_v29  ;;  %v3098_v10 = vpop.f32.mrf.mxu0  ;;  %v4698_v62 = vpop.f32.mrf.mxu1  ;;  %v6947_v29 = vld [vmem:[#allocation47_spill] sm:$0xff] }
 0x23a   : > { %3222 = vst [vmem:[%s4946_s27 + $0xc0] sm:$0xff] %v3190_v26  ;;  %v3291_v14 = vmul.f32 %v3190_v26, %v3190_v26  ;;  %v3193_v52 = vadd.f32 %v6515_v46, %v3154_v25  ;;  %v3153_v7 = vadd.f32 %v3098_v10, %v2872_v16  ;;  %v2875_v44 = vadd.f32 %v4698_v62, %v2591_v31 }
 0x23b   : > { %v3253_v36 = vadd.f32 %v3252_v51, %v3190_v26  ;;  %v3321_v28 = vadd.f32 %v3320_v35, %v3290_v48  ;;  %v4778_v8 = vpop.f32.mrf.mxu0  ;;  %v2827_v0 = vpop.f32.mrf.mxu1  ;;  %v2592_v56 = vadd.f32 %v6947_v29, %v2318_v61 }
 0x23c   : > { %3225 = vst [vmem:[%s4946_s27 + $0xd8] sm:$0xff] %v3193_v52  ;;  %v3192_v38 = vadd.f32 %v6515_v46, %v3153_v7  ;;  %v3156_v32 = vadd.f32 %v4778_v8, %v2875_v44  ;;  %v2874_v6 = vadd.f32 %v2827_v0, %v2590_v9  ;;  %v3294_v37 = vmul.f32 %v3193_v52, %v3193_v52 }
 0x23d   : > { %v3322_v45 = vadd.f32 %v3321_v28, %v3291_v14  ;;  %v3254_v60 = vadd.f32 %v3253_v36, %v3191_v11  ;;  %v3108_v58 = vpop.f32.mrf.mxu0  ;;  %v4701_v21 = vpop.f32.mrf.mxu1 }
 0x23e   : > { %3224 = vst [vmem:[%s4946_s27 + $0xd0] sm:$0xff] %v3192_v38  ;;  %v3293_v39 = vmul.f32 %v3192_v38, %v3192_v38  ;;  %v3195_v43 = vadd.f32 %v6515_v46, %v3156_v32  ;;  %v3155_v3 = vadd.f32 %v3108_v58, %v2874_v6  ;;  %v2877_v18 = vadd.f32 %v4701_v21, %v2593_v24 }
 0x23f   : > { %v3255_v57 = vadd.f32 %v3254_v60, %v3192_v38  ;;  %v3323_v49 = vadd.f32 %v3322_v45, %v3292_v59  ;;  %v4781_v15 = vpop.f32.mrf.mxu0  ;;  %v2837_v27 = vpop.f32.mrf.mxu1 }
 0x240   : > { %3227 = vst [vmem:[%s4946_s27 + $0xe8] sm:$0xff] %v3195_v43  ;;  %v3194_v20 = vadd.f32 %v6515_v46, %v3155_v3  ;;  %v3158_v50 = vadd.f32 %v4781_v15, %v2877_v18  ;;  %v2876_v41 = vadd.f32 %v2837_v27, %v2592_v56  ;;  %v3296_v55 = vmul.f32 %v3195_v43, %v3195_v43 }
 0x241   : > { %v3324_v17 = vadd.f32 %v3323_v49, %v3293_v39  ;;  %v3256_v30 = vadd.f32 %v3255_v57, %v3193_v52  ;;  %v3118_v13 = vpop.f32.mrf.mxu0 }
 0x242   : > { %3226 = vst [vmem:[%s4946_s27 + $0xe0] sm:$0xff] %v3194_v20  ;;  %v3295_v5 = vmul.f32 %v3194_v20, %v3194_v20  ;;  %v3197_v2 = vadd.f32 %v6515_v46, %v3158_v50  ;;  %v3157_v53 = vadd.f32 %v3118_v13, %v2876_v41 }
 0x243   : > { %v3257_v47 = vadd.f32 %v3256_v30, %v3194_v20  ;;  %v3325_v11 = vadd.f32 %v3324_v17, %v3294_v37 }
 0x244   : > { %3229 = vst [vmem:[%s4946_s27 + $0xf8] sm:$0xff] %v3197_v2  ;;  %v3196_v54 = vadd.f32 %v6515_v46, %v3157_v53  ;;  %v3298_v63 = vmul.f32 %v3197_v2, %v3197_v2 }
 0x245   : > { %v3326_v12 = vadd.f32 %v3325_v11, %v3295_v5  ;;  %v3258_v31 = vadd.f32 %v3257_v47, %v3195_v43 }
 0x246   : > { %3228 = vst [vmem:[%s4946_s27 + $0xf0] sm:$0xff] %v3196_v54  ;;  %v3297_v9 = vmul.f32 %v3196_v54, %v3196_v54 }
 0x247   : > { %v3259_v34 = vadd.f32 %v3258_v31, %v3196_v54  ;;  %v3327_v1 = vadd.f32 %v3326_v12, %v3296_v55 }
 0x249   : > { %v3260_v40 = vadd.f32 %v3259_v34, %v3197_v2  ;;  %v3328_v42 = vadd.f32 %v3327_v1, %v3297_v9 }
 0x24b   : > { %v3261_v4 = vrot.slane %v3260_v40, 4  ;;  %v3329_v23 = vadd.f32 %v3328_v42, %v3298_v63 }
 0x24d   : > { %v3262_v26 = vadd.f32 %v3261_v4, %v3260_v40  ;;  %v3330_v25 = vrot.slane %v3329_v23, 4 }
 0x24f   : > { %v3263_v16 = vrot.slane %v3262_v26, 2  ;;  %v3331_v19 = vadd.f32 %v3330_v25, %v3329_v23 }
 0x251   : > { %v3264_v22 = vadd.f32 %v3263_v16, %v3262_v26  ;;  %v3332_v61 = vrot.slane %v3331_v19, 2 }
 0x253   : > { %v3265_v46 = vrot.slane %v3264_v22, 1  ;;  %v3333_v48 = vadd.f32 %v3332_v61, %v3331_v19 }
 0x255   : > { %v3334_v35 = vrot.slane %v3333_v48, 1  ;;  %v3266_v51 = vadd.f32 %v3265_v46, %v3264_v22 }
 0x257   : > { %v3335_v10 = vadd.f32 %v3334_v35, %v3333_v48 }
 0x259   : > { %v3337_v62 = vsel %vm3336_vm2, %v3266_v51, %v3335_v10 }
 0x25a   : > { %3338 = vst [vmem:[%s4951_s30] sm:$0x3] %v3337_v62 }
 0x25b PF: > { %s15_s17 = sadd.s32 1, %s4890_s17   ;;  %s6948_s15 = smov %s4886_s16 }
 0x25c   : > { %p12_p5 = scmp.ge.s32.totalorder %s15_s17, 4   ;;  %s6949_s16 = smov %s6951_s18 }
 0x25e   :  { %14 = sbr.rel (!%p12_p5) target bundleno = 2 (0x2), region = 127 }
 0x263   :  { %3388 = vsyncmov [#allocation3] }
 0x266   :  { %s3389_s27 = vpop.sfrf %3388 }
 0x267   :  { %p3628_p6 = scmp.ne.s32.totalorder %s3389_s27, 0 }
 0x269   :  { %3393 = shalt.err (%p3628_p6)  }

// kernel: deconvx2_res_forward.3
= control target key start
LH: loop header
LB: loop body
LE: loop exit
PB: predicated region body
PF: predicated region fallthrough
CT: control target
= control target key end

     0   :  { %s5866_s27 = smov 0   ;;  %s5868_s28 = smov 0   ;;  %s8157_s0 = inlined_call_operand.vmem [shape: f32[2,18,18,128], index: 0, kind: input, shape index: {}]   ;;  %s8158_s1 = inlined_call_operand.vmem [shape: f32[2,16,16,128], index: 1, kind: input, shape index: {}]   ;;  %s8159_s2 = inlined_call_operand.vmem [shape: f32[1,128], index: 2, kind: input, shape index: {}]   ;;  %s8160_s3 = inlined_call_operand.vmem [shape: f32[1,128], index: 3, kind: input, shape index: {}]   ;;  %s8161_s4 = inlined_call_operand.vmem [shape: f32[9,128,128], index: 4, kind: input, shape index: {}]   ;;  %s8162_s5 = inlined_call_operand.vmem [shape: f32[1,128], index: 5, kind: input, shape index: {}]   ;;  %s8163_s6 = inlined_call_operand.vmem [shape: f32[128,128], index: 6, kind: input, shape index: {}]   ;;  %s8164_s7 = inlined_call_operand.vmem [shape: f32[1,128], index: 7, kind: input, shape index: {}]   ;;  %s8165_s8 = inlined_call_operand.vmem [shape: f32[2,16,16,128], index: 8, kind: output, shape index: {}]  }
   0x1   :  { %s5870_s29 = smov 0  }
   0x2 LB: > { %s30_s30 = sadd.s32 1, %s5814_s28  ;;  %p4281_p0 = scmp.ge.s32.totalorder %s5818_s29, 1  ;;  %s5818_s29 = sphi %s5870_s29, %s18_s29   ;;  %s5814_s28 = sphi %s5868_s28, %s8534_s28   ;;  %s5810_s27 = sphi %s5866_s27, %s8533_s27  }
   0x3   : > { %p32_p1 = scmp.ge.s32.totalorder %s30_s30, 2  ;;  %p260_p2 = scmp.lt.s32.totalorder %s5818_s29, 3 }
   0x5   : > { %s8536_s30 = smov (%p32_p1, %s30_s30), 0  ;;  %p261_p3 = pnand %p4281_p0, %p260_p2 }
   0x7   : > { %264 = sbr.rel (%p261_p3) target bundleno = 798 (0x31e), region = 48 }
   0xc   : > { %p303_p4 = scmp.lt.s32.totalorder %s5810_s27, 1  ;;  %s326_s9 = smul.u32 432, %s5810_s27 }
   0xe   : > { %s8538_s27 = smov (!%p303_p4, %s5810_s27), 1  ;;  %s5887_s12 = scalar_lea.vmem %s8157_s0, %s326_s9 }
   0xf   : > { %s4485_s13 = sshll.u32 %s8538_s27, 8  ;;  %v405_v0 = vld [vmem:[%s5887_s12 + $0x18] sm:$0xff]  ;;  %v407_v1 = vld [vmem:[%s5887_s12 + $0x20] sm:$0xff]  ;;  %v409_v2 = vld [vmem:[%s5887_s12 + $0x30] sm:$0xff] }
  0x10   : > { %s5893_s16 = scalar_lea.vmem %s8158_s1, %s4485_s13  ;;  %s5898_s19 = scalar_lea.vmem %s8165_s8, %s4485_s13  ;;  %406 = vst [vmem:[#allocation2 + $0x18] sm:$0xff] %v405_v0  ;;  %v411_v3 = vld [vmem:[%s5887_s12 + $0x38] sm:$0xff]  ;;  %408 = vst [vmem:[#allocation2 + $0x68] sm:$0xff] %v407_v1  ;;  %v413_v4 = vld [vmem:[%s5887_s12 + $0x48] sm:$0xff] }
  0x11   : > { %410 = vst [vmem:[#allocation2 + $0xd0] sm:$0xff] %v409_v2  ;;  %412 = vst [vmem:[#allocation2 + $0x28] sm:$0xff] %v411_v3  ;;  %v415_v5 = vld [vmem:[%s5887_s12 + $0x50] sm:$0xff]  ;;  %v417_v6 = vld [vmem:[%s5887_s12 + $0x60] sm:$0xff] }
  0x12   : > { %414 = vst [vmem:[#allocation2 + $0x60] sm:$0xff] %v413_v4  ;;  %416 = vst [vmem:[#allocation2 + $0x118] sm:$0xff] %v415_v5  ;;  %v419_v7 = vld [vmem:[%s5887_s12 + $0x68] sm:$0xff]  ;;  %v421_v8 = vld [vmem:[%s5887_s12 + $0x78] sm:$0xff] }
  0x13   : > { %418 = vst [vmem:[#allocation2 + $0x188] sm:$0xff] %v417_v6  ;;  %v423_v9 = vld [vmem:[%s5887_s12 + $0x80] sm:$0xff]  ;;  %420 = vst [vmem:[#allocation2 + $0x198] sm:$0xff] %v419_v7  ;;  %v425_v10 = vld [vmem:[%s5887_s12 + $0x90] sm:$0xff] }
  0x14   : > { %422 = vst [vmem:[#allocation2 + $0xd8] sm:$0xff] %v421_v8  ;;  %424 = vst [vmem:[#allocation2 + $0x1a0] sm:$0xff] %v423_v9  ;;  %v427_v11 = vld [vmem:[%s5887_s12 + $0x98] sm:$0xff]  ;;  %v429_v12 = vld [vmem:[%s5887_s12 + $0xa8] sm:$0xff] }
  0x15   : > { %426 = vst [vmem:[#allocation2 + $0x88] sm:$0xff] %v425_v10  ;;  %428 = vst [vmem:[#allocation2 + $0x180] sm:$0xff] %v427_v11  ;;  %v431_v13 = vld [vmem:[%s5887_s12 + $0xb0] sm:$0xff]  ;;  %v433_v14 = vld [vmem:[%s5887_s12 + $0xc0] sm:$0xff] }
  0x16   : > { %430 = vst [vmem:[#allocation2 + $0x80] sm:$0xff] %v429_v12  ;;  %v435_v15 = vld [vmem:[%s5887_s12 + $0xc8] sm:$0xff]  ;;  %432 = vst [vmem:[#allocation2 + $0x140] sm:$0xff] %v431_v13  ;;  %v437_v16 = vld [vmem:[%s5887_s12 + $0xd8] sm:$0xff] }
  0x17   : > { %434 = vst [vmem:[#allocation2 + $0x130] sm:$0xff] %v433_v14  ;;  %436 = vst [vmem:[#allocation2 + $0x40] sm:$0xff] %v435_v15  ;;  %v439_v17 = vld [vmem:[%s5887_s12 + $0xe0] sm:$0xff]  ;;  %v441_v18 = vld [vmem:[%s5887_s12 + $0xf0] sm:$0xff] }
  0x18   : > { %438 = vst [vmem:[#allocation2 + $0x58] sm:$0xff] %v437_v16  ;;  %440 = vst [vmem:[#allocation2 + $0xb0] sm:$0xff] %v439_v17  ;;  %v443_v19 = vld [vmem:[%s5887_s12 + $0xf8] sm:$0xff]  ;;  %v445_v20 = vld [vmem:[%s5887_s12 + $0x108] sm:$0xff] }
  0x19   : > { %442 = vst [vmem:[#allocation2 + $0x190] sm:$0xff] %v441_v18  ;;  %v447_v21 = vld [vmem:[%s5887_s12 + $0x110] sm:$0xff]  ;;  %444 = vst [vmem:[#allocation2 + $0xb8] sm:$0xff] %v443_v19  ;;  %v449_v22 = vld [vmem:[%s5887_s12 + $0x120] sm:$0xff] }
  0x1a   : > { %446 = vst [vmem:[#allocation2 + $0xe0] sm:$0xff] %v445_v20  ;;  %448 = vst [vmem:[#allocation2 + $0x158] sm:$0xff] %v447_v21  ;;  %v451_v23 = vld [vmem:[%s5887_s12 + $0x128] sm:$0xff]  ;;  %v453_v24 = vld [vmem:[%s5887_s12 + $0x138] sm:$0xff] }
  0x1b   : > { %450 = vst [vmem:[#allocation2 + $0xc0] sm:$0xff] %v449_v22  ;;  %452 = vst [vmem:[#allocation2 + $0xf8] sm:$0xff] %v451_v23  ;;  %v455_v25 = vld [vmem:[%s5887_s12 + $0x140] sm:$0xff]  ;;  %v457_v26 = vld [vmem:[%s5887_s12 + $0x150] sm:$0xff] }
  0x1c   : > { %454 = vst [vmem:[#allocation2 + $0x38] sm:$0xff] %v453_v24  ;;  %v459_v27 = vld [vmem:[%s5887_s12 + $0x158] sm:$0xff]  ;;  %456 = vst [vmem:[#allocation2] sm:$0xff] %v455_v25  ;;  %v461_v28 = vld [vmem:[%s5887_s12 + $0x168] sm:$0xff] }
  0x1d   : > { %458 = vst [vmem:[#allocation2 + $0xe8] sm:$0xff] %v457_v26  ;;  %460 = vst [vmem:[#allocation2 + $0x110] sm:$0xff] %v459_v27  ;;  %v463_v29 = vld [vmem:[%s5887_s12 + $0x170] sm:$0xff]  ;;  %v465_v30 = vld [vmem:[%s5887_s12 + $0x180] sm:$0xff] }
  0x1e   : > { %462 = vst [vmem:[#allocation2 + $0x1a8] sm:$0xff] %v461_v28  ;;  %464 = vst [vmem:[#allocation2 + $0x70] sm:$0xff] %v463_v29  ;;  %v467_v31 = vld [vmem:[%s5887_s12 + $0x188] sm:$0xff]  ;;  %v4288_v33 = vld [vmem:[%s5887_s12 + $0x40] sm:$0x3] }
  0x1f   : > { %466 = vst [vmem:[#allocation2 + $0x78] sm:$0xff] %v465_v30  ;;  %468 = vst [vmem:[#allocation2 + $0xf0] sm:$0xff] %v467_v31  ;;  %v4287_v32 = vld [vmem:[%s5887_s12 + $0x28] sm:$0x3]  ;;  %v4289_v34 = vld [vmem:[%s5887_s12 + $0x58] sm:$0x3] }
  0x20   : > { %486 = vst [vmem:[#allocation2 + $0x160] sm:$0x3] %v4287_v32  ;;  %488 = vst [vmem:[#allocation2 + $0x128] sm:$0x3] %v4288_v33  ;;  %v4290_v35 = vld [vmem:[%s5887_s12 + $0x70] sm:$0x3] }
  0x21   : > { %v4291_v36 = vld [vmem:[%s5887_s12 + $0x88] sm:$0x3]  ;;  %490 = vst [vmem:[#allocation2 + $0x168] sm:$0x3] %v4289_v34  ;;  %492 = vst [vmem:[#allocation2 + $0xa0] sm:$0x3] %v4290_v35 }
  0x22   : > { %494 = vst [vmem:[#allocation2 + $0x48] sm:$0x3] %v4291_v36  ;;  %v4292_v37 = vld [vmem:[%s5887_s12 + $0xa0] sm:$0x3]  ;;  %v4293_v38 = vld [vmem:[%s5887_s12 + $0xb8] sm:$0x3] }
  0x23   : > { %v4294_v39 = vld [vmem:[%s5887_s12 + $0xd0] sm:$0x3]  ;;  %496 = vst [vmem:[#allocation2 + $0x170] sm:$0x3] %v4292_v37  ;;  %498 = vst [vmem:[#allocation2 + $0x20] sm:$0x3] %v4293_v38 }
  0x24   : > { %500 = vst [vmem:[#allocation2 + $0x8] sm:$0x3] %v4294_v39  ;;  %v4295_v40 = vld [vmem:[%s5887_s12 + $0xe8] sm:$0x3]  ;;  %v4296_v41 = vld [vmem:[%s5887_s12 + $0x100] sm:$0x3] }
  0x25   : > { %v4297_v42 = vld [vmem:[%s5887_s12 + $0x118] sm:$0x3]  ;;  %502 = vst [vmem:[#allocation2 + $0x90] sm:$0x3] %v4295_v40  ;;  %504 = vst [vmem:[#allocation2 + $0xa8] sm:$0x3] %v4296_v41 }
  0x26   : > { %506 = vst [vmem:[#allocation2 + $0x98] sm:$0x3] %v4297_v42  ;;  %v4298_v43 = vld [vmem:[%s5887_s12 + $0x130] sm:$0x3]  ;;  %v4299_v44 = vld [vmem:[%s5887_s12 + $0x148] sm:$0x3] }
  0x27   : > { %v4300_v45 = vld [vmem:[%s5887_s12 + $0x160] sm:$0x3]  ;;  %508 = vst [vmem:[#allocation2 + $0x50] sm:$0x3] %v4298_v43  ;;  %510 = vst [vmem:[#allocation2 + $0x30] sm:$0x3] %v4299_v44 }
  0x28   : > { %512 = vst [vmem:[#allocation2 + $0xc8] sm:$0x3] %v4300_v45  ;;  %v4301_v46 = vld [vmem:[%s5887_s12 + $0x178] sm:$0x3]  ;;  %v4302_v47 = vld [vmem:[%s5887_s12 + $0x190] sm:$0x3] }
  0x29   : > { %514 = vst [vmem:[#allocation2 + $0x150] sm:$0x3] %v4301_v46  ;;  %516 = vst [vmem:[#allocation2 + $0x10] sm:$0x3] %v4302_v47 }
  0x2a   : > { %522 = vsyncadd [#allocation3], 5184 }
  0x2b   : > { %5806 = dma.done.wait [#allocation3], 5184 }
  0x2c   : > { %5807 = vsyncadd [#allocation3], 4294962112  ;;  %v8166_v48 = vmov 0.0   ;;  %v4321_v50 = vld [vmem:[%s8161_s4 + $0xf8] sm:$0xff]  ;;  %v4320_v52 = vld [vmem:[%s8161_s4 + $0xf0] sm:$0xff]  ;;  %v775_v62 = vlaneseq  ;;  %vm1065_vm2 = vcmask 1046528  }
  0x2d   : > { %v5948_v49 = vrot.slane %v8166_v48, 1  ;;  %5079 = vmatprep.mubr.f32.mxu1 %v8166_v48  ;;  %v1016_v51 = vld [vmem:[%s8161_s4 + $0x78] sm:$0xff]  ;;  %4967 = vmatprep.subr.mxu0 %v4321_v50  ;;  %v1015_v53 = vld [vmem:[%s8161_s4 + $0x70] sm:$0xff]  ;;  %v4319_v54 = vld [vmem:[%s8161_s4 + $0xe8] sm:$0xff]  ;;  %vm1645_vm3 = vcmask 1045504  }
  0x2e   : > { %5047 = vmatprep.subr.mxu1 %v1016_v51  ;;  %4968 = vmatpush3.msra.mxu0 %v4321_v50  ;;  %v1014_v55 = vld [vmem:[%s8161_s4 + $0x68] sm:$0xff]  ;;  %v4318_v56 = vld [vmem:[%s8161_s4 + $0xe0] sm:$0xff]  ;;  %v4317_v58 = vld [vmem:[%s8161_s4 + $0xd8] sm:$0xff]  ;;  %v6011_v8 = vshrl.u32 %v775_v62, 7 }
  0x2f   : > { %8269 = vst [vmem:[#allocation6_spill] sm:$0xff] %v5948_v49  ;;  %4999 = vmatprep.mubr.f32.mxu0 %v5948_v49  ;;  %5048 = vmatpush3.msra.mxu1 %v1016_v51  ;;  %v1013_v57 = vld [vmem:[%s8161_s4 + $0x60] sm:$0xff]  ;;  %v1012_v59 = vld [vmem:[%s8161_s4 + $0x58] sm:$0xff]  ;;  %v4316_v60 = vld [vmem:[%s8161_s4 + $0xd0] sm:$0xff] }
  0x30   : > { %4969 = vmatprep.subr.mxu0 %v4320_v52  ;;  %5049 = vmatprep.subr.mxu1 %v1015_v53  ;;  %v1011_v61 = vld [vmem:[%s8161_s4 + $0x50] sm:$0xff]  ;;  %v4315_v63 = vld [vmem:[%s8161_s4 + $0xc8] sm:$0xff]  ;;  %v4314_v1 = vld [vmem:[%s8161_s4 + $0xc0] sm:$0xff]  ;;  %v6032_v24 = vadd.s32 16, %v6011_v8  ;;  %vm833_vm0 = vcmp.ge.s32.totalorder %v6011_v8, 1 }
  0x31   : > { %4970 = vmatpush3.msra.mxu0 %v4320_v52  ;;  %5050 = vmatpush3.msra.mxu1 %v1015_v53  ;;  %v1010_v0 = vld [vmem:[%s8161_s4 + $0x48] sm:$0xff]  ;;  %v530_v2 = vld [vmem:[#allocation2 + $0x18] sm:$0xff]  ;;  %v6000_v4 = vld [vmem:[%s8159_s2] ss:$0 sm:$0xff] }
  0x32   : > { %4971 = vmatprep.subr.mxu0 %v4319_v54  ;;  %5051 = vmatprep.subr.mxu1 %v1014_v55  ;;  %v531_v3 = vld [vmem:[#allocation2 + $0x68] sm:$0xff]  ;;  %v1009_v5 = vld [vmem:[%s8161_s4 + $0x40] sm:$0xff]  ;;  %v591_v6 = vmul.f32 %v6000_v4, %v530_v2  ;;  %v533_v11 = vld [vmem:[#allocation2 + $0xd0] sm:$0xff]  ;;  %8270 = vst [vmem:[#allocation7_spill] sm:$0xff] %v6032_v24  ;;  %vm892_vm1 = vcmp.le.s32.totalorder %v6032_v24, 16 }
  0x33   : > { %4972 = vmatpush3.msra.mxu0 %v4319_v54  ;;  %5052 = vmatpush3.msra.mxu1 %v1014_v55  ;;  %v6009_v7 = vld [vmem:[%s8160_s3] ss:$0 sm:$0xff]  ;;  %v534_v12 = vld [vmem:[#allocation2 + $0x28] sm:$0xff]  ;;  %v4313_v14 = vld [vmem:[%s8161_s4 + $0xb8] sm:$0xff]  ;;  %v592_v16 = vmul.f32 %v6000_v4, %v531_v3  ;;  %v594_v17 = vmul.f32 %v6000_v4, %v533_v11 }
  0x34   : > { %4973 = vmatprep.subr.mxu0 %v4318_v56  ;;  %5053 = vmatprep.subr.mxu1 %v1013_v57  ;;  %v532_v9 = vld [vmem:[#allocation2 + $0x160] sm:$0x3]  ;;  %v535_v13 = vld [vmem:[#allocation2 + $0x128] sm:$0x3]  ;;  %v1008_v15 = vld [vmem:[%s8161_s4 + $0x38] sm:$0xff]  ;;  %v652_v19 = vadd.f32 %v6009_v7, %v591_v6  ;;  %v595_v25 = vmul.f32 %v6000_v4, %v534_v12 }
  0x35   : > { %4974 = vmatpush3.msra.mxu0 %v4318_v56  ;;  %5054 = vmatpush3.msra.mxu1 %v1013_v57  ;;  %v593_v10 = vmul.f32 %v6000_v4, %v532_v9  ;;  %v536_v18 = vld [vmem:[#allocation2 + $0x60] sm:$0xff]  ;;  %v596_v21 = vmul.f32 %v6000_v4, %v535_v13  ;;  %v4312_v22 = vld [vmem:[%s8161_s4 + $0xb0] sm:$0xff]  ;;  %v655_v26 = vadd.f32 %v6009_v7, %v594_v17  ;;  %v537_v27 = vld [vmem:[#allocation2 + $0x118] sm:$0xff] }
  0x36   : > { %4975 = vmatprep.subr.mxu0 %v4317_v58  ;;  %5055 = vmatprep.subr.mxu1 %v1012_v59  ;;  %v1007_v23 = vld [vmem:[%s8161_s4 + $0x30] sm:$0xff]  ;;  %v597_v28 = vmul.f32 %v6000_v4, %v536_v18  ;;  %v4311_v29 = vld [vmem:[%s8161_s4 + $0xa8] sm:$0xff]  ;;  %v653_v31 = vadd.f32 %v6009_v7, %v592_v16  ;;  %v4310_v33 = vld [vmem:[%s8161_s4 + $0xa0] sm:$0xff]  ;;  %v6048_v34 = vmax.f32 %v652_v19, 0.0  ;;  %v656_v37 = vadd.f32 %v6009_v7, %v595_v25 }
  0x37   : > { %4976 = vmatpush3.msra.mxu0 %v4317_v58  ;;  %5056 = vmatpush3.msra.mxu1 %v1012_v59  ;;  %v654_v20 = vadd.f32 %v6009_v7, %v593_v10  ;;  %v1006_v30 = vld [vmem:[%s8161_s4 + $0x28] sm:$0xff]  ;;  %v657_v32 = vadd.f32 %v6009_v7, %v596_v21  ;;  %v1005_v36 = vld [vmem:[%s8161_s4 + $0x20] sm:$0xff]  ;;  %v6056_v38 = vmax.f32 %v655_v26, 0.0  ;;  %v598_v39 = vmul.f32 %v6000_v4, %v537_v27  ;;  %v4309_v44 = vld [vmem:[%s8161_s4 + $0x98] sm:$0xff] }
  0x38   : > { %4977 = vmatprep.subr.mxu0 %v4316_v60  ;;  %5057 = vmatprep.subr.mxu1 %v1011_v61  ;;  %v538_v40 = vld [vmem:[#allocation2 + $0x168] sm:$0x3]  ;;  %v658_v42 = vadd.f32 %v6009_v7, %v597_v28  ;;  %v541_v43 = vld [vmem:[#allocation2 + $0xa0] sm:$0x3]  ;;  %v1004_v45 = vld [vmem:[%s8161_s4 + $0x18] sm:$0xff]  ;;  %v6066_v46 = vmax.f32 %v653_v31, 0.0 }
  0x39   : > { %4978 = vmatpush3.msra.mxu0 %v4316_v60  ;;  %5058 = vmatpush3.msra.mxu1 %v1011_v61  ;;  %v708_v35 = vmax.f32 %v654_v20, 0.0  ;;  %v539_v41 = vld [vmem:[#allocation2 + $0x188] sm:$0xff]  ;;  %v711_v47 = vmax.f32 %v657_v32, 0.0  ;;  %v540_v50 = vld [vmem:[#allocation2 + $0x198] sm:$0xff]  ;;  %v6071_v51 = vsel %vm833_vm0, %v6048_v34, 0.0  ;;  %v599_v53 = vmul.f32 %v6000_v4, %v538_v40  ;;  %v4308_v55 = vld [vmem:[%s8161_s4 + $0x90] sm:$0xff] }
  0x3a   : > { %4979 = vmatprep.subr.mxu0 %v4315_v63  ;;  %5059 = vmatprep.subr.mxu1 %v1010_v0  ;;  %v600_v54 = vmul.f32 %v6000_v4, %v539_v41  ;;  %v1003_v56 = vld [vmem:[%s8161_s4 + $0x10] sm:$0xff]  ;;  %v6085_v57 = vmax.f32 %v656_v37, 0.0  ;;  %v6090_v58 = vsel %vm833_vm0, %v6056_v38, 0.0  ;;  %v659_v59 = vadd.f32 %v6009_v7, %v598_v39  ;;  %v542_v61 = vld [vmem:[#allocation2 + $0xd8] sm:$0xff]  ;;  %v4307_v2 = vld [vmem:[%s8161_s4 + $0x88] sm:$0xff] }
  0x3b   : > { %4980 = vmatpush3.msra.mxu0 %v4315_v63  ;;  %5060 = vmatpush3.msra.mxu1 %v1010_v0  ;;  %v6075_v52 = vsel %vm892_vm1, %v708_v35, 0.0  ;;  %v602_v60 = vmul.f32 %v6000_v4, %v541_v43  ;;  %v6094_v62 = vmax.f32 %v658_v42, 0.0  ;;  %v660_v63 = vadd.f32 %v6009_v7, %v599_v53  ;;  %v1002_v3 = vld [vmem:[%s8161_s4 + $0x8] sm:$0xff]  ;;  %v4306_v17 = vld [vmem:[%s8161_s4 + $0x80] sm:$0xff]  ;;  %v4352_v32 = vld [vmem:[%s8161_s4 + $0x178] sm:$0xff] }
  0x3c   : > { %4981 = vmatprep.subr.mxu0 %v4314_v1  ;;  %5061 = vmatprep.subr.mxu1 %v1009_v5  ;;  %v601_v0 = vmul.f32 %v6000_v4, %v540_v50  ;;  %v1072_v6 = vrot.slane %v6066_v46, 1  ;;  %v6108_v9 = vsel %vm892_vm1, %v711_v47, 0.0  ;;  %v661_v10 = vadd.f32 %v6009_v7, %v600_v54  ;;  %v545_v11 = vld [vmem:[#allocation2 + $0x88] sm:$0xff]  ;;  %v1001_v18 = vld [vmem:[%s8161_s4] sm:$0xff]  ;;  %v547_v39 = vld [vmem:[#allocation2 + $0x170] sm:$0x3] }
  0x3d   : > { %4982 = vmatpush3.msra.mxu0 %v4314_v1  ;;  %5062 = vmatpush3.msra.mxu1 %v1009_v5  ;;  %v544_v1 = vld [vmem:[#allocation2 + $0x48] sm:$0x3]  ;;  %v1071_v5 = vrot.slane %v6071_v51, 1  ;;  %v1074_v12 = vrot.slane %v6075_v52, 1  ;;  %v1076_v13 = vrot.slane %v6090_v58, 1  ;;  %v603_v16 = vmul.f32 %v6000_v4, %v542_v61  ;;  %v546_v27 = vld [vmem:[#allocation2 + $0x180] sm:$0xff] }
  0x3e   : > { %4983 = vmatprep.subr.mxu0 %v4313_v14  ;;  %5063 = vmatprep.subr.mxu1 %v1008_v15  ;;  %v1077_v19 = vrot.slane %v6085_v57, 1  ;;  %v6122_v20 = vmax.f32 %v659_v59, 0.0  ;;  %v714_v21 = vmax.f32 %v660_v63, 0.0  ;;  %v6129_v25 = vsel %vm833_vm0, %v6094_v62, 0.0  ;;  %v548_v40 = vld [vmem:[#allocation2 + $0x80] sm:$0xff]  ;;  %v4355_v24 = vld [vmem:[%s8161_s4 + $0x190] sm:$0xff] }
  0x3f   : > { %4984 = vmatpush3.msra.mxu0 %v4313_v14  ;;  %5064 = vmatpush3.msra.mxu1 %v1008_v15  ;;  %v663_v14 = vadd.f32 %v6009_v7, %v602_v60  ;;  %v543_v15 = vld [vmem:[#allocation2 + $0x1a0] sm:$0xff]  ;;  %v662_v26 = vadd.f32 %v6009_v7, %v601_v0  ;;  %v606_v28 = vmul.f32 %v6000_v4, %v545_v11  ;;  %v1081_v41 = vrot.slane %v6129_v25, 1 }
  0x40   : > { %4985 = vmatprep.subr.mxu0 %v4312_v22  ;;  %5065 = vmatprep.subr.mxu1 %v1007_v23  ;;  %v604_v31 = vmul.f32 %v6000_v4, %v543_v15  ;;  %v1082_v42 = vrot.slane %v6122_v20, 1  ;;  %v6151_v43 = vsel %vm892_vm1, %v714_v21, 0.0  ;;  %v6160_v47 = vsel %vm1065_vm2, %v1076_v13, %v1077_v19  ;;  %v550_v0 = vld [vmem:[#allocation2 + $0x20] sm:$0x3] }
  0x41   : > { %4986 = vmatpush3.msra.mxu0 %v4312_v22  ;;  %5066 = vmatpush3.msra.mxu1 %v1007_v23  ;;  %v605_v22 = vmul.f32 %v6000_v4, %v544_v1  ;;  %v1079_v23 = vrot.slane %v6108_v9, 1  ;;  %v717_v35 = vmax.f32 %v663_v14, 0.0  ;;  %8273 = vst [vmem:[#allocation10_spill] sm:$0xff] %v6160_v47  ;;  %v6165_v53 = vmax.f32 %v662_v26, 0.0 }
  0x42   : > { %4987 = vmatprep.subr.mxu0 %v4311_v29  ;;  %5067 = vmatprep.subr.mxu1 %v1006_v30  ;;  %v667_v54 = vadd.f32 %v6009_v7, %v606_v28  ;;  %v665_v60 = vadd.f32 %v6009_v7, %v604_v31  ;;  %v608_v61 = vmul.f32 %v6000_v4, %v547_v39  ;;  %v1084_v1 = vrot.slane %v6151_v43, 1 }
  0x43   : > { %4988 = vmatpush3.msra.mxu0 %v4311_v29  ;;  %5068 = vmatpush3.msra.mxu1 %v1006_v30  ;;  %v6134_v29 = vsel %vm1065_vm2, %v1071_v5, %v1072_v6  ;;  %v6136_v30 = vmax.f32 %v661_v10, 0.0  ;;  %v666_v37 = vadd.f32 %v6009_v7, %v605_v22  ;;  %v6163_v50 = vsel %vm1065_vm2, %v1077_v19, %v1079_v23  ;;  %v4350_v10 = vld [vmem:[%s8161_s4 + $0x168] sm:$0xff]  ;;  %v552_v23 = vld [vmem:[#allocation2 + $0x40] sm:$0xff] }
  0x44   : > { %4989 = vmatprep.subr.mxu0 %v4310_v33  ;;  %5069 = vmatprep.subr.mxu1 %v1005_v36  ;;  %8271 = vst [vmem:[#allocation8_spill] sm:$0xff] %v6134_v29  ;;  %8274 = vst [vmem:[#allocation11_spill] sm:$0xff] %v6163_v50  ;;  %v609_v63 = vmul.f32 %v6000_v4, %v548_v40  ;;  %v6194_v11 = vsel %vm1065_vm2, %v1081_v41, %v1082_v42  ;;  %v6197_v13 = vmax.f32 %v667_v54, 0.0  ;;  %v554_v41 = vld [vmem:[#allocation2 + $0x58] sm:$0xff] }
  0x45   : > { %4990 = vmatpush3.msra.mxu0 %v4310_v33  ;;  %5070 = vmatpush3.msra.mxu1 %v1005_v36  ;;  %v6143_v33 = vsel %vm1065_vm2, %v1072_v6, %v1074_v12  ;;  %v664_v36 = vadd.f32 %v6009_v7, %v603_v16  ;;  %8275 = vst [vmem:[#allocation12_spill] sm:$0xff] %v6165_v53  ;;  %v6175_v59 = vsel %vm833_vm0, %v6136_v30, 0.0  ;;  %v720_v5 = vmax.f32 %v666_v37, 0.0  ;;  %v551_v6 = vld [vmem:[#allocation2 + $0x130] sm:$0xff] }
  0x46   : > { %4991 = vmatprep.subr.mxu0 %v4309_v44  ;;  %5071 = vmatprep.subr.mxu1 %v1004_v45  ;;  %8272 = vst [vmem:[#allocation9_spill] sm:$0xff] %v6143_v33  ;;  %8277 = vst [vmem:[#allocation14_spill] sm:$0xff] %v6194_v11  ;;  %v669_v15 = vadd.f32 %v6009_v7, %v608_v61  ;;  %v670_v16 = vadd.f32 %v6009_v7, %v609_v63  ;;  %v1086_v19 = vrot.slane %v6175_v59, 1 }
  0x47   : > { %4992 = vmatpush3.msra.mxu0 %v4309_v44  ;;  %5072 = vmatpush3.msra.mxu1 %v1004_v45  ;;  %v607_v44 = vmul.f32 %v6000_v4, %v546_v27  ;;  %v4351_v45 = vld [vmem:[%s8161_s4 + $0x170] sm:$0xff]  ;;  %8278 = vst [vmem:[#allocation15_spill] sm:$0xff] %v6197_v13  ;;  %v1087_v21 = vrot.slane %v6165_v53, 1  ;;  %v612_v26 = vmul.f32 %v6000_v4, %v551_v6  ;;  %v6216_v28 = vmax.f32 %v665_v60, 0.0 }
  0x48   : > { %4993 = vmatprep.subr.mxu0 %v4308_v55  ;;  %5073 = vmatprep.subr.mxu1 %v1003_v56  ;;  %v6214_v27 = vsel %vm1065_vm2, %v1082_v42, %v1084_v1  ;;  %v6235_v37 = vsel %vm833_vm0, %v6197_v13, 0.0  ;;  %v4367_v42 = vld [vmem:[%s8161_s4 + $0x1f0] sm:$0xff] }
  0x49   : > { %4994 = vmatpush3.msra.mxu0 %v4308_v55  ;;  %5074 = vmatpush3.msra.mxu1 %v1003_v56  ;;  %v549_v55 = vld [vmem:[#allocation2 + $0x140] sm:$0xff]  ;;  %v4368_v56 = vld [vmem:[%s8161_s4 + $0x1f8] sm:$0xff]  ;;  %v668_v12 = vadd.f32 %v6009_v7, %v607_v44  ;;  %8279 = vst [vmem:[#allocation16_spill] sm:$0xff] %v6214_v27  ;;  %8280 = vst [vmem:[#allocation17_spill] sm:$0xff] %v6216_v28  ;;  %v723_v44 = vmax.f32 %v669_v15, 0.0  ;;  %v673_v60 = vadd.f32 %v6009_v7, %v612_v26 }
  0x4a   : > { %4995 = vmatprep.subr.mxu0 %v4307_v2  ;;  %5075 = vmatprep.subr.mxu1 %v1002_v3  ;;  %v610_v14 = vmul.f32 %v6000_v4, %v549_v55  ;;  %v613_v55 = vmul.f32 %v6000_v4, %v552_v23  ;;  %v555_v6 = vld [vmem:[#allocation2 + $0xb0] sm:$0xff]  ;;  %v1096_v15 = vrot.slane %v6235_v37, 1 }
  0x4b   : > { %4996 = vmatpush3.msra.mxu0 %v4307_v2  ;;  %5076 = vmatpush3.msra.mxu1 %v1002_v3  ;;  %v6186_v2 = vsel %vm892_vm1, %v717_v35, 0.0  ;;  %v6188_v3 = vmax.f32 %v664_v36, 0.0  ;;  %v4349_v35 = vld [vmem:[%s8161_s4 + $0x160] sm:$0xff]  ;;  %v6230_v36 = vmax.f32 %v668_v12, 0.0  ;;  %v556_v12 = vld [vmem:[#allocation2 + $0x90] sm:$0x3] }
  0x4c   : > { %4997 = vmatprep.subr.mxu0 %v4306_v17  ;;  %5077 = vmatprep.subr.mxu1 %v1001_v18  ;;  %v1089_v22 = vrot.slane %v6186_v2, 1  ;;  %v671_v39 = vadd.f32 %v6009_v7, %v610_v14  ;;  %v674_v26 = vadd.f32 %v6009_v7, %v613_v55 }
  0x4d   : > { %4998 = vmatpush3.msra.mxu0 %v4306_v17  ;;  %5078 = vmatpush3.msra.mxu1 %v1001_v18  ;;  %8276 = vst [vmem:[#allocation13_spill] sm:$0xff] %v6188_v3  ;;  %v611_v17 = vmul.f32 %v6000_v4, %v550_v0  ;;  %v553_v18 = vld [vmem:[#allocation2 + $0x8] sm:$0x3]  ;;  %v6221_v31 = vsel %vm833_vm0, %v6188_v3, 0.0  ;;  %8281 = vst [vmem:[#allocation18_spill] sm:$0xff] %v6230_v36  ;;  %v4348_v0 = vld [vmem:[%s8161_s4 + $0x158] sm:$0xff] }
  0x4e   : > { %5000 = vmatmul.mubr.f32.vlgmr.msra.gmra.mxu0 %v5948_v49  ;;  %5080 = vmatmul.mubr.f32.vlgmr.msra.gmra.mxu1 %v8166_v48  ;;  %v614_v40 = vmul.f32 %v6000_v4, %v553_v18  ;;  %v6258_v63 = vsel %vm1065_vm2, %v1087_v21, %v1089_v22  ;;  %v1091_v1 = vrot.slane %v6221_v31, 1  ;;  %v4366_v18 = vld [vmem:[%s8161_s4 + $0x1e8] sm:$0xff]  ;;  %v558_v48 = vld [vmem:[#allocation2 + $0xb8] sm:$0xff]  ;;  %v560_v49 = vld [vmem:[#allocation2 + $0xe0] sm:$0xff] }
  0x4f   : > { %5127 = vmatprep.subr.mxu0 %v4352_v32  ;;  %5002 = vmatprep.mubr.f32.mxu0 %v6134_v29  ;;  %v672_v54 = vadd.f32 %v6009_v7, %v611_v17  ;;  %8284 = vst [vmem:[#allocation21_spill] sm:$0xff] %v6258_v63  ;;  %v6269_v17 = vmax.f32 %v671_v39, 0.0 }
  0x50   : > { %5128 = vmatpush3.msra.mxu0 %v4352_v32  ;;  %5082 = vmatprep.mubr.msk.f32.mxu1 %vm833_vm0, %v6048_v34  ;;  %v6225_v32 = vsel %vm892_vm1, %v720_v5, 0.0  ;;  %v675_v61 = vadd.f32 %v6009_v7, %v614_v40  ;;  %v1092_v5 = vrot.slane %v6216_v28, 1  ;;  %v616_v40 = vmul.f32 %v6000_v4, %v555_v6 }
  0x51   : > { %5129 = vmatprep.subr.mxu0 %v4351_v45  ;;  %5207 = vmatprep.subr.mxu1 %v4368_v56  ;;  %v1094_v14 = vrot.slane %v6225_v32, 1  ;;  %8285 = vst [vmem:[#allocation22_spill] sm:$0xff] %v6269_v17  ;;  %v726_v23 = vmax.f32 %v672_v54, 0.0  ;;  %v4347_v54 = vld [vmem:[%s8161_s4 + $0x150] sm:$0xff] }
  0x52   : > { %5003 = vmatmul.mubr.f32.gmra.mxu0 %v6143_v33  ;;  %5083 = vmatmul.mubr.f32.gmra.mxu1 %v6066_v46  ;;  %v729_v39 = vmax.f32 %v675_v61, 0.0 }
  0x53   : > { %5130 = vmatpush3.msra.mxu0 %v4351_v45  ;;  %5005 = vmatprep.mubr.f32.mxu0 %v6160_v47  ;;  %v6244_v45 = vmax.f32 %v670_v16, 0.0  ;;  %v1097_v16 = vrot.slane %v6230_v36, 1  ;;  %v6303_v61 = vsel %vm1065_vm2, %v1092_v5, %v1094_v14  ;;  %v6319_v14 = vsel %vm892_vm1, %v726_v23, 0.0 }
  0x54   : > { %5085 = vmatprep.mubr.msk.f32.mxu1 %vm833_vm0, %v6056_v38  ;;  %5131 = vmatprep.subr.mxu0 %v4350_v10  ;;  %8288 = vst [vmem:[#allocation25_spill] sm:$0xff] %v6303_v61  ;;  %8290 = vst [vmem:[#allocation27_spill] sm:$0xff] %v6319_v14  ;;  %v6335_v23 = vsel %vm892_vm1, %v729_v39, 0.0  ;;  %v4346_v39 = vld [vmem:[%s8161_s4 + $0x148] sm:$0xff] }
  0x55   : > { %5132 = vmatpush3.msra.mxu0 %v4350_v10  ;;  %5208 = vmatpush3.msra.mxu1 %v4368_v56  ;;  %8282 = vst [vmem:[#allocation19_spill] sm:$0xff] %v6244_v45  ;;  %v6253_v56 = vsel %vm1065_vm2, %v1086_v19, %v1087_v21  ;;  %v615_v10 = vmul.f32 %v6000_v4, %v554_v41  ;;  %v557_v19 = vld [vmem:[#allocation2 + $0x190] sm:$0xff]  ;;  %v6278_v21 = vsel %vm892_vm1, %v723_v44, 0.0  ;;  %v6283_v22 = vsel %vm833_vm0, %v6244_v45, 0.0 }
  0x56   : > { %5006 = vmatmul.mubr.f32.gmra.mxu0 %v6163_v50  ;;  %5086 = vmatmul.mubr.f32.gmra.mxu1 %v6085_v57  ;;  %8283 = vst [vmem:[#allocation20_spill] sm:$0xff] %v6253_v56  ;;  %v617_v41 = vmul.f32 %v6000_v4, %v556_v12  ;;  %v6295_v44 = vsel %vm1065_vm2, %v1091_v1, %v1092_v5  ;;  %v1099_v12 = vrot.slane %v6278_v21, 1  ;;  %8293 = vst [vmem:[#allocation30_spill] sm:$0xff] %v6335_v23 }
  0x57   : > { %5008 = vmatprep.mubr.f32.mxu0 %v6194_v11  ;;  %5088 = vmatprep.mubr.msk.f32.mxu1 %vm833_vm0, %v6094_v62  ;;  %8287 = vst [vmem:[#allocation24_spill] sm:$0xff] %v6295_v44  ;;  %v676_v55 = vadd.f32 %v6009_v7, %v615_v10  ;;  %v6306_v6 = vsel %vm1065_vm2, %v1096_v15, %v1097_v16  ;;  %v4365_v10 = vld [vmem:[%s8161_s4 + $0x1e0] sm:$0xff] }
  0x58   : > { %5133 = vmatprep.subr.mxu0 %v4349_v35  ;;  %5209 = vmatprep.subr.mxu1 %v4367_v42  ;;  %8289 = vst [vmem:[#allocation26_spill] sm:$0xff] %v6306_v6  ;;  %v678_v1 = vadd.f32 %v6009_v7, %v617_v41  ;;  %v6326_v41 = vmax.f32 %v674_v26, 0.0  ;;  %v621_v26 = vmul.f32 %v6000_v4, %v560_v49  ;;  %v8296_v49 = vrot.slane %v6269_v17, 1 }
  0x59   : > { %5134 = vmatpush3.msra.mxu0 %v4349_v35  ;;  %5210 = vmatpush3.msra.mxu1 %v4367_v42  ;;  %v6290_v35 = vmax.f32 %v673_v60, 0.0  ;;  %v559_v42 = vld [vmem:[#allocation2 + $0xa8] sm:$0x3]  ;;  %v618_v60 = vmul.f32 %v6000_v4, %v557_v19  ;;  %v562_v19 = vld [vmem:[#allocation2 + $0x98] sm:$0x3] }
  0x5a   : > { %5009 = vmatmul.mubr.f32.gmra.mxu0 %v6214_v27  ;;  %5089 = vmatmul.mubr.f32.gmra.mxu1 %v6122_v20  ;;  %v620_v15 = vmul.f32 %v6000_v4, %v559_v42  ;;  %8291 = vst [vmem:[#allocation28_spill] sm:$0xff] %v6326_v41  ;;  %v677_v42 = vadd.f32 %v6009_v7, %v616_v40  ;;  %v732_v11 = vmax.f32 %v678_v1, 0.0  ;;  %v4364_v40 = vld [vmem:[%s8161_s4 + $0x1d8] sm:$0xff] }
  0x5b   : > { %5011 = vmatprep.mubr.f32.mxu0 %v6253_v56  ;;  %5091 = vmatprep.mubr.msk.f32.mxu1 %vm833_vm0, %v6136_v30  ;;  %8286 = vst [vmem:[#allocation23_spill] sm:$0xff] %v6290_v35  ;;  %v6331_v5 = vsel %vm833_vm0, %v6290_v35, 0.0  ;;  %v679_v56 = vadd.f32 %v6009_v7, %v618_v60  ;;  %v6344_v27 = vsel %vm1065_vm2, %v1097_v16, %v1099_v12  ;;  %v563_v60 = vld [vmem:[#allocation2 + $0xc0] sm:$0xff] }
  0x5c   : > { %5135 = vmatprep.subr.mxu0 %v4348_v0  ;;  %5211 = vmatprep.subr.mxu1 %v4366_v18  ;;  %8292 = vst [vmem:[#allocation29_spill] sm:$0xff] %v6331_v5  ;;  %8295 = vst [vmem:[#allocation32_spill] sm:$0xff] %v6344_v27  ;;  %v1106_v12 = vrot.slane %v6331_v5, 1  ;;  %v681_v1 = vadd.f32 %v6009_v7, %v620_v15  ;;  %v624_v47 = vmul.f32 %v6000_v4, %v563_v60  ;;  %v569_v5 = vld [vmem:[#allocation2 + $0xe8] sm:$0xff] }
  0x5d   : > { %5136 = vmatpush3.msra.mxu0 %v4348_v0  ;;  %5212 = vmatpush3.msra.mxu1 %v4366_v18  ;;  %v1101_v0 = vrot.slane %v6283_v22, 1  ;;  %v561_v18 = vld [vmem:[#allocation2 + $0x158] sm:$0xff]  ;;  %v6379_v50 = vmax.f32 %v679_v56, 0.0  ;;  %v4363_v56 = vld [vmem:[%s8161_s4 + $0x1d0] sm:$0xff] }
  0x5e   : > { %5012 = vmatmul.mubr.f32.gmra.mxu0 %v6258_v63  ;;  %5092 = vmatmul.mubr.f32.gmra.mxu1 %v6165_v53  ;;  %v6338_v63 = vmax.f32 %v676_v55, 0.0  ;;  %v623_v55 = vmul.f32 %v6000_v4, %v562_v19  ;;  %v6370_v19 = vmax.f32 %v677_v42, 0.0  ;;  %v4345_v42 = vld [vmem:[%s8161_s4 + $0x140] sm:$0xff]  ;;  %v685_v60 = vadd.f32 %v6009_v7, %v624_v47 }
  0x5f   : > { %5014 = vmatprep.mubr.f32.mxu0 %v6295_v44  ;;  %5094 = vmatprep.mubr.msk.f32.mxu1 %vm833_vm0, %v6188_v3  ;;  %v619_v44 = vmul.f32 %v6000_v4, %v558_v48  ;;  %v622_v48 = vmul.f32 %v6000_v4, %v561_v18  ;;  %v6359_v16 = vsel %vm1065_vm2, %v1101_v0, %v8296_v49  ;;  %v1109_v18 = vrot.slane %v6335_v23, 1  ;;  %v564_v49 = vld [vmem:[#allocation2 + $0xf8] sm:$0xff] }
  0x60   : > { %5137 = vmatprep.subr.mxu0 %v4347_v54  ;;  %8294 = vst [vmem:[#allocation31_spill] sm:$0xff] %v6338_v63  ;;  %5213 = vmatprep.subr.mxu1 %v4365_v10  ;;  %8297 = vst [vmem:[#allocation33_spill] sm:$0xff] %v6359_v16  ;;  %v682_v0 = vadd.f32 %v6009_v7, %v621_v26  ;;  %v6376_v15 = vsel %vm833_vm0, %v6338_v63, 0.0  ;;  %v6387_v26 = vsel %vm892_vm1, %v732_v11, 0.0  ;;  %v566_v23 = vld [vmem:[#allocation2 + $0x38] sm:$0xff] }
  0x61   : > { %5138 = vmatpush3.msra.mxu0 %v4347_v54  ;;  %5214 = vmatpush3.msra.mxu1 %v4365_v10  ;;  %v1104_v54 = vrot.slane %v6319_v14, 1  ;;  %v1107_v10 = vrot.slane %v6326_v41, 1  ;;  %8298 = vst [vmem:[#allocation34_spill] sm:$0xff] %v6376_v15  ;;  %8299 = vst [vmem:[#allocation35_spill] sm:$0xff] %v6379_v50  ;;  %v683_v33 = vadd.f32 %v6009_v7, %v622_v48  ;;  %v6442_v14 = vmax.f32 %v685_v60, 0.0 }
  0x62   : > { %5015 = vmatmul.mubr.f32.gmra.mxu0 %v6303_v61  ;;  %5095 = vmatmul.mubr.f32.gmra.mxu1 %v6216_v28  ;;  %v565_v61 = vld [vmem:[#allocation2 + $0x50] sm:$0x3]  ;;  %8300 = vst [vmem:[#allocation36_spill] sm:$0xff] %v6387_v26  ;;  %v684_v29 = vadd.f32 %v6009_v7, %v623_v55  ;;  %v1111_v55 = vrot.slane %v6376_v15, 1 }
  0x63   : > { %5017 = vmatprep.mubr.f32.mxu0 %v6306_v6  ;;  %5097 = vmatprep.mubr.msk.f32.mxu1 %vm833_vm0, %v6197_v13  ;;  %v680_v6 = vadd.f32 %v6009_v7, %v619_v44  ;;  %v735_v44 = vmax.f32 %v681_v1, 0.0  ;;  %v626_v11 = vmul.f32 %v6000_v4, %v565_v61  ;;  %v1112_v1 = vrot.slane %v6370_v19, 1  ;;  %v568_v15 = vld [vmem:[#allocation2 + $0x30] sm:$0x3] }
  0x64   : > { %5139 = vmatprep.subr.mxu0 %v4346_v39  ;;  %5215 = vmatprep.subr.mxu1 %v4364_v40  ;;  %v6413_v47 = vsel %vm1065_vm2, %v1106_v12, %v1107_v10  ;;  %v6416_v61 = vsel %vm1065_vm2, %v1107_v10, %v1109_v18  ;;  %v4362_v12 = vld [vmem:[%s8161_s4 + $0x1c8] sm:$0xff]  ;;  %v1114_v10 = vrot.slane %v6387_v26, 1  ;;  %v6432_v18 = vmax.f32 %v683_v33, 0.0 }
  0x65   : > { %5140 = vmatpush3.msra.mxu0 %v4346_v39  ;;  %5216 = vmatpush3.msra.mxu1 %v4364_v40  ;;  %v625_v39 = vmul.f32 %v6000_v4, %v564_v49  ;;  %v8301_v40 = vrot.slane %v6269_v17, 1  ;;  %v6410_v49 = vmax.f32 %v682_v0, 0.0  ;;  %8303 = vst [vmem:[#allocation38_spill] sm:$0xff] %v6413_v47  ;;  %8304 = vst [vmem:[#allocation39_spill] sm:$0xff] %v6416_v61  ;;  %v567_v0 = vld [vmem:[#allocation2] sm:$0xff] }
  0x66   : > { %5018 = vmatmul.mubr.f32.gmra.mxu0 %v6344_v27  ;;  %5098 = vmatmul.mubr.f32.gmra.mxu1 %v6230_v36  ;;  %v6421_v27 = vmax.f32 %v680_v6, 0.0  ;;  %8306 = vst [vmem:[#allocation41_spill] sm:$0xff] %v6432_v18  ;;  %v627_v6 = vmul.f32 %v6000_v4, %v566_v23  ;;  %v687_v33 = vadd.f32 %v6009_v7, %v626_v11 }
  0x67   : > { %5020 = vmatprep.mubr.f32.mxu0 %v6359_v16  ;;  %5100 = vmatprep.mubr.msk.f32.mxu1 %vm833_vm0, %v6244_v45  ;;  %v6406_v48 = vsel %vm1065_vm2, %v8301_v40, %v1104_v54  ;;  %v4344_v16 = vld [vmem:[%s8161_s4 + $0x138] sm:$0xff]  ;;  %v6426_v54 = vsel %vm833_vm0, %v6379_v50, 0.0  ;;  %v738_v40 = vmax.f32 %v684_v29, 0.0  ;;  %v6439_v45 = vsel %vm892_vm1, %v735_v44, 0.0 }
  0x68   : > { %8302 = vst [vmem:[#allocation37_spill] sm:$0xff] %v6406_v48  ;;  %5141 = vmatprep.subr.mxu0 %v4345_v42  ;;  %8305 = vst [vmem:[#allocation40_spill] sm:$0xff] %v6426_v54  ;;  %5217 = vmatprep.subr.mxu1 %v4363_v56  ;;  %v6450_v29 = vsel %vm1065_vm2, %v1111_v55, %v1112_v1  ;;  %v6455_v23 = vsel %vm833_vm0, %v6410_v49, 0.0  ;;  %v688_v44 = vadd.f32 %v6009_v7, %v627_v6 }
  0x69   : > { %5142 = vmatpush3.msra.mxu0 %v4345_v42  ;;  %5218 = vmatpush3.msra.mxu1 %v4363_v56  ;;  %8307 = vst [vmem:[#allocation42_spill] sm:$0xff] %v6439_v45  ;;  %v686_v42 = vadd.f32 %v6009_v7, %v625_v39  ;;  %8308 = vst [vmem:[#allocation43_spill] sm:$0xff] %v6450_v29  ;;  %v628_v56 = vmul.f32 %v6000_v4, %v567_v0  ;;  %v1116_v39 = vrot.slane %v6426_v54, 1  ;;  %v4343_v0 = vld [vmem:[%s8161_s4 + $0x130] sm:$0xff] }
  0x6a   : > { %5021 = vmatmul.mubr.f32.gmra.mxu0 %v6406_v48  ;;  %5101 = vmatmul.mubr.f32.gmra.mxu1 %v6269_v17  ;;  %8309 = vst [vmem:[#allocation44_spill] sm:$0xff] %v6455_v23  ;;  %v1117_v60 = vrot.slane %v6421_v27, 1  ;;  %v629_v11 = vmul.f32 %v6000_v4, %v568_v15  ;;  %v630_v55 = vmul.f32 %v6000_v4, %v569_v5  ;;  %v571_v48 = vld [vmem:[#allocation2 + $0xc8] sm:$0x3]  ;;  %v1119_v6 = vrot.slane %v6439_v45, 1  ;;  %v4361_v5 = vld [vmem:[%s8161_s4 + $0x1c0] sm:$0xff] }
  0x6b   : > { %5023 = vmatprep.mubr.f32.mxu0 %v6413_v47  ;;  %5103 = vmatprep.mubr.msk.f32.mxu1 %vm833_vm0, %v6290_v35  ;;  %v570_v47 = vld [vmem:[#allocation2 + $0x110] sm:$0xff]  ;;  %v6464_v26 = vsel %vm1065_vm2, %v1112_v1, %v1114_v10  ;;  %v1122_v54 = vrot.slane %v6432_v18, 1  ;;  %v6473_v35 = vsel %vm892_vm1, %v738_v40, 0.0  ;;  %v6481_v15 = vmax.f32 %v686_v42, 0.0  ;;  %v572_v40 = vld [vmem:[#allocation2 + $0x1a8] sm:$0xff] }
  0x6c   : > { %5143 = vmatprep.subr.mxu0 %v4344_v16  ;;  %5219 = vmatprep.subr.mxu1 %v4362_v12  ;;  %8310 = vst [vmem:[#allocation45_spill] sm:$0xff] %v6464_v26  ;;  %v6486_v1 = vsel %vm833_vm0, %v6442_v14, 0.0  ;;  %v741_v10 = vmax.f32 %v687_v33, 0.0  ;;  %v631_v42 = vmul.f32 %v6000_v4, %v570_v47  ;;  %v6498_v45 = vsel %vm1065_vm2, %v1116_v39, %v1117_v60  ;;  %v4342_v33 = vld [vmem:[%s8161_s4 + $0x128] sm:$0xff] }
  0x6d   : > { %5144 = vmatpush3.msra.mxu0 %v4344_v16  ;;  %5220 = vmatpush3.msra.mxu1 %v4362_v12  ;;  %v1121_v16 = vrot.slane %v6455_v23, 1  ;;  %8311 = vst [vmem:[#allocation46_spill] sm:$0xff] %v6481_v15  ;;  %8312 = vst [vmem:[#allocation47_spill] sm:$0xff] %v6486_v1  ;;  %v689_v12 = vadd.f32 %v6009_v7, %v628_v56  ;;  %v632_v23 = vmul.f32 %v6000_v4, %v571_v48  ;;  %v4360_v48 = vld [vmem:[%s8161_s4 + $0x1b8] sm:$0xff] }
  0x6e   : > { %5024 = vmatmul.mubr.f32.gmra.mxu0 %v6416_v61  ;;  %5104 = vmatmul.mubr.f32.gmra.mxu1 %v6326_v41  ;;  %v6493_v61 = vmax.f32 %v688_v44, 0.0  ;;  %8314 = vst [vmem:[#allocation49_spill] sm:$0xff] %v6498_v45  ;;  %v6506_v56 = vsel %vm1065_vm2, %v1117_v60, %v1119_v6  ;;  %v1124_v47 = vrot.slane %v6473_v35, 1  ;;  %v573_v44 = vld [vmem:[#allocation2 + $0x70] sm:$0xff]  ;;  %v633_v39 = vmul.f32 %v6000_v4, %v572_v40 }
  0x6f   : > { %5026 = vmatprep.mubr.f32.mxu0 %v6450_v29  ;;  %5106 = vmatprep.mubr.msk.f32.mxu1 %vm833_vm0, %v6338_v63  ;;  %v690_v29 = vadd.f32 %v6009_v7, %v629_v11  ;;  %v691_v63 = vadd.f32 %v6009_v7, %v630_v55  ;;  %v574_v41 = vld [vmem:[#allocation2 + $0x150] sm:$0x3]  ;;  %v6516_v11 = vsel %vm1065_vm2, %v1121_v16, %v1122_v54  ;;  %v1126_v60 = vrot.slane %v6486_v1, 1 }
  0x70   : > { %8313 = vst [vmem:[#allocation48_spill] sm:$0xff] %v6493_v61  ;;  %5145 = vmatprep.subr.mxu0 %v4343_v0  ;;  %5221 = vmatprep.subr.mxu1 %v4361_v5  ;;  %v1127_v55 = vrot.slane %v6481_v15, 1  ;;  %v6528_v6 = vmax.f32 %v689_v12, 0.0  ;;  %v692_v16 = vadd.f32 %v6009_v7, %v631_v42  ;;  %v693_v40 = vadd.f32 %v6009_v7, %v632_v23  ;;  %v4341_v12 = vld [vmem:[%s8161_s4 + $0x120] sm:$0xff]  ;;  %v4359_v42 = vld [vmem:[%s8161_s4 + $0x1b0] sm:$0xff] }
  0x71   : > { %5146 = vmatpush3.msra.mxu0 %v4343_v0  ;;  %5222 = vmatpush3.msra.mxu1 %v4361_v5  ;;  %v6522_v0 = vsel %vm892_vm1, %v741_v10, 0.0  ;;  %v6533_v5 = vsel %vm833_vm0, %v6493_v61, 0.0  ;;  %v744_v10 = vmax.f32 %v690_v29, 0.0  ;;  %v635_v1 = vmul.f32 %v6000_v4, %v574_v41 }
  0x72   : > { %5027 = vmatmul.mubr.f32.gmra.mxu0 %v6464_v26  ;;  %5107 = vmatmul.mubr.f32.gmra.mxu1 %v6370_v19  ;;  %8315 = vst [vmem:[#allocation50_spill] sm:$0xff] %v6528_v6  ;;  %v6537_v26 = vmax.f32 %v691_v63, 0.0  ;;  %v694_v23 = vadd.f32 %v6009_v7, %v633_v39  ;;  %v6551_v63 = vsel %vm1065_vm2, %v1122_v54, %v1124_v47  ;;  %v1129_v41 = vrot.slane %v6522_v0, 1 }
  0x73   : > { %5029 = vmatprep.mubr.f32.mxu0 %v6498_v45  ;;  %5109 = vmatprep.mubr.msk.f32.mxu1 %vm833_vm0, %v6379_v50  ;;  %v634_v45 = vmul.f32 %v6000_v4, %v573_v44  ;;  %8316 = vst [vmem:[#allocation51_spill] sm:$0xff] %v6551_v63  ;;  %v6554_v4 = vsel %vm1065_vm2, %v1126_v60, %v1127_v55  ;;  %v1131_v29 = vrot.slane %v6533_v5, 1  ;;  %v747_v44 = vmax.f32 %v693_v40, 0.0  ;;  %v4358_v40 = vld [vmem:[%s8161_s4 + $0x1a8] sm:$0xff] }
  0x74   : > { %5147 = vmatprep.subr.mxu0 %v4342_v33  ;;  %5223 = vmatprep.subr.mxu1 %v4360_v48  ;;  %8317 = vst [vmem:[#allocation52_spill] sm:$0xff] %v6554_v4  ;;  %v6567_v54 = vsel %vm892_vm1, %v744_v10, 0.0  ;;  %v6572_v47 = vsel %vm833_vm0, %v6537_v26, 0.0  ;;  %v696_v60 = vadd.f32 %v6009_v7, %v635_v1  ;;  %v6582_v10 = vmax.f32 %v694_v23, 0.0 }
  0x75   : > { %5148 = vmatpush3.msra.mxu0 %v4342_v33  ;;  %5224 = vmatpush3.msra.mxu1 %v4360_v48  ;;  %v1132_v33 = vrot.slane %v6528_v6, 1  ;;  %v6563_v48 = vmax.f32 %v692_v16, 0.0  ;;  %v695_v39 = vadd.f32 %v6009_v7, %v634_v45  ;;  %v4340_v16 = vld [vmem:[%s8161_s4 + $0x118] sm:$0xff]  ;;  %v6591_v7 = vsel %vm1065_vm2, %v1127_v55, %v1129_v41  ;;  %v4339_v55 = vld [vmem:[%s8161_s4 + $0x110] sm:$0xff]  ;;  %v4357_v41 = vld [vmem:[%s8161_s4 + $0x1a0] sm:$0xff] }
  0x76   : > { %5030 = vmatmul.mubr.f32.gmra.mxu0 %v6506_v56  ;;  %5110 = vmatmul.mubr.f32.gmra.mxu1 %v6421_v27  ;;  %v1134_v1 = vrot.slane %v6567_v54, 1  ;;  %v6601_v23 = vsel %vm892_vm1, %v747_v44, 0.0 }
  0x77   : > { %5032 = vmatprep.mubr.f32.mxu0 %v6516_v11  ;;  %5112 = vmatprep.mubr.msk.f32.mxu1 %vm833_vm0, %v6410_v49  ;;  %v6594_v45 = vsel %vm1065_vm2, %v1131_v29, %v1132_v33  ;;  %v6614_v29 = vsel %vm833_vm0, %v6582_v10, 0.0 }
  0x78   : > { %5149 = vmatprep.subr.mxu0 %v4341_v12  ;;  %5225 = vmatprep.subr.mxu1 %v4359_v42  ;;  %8318 = vst [vmem:[#allocation53_spill] sm:$0xff] %v6594_v45  ;;  %v6623_v44 = vsel %vm1065_vm2, %v1132_v33, %v1134_v1  ;;  %v4338_v33 = vld [vmem:[%s8161_s4 + $0x108] sm:$0xff]  ;;  %v4356_v1 = vld [vmem:[%s8161_s4 + $0x198] sm:$0xff] }
  0x79   : > { %5150 = vmatpush3.msra.mxu0 %v4341_v12  ;;  %5226 = vmatpush3.msra.mxu1 %v4359_v42  ;;  %v1136_v12 = vrot.slane %v6572_v47, 1  ;;  %v1137_v42 = vrot.slane %v6563_v48, 1 }
  0x7a   : > { %5033 = vmatmul.mubr.f32.gmra.mxu0 %v6551_v63  ;;  %5113 = vmatmul.mubr.f32.gmra.mxu1 %v6432_v18  ;;  %v750_v63 = vmax.f32 %v696_v60, 0.0 }
  0x7b   : > { %5035 = vmatprep.mubr.f32.mxu0 %v6554_v4  ;;  %5115 = vmatprep.mubr.msk.f32.mxu1 %vm833_vm0, %v6442_v14  ;;  %v6603_v4 = vmax.f32 %v695_v39, 0.0  ;;  %v1139_v39 = vrot.slane %v6601_v23, 1  ;;  %v6627_v60 = vsel %vm1065_vm2, %v1136_v12, %v1137_v42 }
  0x7c   : > { %5151 = vmatprep.subr.mxu0 %v4340_v16  ;;  %5227 = vmatprep.subr.mxu1 %v4358_v40 }
  0x7d   : > { %5152 = vmatpush3.msra.mxu0 %v4340_v16  ;;  %5228 = vmatpush3.msra.mxu1 %v4358_v40  ;;  %v1141_v16 = vrot.slane %v6614_v29, 1  ;;  %v1142_v40 = vrot.slane %v6603_v4, 1 }
  0x7e   : > { %5036 = vmatmul.mubr.f32.gmra.mxu0 %v6591_v7  ;;  %5116 = vmatmul.mubr.f32.gmra.mxu1 %v6481_v15 }
  0x7f   : > { %5038 = vmatprep.mubr.f32.mxu0 %v6594_v45  ;;  %5118 = vmatprep.mubr.msk.f32.mxu1 %vm833_vm0, %v6493_v61  ;;  %v6633_v45 = vsel %vm892_vm1, %v750_v63, 0.0  ;;  %v6648_v63 = vsel %vm1065_vm2, %v1137_v42, %v1139_v39  ;;  %v8321_v39 = vmov 0.0  }
  0x80   : > { %5153 = vmatprep.subr.mxu0 %v4339_v55  ;;  %5229 = vmatprep.subr.mxu1 %v4357_v41  ;;  %v1144_v12 = vrot.slane %v6633_v45, 1 }
  0x81   : > { %5154 = vmatpush3.msra.mxu0 %v4339_v55  ;;  %5230 = vmatpush3.msra.mxu1 %v4357_v41  ;;  %v6652_v55 = vsel %vm1065_vm2, %v1141_v16, %v1142_v40  ;;  %v4337_v41 = vld [vmem:[%s8161_s4 + $0x100] sm:$0xff]  ;;  %v6670_v16 = vrot.slane %v8321_v39, 2 }
  0x82   : > { %5039 = vmatmul.mubr.f32.gmra.mxu0 %v6623_v44  ;;  %5119 = vmatmul.mubr.f32.gmra.mxu1 %v6528_v6  ;;  %8319 = vst [vmem:[#allocation54_spill] sm:$0xff] %v6652_v55  ;;  %v6667_v42 = vsel %vm1065_vm2, %v1142_v40, %v1144_v12  ;;  %v1652_v40 = vrot.slane %v6066_v46, 2  ;;  %v4353_v12 = vld [vmem:[%s8161_s4 + $0x180] sm:$0xff] }
  0x83   : > { %5041 = vmatprep.mubr.f32.mxu0 %v6627_v60  ;;  %5121 = vmatprep.mubr.msk.f32.mxu1 %vm833_vm0, %v6537_v26  ;;  %8320 = vst [vmem:[#allocation55_spill] sm:$0xff] %v6667_v42  ;;  %8322 = vst [vmem:[#allocation56_spill] sm:$0xff] %v6670_v16 }
  0x84   : > { %5155 = vmatprep.subr.mxu0 %v4338_v33  ;;  %5231 = vmatprep.subr.mxu1 %v4356_v1 }
  0x85   : > { %5156 = vmatpush3.msra.mxu0 %v4338_v33  ;;  %5232 = vmatpush3.msra.mxu1 %v4356_v1  ;;  %v4354_v33 = vld [vmem:[%s8161_s4 + $0x188] sm:$0xff]  ;;  %v4400_v1 = vld [vmem:[%s8161_s4 + $0x278] sm:$0xff] }
  0x86   : > { %5042 = vmatmul.mubr.f32.gmra.mxu0 %v6648_v63  ;;  %5122 = vmatmul.mubr.f32.gmra.mxu1 %v6563_v48 }
  0x87   : > { %5044 = vmatprep.mubr.f32.mxu0 %v6652_v55  ;;  %5124 = vmatprep.mubr.msk.f32.mxu1 %vm833_vm0, %v6582_v10  ;;  %v1651_v55 = vrot.slane %v6071_v51, 2  ;;  %v1656_v51 = vrot.slane %v6090_v58, 2  ;;  %v1659_v58 = vrot.slane %v6108_v9, 2  ;;  %v4416_v9 = vld [vmem:[%s8161_s4 + $0x2f8] sm:$0xff] }
  0x88   : > { %5157 = vmatprep.subr.mxu0 %v4337_v41  ;;  %5233 = vmatprep.subr.mxu1 %v4355_v24 }
  0x89   : > { %5158 = vmatpush3.msra.mxu0 %v4337_v41  ;;  %5234 = vmatpush3.msra.mxu1 %v4355_v24  ;;  %v1654_v24 = vrot.slane %v6075_v52, 2  ;;  %v1657_v41 = vrot.slane %v6085_v57, 2  ;;  %v6693_v39 = vsel %vm1645_vm3, %v1651_v55, %v1652_v40 }
  0x8a   : > { %5045 = vmatmul.mubr.f32.gmra.mxu0 %v6667_v42  ;;  %5125 = vmatmul.mubr.f32.gmra.mxu1 %v6603_v4  ;;  %v4399_v42 = vld [vmem:[%s8161_s4 + $0x270] sm:$0xff] }
  0x8b   : > { %5235 = vmatprep.subr.mxu1 %v4354_v33  ;;  %5159 = vmatprep.mubr.f32.mxu0 %v6670_v16  ;;  %v6701_v52 = vsel %vm1645_vm3, %v1652_v40, %v1654_v24  ;;  %v6709_v55 = vsel %vm1645_vm3, %v1656_v51, %v1657_v41  ;;  %v1667_v24 = vrot.slane %v6165_v53, 2  ;;  %v4415_v51 = vld [vmem:[%s8161_s4 + $0x2f0] sm:$0xff] }
  0x8c   : > { %5236 = vmatpush3.msra.mxu1 %v4354_v33  ;;  %5287 = vmatprep.subr.mxu0 %v4400_v1  ;;  %v1661_v33 = vrot.slane %v6129_v25, 2  ;;  %v6726_v25 = vsel %vm1645_vm3, %v1657_v41, %v1659_v58  ;;  %v1669_v41 = vrot.slane %v6186_v2, 2  ;;  %v4395_v2 = vld [vmem:[%s8161_s4 + $0x250] sm:$0xff] }
  0x8d   : > { %5237 = vmatprep.subr.mxu1 %v4353_v12  ;;  %5239 = vmatprep.mubr.msk.f32.mxu1 %vm833_vm0, %v6048_v34  ;;  %v4398_v34 = vld [vmem:[%s8161_s4 + $0x268] sm:$0xff] }
  0x8e   : > { %5160 = vmatmul.mubr.f32.vlgmr.msra.gmra.mxu0 %v6670_v16  ;;  %5238 = vmatpush3.msra.mxu1 %v4353_v12  ;;  %v1666_v12 = vrot.slane %v6175_v59, 2 }
  0x8f   : > { %5288 = vmatpush3.msra.mxu0 %v4400_v1  ;;  %5240 = vmatmul.mubr.f32.vlgmr.msra.gmra.mxu1 %v6066_v46  ;;  %v1662_v1 = vrot.slane %v6122_v20, 2  ;;  %v4397_v46 = vld [vmem:[%s8161_s4 + $0x260] sm:$0xff] }
  0x90   : > { %5162 = vmatprep.mubr.f32.mxu0 %v6693_v39  ;;  %5289 = vmatprep.subr.mxu0 %v4399_v42  ;;  %v6754_v58 = vsel %vm1645_vm3, %v1666_v12, %v1667_v24  ;;  %v1677_v12 = vrot.slane %v6230_v36, 2 }
  0x91   : > { %5242 = vmatprep.mubr.msk.f32.mxu1 %vm833_vm0, %v6056_v38  ;;  %5290 = vmatpush3.msra.mxu0 %v4399_v42  ;;  %v1664_v42 = vrot.slane %v6151_v43, 2  ;;  %v6733_v40 = vsel %vm1645_vm3, %v1661_v33, %v1662_v1  ;;  %v4396_v43 = vld [vmem:[%s8161_s4 + $0x258] sm:$0xff]  ;;  %8323 = vst [vmem:[#allocation57_spill] sm:$0xff] %v6754_v58  ;;  %v1672_v33 = vrot.slane %v6216_v28, 2 }
  0x92   : > { %5163 = vmatmul.mubr.f32.gmra.mxu0 %v6701_v52  ;;  %5291 = vmatprep.subr.mxu0 %v4398_v34 }
  0x93   : > { %5243 = vmatmul.mubr.f32.gmra.mxu1 %v6085_v57  ;;  %5165 = vmatprep.mubr.f32.mxu0 %v6709_v55  ;;  %v6747_v59 = vsel %vm1645_vm3, %v1662_v1, %v1664_v42  ;;  %v4414_v1 = vld [vmem:[%s8161_s4 + $0x2e8] sm:$0xff]  ;;  %v1676_v42 = vrot.slane %v6235_v37, 2 }
  0x94   : > { %5245 = vmatprep.mubr.msk.f32.mxu1 %vm833_vm0, %v6094_v62  ;;  %5292 = vmatpush3.msra.mxu0 %v4398_v34  ;;  %v1671_v34 = vrot.slane %v6221_v31, 2  ;;  %v6768_v31 = vsel %vm1645_vm3, %v1667_v24, %v1669_v41  ;;  %v4413_v24 = vld [vmem:[%s8161_s4 + $0x2e0] sm:$0xff]  ;;  %v1681_v41 = vrot.slane %v6283_v22, 2 }
  0x95   : > { %5293 = vmatprep.subr.mxu0 %v4397_v46  ;;  %5367 = vmatprep.subr.mxu1 %v4416_v9  ;;  %8324 = vst [vmem:[#allocation58_spill] sm:$0xff] %v6768_v31 }
  0x96   : > { %5166 = vmatmul.mubr.f32.gmra.mxu0 %v6726_v25  ;;  %5368 = vmatpush3.msra.mxu1 %v4416_v9  ;;  %v6775_v9 = vsel %vm1645_vm3, %v1671_v34, %v1672_v33  ;;  %v1682_v34 = vrot.slane %v6269_v17, 2 }
  0x97   : > { %5246 = vmatmul.mubr.f32.gmra.mxu1 %v6122_v20  ;;  %5168 = vmatprep.mubr.f32.mxu0 %v6733_v40  ;;  %8325 = vst [vmem:[#allocation59_spill] sm:$0xff] %v6775_v9 }
  0x98   : > { %5248 = vmatprep.mubr.msk.f32.mxu1 %vm833_vm0, %v6136_v30  ;;  %5294 = vmatpush3.msra.mxu0 %v4397_v46  ;;  %v1674_v46 = vrot.slane %v6225_v32, 2  ;;  %v4394_v32 = vld [vmem:[%s8161_s4 + $0x248] sm:$0xff] }
  0x99   : > { %5295 = vmatprep.subr.mxu0 %v4396_v43  ;;  %5369 = vmatprep.subr.mxu1 %v4415_v51 }
  0x9a   : > { %5169 = vmatmul.mubr.f32.gmra.mxu0 %v6747_v59  ;;  %5370 = vmatpush3.msra.mxu1 %v4415_v51  ;;  %v6789_v37 = vsel %vm1645_vm3, %v1672_v33, %v1674_v46  ;;  %v6796_v51 = vsel %vm1645_vm3, %v1676_v42, %v1677_v12  ;;  %v4412_v33 = vld [vmem:[%s8161_s4 + $0x2d8] sm:$0xff]  ;;  %v6817_v42 = vsel %vm1645_vm3, %v1681_v41, %v1682_v34  ;;  %v8335_v41 = vld [vmem:[#allocation30_spill] sm:$0xff] }
  0x9b   : > { %5249 = vmatmul.mubr.f32.gmra.mxu1 %v6165_v53  ;;  %5171 = vmatprep.mubr.f32.mxu0 %v6754_v58  ;;  %8326 = vst [vmem:[#allocation60_spill] sm:$0xff] %v6789_v37  ;;  %8327 = vst [vmem:[#allocation61_spill] sm:$0xff] %v6796_v51  ;;  %v8330_v46 = vld [vmem:[#allocation19_spill] sm:$0xff]  ;;  %v1697_v53 = vrot.slane %v6421_v27, 2 }
  0x9c   : > { %5251 = vmatprep.mubr.msk.f32.mxu1 %vm833_vm0, %v6188_v3  ;;  %5296 = vmatpush3.msra.mxu0 %v4396_v43  ;;  %v1679_v43 = vrot.slane %v6278_v21, 2  ;;  %v4393_v21 = vld [vmem:[%s8161_s4 + $0x240] sm:$0xff]  ;;  %v1692_v3 = vrot.slane %v6370_v19, 2 }
  0x9d   : > { %5297 = vmatprep.subr.mxu0 %v4395_v2  ;;  %5371 = vmatprep.subr.mxu1 %v4414_v1 }
  0x9e   : > { %5172 = vmatmul.mubr.f32.gmra.mxu0 %v6768_v31  ;;  %5372 = vmatpush3.msra.mxu1 %v4414_v1  ;;  %v6810_v22 = vsel %vm1645_vm3, %v1677_v12, %v1679_v43  ;;  %v4392_v12 = vld [vmem:[%s8161_s4 + $0x238] sm:$0xff] }
  0x9f   : > { %5252 = vmatmul.mubr.f32.gmra.mxu1 %v6216_v28  ;;  %5174 = vmatprep.mubr.f32.mxu0 %v6775_v9  ;;  %8328 = vst [vmem:[#allocation62_spill] sm:$0xff] %v6810_v22 }
  0xa0   : > { %5254 = vmatprep.mubr.msk.f32.mxu1 %vm833_vm0, %v6197_v13  ;;  %5298 = vmatpush3.msra.mxu0 %v4395_v2  ;;  %v8329_v2 = vld [vmem:[#allocation27_spill] sm:$0xff]  ;;  %v8333_v13 = vld [vmem:[#allocation28_spill] sm:$0xff] }
  0xa1   : > { %5299 = vmatprep.subr.mxu0 %v4394_v32  ;;  %5373 = vmatprep.subr.mxu1 %v4413_v24  ;;  %v1684_v1 = vrot.slane %v8329_v2, 2  ;;  %8331 = vst [vmem:[#allocation27_spill] sm:$0xff] %v6817_v42  ;;  %v1687_v28 = vrot.slane %v8333_v13, 2  ;;  %v1689_v2 = vrot.slane %v8335_v41, 2  ;;  %v8341_v41 = vld [vmem:[#allocation31_spill] sm:$0xff] }
  0xa2   : > { %5175 = vmatmul.mubr.f32.gmra.mxu0 %v6789_v37  ;;  %5374 = vmatpush3.msra.mxu1 %v4413_v24  ;;  %v8332_v24 = vld [vmem:[#allocation29_spill] sm:$0xff] }
  0xa3   : > { %5255 = vmatmul.mubr.f32.gmra.mxu1 %v6230_v36  ;;  %5177 = vmatprep.mubr.f32.mxu0 %v6796_v51  ;;  %v1686_v16 = vrot.slane %v8332_v24, 2  ;;  %v6831_v43 = vsel %vm1645_vm3, %v1682_v34, %v1684_v1  ;;  %v8336_v24 = vld [vmem:[#allocation23_spill] sm:$0xff]  ;;  %v4391_v34 = vld [vmem:[%s8161_s4 + $0x230] sm:$0xff]  ;;  %v8340_v1 = vld [vmem:[#allocation36_spill] sm:$0xff] }
  0xa4   : > { %5257 = vmatprep.mubr.msk.f32.mxu1 %vm833_vm0, %v8330_v46  ;;  %5300 = vmatpush3.msra.mxu0 %v4394_v32  ;;  %v4411_v32 = vld [vmem:[%s8161_s4 + $0x2d0] sm:$0xff]  ;;  %8334 = vst [vmem:[#allocation29_spill] sm:$0xff] %v6831_v43 }
  0xa5   : > { %5301 = vmatprep.subr.mxu0 %v4393_v21  ;;  %5375 = vmatprep.subr.mxu1 %v4412_v33  ;;  %v8338_v46 = vld [vmem:[#allocation34_spill] sm:$0xff] }
  0xa6   : > { %5178 = vmatmul.mubr.f32.gmra.mxu0 %v6810_v22  ;;  %5376 = vmatpush3.msra.mxu1 %v4412_v33  ;;  %v6838_v33 = vsel %vm1645_vm3, %v1686_v16, %v1687_v28  ;;  %v1691_v36 = vrot.slane %v8338_v46, 2  ;;  %v6852_v16 = vsel %vm1645_vm3, %v1687_v28, %v1689_v2  ;;  %v1694_v46 = vrot.slane %v8340_v1, 2  ;;  %v4390_v28 = vld [vmem:[%s8161_s4 + $0x228] sm:$0xff]  ;;  %v8345_v2 = vld [vmem:[#allocation42_spill] sm:$0xff]  ;;  %v8347_v1 = vld [vmem:[#allocation44_spill] sm:$0xff] }
  0xa7   : > { %5258 = vmatmul.mubr.f32.gmra.mxu1 %v6269_v17  ;;  %5180 = vmatprep.mubr.f32.mxu0 %v6817_v42  ;;  %8337 = vst [vmem:[#allocation30_spill] sm:$0xff] %v6838_v33  ;;  %8339 = vst [vmem:[#allocation34_spill] sm:$0xff] %v6852_v16 }
  0xa8   : > { %5260 = vmatprep.mubr.msk.f32.mxu1 %vm833_vm0, %v8336_v24  ;;  %5302 = vmatpush3.msra.mxu0 %v4393_v21  ;;  %v4410_v21 = vld [vmem:[%s8161_s4 + $0x2c8] sm:$0xff]  ;;  %v8343_v24 = vld [vmem:[#allocation40_spill] sm:$0xff] }
  0xa9   : > { %5303 = vmatprep.subr.mxu0 %v4392_v12  ;;  %5377 = vmatprep.subr.mxu1 %v4411_v32  ;;  %v1696_v17 = vrot.slane %v8343_v24, 2  ;;  %v1699_v24 = vrot.slane %v8345_v2, 2  ;;  %v8349_v2 = vld [vmem:[#allocation47_spill] sm:$0xff] }
  0xaa   : > { %5181 = vmatmul.mubr.f32.gmra.mxu0 %v6831_v43  ;;  %5378 = vmatpush3.msra.mxu1 %v4411_v32  ;;  %v6859_v32 = vsel %vm1645_vm3, %v1691_v36, %v1692_v3  ;;  %v6873_v36 = vsel %vm1645_vm3, %v1692_v3, %v1694_v46  ;;  %v4389_v3 = vld [vmem:[%s8161_s4 + $0x220] sm:$0xff]  ;;  %v1704_v46 = vrot.slane %v6473_v35, 2  ;;  %v4407_v35 = vld [vmem:[%s8161_s4 + $0x2b0] sm:$0xff] }
  0xab   : > { %5261 = vmatmul.mubr.f32.gmra.mxu1 %v8333_v13  ;;  %5183 = vmatprep.mubr.f32.mxu0 %v6838_v33  ;;  %8342 = vst [vmem:[#allocation36_spill] sm:$0xff] %v6859_v32  ;;  %8344 = vst [vmem:[#allocation40_spill] sm:$0xff] %v6873_v36  ;;  %v1702_v13 = vrot.slane %v6432_v18, 2 }
  0xac   : > { %5263 = vmatprep.mubr.msk.f32.mxu1 %vm833_vm0, %v8341_v41  ;;  %5304 = vmatpush3.msra.mxu0 %v4392_v12  ;;  %v4409_v12 = vld [vmem:[%s8161_s4 + $0x2c0] sm:$0xff]  ;;  %v1701_v41 = vrot.slane %v8347_v1, 2  ;;  %v1706_v1 = vrot.slane %v8349_v2, 2  ;;  %v1712_v2 = vrot.slane %v6528_v6, 2 }
  0xad   : > { %5305 = vmatprep.subr.mxu0 %v4391_v34  ;;  %5379 = vmatprep.subr.mxu1 %v4410_v21 }
  0xae   : > { %5184 = vmatmul.mubr.f32.gmra.mxu0 %v6852_v16  ;;  %5380 = vmatpush3.msra.mxu1 %v4410_v21  ;;  %v6880_v21 = vsel %vm1645_vm3, %v1696_v17, %v1697_v53  ;;  %v6894_v17 = vsel %vm1645_vm3, %v1697_v53, %v1699_v24  ;;  %v4388_v53 = vld [vmem:[%s8161_s4 + $0x218] sm:$0xff] }
  0xaf   : > { %5264 = vmatmul.mubr.f32.gmra.mxu1 %v6370_v19  ;;  %5186 = vmatprep.mubr.f32.mxu0 %v6859_v32  ;;  %8346 = vst [vmem:[#allocation42_spill] sm:$0xff] %v6880_v21  ;;  %8348 = vst [vmem:[#allocation44_spill] sm:$0xff] %v6894_v17 }
  0xb0   : > { %5266 = vmatprep.mubr.msk.f32.mxu1 %vm833_vm0, %v6379_v50  ;;  %5306 = vmatpush3.msra.mxu0 %v4391_v34  ;;  %v4408_v34 = vld [vmem:[%s8161_s4 + $0x2b8] sm:$0xff]  ;;  %v1707_v50 = vrot.slane %v6481_v15, 2 }
  0xb1   : > { %5307 = vmatprep.subr.mxu0 %v4390_v28  ;;  %5381 = vmatprep.subr.mxu1 %v4409_v12 }
  0xb2   : > { %5187 = vmatmul.mubr.f32.gmra.mxu0 %v6873_v36  ;;  %5382 = vmatpush3.msra.mxu1 %v4409_v12  ;;  %v6901_v12 = vsel %vm1645_vm3, %v1701_v41, %v1702_v13  ;;  %v6915_v41 = vsel %vm1645_vm3, %v1702_v13, %v1704_v46  ;;  %v6922_v24 = vsel %vm1645_vm3, %v1706_v1, %v1707_v50  ;;  %v4387_v13 = vld [vmem:[%s8161_s4 + $0x210] sm:$0xff]  ;;  %v1716_v1 = vrot.slane %v6572_v47, 2  ;;  %v4405_v47 = vld [vmem:[%s8161_s4 + $0x2a0] sm:$0xff] }
  0xb3   : > { %5267 = vmatmul.mubr.f32.gmra.mxu1 %v6421_v27  ;;  %5189 = vmatprep.mubr.f32.mxu0 %v6880_v21  ;;  %8350 = vst [vmem:[#allocation47_spill] sm:$0xff] %v6915_v41  ;;  %8351 = vst [vmem:[#allocation63_spill] sm:$0xff] %v6922_v24 }
  0xb4   : > { %5269 = vmatprep.mubr.msk.f32.mxu1 %vm833_vm0, %v6410_v49  ;;  %5308 = vmatpush3.msra.mxu0 %v4390_v28  ;;  %v1709_v28 = vrot.slane %v6522_v0, 2  ;;  %v4406_v0 = vld [vmem:[%s8161_s4 + $0x2a8] sm:$0xff] }
  0xb5   : > { %5309 = vmatprep.subr.mxu0 %v4389_v3  ;;  %5383 = vmatprep.subr.mxu1 %v4408_v34 }
  0xb6   : > { %5190 = vmatmul.mubr.f32.gmra.mxu0 %v6894_v17  ;;  %5384 = vmatpush3.msra.mxu1 %v4408_v34  ;;  %v1711_v34 = vrot.slane %v6533_v5, 2  ;;  %v6936_v5 = vsel %vm1645_vm3, %v1707_v50, %v1709_v28  ;;  %v1719_v28 = vrot.slane %v6601_v23, 2 }
  0xb7   : > { %5270 = vmatmul.mubr.f32.gmra.mxu1 %v6432_v18  ;;  %5192 = vmatprep.mubr.f32.mxu0 %v6901_v12  ;;  %v575_v18 = vld [vmem:[#allocation2 + $0x78] sm:$0xff]  ;;  %8352 = vst [vmem:[#allocation64_spill] sm:$0xff] %v6936_v5 }
  0xb8   : > { %5272 = vmatprep.mubr.msk.f32.mxu1 %vm833_vm0, %v6442_v14  ;;  %5310 = vmatpush3.msra.mxu0 %v4389_v3  ;;  %v1714_v3 = vrot.slane %v6567_v54, 2  ;;  %v6943_v46 = vsel %vm1645_vm3, %v1711_v34, %v1712_v2  ;;  %v576_v54 = vld [vmem:[#allocation2 + $0xf0] sm:$0xff] }
  0xb9   : > { %5311 = vmatprep.subr.mxu0 %v4388_v53  ;;  %5385 = vmatprep.subr.mxu1 %v4407_v35  ;;  %8353 = vst [vmem:[#allocation65_spill] sm:$0xff] %v6943_v46 }
  0xba   : > { %5193 = vmatmul.mubr.f32.gmra.mxu0 %v6915_v41  ;;  %5386 = vmatpush3.msra.mxu1 %v4407_v35  ;;  %v1717_v35 = vrot.slane %v6563_v48, 2 }
  0xbb   : > { %5273 = vmatmul.mubr.f32.gmra.mxu1 %v6481_v15  ;;  %5195 = vmatprep.mubr.f32.mxu0 %v6922_v24  ;;  %v6950_v15 = vld [vmem:[%s8159_s2] ss:$0 sm:$0xff] }
  0xbc   : > { %5275 = vmatprep.mubr.msk.f32.mxu1 %vm833_vm0, %v6493_v61  ;;  %5312 = vmatpush3.msra.mxu0 %v4388_v53  ;;  %v636_v50 = vmul.f32 %v6950_v15, %v575_v18  ;;  %v4386_v53 = vld [vmem:[%s8161_s4 + $0x208] sm:$0xff]  ;;  %v6963_v18 = vsel %vm1645_vm3, %v1712_v2, %v1714_v3  ;;  %v637_v34 = vmul.f32 %v6950_v15, %v576_v54  ;;  %v1721_v61 = vrot.slane %v6614_v29, 2  ;;  %v6978_v2 = vld [vmem:[%s8160_s3] ss:$0 sm:$0xff] }
  0xbd   : > { %5313 = vmatprep.subr.mxu0 %v4387_v13  ;;  %5387 = vmatprep.subr.mxu1 %v4406_v0  ;;  %8354 = vst [vmem:[#allocation66_spill] sm:$0xff] %v6963_v18  ;;  %v4385_v29 = vld [vmem:[%s8161_s4 + $0x200] sm:$0xff]  ;;  %v6991_v3 = vsel %vm1645_vm3, %v1717_v35, %v1719_v28  ;;  %v4432_v28 = vld [vmem:[%s8161_s4 + $0x378] sm:$0xff] }
  0xbe   : > { %5196 = vmatmul.mubr.f32.gmra.mxu0 %v6936_v5  ;;  %5388 = vmatpush3.msra.mxu1 %v4406_v0  ;;  %v6971_v0 = vsel %vm1645_vm3, %v1716_v1, %v1717_v35  ;;  %v697_v23 = vadd.f32 %v6978_v2, %v636_v50  ;;  %8356 = vst [vmem:[#allocation68_spill] sm:$0xff] %v6991_v3  ;;  %v1724_v1 = vrot.slane %v6633_v45, 2  ;;  %v4403_v35 = vld [vmem:[%s8161_s4 + $0x290] sm:$0xff] }
  0xbf   : > { %5276 = vmatmul.mubr.f32.gmra.mxu1 %v6528_v6  ;;  %5198 = vmatprep.mubr.f32.mxu0 %v6943_v46  ;;  %8355 = vst [vmem:[#allocation67_spill] sm:$0xff] %v6971_v0  ;;  %v1722_v6 = vrot.slane %v6603_v4, 2  ;;  %v698_v50 = vadd.f32 %v6978_v2, %v637_v34  ;;  %v8357_v34 = vld [vmem:[#allocation8_spill] sm:$0xff] }
  0xc0   : > { %5278 = vmatprep.mubr.msk.f32.mxu1 %vm833_vm0, %v6537_v26  ;;  %5314 = vmatpush3.msra.mxu0 %v4387_v13  ;;  %v4404_v13 = vld [vmem:[%s8161_s4 + $0x298] sm:$0xff] }
  0xc1   : > { %5315 = vmatprep.subr.mxu0 %v4386_v53  ;;  %5389 = vmatprep.subr.mxu1 %v4405_v47  ;;  %v6999_v54 = vsel %vm1645_vm3, %v1721_v61, %v1722_v6  ;;  %v7010_v45 = vsel %vm1645_vm3, %v1722_v6, %v1724_v1  ;;  %v7012_v61 = vmax.f32 %v698_v50, 0.0  ;;  %v4401_v6 = vld [vmem:[%s8161_s4 + $0x280] sm:$0xff]  ;;  %v8359_v1 = vld [vmem:[#allocation10_spill] sm:$0xff] }
  0xc2   : > { %5199 = vmatmul.mubr.f32.gmra.mxu0 %v6963_v18  ;;  %5390 = vmatpush3.msra.mxu1 %v4405_v47  ;;  %v7001_v47 = vmax.f32 %v697_v23, 0.0  ;;  %v4431_v23 = vld [vmem:[%s8161_s4 + $0x370] sm:$0xff]  ;;  %v4429_v50 = vld [vmem:[%s8161_s4 + $0x360] sm:$0xff] }
  0xc3   : > { %5279 = vmatmul.mubr.f32.gmra.mxu1 %v6563_v48  ;;  %5201 = vmatprep.mubr.f32.mxu0 %v6971_v0 }
  0xc4   : > { %5281 = vmatprep.mubr.msk.f32.mxu1 %vm833_vm0, %v6582_v10  ;;  %5316 = vmatpush3.msra.mxu0 %v4386_v53  ;;  %v4402_v53 = vld [vmem:[%s8161_s4 + $0x288] sm:$0xff] }
  0xc5   : > { %5391 = vmatprep.subr.mxu1 %v4404_v13  ;;  %5317 = vmatprep.subr.mxu0 %v4385_v29 }
  0xc6   : > { %5202 = vmatmul.mubr.f32.gmra.mxu0 %v6991_v3  ;;  %5392 = vmatpush3.msra.mxu1 %v4404_v13  ;;  %v8358_v13 = vld [vmem:[#allocation9_spill] sm:$0xff] }
  0xc7   : > { %5282 = vmatmul.mubr.f32.gmra.mxu1 %v6603_v4  ;;  %5204 = vmatprep.mubr.f32.mxu0 %v6999_v54 }
  0xc8   : > { %5393 = vmatprep.subr.mxu1 %v4403_v35  ;;  %5284 = vmatprep.mubr.msk.f32.mxu1 %vm833_vm0, %v7001_v47 }
  0xc9   : > { %5318 = vmatpush3.msra.mxu0 %v4385_v29  ;;  %5394 = vmatpush3.msra.mxu1 %v4403_v35  ;;  %v4430_v29 = vld [vmem:[%s8161_s4 + $0x368] sm:$0xff]  ;;  %v8361_v35 = vld [vmem:[#allocation14_spill] sm:$0xff] }
  0xca   : > { %5205 = vmatmul.mubr.f32.gmra.mxu0 %v7010_v45  ;;  %5395 = vmatprep.subr.mxu1 %v4402_v53 }
  0xcb   : > { %5285 = vmatmul.mubr.f32.gmra.mxu1 %v7012_v61  ;;  %5319 = vmatprep.mubr.f32.mxu0 %v8357_v34  ;;  %v8363_v34 = vld [vmem:[#allocation20_spill] sm:$0xff] }
  0xcc   : > { %5396 = vmatpush3.msra.mxu1 %v4402_v53  ;;  %5447 = vmatprep.subr.mxu0 %v4432_v28  ;;  %v8362_v53 = vld [vmem:[#allocation16_spill] sm:$0xff] }
  0xcd   : > { %5397 = vmatprep.subr.mxu1 %v4401_v6  ;;  %5399 = vmatprep.mubr.f32.mxu1 %v6693_v39  ;;  %v8360_v39 = vld [vmem:[#allocation11_spill] sm:$0xff] }
  0xce   : > { %5320 = vmatmul.mubr.f32.vlgmr.msra.gmra.mxu0 %v8358_v13  ;;  %5398 = vmatpush3.msra.mxu1 %v4401_v6  ;;  %v4462_v6 = vld [vmem:[%s8161_s4 + $0x3f0] sm:$0xff] }
  0xcf   : > { %5448 = vmatpush3.msra.mxu0 %v4432_v28  ;;  %5400 = vmatmul.mubr.f32.vlgmr.msra.gmra.mxu1 %v6701_v52  ;;  %v4463_v52 = vld [vmem:[%s8161_s4 + $0x3f8] sm:$0xff]  ;;  %v4427_v13 = vld [vmem:[%s8161_s4 + $0x350] sm:$0xff] }
  0xd0   : > { %5322 = vmatprep.mubr.f32.mxu0 %v8359_v1  ;;  %5449 = vmatprep.subr.mxu0 %v4431_v23  ;;  %v4428_v28 = vld [vmem:[%s8161_s4 + $0x358] sm:$0xff] }
  0xd1   : > { %5402 = vmatprep.mubr.f32.mxu1 %v6709_v55  ;;  %5450 = vmatpush3.msra.mxu0 %v4431_v23  ;;  %v8364_v23 = vld [vmem:[#allocation21_spill] sm:$0xff] }
  0xd2   : > { %5323 = vmatmul.mubr.f32.gmra.mxu0 %v8360_v39  ;;  %5451 = vmatprep.subr.mxu0 %v4430_v29 }
  0xd3   : > { %5403 = vmatmul.mubr.f32.gmra.mxu1 %v6726_v25  ;;  %5325 = vmatprep.mubr.f32.mxu0 %v8361_v35 }
  0xd4   : > { %5405 = vmatprep.mubr.f32.mxu1 %v6733_v40  ;;  %5452 = vmatpush3.msra.mxu0 %v4430_v29  ;;  %v4461_v29 = vld [vmem:[%s8161_s4 + $0x3e8] sm:$0xff] }
  0xd5   : > { %5453 = vmatprep.subr.mxu0 %v4429_v50  ;;  %5527 = vmatprep.subr.mxu1 %v4463_v52 }
  0xd6   : > { %5326 = vmatmul.mubr.f32.gmra.mxu0 %v8362_v53  ;;  %5528 = vmatpush3.msra.mxu1 %v4463_v52  ;;  %v8365_v52 = vld [vmem:[#allocation24_spill] sm:$0xff] }
  0xd7   : > { %5406 = vmatmul.mubr.f32.gmra.mxu1 %v6747_v59  ;;  %5328 = vmatprep.mubr.f32.mxu0 %v8363_v34 }
  0xd8   : > { %5408 = vmatprep.mubr.f32.mxu1 %v6754_v58  ;;  %5454 = vmatpush3.msra.mxu0 %v4429_v50  ;;  %v8366_v50 = vld [vmem:[#allocation25_spill] sm:$0xff] }
  0xd9   : > { %5455 = vmatprep.subr.mxu0 %v4428_v28  ;;  %5529 = vmatprep.subr.mxu1 %v4462_v6  ;;  %v4426_v58 = vld [vmem:[%s8161_s4 + $0x348] sm:$0xff] }
  0xda   : > { %5329 = vmatmul.mubr.f32.gmra.mxu0 %v8364_v23  ;;  %5530 = vmatpush3.msra.mxu1 %v4462_v6  ;;  %v4460_v6 = vld [vmem:[%s8161_s4 + $0x3e0] sm:$0xff] }
  0xdb   : > { %5409 = vmatmul.mubr.f32.gmra.mxu1 %v6768_v31  ;;  %5331 = vmatprep.mubr.f32.mxu0 %v8365_v52  ;;  %v8367_v31 = vld [vmem:[#allocation26_spill] sm:$0xff] }
  0xdc   : > { %5411 = vmatprep.mubr.f32.mxu1 %v6775_v9  ;;  %5456 = vmatpush3.msra.mxu0 %v4428_v28  ;;  %v8368_v28 = vld [vmem:[#allocation32_spill] sm:$0xff] }
  0xdd   : > { %5457 = vmatprep.subr.mxu0 %v4427_v13  ;;  %5531 = vmatprep.subr.mxu1 %v4461_v29  ;;  %v4425_v9 = vld [vmem:[%s8161_s4 + $0x340] sm:$0xff] }
  0xde   : > { %5332 = vmatmul.mubr.f32.gmra.mxu0 %v8366_v50  ;;  %5532 = vmatpush3.msra.mxu1 %v4461_v29  ;;  %v4459_v29 = vld [vmem:[%s8161_s4 + $0x3d8] sm:$0xff] }
  0xdf   : > { %5412 = vmatmul.mubr.f32.gmra.mxu1 %v6789_v37  ;;  %5334 = vmatprep.mubr.f32.mxu0 %v8367_v31  ;;  %v8369_v37 = vld [vmem:[#allocation33_spill] sm:$0xff] }
  0xe0   : > { %5414 = vmatprep.mubr.f32.mxu1 %v6796_v51  ;;  %5458 = vmatpush3.msra.mxu0 %v4427_v13  ;;  %v8370_v13 = vld [vmem:[#allocation37_spill] sm:$0xff]  ;;  %v4424_v51 = vld [vmem:[%s8161_s4 + $0x338] sm:$0xff] }
  0xe1   : > { %5459 = vmatprep.subr.mxu0 %v4426_v58  ;;  %5533 = vmatprep.subr.mxu1 %v4460_v6 }
  0xe2   : > { %5335 = vmatmul.mubr.f32.gmra.mxu0 %v8368_v28  ;;  %5534 = vmatpush3.msra.mxu1 %v4460_v6  ;;  %v4458_v6 = vld [vmem:[%s8161_s4 + $0x3d0] sm:$0xff] }
  0xe3   : > { %5415 = vmatmul.mubr.f32.gmra.mxu1 %v6810_v22  ;;  %5337 = vmatprep.mubr.f32.mxu0 %v8369_v37  ;;  %v8371_v22 = vld [vmem:[#allocation38_spill] sm:$0xff] }
  0xe4   : > { %5417 = vmatprep.mubr.f32.mxu1 %v6817_v42  ;;  %5460 = vmatpush3.msra.mxu0 %v4426_v58  ;;  %v8372_v58 = vld [vmem:[#allocation39_spill] sm:$0xff]  ;;  %v4423_v42 = vld [vmem:[%s8161_s4 + $0x330] sm:$0xff] }
  0xe5   : > { %5461 = vmatprep.subr.mxu0 %v4425_v9  ;;  %5535 = vmatprep.subr.mxu1 %v4459_v29 }
  0xe6   : > { %5338 = vmatmul.mubr.f32.gmra.mxu0 %v8370_v13  ;;  %5536 = vmatpush3.msra.mxu1 %v4459_v29  ;;  %v4457_v29 = vld [vmem:[%s8161_s4 + $0x3c8] sm:$0xff] }
  0xe7   : > { %5418 = vmatmul.mubr.f32.gmra.mxu1 %v6831_v43  ;;  %5340 = vmatprep.mubr.f32.mxu0 %v8371_v22  ;;  %v8373_v43 = vld [vmem:[#allocation43_spill] sm:$0xff] }
  0xe8   : > { %5420 = vmatprep.mubr.f32.mxu1 %v6838_v33  ;;  %5462 = vmatpush3.msra.mxu0 %v4425_v9  ;;  %v8374_v9 = vld [vmem:[#allocation45_spill] sm:$0xff] }
  0xe9   : > { %5463 = vmatprep.subr.mxu0 %v4424_v51  ;;  %5537 = vmatprep.subr.mxu1 %v4458_v6  ;;  %v4422_v33 = vld [vmem:[%s8161_s4 + $0x328] sm:$0xff] }
  0xea   : > { %5341 = vmatmul.mubr.f32.gmra.mxu0 %v8372_v58  ;;  %5538 = vmatpush3.msra.mxu1 %v4458_v6  ;;  %v4456_v6 = vld [vmem:[%s8161_s4 + $0x3c0] sm:$0xff] }
  0xeb   : > { %5421 = vmatmul.mubr.f32.gmra.mxu1 %v6852_v16  ;;  %5343 = vmatprep.mubr.f32.mxu0 %v8373_v43  ;;  %v8375_v16 = vld [vmem:[#allocation49_spill] sm:$0xff] }
  0xec   : > { %5423 = vmatprep.mubr.f32.mxu1 %v6859_v32  ;;  %5464 = vmatpush3.msra.mxu0 %v4424_v51  ;;  %v577_v51 = vld [vmem:[#allocation2 + $0x10] sm:$0x3]  ;;  %v4455_v32 = vld [vmem:[%s8161_s4 + $0x3b8] sm:$0xff] }
  0xed   : > { %5465 = vmatprep.subr.mxu0 %v4423_v42  ;;  %5539 = vmatprep.subr.mxu1 %v4457_v29 }
  0xee   : > { %5344 = vmatmul.mubr.f32.gmra.mxu0 %v8374_v9  ;;  %5540 = vmatpush3.msra.mxu1 %v4457_v29  ;;  %v4421_v29 = vld [vmem:[%s8161_s4 + $0x320] sm:$0xff] }
  0xef   : > { %5424 = vmatmul.mubr.f32.gmra.mxu1 %v6873_v36  ;;  %5346 = vmatprep.mubr.f32.mxu0 %v8375_v16  ;;  %v8377_v36 = vld [vmem:[#allocation52_spill] sm:$0xff] }
  0xf0   : > { %5426 = vmatprep.mubr.f32.mxu1 %v6880_v21  ;;  %5466 = vmatpush3.msra.mxu0 %v4423_v42  ;;  %v638_v42 = vmul.f32 %v6950_v15, %v577_v51  ;;  %v8376_v21 = vld [vmem:[#allocation51_spill] sm:$0xff]  ;;  %v8378_v51 = vld [vmem:[#allocation53_spill] sm:$0xff] }
  0xf1   : > { %5467 = vmatprep.subr.mxu0 %v4422_v33  ;;  %5541 = vmatprep.subr.mxu1 %v4456_v6 }
  0xf2   : > { %5347 = vmatmul.mubr.f32.gmra.mxu0 %v6506_v56  ;;  %5542 = vmatpush3.msra.mxu1 %v4456_v6  ;;  %v4420_v6 = vld [vmem:[%s8161_s4 + $0x318] sm:$0xff]  ;;  %v699_v15 = vadd.f32 %v6978_v2, %v638_v42  ;;  %v4452_v42 = vld [vmem:[%s8161_s4 + $0x3a0] sm:$0xff] }
  0xf3   : > { %5427 = vmatmul.mubr.f32.gmra.mxu1 %v6894_v17  ;;  %5349 = vmatprep.mubr.f32.mxu0 %v6516_v11  ;;  %v4454_v17 = vld [vmem:[%s8161_s4 + $0x3b0] sm:$0xff] }
  0xf4   : > { %5429 = vmatprep.mubr.f32.mxu1 %v6901_v12  ;;  %5468 = vmatpush3.msra.mxu0 %v4422_v33  ;;  %v4419_v33 = vld [vmem:[%s8161_s4 + $0x310] sm:$0xff]  ;;  %v753_v2 = vmax.f32 %v699_v15, 0.0  ;;  %v2310_v15 = vrot.slane %v7012_v61, 1 }
  0xf5   : > { %5469 = vmatprep.subr.mxu0 %v4421_v29  ;;  %5543 = vmatprep.subr.mxu1 %v4455_v32 }
  0xf6   : > { %5350 = vmatmul.mubr.f32.gmra.mxu0 %v8376_v21  ;;  %5544 = vmatpush3.msra.mxu1 %v4455_v32  ;;  %v4453_v32 = vld [vmem:[%s8161_s4 + $0x3a8] sm:$0xff] }
  0xf7   : > { %5430 = vmatmul.mubr.f32.gmra.mxu1 %v6915_v41  ;;  %5352 = vmatprep.mubr.f32.mxu0 %v8377_v36 }
  0xf8   : > { %5432 = vmatprep.mubr.f32.mxu1 %v6922_v24  ;;  %5470 = vmatpush3.msra.mxu0 %v4421_v29  ;;  %v995_v29 = vsel %vm833_vm0, %v7001_v47, 0.0  ;;  %v2591_v24 = vrot.slane %v7012_v61, 2 }
  0xf9   : > { %5471 = vmatprep.subr.mxu0 %v4420_v6  ;;  %5545 = vmatprep.subr.mxu1 %v4454_v17 }
  0xfa   : > { %5353 = vmatmul.mubr.f32.gmra.mxu0 %v6591_v7  ;;  %5546 = vmatpush3.msra.mxu1 %v4454_v17  ;;  %v4418_v17 = vld [vmem:[%s8161_s4 + $0x308] sm:$0xff] }
  0xfb   : > { %5433 = vmatmul.mubr.f32.gmra.mxu1 %v6936_v5  ;;  %5355 = vmatprep.mubr.f32.mxu0 %v8378_v51  ;;  %v2590_v5 = vrot.slane %v995_v29, 2 }
  0xfc   : > { %5435 = vmatprep.mubr.f32.mxu1 %v6943_v46  ;;  %5472 = vmatpush3.msra.mxu0 %v4420_v6  ;;  %v2309_v6 = vrot.slane %v995_v29, 1  ;;  %v8380_v46 = vld [vmem:[#allocation54_spill] sm:$0xff] }
  0xfd   : > { %5473 = vmatprep.subr.mxu0 %v4419_v33  ;;  %5547 = vmatprep.subr.mxu1 %v4453_v32  ;;  %v7186_v41 = vsel %vm1645_vm3, %v2590_v5, %v2591_v24 }
  0xfe   : > { %5356 = vmatmul.mubr.f32.gmra.mxu0 %v6623_v44  ;;  %5548 = vmatpush3.msra.mxu1 %v4453_v32  ;;  %v997_v32 = vsel %vm892_vm1, %v753_v2, 0.0  ;;  %v7180_v29 = vsel %vm1065_vm2, %v2309_v6, %v2310_v15  ;;  %v4449_v6 = vld [vmem:[%s8161_s4 + $0x388] sm:$0xff] }
  0xff   : > { %5436 = vmatmul.mubr.f32.gmra.mxu1 %v6963_v18  ;;  %5358 = vmatprep.mubr.f32.mxu0 %v6627_v60  ;;  %v4451_v18 = vld [vmem:[%s8161_s4 + $0x398] sm:$0xff]  ;;  %v2312_v2 = vrot.slane %v997_v32, 1 }
 0x100   : > { %5438 = vmatprep.mubr.f32.mxu1 %v6971_v0  ;;  %5474 = vmatpush3.msra.mxu0 %v4419_v33  ;;  %v4417_v33 = vld [vmem:[%s8161_s4 + $0x300] sm:$0xff]  ;;  %v4450_v0 = vld [vmem:[%s8161_s4 + $0x390] sm:$0xff] }
 0x101   : > { %5475 = vmatprep.subr.mxu0 %v4418_v17  ;;  %5549 = vmatprep.subr.mxu1 %v4452_v42 }
 0x102   : > { %5359 = vmatmul.mubr.f32.gmra.mxu0 %v6648_v63  ;;  %5550 = vmatpush3.msra.mxu1 %v4452_v42  ;;  %v2593_v42 = vrot.slane %v997_v32, 2 }
 0x103   : > { %5439 = vmatmul.mubr.f32.gmra.mxu1 %v6991_v3  ;;  %5361 = vmatprep.mubr.f32.mxu0 %v8380_v46  ;;  %v8381_v3 = vld [vmem:[#allocation55_spill] sm:$0xff] }
 0x104   : > { %5441 = vmatprep.mubr.f32.mxu1 %v6999_v54  ;;  %5476 = vmatpush3.msra.mxu0 %v4418_v17  ;;  %v7192_v17 = vsel %vm1065_vm2, %v2310_v15, %v2312_v2  ;;  %v7199_v5 = vsel %vm1645_vm3, %v2591_v24, %v2593_v42  ;;  %v4448_v15 = vld [vmem:[%s8161_s4 + $0x380] sm:$0xff]  ;;  %v4478_v24 = vld [vmem:[%s8161_s4 + $0x470] sm:$0xff] }
 0x105   : > { %5551 = vmatprep.subr.mxu1 %v4451_v18  ;;  %5477 = vmatprep.subr.mxu0 %v4417_v33 }
 0x106   : > { %5362 = vmatmul.mubr.f32.gmra.mxu0 %v8381_v3  ;;  %5552 = vmatpush3.msra.mxu1 %v4451_v18  ;;  %v4479_v18 = vld [vmem:[%s8161_s4 + $0x478] sm:$0xff] }
 0x107   : > { %5442 = vmatmul.mubr.f32.gmra.mxu1 %v7010_v45  ;;  %5364 = vmatprep.mubr.f32.mxu0 %v7180_v29 }
 0x108   : > { %5553 = vmatprep.subr.mxu1 %v4450_v0  ;;  %5444 = vmatprep.mubr.f32.mxu1 %v7186_v41 }
 0x109   : > { %5478 = vmatpush3.msra.mxu0 %v4417_v33  ;;  %5554 = vmatpush3.msra.mxu1 %v4450_v0 }
 0x10a   : > { %5365 = vmatmul.mubr.f32.gmra.mxu0 %v7192_v17  ;;  %5555 = vmatprep.subr.mxu1 %v4449_v6 }
 0x10b   : > { %5445 = vmatmul.mubr.f32.gmra.mxu1 %v7199_v5  ;;  %5479 = vmatprep.mubr.msk.f32.mxu0 %vm833_vm0, %v6056_v38  ;;  %v4477_v38 = vld [vmem:[%s8161_s4 + $0x468] sm:$0xff] }
 0x10c   : > { %5556 = vmatpush3.msra.mxu1 %v4449_v6  ;;  %5607 = vmatprep.subr.mxu0 %v4479_v18 }
 0x10d   : > { %5557 = vmatprep.subr.mxu1 %v4448_v15  ;;  %5559 = vmatprep.mubr.f32.mxu1 %v8359_v1 }
 0x10e   : > { %v5001_v0 = vpop.f32.mrf.mxu0  ;;  %v5081_v32 = vpop.f32.mrf.mxu1  ;;  %5480 = vmatmul.mubr.f32.vlgmr.msra.gmra.mxu0 %v6085_v57  ;;  %5558 = vmatpush3.msra.mxu1 %v4448_v15 }
 0x10f   : > { %v7217_v33 = vadd.f32 %v5081_v32, %v5001_v0  ;;  %5608 = vmatpush3.msra.mxu0 %v4479_v18  ;;  %5560 = vmatmul.mubr.f32.vlgmr.msra.gmra.mxu1 %v8360_v39  ;;  %v4476_v39 = vld [vmem:[%s8161_s4 + $0x460] sm:$0xff] }
 0x110   : > { %v1261_v2 = vpop.f32.mrf.mxu0  ;;  %v1486_v1 = vpop.f32.mrf.mxu1  ;;  %5482 = vmatprep.mubr.msk.f32.mxu0 %vm833_vm0, %v6094_v62  ;;  %5609 = vmatprep.subr.mxu0 %v4478_v24  ;;  %v8382_v0 = vld [vmem:[#allocation12_spill] sm:$0xff] }
 0x111   : > { %v7226_v42 = vadd.f32 %v1486_v1, %v1261_v2  ;;  %5562 = vmatprep.mubr.f32.mxu1 %v8361_v35  ;;  %5610 = vmatpush3.msra.mxu0 %v4478_v24 }
 0x112   : > { %v5004_v57 = vpop.f32.mrf.mxu0  ;;  %v5084_v6 = vpop.f32.mrf.mxu1  ;;  %5483 = vmatmul.mubr.f32.gmra.mxu0 %v6122_v20  ;;  %5611 = vmatprep.subr.mxu0 %v4477_v38 }
 0x113   : > { %v7233_v18 = vadd.f32 %v5084_v6, %v5004_v57  ;;  %5563 = vmatmul.mubr.f32.gmra.mxu1 %v8362_v53  ;;  %5485 = vmatprep.mubr.msk.f32.mxu0 %vm833_vm0, %v6136_v30  ;;  %v4475_v53 = vld [vmem:[%s8161_s4 + $0x458] sm:$0xff]  ;;  %v8383_v30 = vld [vmem:[#allocation13_spill] sm:$0xff] }
 0x114   : > { %v1271_v62 = vpop.f32.mrf.mxu0  ;;  %v1496_v35 = vpop.f32.mrf.mxu1  ;;  %5565 = vmatprep.mubr.f32.mxu1 %v8363_v34  ;;  %5612 = vmatpush3.msra.mxu0 %v4477_v38  ;;  %v8384_v6 = vld [vmem:[#allocation17_spill] sm:$0xff] }
 0x115   : > { %v7240_v15 = vadd.f32 %v1496_v35, %v1271_v62  ;;  %5613 = vmatprep.subr.mxu0 %v4476_v39  ;;  %v8385_v35 = vld [vmem:[#allocation15_spill] sm:$0xff] }
 0x116   : > { %v5007_v20 = vpop.f32.mrf.mxu0  ;;  %v5087_v24 = vpop.f32.mrf.mxu1  ;;  %5486 = vmatmul.mubr.f32.gmra.mxu0 %v8382_v0 }
 0x117   : > { %v7246_v32 = vadd.f32 %v5087_v24, %v5007_v20  ;;  %5566 = vmatmul.mubr.f32.gmra.mxu1 %v8364_v23  ;;  %5488 = vmatprep.mubr.msk.f32.mxu0 %vm833_vm0, %v8383_v30  ;;  %v4474_v23 = vld [vmem:[%s8161_s4 + $0x450] sm:$0xff] }
 0x118   : > { %v1281_v34 = vpop.f32.mrf.mxu0  ;;  %v1506_v38 = vpop.f32.mrf.mxu1  ;;  %5568 = vmatprep.mubr.f32.mxu1 %v8365_v52  ;;  %5614 = vmatpush3.msra.mxu0 %v4476_v39  ;;  %v8386_v30 = vld [vmem:[#allocation18_spill] sm:$0xff] }
 0x119   : > { %v7253_v2 = vadd.f32 %v1506_v38, %v1281_v34  ;;  %5615 = vmatprep.subr.mxu0 %v4475_v53  ;;  %v8387_v38 = vld [vmem:[#allocation19_spill] sm:$0xff] }
 0x11a   : > { %v5010_v1 = vpop.f32.mrf.mxu0  ;;  %v5090_v57 = vpop.f32.mrf.mxu1  ;;  %5489 = vmatmul.mubr.f32.gmra.mxu0 %v8384_v6 }
 0x11b   : > { %v7259_v62 = vadd.f32 %v5090_v57, %v5010_v1  ;;  %5569 = vmatmul.mubr.f32.gmra.mxu1 %v8366_v50  ;;  %5491 = vmatprep.mubr.msk.f32.mxu0 %vm833_vm0, %v8385_v35  ;;  %v4473_v50 = vld [vmem:[%s8161_s4 + $0x448] sm:$0xff]  ;;  %v8388_v35 = vld [vmem:[#allocation22_spill] sm:$0xff] }
 0x11c   : > { %v1291_v52 = vpop.f32.mrf.mxu0  ;;  %v1516_v39 = vpop.f32.mrf.mxu1  ;;  %5571 = vmatprep.mubr.f32.mxu1 %v8367_v31  ;;  %5616 = vmatpush3.msra.mxu0 %v4475_v53 }
 0x11d   : > { %v7266_v20 = vadd.f32 %v1516_v39, %v1291_v52  ;;  %5617 = vmatprep.subr.mxu0 %v4474_v23  ;;  %v8389_v39 = vld [vmem:[#allocation23_spill] sm:$0xff] }
 0x11e   : > { %v5013_v24 = vpop.f32.mrf.mxu0  ;;  %v5093_v0 = vpop.f32.mrf.mxu1  ;;  %5492 = vmatmul.mubr.f32.gmra.mxu0 %v8386_v30 }
 0x11f   : > { %v7272_v34 = vadd.f32 %v5093_v0, %v5013_v24  ;;  %5572 = vmatmul.mubr.f32.gmra.mxu1 %v8368_v28  ;;  %5494 = vmatprep.mubr.msk.f32.mxu0 %vm833_vm0, %v8387_v38  ;;  %v4472_v28 = vld [vmem:[%s8161_s4 + $0x440] sm:$0xff] }
 0x120   : > { %v1301_v31 = vpop.f32.mrf.mxu0  ;;  %v1526_v53 = vpop.f32.mrf.mxu1  ;;  %5574 = vmatprep.mubr.f32.mxu1 %v8369_v37  ;;  %5618 = vmatpush3.msra.mxu0 %v4474_v23  ;;  %v8390_v38 = vld [vmem:[#allocation28_spill] sm:$0xff] }
 0x121   : > { %v7279_v1 = vadd.f32 %v1526_v53, %v1301_v31  ;;  %5619 = vmatprep.subr.mxu0 %v4473_v50  ;;  %v8391_v53 = vld [vmem:[#allocation31_spill] sm:$0xff] }
 0x122   : > { %v5016_v57 = vpop.f32.mrf.mxu0  ;;  %v5096_v6 = vpop.f32.mrf.mxu1  ;;  %5495 = vmatmul.mubr.f32.gmra.mxu0 %v8388_v35 }
 0x123   : > { %v7285_v52 = vadd.f32 %v5096_v6, %v5016_v57  ;;  %5575 = vmatmul.mubr.f32.gmra.mxu1 %v8370_v13  ;;  %5497 = vmatprep.mubr.msk.f32.mxu0 %vm833_vm0, %v8389_v39  ;;  %v4471_v13 = vld [vmem:[%s8161_s4 + $0x438] sm:$0xff] }
 0x124   : > { %v1311_v37 = vpop.f32.mrf.mxu0  ;;  %v1536_v23 = vpop.f32.mrf.mxu1  ;;  %5577 = vmatprep.mubr.f32.mxu1 %v8371_v22  ;;  %5620 = vmatpush3.msra.mxu0 %v4473_v50 }
 0x125   : > { %v7292_v24 = vadd.f32 %v1536_v23, %v1311_v37  ;;  %5621 = vmatprep.subr.mxu0 %v4472_v28  ;;  %v8392_v37 = vld [vmem:[#allocation35_spill] sm:$0xff] }
 0x126   : > { %v5019_v0 = vpop.f32.mrf.mxu0  ;;  %v5099_v30 = vpop.f32.mrf.mxu1  ;;  %5498 = vmatmul.mubr.f32.gmra.mxu0 %v8390_v38 }
 0x127   : > { %v7298_v31 = vadd.f32 %v5099_v30, %v5019_v0  ;;  %5578 = vmatmul.mubr.f32.gmra.mxu1 %v8372_v58  ;;  %5500 = vmatprep.mubr.msk.f32.mxu0 %vm833_vm0, %v8391_v53  ;;  %v4470_v58 = vld [vmem:[%s8161_s4 + $0x430] sm:$0xff]  ;;  %v8393_v53 = vld [vmem:[#allocation41_spill] sm:$0xff] }
 0x128   : > { %v1321_v22 = vpop.f32.mrf.mxu0  ;;  %v1546_v50 = vpop.f32.mrf.mxu1  ;;  %5580 = vmatprep.mubr.f32.mxu1 %v8373_v43  ;;  %5622 = vmatpush3.msra.mxu0 %v4472_v28 }
 0x129   : > { %v7305_v57 = vadd.f32 %v1546_v50, %v1321_v22  ;;  %5623 = vmatprep.subr.mxu0 %v4471_v13 }
 0x12a   : > { %v5022_v6 = vpop.f32.mrf.mxu0  ;;  %v5102_v35 = vpop.f32.mrf.mxu1  ;;  %5501 = vmatmul.mubr.f32.gmra.mxu0 %v6370_v19 }
 0x12b   : > { %v7311_v39 = vadd.f32 %v5102_v35, %v5022_v6  ;;  %5581 = vmatmul.mubr.f32.gmra.mxu1 %v8374_v9  ;;  %5503 = vmatprep.mubr.msk.f32.mxu0 %vm833_vm0, %v8392_v37  ;;  %v4469_v9 = vld [vmem:[%s8161_s4 + $0x428] sm:$0xff]  ;;  %v8394_v35 = vld [vmem:[#allocation46_spill] sm:$0xff] }
 0x12c   : > { %v1331_v43 = vpop.f32.mrf.mxu0  ;;  %v1556_v28 = vpop.f32.mrf.mxu1  ;;  %5583 = vmatprep.mubr.f32.mxu1 %v8375_v16  ;;  %5624 = vmatpush3.msra.mxu0 %v4471_v13 }
 0x12d   : > { %v7318_v23 = vadd.f32 %v1556_v28, %v1331_v43  ;;  %5625 = vmatprep.subr.mxu0 %v4470_v58 }
 0x12e   : > { %v5025_v19 = vpop.f32.mrf.mxu0  ;;  %v5105_v0 = vpop.f32.mrf.mxu1  ;;  %5504 = vmatmul.mubr.f32.gmra.mxu0 %v6421_v27 }
 0x12f   : > { %v7324_v30 = vadd.f32 %v5105_v0, %v5025_v19  ;;  %5584 = vmatmul.mubr.f32.gmra.mxu1 %v6506_v56  ;;  %5506 = vmatprep.mubr.msk.f32.mxu0 %vm833_vm0, %v6410_v49  ;;  %v4468_v56 = vld [vmem:[%s8161_s4 + $0x420] sm:$0xff]  ;;  %v8396_v19 = vld [vmem:[#allocation50_spill] sm:$0xff] }
 0x130   : > { %v7330_v16 = vpop.f32.mrf.mxu0  ;;  %v7332_v38 = vpop.f32.mrf.mxu1  ;;  %5586 = vmatprep.mubr.f32.mxu1 %v6516_v11  ;;  %5626 = vmatpush3.msra.mxu0 %v4470_v58 }
 0x131   : > { %5627 = vmatprep.subr.mxu0 %v4469_v9 }
 0x132   : > { %v5028_v27 = vpop.f32.mrf.mxu0  ;;  %v5108_v13 = vpop.f32.mrf.mxu1  ;;  %5507 = vmatmul.mubr.f32.gmra.mxu0 %v8393_v53 }
 0x133   : > { %v7339_v22 = vadd.f32 %v5108_v13, %v5028_v27  ;;  %5587 = vmatmul.mubr.f32.gmra.mxu1 %v8376_v21  ;;  %5509 = vmatprep.mubr.msk.f32.mxu0 %vm833_vm0, %v6442_v14  ;;  %v4467_v21 = vld [vmem:[%s8161_s4 + $0x418] sm:$0xff]  ;;  %v8395_v14 = vld [vmem:[#allocation48_spill] sm:$0xff] }
 0x134   : > { %v7345_v49 = vpop.f32.mrf.mxu0  ;;  %v7347_v11 = vpop.f32.mrf.mxu1  ;;  %5589 = vmatprep.mubr.f32.mxu1 %v8377_v36  ;;  %5628 = vmatpush3.msra.mxu0 %v4469_v9 }
 0x135   : > { %5629 = vmatprep.subr.mxu0 %v4468_v56 }
 0x136   : > { %v5031_v50 = vpop.f32.mrf.mxu0  ;;  %v5111_v6 = vpop.f32.mrf.mxu1  ;;  %5510 = vmatmul.mubr.f32.gmra.mxu0 %v8394_v35 }
 0x137   : > { %v7354_v58 = vadd.f32 %v5111_v6, %v5031_v50  ;;  %5590 = vmatmul.mubr.f32.gmra.mxu1 %v6591_v7  ;;  %5512 = vmatprep.mubr.msk.f32.mxu0 %vm833_vm0, %v8395_v14  ;;  %v4466_v7 = vld [vmem:[%s8161_s4 + $0x410] sm:$0xff] }
 0x138   : > { %v7360_v37 = vpop.f32.mrf.mxu0  ;;  %v7362_v36 = vpop.f32.mrf.mxu1  ;;  %5592 = vmatprep.mubr.f32.mxu1 %v8378_v51  ;;  %5630 = vmatpush3.msra.mxu0 %v4468_v56 }
 0x139   : > { %5631 = vmatprep.subr.mxu0 %v4467_v21 }
 0x13a   : > { %v5034_v43 = vpop.f32.mrf.mxu0  ;;  %v5114_v28 = vpop.f32.mrf.mxu1  ;;  %5513 = vmatmul.mubr.f32.gmra.mxu0 %v8396_v19 }
 0x13b   : > { %v7369_v0 = vadd.f32 %v5114_v28, %v5034_v43  ;;  %5593 = vmatmul.mubr.f32.gmra.mxu1 %v6623_v44  ;;  %5515 = vmatprep.mubr.msk.f32.mxu0 %vm833_vm0, %v6537_v26  ;;  %v4465_v44 = vld [vmem:[%s8161_s4 + $0x408] sm:$0xff] }
 0x13c   : > { %v7375_v9 = vpop.f32.mrf.mxu0  ;;  %v7377_v51 = vpop.f32.mrf.mxu1  ;;  %5595 = vmatprep.mubr.f32.mxu1 %v6627_v60  ;;  %5632 = vmatpush3.msra.mxu0 %v4467_v21  ;;  %v8398_v21 = vld [vmem:[#allocation6_spill] sm:$0xff] }
 0x13d   : > { %5633 = vmatprep.subr.mxu0 %v4466_v7 }
 0x13e   : > { %v5037_v27 = vpop.f32.mrf.mxu0  ;;  %v5117_v13 = vpop.f32.mrf.mxu1  ;;  %5516 = vmatmul.mubr.f32.gmra.mxu0 %v6563_v48 }
 0x13f   : > { %v7384_v53 = vadd.f32 %v5117_v13, %v5037_v27  ;;  %5596 = vmatmul.mubr.f32.gmra.mxu1 %v6648_v63  ;;  %5518 = vmatprep.mubr.msk.f32.mxu0 %vm833_vm0, %v6582_v10  ;;  %v4464_v63 = vld [vmem:[%s8161_s4 + $0x400] sm:$0xff] }
 0x140   : > { %v7390_v26 = vpop.f32.mrf.mxu0  ;;  %v7392_v60 = vpop.f32.mrf.mxu1  ;;  %5598 = vmatprep.mubr.f32.mxu1 %v8380_v46  ;;  %5634 = vmatpush3.msra.mxu0 %v4466_v7 }
 0x141   : > { %5635 = vmatprep.subr.mxu0 %v4465_v44 }
 0x142   : > { %v5040_v48 = vpop.f32.mrf.mxu0  ;;  %v5120_v56 = vpop.f32.mrf.mxu1  ;;  %5519 = vmatmul.mubr.f32.gmra.mxu0 %v6603_v4 }
 0x143   : > { %v7399_v50 = vadd.f32 %v5120_v56, %v5040_v48  ;;  %5599 = vmatmul.mubr.f32.gmra.mxu1 %v8381_v3  ;;  %5521 = vmatprep.mubr.msk.f32.mxu0 %vm833_vm0, %v7001_v47  ;;  %v8397_v3 = vmov 0.0  }
 0x144   : > { %v7405_v10 = vpop.f32.mrf.mxu0  ;;  %v7407_v46 = vpop.f32.mrf.mxu1  ;;  %5601 = vmatprep.mubr.f32.mxu1 %v7180_v29  ;;  %5636 = vmatpush3.msra.mxu0 %v4465_v44 }
 0x145   : > { %5637 = vmatprep.subr.mxu0 %v4464_v63 }
 0x146   : > { %v5043_v4 = vpop.f32.mrf.mxu0  ;;  %v5123_v6 = vpop.f32.mrf.mxu1  ;;  %5522 = vmatmul.mubr.f32.gmra.mxu0 %v7012_v61 }
 0x147   : > { %v7411_v35 = vadd.f32 %v5123_v6, %v5043_v4  ;;  %5602 = vmatmul.mubr.f32.gmra.mxu1 %v7192_v17  ;;  %5524 = vmatprep.mubr.f32.mxu0 %v8397_v3 }
 0x148   : > { %v7415_v8 = vpop.f32.mrf.mxu0  ;;  %v7417_v47 = vpop.f32.mrf.mxu1  ;;  %5604 = vmatprep.mubr.f32.mxu1 %v8398_v21  ;;  %5638 = vmatpush3.msra.mxu0 %v4464_v63 }
 0x14a   : > { %v5046_v29 = vpop.f32.mrf.mxu0  ;;  %v5126_v14 = vpop.f32.mrf.mxu1  ;;  %5525 = vmatmul.mubr.f32.gmra.mxu0 %v8397_v3  ;;  %v8400_v3 = vld [vmem:[#allocation58_spill] sm:$0xff] }
 0x14b   : > { %v7421_v43 = vadd.f32 %v5126_v14, %v5046_v29  ;;  %5605 = vmatmul.mubr.f32.gmra.mxu1 %v8398_v21  ;;  %5639 = vmatprep.mubr.f32.mxu0 %v6709_v55 }
 0x14c   : > { %v7425_v61 = vpop.f32.mrf.mxu0  ;;  %v7427_v17 = vpop.f32.mrf.mxu1 }
 0x14e   : > { %v5161_v28 = vpop.f32.mrf.mxu0  ;;  %5640 = vmatmul.mubr.f32.vlgmr.msra.gmra.mxu0 %v6726_v25  ;;  %v8399_v25 = vld [vmem:[#allocation57_spill] sm:$0xff] }
 0x14f   : > { %v2001_v19 = vadd.f32 %v5161_v28, %v7217_v33  ;;  %v5241_v7 = vpop.f32.mrf.mxu1  ;;  %5642 = vmatprep.mubr.f32.mxu0 %v6733_v40 }
 0x150   : > { %v1841_v27 = vpop.f32.mrf.mxu0 }
 0x151   : > { %v7433_v13 = vadd.f32 %v1841_v27, %v7226_v42  ;;  %v7435_v44 = vadd.f32 %v5241_v7, %v2001_v19  ;;  %v7437_v48 = vpop.f32.mrf.mxu1  ;;  %v8402_v7 = vld [vmem:[#allocation60_spill] sm:$0xff] }
 0x152   : > { %v5164_v55 = vpop.f32.mrf.mxu0  ;;  %5643 = vmatmul.mubr.f32.gmra.mxu0 %v6747_v59  ;;  %v8401_v59 = vld [vmem:[#allocation59_spill] sm:$0xff] }
 0x153   : > { %v2003_v56 = vadd.f32 %v5164_v55, %v7233_v18  ;;  %v5244_v63 = vpop.f32.mrf.mxu1  ;;  %5645 = vmatprep.mubr.f32.mxu0 %v8399_v25 }
 0x154   : > { %v1851_v33 = vpop.f32.mrf.mxu0 }
 0x155   : > { %v7443_v4 = vadd.f32 %v1851_v33, %v7240_v15  ;;  %v7445_v40 = vadd.f32 %v5244_v63, %v2003_v56  ;;  %v7447_v42 = vpop.f32.mrf.mxu1  ;;  %v8403_v56 = vld [vmem:[#allocation61_spill] sm:$0xff] }
 0x156   : > { %v5167_v6 = vpop.f32.mrf.mxu0  ;;  %5646 = vmatmul.mubr.f32.gmra.mxu0 %v8400_v3  ;;  %v8404_v3 = vld [vmem:[#allocation62_spill] sm:$0xff] }
 0x157   : > { %v2005_v21 = vadd.f32 %v5167_v6, %v7246_v32  ;;  %v5247_v29 = vpop.f32.mrf.mxu1  ;;  %5648 = vmatprep.mubr.f32.mxu0 %v8401_v59  ;;  %v3860_v32 = vld [vmem:[%s8163_s6 + $0x78] sm:$0xff]  ;;  %v3859_v59 = vld [vmem:[%s8163_s6 + $0x70] sm:$0xff] }
 0x158   : > { %v1861_v18 = vpop.f32.mrf.mxu0  ;;  %5687 = vmatprep.subr.mxu1 %v3860_v32 }
 0x159   : > { %v7453_v14 = vadd.f32 %v1861_v18, %v7253_v2  ;;  %v7455_v28 = vadd.f32 %v5247_v29, %v2005_v21  ;;  %v7457_v15 = vpop.f32.mrf.mxu1  ;;  %5688 = vmatpush3.msra.mxu1 %v3860_v32  ;;  %v8405_v29 = vld [vmem:[#allocation27_spill] sm:$0xff]  ;;  %v8407_v32 = vld [vmem:[#allocation30_spill] sm:$0xff] }
 0x15a   : > { %v5170_v19 = vpop.f32.mrf.mxu0  ;;  %5649 = vmatmul.mubr.f32.gmra.mxu0 %v8402_v7  ;;  %5689 = vmatprep.subr.mxu1 %v3859_v59 }
 0x15b   : > { %v2007_v27 = vadd.f32 %v5170_v19, %v7259_v62  ;;  %v5250_v55 = vpop.f32.mrf.mxu1  ;;  %5651 = vmatprep.mubr.f32.mxu0 %v8403_v56  ;;  %5690 = vmatpush3.msra.mxu1 %v3859_v59 }
 0x15c   : > { %v1871_v63 = vpop.f32.mrf.mxu0 }
 0x15d   : > { %v7466_v2 = vadd.f32 %v1871_v63, %v7266_v20  ;;  %v7468_v25 = vadd.f32 %v5250_v55, %v2007_v27  ;;  %v7470_v33 = vpop.f32.mrf.mxu1  ;;  %v8406_v55 = vld [vmem:[#allocation29_spill] sm:$0xff] }
 0x15e   : > { %v5173_v6 = vpop.f32.mrf.mxu0  ;;  %5652 = vmatmul.mubr.f32.gmra.mxu0 %v8404_v3  ;;  %v3858_v63 = vld [vmem:[%s8163_s6 + $0x68] sm:$0xff] }
 0x15f   : > { %v2009_v62 = vadd.f32 %v5173_v6, %v7272_v34  ;;  %v5253_v21 = vpop.f32.mrf.mxu1  ;;  %5654 = vmatprep.mubr.f32.mxu0 %v8405_v29  ;;  %5691 = vmatprep.subr.mxu1 %v3858_v63  ;;  %v8408_v29 = vld [vmem:[#allocation34_spill] sm:$0xff] }
 0x160   : > { %v1881_v18 = vpop.f32.mrf.mxu0  ;;  %5692 = vmatpush3.msra.mxu1 %v3858_v63  ;;  %v8410_v63 = vld [vmem:[#allocation40_spill] sm:$0xff] }
 0x161   : > { %v7479_v20 = vadd.f32 %v1881_v18, %v7279_v1  ;;  %v7481_v19 = vadd.f32 %v5253_v21, %v2009_v62  ;;  %v7483_v7 = vpop.f32.mrf.mxu1  ;;  %v8409_v18 = vld [vmem:[#allocation36_spill] sm:$0xff] }
 0x162   : > { %v5176_v27 = vpop.f32.mrf.mxu0  ;;  %5655 = vmatmul.mubr.f32.gmra.mxu0 %v8406_v55 }
 0x163   : > { %v2011_v34 = vadd.f32 %v5176_v27, %v7285_v52  ;;  %v5256_v56 = vpop.f32.mrf.mxu1  ;;  %5657 = vmatprep.mubr.f32.mxu0 %v8407_v32  ;;  %v3857_v27 = vld [vmem:[%s8163_s6 + $0x60] sm:$0xff] }
 0x164   : > { %v1891_v6 = vpop.f32.mrf.mxu0  ;;  %5693 = vmatprep.subr.mxu1 %v3857_v27 }
 0x165   : > { %v7492_v1 = vadd.f32 %v1891_v6, %v7292_v24  ;;  %v7494_v3 = vadd.f32 %v5256_v56, %v2011_v34  ;;  %v7496_v62 = vpop.f32.mrf.mxu1  ;;  %5694 = vmatpush3.msra.mxu1 %v3857_v27 }
 0x166   : > { %v5179_v21 = vpop.f32.mrf.mxu0  ;;  %5658 = vmatmul.mubr.f32.gmra.mxu0 %v8408_v29  ;;  %v3856_v29 = vld [vmem:[%s8163_s6 + $0x58] sm:$0xff] }
 0x167   : > { %v2013_v52 = vadd.f32 %v5179_v21, %v7298_v31  ;;  %v5259_v59 = vpop.f32.mrf.mxu1  ;;  %5660 = vmatprep.mubr.f32.mxu0 %v8409_v18  ;;  %v8411_v21 = vld [vmem:[#allocation42_spill] sm:$0xff]  ;;  %5695 = vmatprep.subr.mxu1 %v3856_v29 }
 0x168   : > { %v1901_v55 = vpop.f32.mrf.mxu0  ;;  %5696 = vmatpush3.msra.mxu1 %v3856_v29 }
 0x169   : > { %v7505_v24 = vadd.f32 %v1901_v55, %v7305_v57  ;;  %v7507_v34 = vadd.f32 %v5259_v59, %v2013_v52  ;;  %v7509_v56 = vpop.f32.mrf.mxu1  ;;  %v8412_v55 = vld [vmem:[#allocation44_spill] sm:$0xff] }
 0x16a   : > { %v5182_v32 = vpop.f32.mrf.mxu0  ;;  %5661 = vmatmul.mubr.f32.gmra.mxu0 %v8410_v63 }
 0x16b   : > { %v2015_v31 = vadd.f32 %v5182_v32, %v7311_v39  ;;  %v5262_v6 = vpop.f32.mrf.mxu1  ;;  %5663 = vmatprep.mubr.f32.mxu0 %v8411_v21  ;;  %v1567_v39 = vadd.f32 %v7332_v38, %v7330_v16 }
 0x16c   : > { %v1911_v18 = vpop.f32.mrf.mxu0 }
 0x16d   : > { %v7518_v57 = vadd.f32 %v1911_v18, %v7318_v23  ;;  %v7520_v52 = vadd.f32 %v5262_v6, %v2015_v31  ;;  %v7522_v59 = vpop.f32.mrf.mxu1  ;;  %v3855_v23 = vld [vmem:[%s8163_s6 + $0x50] sm:$0xff] }
 0x16e   : > { %v5185_v27 = vpop.f32.mrf.mxu0  ;;  %5664 = vmatmul.mubr.f32.gmra.mxu0 %v8412_v55  ;;  %5697 = vmatprep.subr.mxu1 %v3855_v23  ;;  %v8413_v55 = vld [vmem:[#allocation47_spill] sm:$0xff] }
 0x16f   : > { %v2017_v32 = vadd.f32 %v5185_v27, %v7324_v30  ;;  %v5265_v63 = vpop.f32.mrf.mxu1  ;;  %5666 = vmatprep.mubr.f32.mxu0 %v6901_v12  ;;  %5698 = vmatpush3.msra.mxu1 %v3855_v23  ;;  %v1577_v30 = vadd.f32 %v7347_v11, %v7345_v49  ;;  %v8414_v27 = vld [vmem:[#allocation63_spill] sm:$0xff]  ;;  %v8415_v49 = vld [vmem:[#allocation64_spill] sm:$0xff] }
 0x170   : > { %v1921_v31 = vpop.f32.mrf.mxu0 }
 0x171   : > { %v2016_v6 = vadd.f32 %v1921_v31, %v1567_v39  ;;  %v7532_v21 = vadd.f32 %v5265_v63, %v2017_v32  ;;  %v2195_v29 = vpop.f32.mrf.mxu1  ;;  %v3854_v39 = vld [vmem:[%s8163_s6 + $0x48] sm:$0xff] }
 0x172   : > { %v5188_v18 = vpop.f32.mrf.mxu0  ;;  %5667 = vmatmul.mubr.f32.gmra.mxu0 %v8413_v55  ;;  %5699 = vmatprep.subr.mxu1 %v3854_v39 }
 0x173   : > { %v2019_v16 = vadd.f32 %v5188_v18, %v7339_v22  ;;  %v7538_v12 = vadd.f32 %v2195_v29, %v2016_v6  ;;  %v5268_v38 = vpop.f32.mrf.mxu1  ;;  %5669 = vmatprep.mubr.f32.mxu0 %v8414_v27  ;;  %5700 = vmatpush3.msra.mxu1 %v3854_v39  ;;  %v1587_v22 = vadd.f32 %v7362_v36, %v7360_v37  ;;  %v8416_v18 = vld [vmem:[#allocation65_spill] sm:$0xff]  ;;  %v8417_v37 = vld [vmem:[#allocation66_spill] sm:$0xff] }
 0x174   : > { %v1931_v32 = vpop.f32.mrf.mxu0 }
 0x175   : > { %v2018_v63 = vadd.f32 %v1931_v32, %v1577_v30  ;;  %v7544_v23 = vadd.f32 %v5268_v38, %v2019_v16  ;;  %v2205_v31 = vpop.f32.mrf.mxu1  ;;  %v3853_v30 = vld [vmem:[%s8163_s6 + $0x40] sm:$0xff] }
 0x176   : > { %v5191_v55 = vpop.f32.mrf.mxu0  ;;  %5670 = vmatmul.mubr.f32.gmra.mxu0 %v8415_v49  ;;  %5701 = vmatprep.subr.mxu1 %v3853_v30  ;;  %v3852_v49 = vld [vmem:[%s8163_s6 + $0x38] sm:$0xff] }
 0x177   : > { %v2021_v11 = vadd.f32 %v5191_v55, %v7354_v58  ;;  %v7550_v6 = vadd.f32 %v2205_v31, %v2018_v63  ;;  %v5271_v29 = vpop.f32.mrf.mxu1  ;;  %5672 = vmatprep.mubr.f32.mxu0 %v8416_v18  ;;  %5702 = vmatpush3.msra.mxu1 %v3853_v30  ;;  %v1597_v58 = vadd.f32 %v7377_v51, %v7375_v9  ;;  %v8418_v55 = vld [vmem:[#allocation67_spill] sm:$0xff]  ;;  %v8419_v9 = vld [vmem:[#allocation68_spill] sm:$0xff] }
 0x178   : > { %v1941_v16 = vpop.f32.mrf.mxu0  ;;  %5703 = vmatprep.subr.mxu1 %v3852_v49 }
 0x179   : > { %v2020_v38 = vadd.f32 %v1941_v16, %v1587_v22  ;;  %v7556_v27 = vadd.f32 %v5271_v29, %v2021_v11  ;;  %v2215_v39 = vpop.f32.mrf.mxu1  ;;  %5704 = vmatpush3.msra.mxu1 %v3852_v49 }
 0x17a   : > { %v5194_v32 = vpop.f32.mrf.mxu0  ;;  %5673 = vmatmul.mubr.f32.gmra.mxu0 %v8417_v37 }
 0x17b   : > { %v2023_v36 = vadd.f32 %v5194_v32, %v7369_v0  ;;  %v7562_v63 = vadd.f32 %v2215_v39, %v2020_v38  ;;  %v5274_v31 = vpop.f32.mrf.mxu1  ;;  %5675 = vmatprep.mubr.f32.mxu0 %v8418_v55  ;;  %v1607_v0 = vadd.f32 %v7392_v60, %v7390_v26  ;;  %v3851_v39 = vld [vmem:[%s8163_s6 + $0x30] sm:$0xff]  ;;  %v3850_v55 = vld [vmem:[%s8163_s6 + $0x28] sm:$0xff] }
 0x17c   : > { %v1951_v22 = vpop.f32.mrf.mxu0  ;;  %5705 = vmatprep.subr.mxu1 %v3851_v39 }
 0x17d   : > { %v2022_v11 = vadd.f32 %v1951_v22, %v1597_v58  ;;  %v7568_v29 = vadd.f32 %v5274_v31, %v2023_v36  ;;  %v2225_v18 = vpop.f32.mrf.mxu1  ;;  %5706 = vmatpush3.msra.mxu1 %v3851_v39 }
 0x17e   : > { %v5197_v30 = vpop.f32.mrf.mxu0  ;;  %5676 = vmatmul.mubr.f32.gmra.mxu0 %v8419_v9  ;;  %5707 = vmatprep.subr.mxu1 %v3850_v55  ;;  %v3849_v9 = vld [vmem:[%s8163_s6 + $0x20] sm:$0xff] }
 0x17f   : > { %v2025_v51 = vadd.f32 %v5197_v30, %v7384_v53  ;;  %v7574_v16 = vadd.f32 %v2225_v18, %v2022_v11  ;;  %v5277_v38 = vpop.f32.mrf.mxu1  ;;  %5678 = vmatprep.mubr.f32.mxu0 %v6999_v54  ;;  %v1617_v53 = vadd.f32 %v7407_v46, %v7405_v10  ;;  %5708 = vmatpush3.msra.mxu1 %v3850_v55  ;;  %v8420_v30 = vld [vmem:[#allocation56_spill] sm:$0xff] }
 0x180   : > { %v1961_v32 = vpop.f32.mrf.mxu0  ;;  %5709 = vmatprep.subr.mxu1 %v3849_v9 }
 0x181   : > { %v2024_v37 = vadd.f32 %v1961_v32, %v1607_v0  ;;  %v7580_v58 = vadd.f32 %v5277_v38, %v2025_v51  ;;  %v2235_v36 = vpop.f32.mrf.mxu1  ;;  %5710 = vmatpush3.msra.mxu1 %v3849_v9 }
 0x182   : > { %v5200_v31 = vpop.f32.mrf.mxu0  ;;  %5679 = vmatmul.mubr.f32.gmra.mxu0 %v7010_v45 }
 0x183   : > { %v2027_v26 = vadd.f32 %v5200_v31, %v7399_v50  ;;  %v7586_v54 = vadd.f32 %v2235_v36, %v2024_v37  ;;  %v5280_v60 = vpop.f32.mrf.mxu1  ;;  %5681 = vmatprep.mubr.f32.mxu0 %v7186_v41  ;;  %v1627_v50 = vadd.f32 %v7417_v47, %v7415_v8  ;;  %v3848_v37 = vld [vmem:[%s8163_s6 + $0x18] sm:$0xff] }
 0x184   : > { %v1971_v49 = vpop.f32.mrf.mxu0  ;;  %5711 = vmatprep.subr.mxu1 %v3848_v37 }
 0x185   : > { %v2026_v22 = vadd.f32 %v1971_v49, %v1617_v53  ;;  %v7592_v11 = vadd.f32 %v5280_v60, %v2027_v26  ;;  %v2245_v45 = vpop.f32.mrf.mxu1  ;;  %5712 = vmatpush3.msra.mxu1 %v3848_v37 }
 0x186   : > { %v5203_v18 = vpop.f32.mrf.mxu0  ;;  %5682 = vmatmul.mubr.f32.gmra.mxu0 %v7199_v5 }
 0x187   : > { %v2029_v10 = vadd.f32 %v5203_v18, %v7411_v35  ;;  %v7598_v41 = vadd.f32 %v2245_v45, %v2026_v22  ;;  %v5283_v46 = vpop.f32.mrf.mxu1  ;;  %5684 = vmatprep.mubr.f32.mxu0 %v8420_v30  ;;  %v1637_v35 = vadd.f32 %v7427_v17, %v7425_v61  ;;  %v2274_v61 = vadd.f32 %v7437_v48, %v7433_v13 }
 0x188   : > { %v1981_v0 = vpop.f32.mrf.mxu0 }
 0x189   : > { %v2028_v51 = vadd.f32 %v1981_v0, %v1627_v50  ;;  %v7604_v38 = vadd.f32 %v5283_v46, %v2029_v10  ;;  %v2255_v5 = vpop.f32.mrf.mxu1  ;;  %v2276_v50 = vadd.f32 %v7447_v42, %v7443_v4  ;;  %v3846_v4 = vld [vmem:[%s8163_s6 + $0x8] sm:$0xff] }
 0x18a   : > { %v5206_v39 = vpop.f32.mrf.mxu0  ;;  %5685 = vmatmul.mubr.f32.gmra.mxu0 %v8420_v30 }
 0x18b   : > { %v2031_v8 = vadd.f32 %v5206_v39, %v7421_v43  ;;  %v7610_v47 = vadd.f32 %v2255_v5, %v2028_v51  ;;  %v5286_v32 = vpop.f32.mrf.mxu1  ;;  %v3845_v51 = vld [vmem:[%s8163_s6] sm:$0xff] }
 0x18c   : > { %v1991_v36 = vpop.f32.mrf.mxu0 }
 0x18d   : > { %v2030_v31 = vadd.f32 %v1991_v36, %v1637_v35  ;;  %v7615_v53 = vadd.f32 %v5286_v32, %v2031_v8  ;;  %v2265_v26 = vpop.f32.mrf.mxu1 }
 0x18e   : > { %v5321_v60 = vpop.f32.mrf.mxu0 }
 0x18f   : > { %v7619_v17 = vadd.f32 %v2265_v26, %v2030_v31  ;;  %v7622_v43 = vadd.f32 %v5321_v60, %v7435_v44  ;;  %v7624_v55 = vpop.f32.mrf.mxu1  ;;  %v3847_v44 = vld [vmem:[%s8163_s6 + $0x10] sm:$0xff]  ;;  %v2282_v26 = vadd.f32 %v7483_v7, %v7479_v20 }
 0x190   : > { %v2399_v49 = vpop.f32.mrf.mxu0  ;;  %5713 = vmatprep.subr.mxu1 %v3847_v44 }
 0x191   : > { %v7626_v22 = vadd.f32 %v2399_v49, %v2274_v61  ;;  %v7628_v45 = vpop.f32.mrf.mxu1  ;;  %5714 = vmatpush3.msra.mxu1 %v3847_v44 }
 0x192   : > { %v5324_v18 = vpop.f32.mrf.mxu0  ;;  %5715 = vmatprep.subr.mxu1 %v3846_v4 }
 0x193   : > { %v7633_v10 = vadd.f32 %v5324_v18, %v7445_v40  ;;  %v7635_v13 = vpop.f32.mrf.mxu1  ;;  %v2278_v40 = vadd.f32 %v7457_v15, %v7453_v14  ;;  %5716 = vmatpush3.msra.mxu1 %v3846_v4  ;;  %v2280_v14 = vadd.f32 %v7470_v33, %v7466_v2  ;;  %v2284_v18 = vadd.f32 %v7496_v62, %v7492_v1 }
 0x194   : > { %v2409_v48 = vpop.f32.mrf.mxu0  ;;  %5717 = vmatprep.subr.mxu1 %v3845_v51  ;;  %v2286_v4 = vadd.f32 %v7509_v56, %v7505_v24 }
 0x195   : > { %v7640_v46 = vadd.f32 %v2409_v48, %v2276_v50  ;;  %v7642_v30 = vpop.f32.mrf.mxu1  ;;  %5718 = vmatpush3.msra.mxu1 %v3845_v51 }
 0x196   : > { %v5327_v42 = vpop.f32.mrf.mxu0 }
 0x197   : > { %v7650_v9 = vadd.f32 %v5327_v42, %v7455_v28  ;;  %v7652_v0 = vpop.f32.mrf.mxu1 }
 0x198   : > { %v2419_v5 = vpop.f32.mrf.mxu0 }
 0x199   : > { %v7657_v39 = vadd.f32 %v2419_v5, %v2278_v40  ;;  %v7659_v35 = vpop.f32.mrf.mxu1  ;;  %v2288_v5 = vadd.f32 %v7522_v59, %v7518_v57 }
 0x19a   : > { %v5330_v8 = vpop.f32.mrf.mxu0 }
 0x19b   : > { %v7664_v28 = vadd.f32 %v5330_v8, %v7468_v25  ;;  %v7666_v15 = vpop.f32.mrf.mxu1 }
 0x19c   : > { %v2429_v32 = vpop.f32.mrf.mxu0 }
 0x19d   : > { %v7668_v37 = vadd.f32 %v2429_v32, %v2280_v14  ;;  %v7670_v36 = vpop.f32.mrf.mxu1 }
 0x19e   : > { %v5333_v31 = vpop.f32.mrf.mxu0 }
 0x19f   : > { %v7675_v60 = vadd.f32 %v5333_v31, %v7481_v19  ;;  %v7677_v61 = vpop.f32.mrf.mxu1 }
 0x1a0   : > { %v2439_v2 = vpop.f32.mrf.mxu0 }
 0x1a1   : > { %v7679_v33 = vadd.f32 %v2439_v2, %v2282_v26  ;;  %v7681_v25 = vpop.f32.mrf.mxu1 }
 0x1a2   : > { %v5336_v49 = vpop.f32.mrf.mxu0 }
 0x1a3   : > { %v7686_v50 = vadd.f32 %v5336_v49, %v7494_v3  ;;  %v7688_v44 = vpop.f32.mrf.mxu1 }
 0x1a4   : > { %v2449_v20 = vpop.f32.mrf.mxu0 }
 0x1a5   : > { %v7690_v7 = vadd.f32 %v2449_v20, %v2284_v18  ;;  %v7692_v19 = vpop.f32.mrf.mxu1 }
 0x1a6   : > { %v5339_v48 = vpop.f32.mrf.mxu0 }
 0x1a7   : > { %v7697_v42 = vadd.f32 %v5339_v48, %v7507_v34  ;;  %v7699_v40 = vpop.f32.mrf.mxu1 }
 0x1a8   : > { %v2459_v1 = vpop.f32.mrf.mxu0 }
 0x1a9   : > { %v7701_v62 = vadd.f32 %v2459_v1, %v2286_v4  ;;  %v7703_v3 = vpop.f32.mrf.mxu1 }
 0x1aa   : > { %v5342_v51 = vpop.f32.mrf.mxu0 }
 0x1ab   : > { %v7708_v8 = vadd.f32 %v5342_v51, %v7520_v52  ;;  %v7710_v14 = vpop.f32.mrf.mxu1 }
 0x1ac   : > { %8421 = vst [vmem:[#allocation8_spill] sm:$0xff] %v7710_v14  ;;  %v2469_v24 = vpop.f32.mrf.mxu0 }
 0x1ad   : > { %v7712_v56 = vadd.f32 %v2469_v24, %v2288_v5  ;;  %v7714_v34 = vpop.f32.mrf.mxu1 }
 0x1ae   : > { %8423 = vst [vmem:[#allocation10_spill] sm:$0xff] %v7714_v34  ;;  %v5345_v32 = vpop.f32.mrf.mxu0 }
 0x1af   : > { %8422 = vst [vmem:[#allocation9_spill] sm:$0xff] %v7712_v56  ;;  %v7717_v31 = vadd.f32 %v5345_v32, %v7532_v21  ;;  %v7719_v26 = vpop.f32.mrf.mxu1 }
 0x1b0   : > { %8425 = vst [vmem:[#allocation14_spill] sm:$0xff] %v7719_v26  ;;  %v2479_v2 = vpop.f32.mrf.mxu0 }
 0x1b1   : > { %8424 = vst [vmem:[#allocation11_spill] sm:$0xff] %v7717_v31  ;;  %v7722_v49 = vadd.f32 %v2479_v2, %v7538_v12  ;;  %v7724_v57 = vpop.f32.mrf.mxu1 }
 0x1b2   : > { %8427 = vst [vmem:[#allocation20_spill] sm:$0xff] %v7724_v57  ;;  %v5348_v52 = vpop.f32.mrf.mxu0 }
 0x1b3   : > { %8426 = vst [vmem:[#allocation16_spill] sm:$0xff] %v7722_v49  ;;  %v7727_v59 = vadd.f32 %v5348_v52, %v7544_v23  ;;  %v7729_v18 = vpop.f32.mrf.mxu1 }
 0x1b4   : > { %8429 = vst [vmem:[#allocation24_spill] sm:$0xff] %v7729_v18  ;;  %v2489_v20 = vpop.f32.mrf.mxu0 }
 0x1b5   : > { %8428 = vst [vmem:[#allocation21_spill] sm:$0xff] %v7727_v59  ;;  %v7732_v48 = vadd.f32 %v2489_v20, %v7550_v6  ;;  %v7734_v21 = vpop.f32.mrf.mxu1 }
 0x1b6   : > { %8431 = vst [vmem:[#allocation26_spill] sm:$0xff] %v7734_v21  ;;  %v5351_v4 = vpop.f32.mrf.mxu0 }
 0x1b7   : > { %8430 = vst [vmem:[#allocation25_spill] sm:$0xff] %v7732_v48  ;;  %v7737_v1 = vadd.f32 %v5351_v4, %v7556_v27  ;;  %v7739_v12 = vpop.f32.mrf.mxu1 }
 0x1b8   : > { %8433 = vst [vmem:[#allocation33_spill] sm:$0xff] %v7739_v12  ;;  %v2499_v51 = vpop.f32.mrf.mxu0 }
 0x1b9   : > { %8432 = vst [vmem:[#allocation32_spill] sm:$0xff] %v7737_v1  ;;  %v7742_v5 = vadd.f32 %v2499_v51, %v7562_v63  ;;  %v7744_v23 = vpop.f32.mrf.mxu1 }
 0x1ba   : > { %8435 = vst [vmem:[#allocation38_spill] sm:$0xff] %v7744_v23  ;;  %v5354_v24 = vpop.f32.mrf.mxu0 }
 0x1bb   : > { %8434 = vst [vmem:[#allocation37_spill] sm:$0xff] %v7742_v5  ;;  %v7747_v32 = vadd.f32 %v5354_v24, %v7568_v29  ;;  %v7749_v6 = vpop.f32.mrf.mxu1 }
 0x1bc   : > { %8437 = vst [vmem:[#allocation43_spill] sm:$0xff] %v7749_v6  ;;  %v2509_v2 = vpop.f32.mrf.mxu0 }
 0x1bd   : > { %8436 = vst [vmem:[#allocation39_spill] sm:$0xff] %v7747_v32  ;;  %v7752_v52 = vadd.f32 %v2509_v2, %v7574_v16  ;;  %v7754_v27 = vpop.f32.mrf.mxu1 }
 0x1be   : > { %8439 = vst [vmem:[#allocation49_spill] sm:$0xff] %v7754_v27  ;;  %v5357_v20 = vpop.f32.mrf.mxu0 }
 0x1bf   : > { %8438 = vst [vmem:[#allocation45_spill] sm:$0xff] %v7752_v52  ;;  %v7757_v4 = vadd.f32 %v5357_v20, %v7580_v58  ;;  %v7759_v63 = vpop.f32.mrf.mxu1 }
 0x1c0   : > { %8441 = vst [vmem:[#allocation52_spill] sm:$0xff] %v7759_v63  ;;  %v2519_v51 = vpop.f32.mrf.mxu0 }
 0x1c1   : > { %8440 = vst [vmem:[#allocation51_spill] sm:$0xff] %v7757_v4  ;;  %v7762_v23 = vadd.f32 %v2519_v51, %v7586_v54  ;;  %v7764_v29 = vpop.f32.mrf.mxu1 }
 0x1c2   : > { %8443 = vst [vmem:[#allocation7_spill] sm:$0xff] %v7764_v29  ;;  %v5360_v24 = vpop.f32.mrf.mxu0 }
 0x1c3   : > { %8442 = vst [vmem:[#allocation53_spill] sm:$0xff] %v7762_v23  ;;  %v7767_v6 = vadd.f32 %v5360_v24, %v7592_v11  ;;  %v7769_v16 = vpop.f32.mrf.mxu1 }
 0x1c4   : > { %8445 = vst [vmem:[#allocation55_spill] sm:$0xff] %v7769_v16  ;;  %v2529_v2 = vpop.f32.mrf.mxu0 }
 0x1c5   : > { %8444 = vst [vmem:[#allocation54_spill] sm:$0xff] %v7767_v6  ;;  %v7772_v27 = vadd.f32 %v2529_v2, %v7598_v41  ;;  %v7774_v58 = vpop.f32.mrf.mxu1 }
 0x1c6   : > { %8447 = vst [vmem:[#allocation13_spill] sm:$0xff] %v7774_v58  ;;  %v5363_v20 = vpop.f32.mrf.mxu0 }
 0x1c7   : > { %8446 = vst [vmem:[#allocation12_spill] sm:$0xff] %v7772_v27  ;;  %v7777_v63 = vadd.f32 %v5363_v20, %v7604_v38  ;;  %v7779_v54 = vpop.f32.mrf.mxu1 }
 0x1c8   : > { %8449 = vst [vmem:[#allocation15_spill] sm:$0xff] %v7779_v54  ;;  %v2539_v51 = vpop.f32.mrf.mxu0 }
 0x1c9   : > { %8448 = vst [vmem:[#allocation17_spill] sm:$0xff] %v7777_v63  ;;  %v7782_v29 = vadd.f32 %v2539_v51, %v7610_v47  ;;  %v7784_v11 = vpop.f32.mrf.mxu1 }
 0x1ca   : > { %8451 = vst [vmem:[#allocation19_spill] sm:$0xff] %v7784_v11  ;;  %v5366_v24 = vpop.f32.mrf.mxu0 }
 0x1cb   : > { %8450 = vst [vmem:[#allocation18_spill] sm:$0xff] %v7782_v29  ;;  %v7787_v16 = vadd.f32 %v5366_v24, %v7615_v53  ;;  %v7789_v41 = vpop.f32.mrf.mxu1 }
 0x1cc   : > { %8453 = vst [vmem:[#allocation23_spill] sm:$0xff] %v7789_v41  ;;  %v2549_v2 = vpop.f32.mrf.mxu0 }
 0x1cd   : > { %8452 = vst [vmem:[#allocation22_spill] sm:$0xff] %v7787_v16  ;;  %v7792_v58 = vadd.f32 %v2549_v2, %v7619_v17  ;;  %v7794_v38 = vpop.f32.mrf.mxu1 }
 0x1ce   : > { %8455 = vst [vmem:[#allocation31_spill] sm:$0xff] %v7794_v38  ;;  %v5481_v20 = vpop.f32.mrf.mxu0 }
 0x1cf   : > { %8454 = vst [vmem:[#allocation28_spill] sm:$0xff] %v7792_v58  ;;  %v5561_v54 = vpop.f32.mrf.mxu1 }
 0x1d0   : > { %v2954_v63 = vpop.f32.mrf.mxu0 }
 0x1d1   : > { %v3238_v27 = vpop.f32.mrf.mxu1 }
 0x1d2   : > { %v5484_v47 = vpop.f32.mrf.mxu0 }
 0x1d3   : > { %v5564_v29 = vpop.f32.mrf.mxu1 }
 0x1d4   : > { %v2964_v51 = vpop.f32.mrf.mxu0 }
 0x1d5   : > { %v7796_v6 = vpop.f32.mrf.mxu1 }
 0x1d6   : > { %v5487_v11 = vpop.f32.mrf.mxu0 }
 0x1d7   : > { %v7800_v41 = vpop.f32.mrf.mxu1 }
 0x1d8   : > { %v2974_v53 = vpop.f32.mrf.mxu0 }
 0x1d9   : > { %v7806_v2 = vpop.f32.mrf.mxu1 }
 0x1da   : > { %v7798_v24 = vpop.f32.mrf.mxu0 }
 0x1db   : > { %v7812_v23 = vpop.f32.mrf.mxu1 }
 0x1dc   : > { %v7802_v16 = vpop.f32.mrf.mxu0 }
 0x1dd   : > { %v7818_v32 = vpop.f32.mrf.mxu1 }
 0x1de   : > { %v7804_v17 = vpop.f32.mrf.mxu0 }
 0x1df   : > { %v7824_v1 = vpop.f32.mrf.mxu1 }
 0x1e0   : > { %v7808_v38 = vpop.f32.mrf.mxu0 }
 0x1e1   : > { %v7830_v18 = vpop.f32.mrf.mxu1 }
 0x1e2   : > { %v7810_v58 = vpop.f32.mrf.mxu0 }
 0x1e3   : > { %v7836_v49 = vpop.f32.mrf.mxu1 }
 0x1e4   : > { %v7814_v4 = vpop.f32.mrf.mxu0 }
 0x1e5   : > { %v7842_v34 = vpop.f32.mrf.mxu1 }
 0x1e6   : > { %v7816_v52 = vpop.f32.mrf.mxu0  ;;  %8464 = vst [vmem:[#allocation59_spill] sm:$0xff] %v7842_v34 }
 0x1e8   : > { %v7820_v5 = vpop.f32.mrf.mxu0 }
 0x1e9   : > { %8456 = vst [vmem:[#allocation35_spill] sm:$0xff] %v7820_v5 }
 0x1ea   : > { %v7822_v12 = vpop.f32.mrf.mxu0 }
 0x1eb   : > { %8457 = vst [vmem:[#allocation41_spill] sm:$0xff] %v7822_v12 }
 0x1ec   : > { %v7826_v21 = vpop.f32.mrf.mxu0 }
 0x1ed   : > { %8458 = vst [vmem:[#allocation46_spill] sm:$0xff] %v7826_v21  ;;  %v7848_v21 = vpop.f32.mrf.mxu1 }
 0x1ee   : > { %v7828_v48 = vpop.f32.mrf.mxu0 }
 0x1ef   : > { %8459 = vst [vmem:[#allocation48_spill] sm:$0xff] %v7828_v48 }
 0x1f0   : > { %v7832_v59 = vpop.f32.mrf.mxu0 }
 0x1f1   : > { %8460 = vst [vmem:[#allocation50_spill] sm:$0xff] %v7832_v59  ;;  %v7854_v59 = vpop.f32.mrf.mxu1 }
 0x1f2   : > { %v7834_v57 = vpop.f32.mrf.mxu0  ;;  %8469 = vst [vmem:[#allocation29_spill] sm:$0xff] %v7854_v59 }
 0x1f3   : > { %8461 = vst [vmem:[#allocation6_spill] sm:$0xff] %v7834_v57 }
 0x1f4   : > { %v7838_v26 = vpop.f32.mrf.mxu0 }
 0x1f5   : > { %8462 = vst [vmem:[#allocation57_spill] sm:$0xff] %v7838_v26  ;;  %v7860_v26 = vpop.f32.mrf.mxu1 }
 0x1f6   : > { %v7840_v31 = vpop.f32.mrf.mxu0  ;;  %8472 = vst [vmem:[#allocation36_spill] sm:$0xff] %v7860_v26 }
 0x1f7   : > { %8463 = vst [vmem:[#allocation58_spill] sm:$0xff] %v7840_v31 }
 0x1f8   : > { %v7844_v12 = vpop.f32.mrf.mxu0 }
 0x1f9   : > { %8465 = vst [vmem:[#allocation60_spill] sm:$0xff] %v7844_v12  ;;  %v7868_v12 = vpop.f32.mrf.mxu1 }
 0x1fa   : > { %v7846_v56 = vpop.f32.mrf.mxu0 }
 0x1fb   : > { %8466 = vst [vmem:[#allocation61_spill] sm:$0xff] %v7846_v56  ;;  %v2840_v56 = vadd.f32 %v7624_v55, %v7622_v43  ;;  %v2841_v43 = vadd.f32 %v7642_v30, %v7640_v46 }
 0x1fc   : > { %v7850_v48 = vpop.f32.mrf.mxu0 }
 0x1fd   : > { %8467 = vst [vmem:[#allocation62_spill] sm:$0xff] %v7850_v48  ;;  %v3114_v59 = vadd.f32 %v5481_v20, %v2840_v56  ;;  %v3115_v56 = vadd.f32 %v2964_v51, %v2841_v43 }
 0x1fe   : > { %v7852_v5 = vpop.f32.mrf.mxu0 }
 0x1ff   : > { %8468 = vst [vmem:[#allocation27_spill] sm:$0xff] %v7852_v5  ;;  %v2839_v5 = vadd.f32 %v7628_v45, %v7626_v22  ;;  %v3398_v55 = vadd.f32 %v5561_v54, %v3114_v59  ;;  %v2844_v22 = vadd.f32 %v7652_v0, %v7650_v9  ;;  %v3750_v0 = vld [vmem:[%s5893_s16 + $0x8] sm:$0xff] }
 0x200   : > { %v7856_v57 = vpop.f32.mrf.mxu0 }
 0x201   : > { %8470 = vst [vmem:[#allocation30_spill] sm:$0xff] %v7856_v57  ;;  %v3113_v26 = vadd.f32 %v2954_v63, %v2839_v5  ;;  %v2843_v63 = vadd.f32 %v7659_v35, %v7657_v39  ;;  %v3118_v20 = vadd.f32 %v5487_v11, %v2844_v22  ;;  %v2848_v22 = vadd.f32 %v7677_v61, %v7675_v60 }
 0x202   : > { %v7858_v14 = vpop.f32.mrf.mxu0 }
 0x203   : > { %8471 = vst [vmem:[#allocation34_spill] sm:$0xff] %v7858_v14  ;;  %v2842_v14 = vadd.f32 %v7635_v13, %v7633_v10  ;;  %v7889_v10 = vld [vmem:[%s8162_s5] ss:$0 sm:$0xff]  ;;  %v3397_v13 = vadd.f32 %v3238_v27, %v3113_v26  ;;  %v3117_v54 = vadd.f32 %v2974_v53, %v2843_v63  ;;  %v2846_v26 = vadd.f32 %v7666_v15, %v7664_v28  ;;  %v3752_v28 = vld [vmem:[%s5893_s16 + $0x18] sm:$0xff] }
 0x204   : > { %v7862_v31 = vpop.f32.mrf.mxu0  ;;  %v3399_v27 = vadd.f32 %v7796_v6, %v3115_v56 }
 0x205   : > { %8473 = vst [vmem:[#allocation40_spill] sm:$0xff] %v7862_v31  ;;  %v7878_v31 = vpop.f32.mrf.mxu1  ;;  %v3120_v43 = vadd.f32 %v7798_v24, %v2846_v26  ;;  %v2847_v24 = vadd.f32 %v7681_v25, %v7679_v33  ;;  %v2849_v26 = vadd.f32 %v7692_v19, %v7690_v7 }
 0x206   : > { %v7864_v34 = vpop.f32.mrf.mxu0 }
 0x207   : > { %8474 = vst [vmem:[#allocation42_spill] sm:$0xff] %v7864_v34  ;;  %v7893_v46 = vpop.f32.mrf.mxu1  ;;  %v3121_v33 = vadd.f32 %v7808_v38, %v2847_v24  ;;  %v8479_v24 = vld [vmem:[#allocation59_spill] sm:$0xff] }
 0x208   : > { %v7870_v48 = vpop.f32.mrf.mxu0 }
 0x209   : > { %8475 = vst [vmem:[#allocation44_spill] sm:$0xff] %v7870_v48  ;;  %v3116_v48 = vadd.f32 %v5484_v47, %v2842_v14  ;;  %v7905_v11 = vpop.f32.mrf.mxu1  ;;  %v3405_v7 = vadd.f32 %v7830_v18, %v3121_v33  ;;  %v8482_v33 = vld [vmem:[#allocation41_spill] sm:$0xff] }
 0x20a   : > { %v7874_v57 = vpop.f32.mrf.mxu0 }
 0x20b   : > { %v3400_v14 = vadd.f32 %v5564_v29, %v3116_v48  ;;  %v2845_v48 = vadd.f32 %v7670_v36, %v7668_v37  ;;  %v3402_v29 = vadd.f32 %v7800_v41, %v3118_v20  ;;  %v3751_v36 = vld [vmem:[%s5893_s16 + $0x10] sm:$0xff]  ;;  %v7919_v63 = vpop.f32.mrf.mxu1 }
 0x20c   : > { %v7880_v34 = vpop.f32.mrf.mxu0 }
 0x20d   : > { %8476 = vst [vmem:[#allocation47_spill] sm:$0xff] %v7880_v34  ;;  %v3749_v34 = vld [vmem:[%s5893_s16] sm:$0xff]  ;;  %v3119_v41 = vadd.f32 %v7802_v16, %v2845_v48  ;;  %v3754_v16 = vld [vmem:[%s5893_s16 + $0x28] sm:$0xff] }
 0x20e   : > { %v5641_v45 = vpop.f32.mrf.mxu0 }
 0x20f   : > { %v3679_v5 = vadd.f32 %v5641_v45, %v3398_v55  ;;  %v3401_v45 = vadd.f32 %v7806_v2, %v3117_v54  ;;  %v3404_v2 = vadd.f32 %v7812_v23, %v3120_v43  ;;  %v3123_v43 = vadd.f32 %v7814_v4, %v2849_v26  ;;  %v3758_v4 = vld [vmem:[%s5893_s16 + $0x48] sm:$0xff]  ;;  %v8484_v26 = vld [vmem:[#allocation14_spill] sm:$0xff] }
 0x210   : > { %v3519_v30 = vpop.f32.mrf.mxu0 }
 0x211   : > { %v3718_v9 = vadd.f32 %v7889_v10, %v3679_v5  ;;  %v3678_v59 = vadd.f32 %v3519_v30, %v3397_v13 }
 0x212   : > { %v5644_v47 = vpop.f32.mrf.mxu0 }
 0x213   : > { %v3717_v39 = vadd.f32 %v7889_v10, %v3678_v59  ;;  %v3681_v35 = vadd.f32 %v5644_v47, %v3400_v14  ;;  %v3782_v51 = vadd.f32 %v3750_v0, %v3718_v9  ;;  %v2850_v0 = vadd.f32 %v7688_v44, %v7686_v50 }
 0x214   : > { %v3529_v53 = vpop.f32.mrf.mxu0  ;;  %v3403_v59 = vadd.f32 %v7818_v32, %v3119_v41  ;;  %v3756_v32 = vld [vmem:[%s5893_s16 + $0x38] sm:$0xff] }
 0x215   : > { %v3720_v55 = vadd.f32 %v7889_v10, %v3681_v35  ;;  %v3680_v15 = vadd.f32 %v3529_v53, %v3399_v27  ;;  %v3781_v6 = vadd.f32 %v3749_v34, %v3717_v39  ;;  %v3122_v34 = vadd.f32 %v7804_v17, %v2848_v22  ;;  %v3753_v17 = vld [vmem:[%s5893_s16 + $0x20] sm:$0xff]  ;;  %v7933_v39 = vpop.f32.mrf.mxu1 }
 0x216   : > { %v5647_v37 = vpop.f32.mrf.mxu0  ;;  %v3814_v60 = vmax.f32 %v3782_v51, 0.0  ;;  %v3124_v35 = vadd.f32 %v7810_v58, %v2850_v0  ;;  %v2852_v53 = vadd.f32 %v7699_v40, %v7697_v42 }
 0x217   : > { %v3719_v13 = vadd.f32 %v7889_v10, %v3680_v15  ;;  %v3683_v56 = vadd.f32 %v5647_v37, %v3402_v29  ;;  %v3813_v5 = vmax.f32 %v3781_v6, 0.0  ;;  %v3784_v61 = vadd.f32 %v3752_v28, %v3720_v55  ;;  %v7947_v22 = vpop.f32.mrf.mxu1 }
 0x218   : > { %v3539_v20 = vpop.f32.mrf.mxu0  ;;  %v3406_v27 = vadd.f32 %v7824_v1, %v3122_v34  ;;  %v3755_v1 = vld [vmem:[%s5893_s16 + $0x30] sm:$0xff]  ;;  %v2851_v15 = vadd.f32 %v7703_v3, %v7701_v62  ;;  %v3126_v6 = vadd.f32 %v7816_v52, %v2852_v53  ;;  %v8478_v62 = vld [vmem:[#allocation35_spill] sm:$0xff]  ;;  %v3407_v34 = vadd.f32 %v8479_v24, %v3123_v43  ;;  %v8487_v53 = vld [vmem:[#allocation16_spill] sm:$0xff] }
 0x219   : > { %v3722_v30 = vadd.f32 %v7889_v10, %v3683_v56  ;;  %v3682_v14 = vadd.f32 %v3539_v20, %v3401_v45  ;;  %5719 = vmatprep.mubr.f32.mxu1 %v3813_v5  ;;  %v3783_v9 = vadd.f32 %v3751_v36, %v3719_v13  ;;  %v3816_v50 = vmax.f32 %v3784_v61, 0.0  ;;  %v8477_v13 = vld [vmem:[#allocation8_spill] sm:$0xff]  ;;  %v8480_v20 = vld [vmem:[#allocation9_spill] sm:$0xff] }
 0x21a   : > { %v5650_v25 = vpop.f32.mrf.mxu0  ;;  %5720 = vmatmul.mubr.f32.vlgmr.msra.gmra.mxu1 %v3814_v60  ;;  %v3408_v45 = vadd.f32 %v7836_v49, %v3124_v35  ;;  %v2854_v56 = vadd.f32 %v8477_v13, %v7708_v8  ;;  %v3125_v3 = vadd.f32 %v8478_v62, %v2851_v15  ;;  %v3757_v5 = vld [vmem:[%s5893_s16 + $0x40] sm:$0xff]  ;;  %v8486_v35 = vld [vmem:[#allocation46_spill] sm:$0xff] }
 0x21b   : > { %v3721_v54 = vadd.f32 %v7889_v10, %v3682_v14  ;;  %v3685_v23 = vadd.f32 %v5650_v25, %v3404_v2  ;;  %v3815_v47 = vmax.f32 %v3783_v9, 0.0  ;;  %v3786_v44 = vadd.f32 %v3754_v16, %v3722_v30  ;;  %v8481_v2 = vld [vmem:[#allocation10_spill] sm:$0xff]  ;;  %v7961_v14 = vpop.f32.mrf.mxu1 }
 0x21c   : > { %v3549_v38 = vpop.f32.mrf.mxu0  ;;  %v2853_v30 = vadd.f32 %v8481_v2, %v8480_v20  ;;  %v3410_v16 = vadd.f32 %v7848_v21, %v3126_v6  ;;  %v3128_v25 = vadd.f32 %v8482_v33, %v2854_v56  ;;  %v8490_v6 = vld [vmem:[#allocation36_spill] sm:$0xff]  ;;  %v8493_v13 = vld [vmem:[#allocation50_spill] sm:$0xff] }
 0x21d   : > { %v3724_v48 = vadd.f32 %v7889_v10, %v3685_v23  ;;  %v3684_v29 = vadd.f32 %v3549_v38, %v3403_v59  ;;  %5722 = vmatprep.mubr.f32.mxu1 %v3815_v47  ;;  %v3785_v51 = vadd.f32 %v3753_v17, %v3721_v54  ;;  %v3818_v42 = vmax.f32 %v3786_v44, 0.0  ;;  %v3760_v59 = vld [vmem:[%s5893_s16 + $0x58] sm:$0xff]  ;;  %v3759_v38 = vld [vmem:[%s5893_s16 + $0x50] sm:$0xff] }
 0x21e   : > { %v5653_v19 = vpop.f32.mrf.mxu0  ;;  %5723 = vmatmul.mubr.f32.gmra.mxu1 %v3816_v50  ;;  %v8483_v47 = vld [vmem:[#allocation11_spill] sm:$0xff]  ;;  %v8485_v50 = vld [vmem:[#allocation29_spill] sm:$0xff] }
 0x21f   : > { %v3723_v55 = vadd.f32 %v7889_v10, %v3684_v29  ;;  %v3687_v58 = vadd.f32 %v5653_v19, %v3406_v27  ;;  %v3817_v28 = vmax.f32 %v3785_v51, 0.0  ;;  %v3788_v40 = vadd.f32 %v3756_v32, %v3724_v48 }
 0x220   : > { %v3559_v18 = vpop.f32.mrf.mxu0  ;;  %v2856_v27 = vadd.f32 %v8484_v26, %v8483_v47  ;;  %v3409_v44 = vadd.f32 %v8485_v50, %v3125_v3  ;;  %v3127_v48 = vadd.f32 %v8486_v35, %v2853_v30  ;;  %v3761_v3 = vld [vmem:[%s5893_s16 + $0x60] sm:$0xff]  ;;  %v3763_v26 = vld [vmem:[%s5893_s16 + $0x70] sm:$0xff]  ;;  %v8500_v35 = vld [vmem:[#allocation37_spill] sm:$0xff] }
 0x221   : > { %v3726_v37 = vadd.f32 %v7889_v10, %v3687_v58  ;;  %v3686_v36 = vadd.f32 %v3559_v18, %v3405_v7  ;;  %5725 = vmatprep.mubr.f32.mxu1 %v3817_v28  ;;  %v3787_v41 = vadd.f32 %v3755_v1, %v3723_v55  ;;  %v3820_v8 = vmax.f32 %v3788_v40, 0.0  ;;  %v8488_v7 = vld [vmem:[#allocation20_spill] sm:$0xff]  ;;  %v7975_v55 = vpop.f32.mrf.mxu1  ;;  %v3762_v18 = vld [vmem:[%s5893_s16 + $0x68] sm:$0xff] }
 0x222   : > { %v5656_v52 = vpop.f32.mrf.mxu0  ;;  %5726 = vmatmul.mubr.f32.gmra.mxu1 %v3818_v42  ;;  %v2855_v19 = vadd.f32 %v8488_v7, %v8487_v53  ;;  %v8489_v1 = vld [vmem:[#allocation48_spill] sm:$0xff]  ;;  %v3412_v42 = vadd.f32 %v8490_v6, %v3128_v25  ;;  %v8503_v6 = vld [vmem:[#allocation39_spill] sm:$0xff] }
 0x223   : > { %v3725_v60 = vadd.f32 %v7889_v10, %v3686_v36  ;;  %v3689_v49 = vadd.f32 %v5656_v52, %v3408_v45  ;;  %v3819_v61 = vmax.f32 %v3787_v41, 0.0  ;;  %v3790_v9 = vadd.f32 %v3758_v4, %v3726_v37  ;;  %v8491_v4 = vld [vmem:[#allocation21_spill] sm:$0xff]  ;;  %v8492_v36 = vld [vmem:[#allocation24_spill] sm:$0xff]  ;;  %v7989_v2 = vpop.f32.mrf.mxu1 }
 0x224   : > { %v3569_v0 = vpop.f32.mrf.mxu0  ;;  %v3130_v43 = vadd.f32 %v8489_v1, %v2856_v27  ;;  %v2858_v41 = vadd.f32 %v8492_v36, %v8491_v4  ;;  %v3129_v56 = vadd.f32 %v8493_v13, %v2855_v19  ;;  %v3411_v52 = vadd.f32 %v7868_v12, %v3127_v48  ;;  %v3764_v12 = vld [vmem:[%s5893_s16 + $0x78] sm:$0xff]  ;;  %v8499_v27 = vld [vmem:[#allocation57_spill] sm:$0xff]  ;;  %v8501_v48 = vld [vmem:[#allocation38_spill] sm:$0xff] }
 0x225   : > { %v3728_v17 = vadd.f32 %v7889_v10, %v3689_v49  ;;  %v3688_v54 = vadd.f32 %v3569_v0, %v3407_v34  ;;  %5728 = vmatprep.mubr.f32.mxu1 %v3819_v61  ;;  %v3789_v23 = vadd.f32 %v3757_v5, %v3725_v60  ;;  %v3822_v58 = vmax.f32 %v3790_v9, 0.0  ;;  %v8494_v60 = vld [vmem:[#allocation25_spill] sm:$0xff]  ;;  %v8495_v49 = vld [vmem:[#allocation26_spill] sm:$0xff]  ;;  %v8003_v53 = vpop.f32.mrf.mxu1  ;;  %v3765_v4 = vld [vmem:[%s5893_s16 + $0x80] sm:$0xff] }
 0x226   : > { %v5659_v21 = vpop.f32.mrf.mxu0  ;;  %5729 = vmatmul.mubr.f32.gmra.mxu1 %v3820_v8  ;;  %v2857_v61 = vadd.f32 %v8495_v49, %v8494_v60  ;;  %v3414_v20 = vadd.f32 %v7878_v31, %v3130_v43  ;;  %v8496_v9 = vld [vmem:[#allocation6_spill] sm:$0xff]  ;;  %v3413_v47 = vadd.f32 %v7893_v46, %v3129_v56  ;;  %v8506_v56 = vld [vmem:[#allocation45_spill] sm:$0xff] }
 0x227   : > { %v3727_v32 = vadd.f32 %v7889_v10, %v3688_v54  ;;  %v3691_v29 = vadd.f32 %v5659_v21, %v3410_v16  ;;  %v3821_v51 = vmax.f32 %v3789_v23, 0.0  ;;  %v3792_v28 = vadd.f32 %v3760_v59, %v3728_v17  ;;  %v8497_v59 = vld [vmem:[#allocation32_spill] sm:$0xff]  ;;  %v8498_v54 = vld [vmem:[#allocation33_spill] sm:$0xff] }
 0x228   : > { %v3579_v15 = vpop.f32.mrf.mxu0  ;;  %v3132_v0 = vadd.f32 %v8496_v9, %v2858_v41  ;;  %v2860_v23 = vadd.f32 %v8498_v54, %v8497_v59  ;;  %v3131_v50 = vadd.f32 %v8499_v27, %v2857_v61  ;;  %v8508_v49 = vld [vmem:[#allocation61_spill] sm:$0xff]  ;;  %v8510_v9 = vld [vmem:[#allocation52_spill] sm:$0xff]  ;;  %v8514_v27 = vld [vmem:[#allocation27_spill] sm:$0xff] }
 0x229   : > { %v3730_v40 = vadd.f32 %v7889_v10, %v3691_v29  ;;  %v3690_v45 = vadd.f32 %v3579_v15, %v3409_v44  ;;  %5731 = vmatprep.mubr.f32.mxu1 %v3821_v51  ;;  %v3791_v37 = vadd.f32 %v3759_v38, %v3727_v32  ;;  %v3824_v30 = vmax.f32 %v3792_v28, 0.0  ;;  %v8502_v29 = vld [vmem:[#allocation58_spill] sm:$0xff] }
 0x22a   : > { %v5662_v62 = vpop.f32.mrf.mxu0  ;;  %5732 = vmatmul.mubr.f32.gmra.mxu1 %v3822_v58  ;;  %v2859_v32 = vadd.f32 %v8501_v48, %v8500_v35  ;;  %v3134_v51 = vadd.f32 %v8502_v29, %v2860_v23  ;;  %v3416_v1 = vadd.f32 %v7905_v11, %v3132_v0  ;;  %v3766_v58 = vld [vmem:[%s5893_s16 + $0x88] sm:$0xff]  ;;  %v3415_v36 = vadd.f32 %v7919_v63, %v3131_v50  ;;  %v3768_v63 = vld [vmem:[%s5893_s16 + $0x98] sm:$0xff] }
 0x22b   : > { %v3729_v5 = vadd.f32 %v7889_v10, %v3690_v45  ;;  %v3693_v24 = vadd.f32 %v5662_v62, %v3412_v42  ;;  %v3823_v34 = vmax.f32 %v3791_v37, 0.0  ;;  %v3794_v16 = vadd.f32 %v3762_v18, %v3730_v40  ;;  %v8504_v42 = vld [vmem:[#allocation43_spill] sm:$0xff]  ;;  %v8505_v18 = vld [vmem:[#allocation60_spill] sm:$0xff]  ;;  %v8507_v62 = vld [vmem:[#allocation49_spill] sm:$0xff] }
 0x22c   : > { %v3589_v8 = vpop.f32.mrf.mxu0  ;;  %v2862_v40 = vadd.f32 %v8504_v42, %v8503_v6  ;;  %v3133_v45 = vadd.f32 %v8505_v18, %v2859_v32  ;;  %v3770_v32 = vld [vmem:[%s5893_s16 + $0xa8] sm:$0xff] }
 0x22d   : > { %v3732_v33 = vadd.f32 %v7889_v10, %v3693_v24  ;;  %v3692_v25 = vadd.f32 %v3589_v8, %v3411_v52  ;;  %5734 = vmatprep.mubr.f32.mxu1 %v3823_v34  ;;  %v3793_v17 = vadd.f32 %v3761_v3, %v3729_v5  ;;  %v3826_v7 = vmax.f32 %v3794_v16, 0.0  ;;  %v8017_v5 = vpop.f32.mrf.mxu1  ;;  %v8509_v8 = vld [vmem:[#allocation51_spill] sm:$0xff]  ;;  %v8519_v18 = vld [vmem:[#allocation13_spill] sm:$0xff] }
 0x22e   : > { %v5665_v31 = vpop.f32.mrf.mxu0  ;;  %5735 = vmatmul.mubr.f32.gmra.mxu1 %v3824_v30  ;;  %v2861_v3 = vadd.f32 %v8507_v62, %v8506_v56  ;;  %v3418_v52 = vadd.f32 %v7933_v39, %v3134_v51  ;;  %v3136_v61 = vadd.f32 %v8508_v49, %v2862_v40  ;;  %v2864_v0 = vadd.f32 %v8510_v9, %v8509_v8  ;;  %v8518_v40 = vld [vmem:[#allocation12_spill] sm:$0xff]  ;;  %v8524_v9 = vld [vmem:[#allocation18_spill] sm:$0xff] }
 0x22f   : > { %v3731_v44 = vadd.f32 %v7889_v10, %v3692_v25  ;;  %v3695_v21 = vadd.f32 %v5665_v31, %v3414_v20  ;;  %v3825_v38 = vmax.f32 %v3793_v17, 0.0  ;;  %v3796_v46 = vadd.f32 %v3764_v12, %v3732_v33  ;;  %v3767_v12 = vld [vmem:[%s5893_s16 + $0x90] sm:$0xff]  ;;  %v8513_v31 = vld [vmem:[#allocation7_spill] sm:$0xff] }
 0x230   : > { %v3599_v19 = vpop.f32.mrf.mxu0  ;;  %v3417_v33 = vadd.f32 %v7947_v22, %v3133_v45  ;;  %v8511_v25 = vld [vmem:[#allocation62_spill] sm:$0xff]  ;;  %v3138_v50 = vadd.f32 %v8514_v27, %v2864_v0  ;;  %v3420_v35 = vadd.f32 %v7961_v14, %v3136_v61  ;;  %v2865_v45 = vadd.f32 %v8519_v18, %v8518_v40  ;;  %v8525_v0 = vld [vmem:[#allocation19_spill] sm:$0xff] }
 0x231   : > { %v3734_v43 = vadd.f32 %v7889_v10, %v3695_v21  ;;  %v3694_v28 = vadd.f32 %v3599_v19, %v3413_v47  ;;  %5737 = vmatprep.mubr.f32.mxu1 %v3825_v38  ;;  %v3795_v15 = vadd.f32 %v3763_v26, %v3731_v44  ;;  %v3828_v24 = vmax.f32 %v3796_v46, 0.0  ;;  %v8512_v47 = vld [vmem:[#allocation53_spill] sm:$0xff]  ;;  %v3368_v44 = vpop.f32.mrf.mxu1  ;;  %v8516_v46 = vld [vmem:[#allocation55_spill] sm:$0xff]  ;;  %v8527_v27 = vld [vmem:[#allocation22_spill] sm:$0xff] }
 0x232   : > { %v5668_v37 = vpop.f32.mrf.mxu0  ;;  %5738 = vmatmul.mubr.f32.gmra.mxu1 %v3826_v7  ;;  %v3135_v17 = vadd.f32 %v8511_v25, %v2861_v3  ;;  %v2863_v26 = vadd.f32 %v8513_v31, %v8512_v47  ;;  %v8515_v7 = vld [vmem:[#allocation54_spill] sm:$0xff]  ;;  %v3772_v3 = vld [vmem:[%s5893_s16 + $0xb8] sm:$0xff]  ;;  %v3774_v47 = vld [vmem:[%s5893_s16 + $0xc8] sm:$0xff] }
 0x233   : > { %v3733_v41 = vadd.f32 %v7889_v10, %v3694_v28  ;;  %v3697_v11 = vadd.f32 %v5668_v37, %v3416_v1  ;;  %v3827_v13 = vmax.f32 %v3795_v15, 0.0  ;;  %v3798_v34 = vadd.f32 %v3766_v58, %v3734_v43  ;;  %v8517_v1 = vld [vmem:[#allocation30_spill] sm:$0xff]  ;;  %v3769_v28 = vld [vmem:[%s5893_s16 + $0xa0] sm:$0xff] }
 0x234   : > { %v3609_v60 = vpop.f32.mrf.mxu0  ;;  %v2866_v19 = vadd.f32 %v8516_v46, %v8515_v7  ;;  %v3137_v43 = vadd.f32 %v8517_v1, %v2863_v26  ;;  %v3419_v15 = vadd.f32 %v7975_v55, %v3135_v17  ;;  %v3422_v37 = vadd.f32 %v7989_v2, %v3138_v50  ;;  %v3771_v2 = vld [vmem:[%s5893_s16 + $0xb0] sm:$0xff]  ;;  %v8528_v50 = vld [vmem:[#allocation23_spill] sm:$0xff]  ;;  %v8530_v7 = vld [vmem:[#allocation28_spill] sm:$0xff] }
 0x235   : > { %v3736_v20 = vadd.f32 %v7889_v10, %v3697_v11  ;;  %v3696_v30 = vadd.f32 %v3609_v60, %v3415_v36  ;;  %5740 = vmatprep.mubr.f32.mxu1 %v3827_v13  ;;  %v3797_v16 = vadd.f32 %v3765_v4, %v3733_v41  ;;  %v3830_v21 = vmax.f32 %v3798_v34, 0.0  ;;  %v5603_v4 = vpop.f32.mrf.mxu1  ;;  %v8520_v13 = vld [vmem:[#allocation34_spill] sm:$0xff]  ;;  %v8522_v34 = vld [vmem:[#allocation15_spill] sm:$0xff] }
 0x236   : > { %v5671_v39 = vpop.f32.mrf.mxu0  ;;  %5741 = vmatmul.mubr.f32.gmra.mxu1 %v3828_v24  ;;  %v3140_v56 = vadd.f32 %v8520_v13, %v2866_v19  ;;  %v8521_v24 = vld [vmem:[#allocation17_spill] sm:$0xff]  ;;  %v3421_v49 = vadd.f32 %v8003_v53, %v3137_v43  ;;  %v8531_v46 = vld [vmem:[#allocation31_spill] sm:$0xff] }
 0x237   : > { %v3735_v59 = vadd.f32 %v7889_v10, %v3696_v30  ;;  %v3699_v54 = vadd.f32 %v5671_v39, %v3418_v52  ;;  %v3829_v23 = vmax.f32 %v3797_v16, 0.0  ;;  %v3800_v38 = vadd.f32 %v3768_v63, %v3736_v20  ;;  %v8523_v20 = vld [vmem:[#allocation40_spill] sm:$0xff]  ;;  %v8526_v39 = vld [vmem:[#allocation42_spill] sm:$0xff]  ;;  %v3378_v25 = vpop.f32.mrf.mxu1 }
 0x238   : > { %v3619_v22 = vpop.f32.mrf.mxu0  ;;  %v2868_v60 = vadd.f32 %v8522_v34, %v8521_v24  ;;  %v3139_v63 = vadd.f32 %v8523_v20, %v2865_v45  ;;  %v2869_v19 = vadd.f32 %v8531_v46, %v8530_v7  ;;  %v3778_v24 = vld [vmem:[%s5893_s16 + $0xe8] sm:$0xff] }
 0x239   : > { %v3738_v48 = vadd.f32 %v7889_v10, %v3699_v54  ;;  %v3698_v29 = vadd.f32 %v3619_v22, %v3417_v33  ;;  %5743 = vmatprep.mubr.f32.mxu1 %v3829_v23  ;;  %v3799_v51 = vadd.f32 %v3767_v12, %v3735_v59  ;;  %v3832_v36 = vmax.f32 %v3800_v38, 0.0  ;;  %v8529_v38 = vld [vmem:[#allocation44_spill] sm:$0xff]  ;;  %v5606_v43 = vpop.f32.mrf.mxu1 }
 0x23a   : > { %v5674_v58 = vpop.f32.mrf.mxu0  ;;  %5744 = vmatmul.mubr.f32.gmra.mxu1 %v3830_v21  ;;  %v2867_v33 = vadd.f32 %v8525_v0, %v8524_v9  ;;  %v3142_v12 = vadd.f32 %v8526_v39, %v2868_v60  ;;  %v3424_v54 = vadd.f32 %v8017_v5, %v3140_v56  ;;  %v2870_v21 = vadd.f32 %v8528_v50, %v8527_v27 }
 0x23b   : > { %v3737_v6 = vadd.f32 %v7889_v10, %v3698_v29  ;;  %v3701_v14 = vadd.f32 %v5674_v58, %v3420_v35  ;;  %v3831_v42 = vmax.f32 %v3799_v51, 0.0  ;;  %v3802_v41 = vadd.f32 %v3770_v32, %v3738_v48  ;;  %v3773_v48 = vld [vmem:[%s5893_s16 + $0xc0] sm:$0xff]  ;;  %v3388_v56 = vpop.f32.mrf.mxu1 }
 0x23c   : > { %v3629_v11 = vpop.f32.mrf.mxu0  ;;  %v3141_v22 = vadd.f32 %v8529_v38, %v2867_v33  ;;  %v3423_v32 = vadd.f32 %v3368_v44, %v3139_v63  ;;  %v3426_v1 = vadd.f32 %v5603_v4, %v3142_v12  ;;  %v3780_v33 = vld [vmem:[%s5893_s16 + $0xf8] sm:$0xff] }
 0x23d   : > { %v3740_v62 = vadd.f32 %v7889_v10, %v3701_v14  ;;  %v3700_v55 = vadd.f32 %v3629_v11, %v3419_v15  ;;  %5746 = vmatprep.mubr.f32.mxu1 %v3831_v42  ;;  %v3801_v52 = vadd.f32 %v3769_v28, %v3737_v6  ;;  %v3834_v17 = vmax.f32 %v3802_v41, 0.0  ;;  %v3776_v42 = vld [vmem:[%s5893_s16 + $0xd8] sm:$0xff] }
 0x23e   : > { %v5677_v61 = vpop.f32.mrf.mxu0  ;;  %5747 = vmatmul.mubr.f32.gmra.mxu1 %v3832_v36  ;;  %v3144_v6 = vadd.f32 %v7874_v57, %v2870_v21  ;;  %v3425_v18 = vadd.f32 %v3378_v25, %v3141_v22  ;;  %v8532_v36 = vld [vmem:[#allocation47_spill] sm:$0xff]  ;;  %v3779_v25 = vld [vmem:[%s5893_s16 + $0xf0] sm:$0xff] }
 0x23f   : > { %v3739_v30 = vadd.f32 %v7889_v10, %v3700_v55  ;;  %v3703_v16 = vadd.f32 %v5677_v61, %v3422_v37  ;;  %v3833_v8 = vmax.f32 %v3801_v52, 0.0  ;;  %v3804_v59 = vadd.f32 %v3772_v3, %v3740_v62  ;;  %v3775_v37 = vld [vmem:[%s5893_s16 + $0xd0] sm:$0xff]  ;;  %v3777_v61 = vld [vmem:[%s5893_s16 + $0xe0] sm:$0xff] }
 0x240   : > { %v3639_v53 = vpop.f32.mrf.mxu0  ;;  %v3143_v41 = vadd.f32 %v8532_v36, %v2869_v19  ;;  %v3428_v55 = vadd.f32 %v5606_v43, %v3144_v6 }
 0x241   : > { %v3742_v23 = vadd.f32 %v7889_v10, %v3703_v16  ;;  %v3702_v31 = vadd.f32 %v3639_v53, %v3421_v49  ;;  %5749 = vmatprep.mubr.f32.mxu1 %v3833_v8  ;;  %v3803_v26 = vadd.f32 %v3771_v2, %v3739_v30  ;;  %v3836_v58 = vmax.f32 %v3804_v59, 0.0 }
 0x242   : > { %v5680_v35 = vpop.f32.mrf.mxu0  ;;  %5750 = vmatmul.mubr.f32.gmra.mxu1 %v3834_v17  ;;  %v3427_v2 = vadd.f32 %v3388_v56, %v3143_v41 }
 0x243   : > { %v3741_v29 = vadd.f32 %v7889_v10, %v3702_v31  ;;  %v3705_v51 = vadd.f32 %v5680_v35, %v3424_v54  ;;  %v3835_v5 = vmax.f32 %v3803_v26, 0.0  ;;  %v3806_v28 = vadd.f32 %v3774_v47, %v3742_v23  ;;  %v8082_v26 = vld [vmem:[%s8164_s7] ss:$0 sm:$0xff] }
 0x244   : > { %v3649_v15 = vpop.f32.mrf.mxu0 }
 0x245   : > { %v3744_v14 = vadd.f32 %v7889_v10, %v3705_v51  ;;  %v3704_v40 = vadd.f32 %v3649_v15, %v3423_v32  ;;  %5752 = vmatprep.mubr.f32.mxu1 %v3835_v5  ;;  %v3805_v44 = vadd.f32 %v3773_v48, %v3741_v29  ;;  %v3838_v57 = vmax.f32 %v3806_v28, 0.0 }
 0x246   : > { %v5683_v45 = vpop.f32.mrf.mxu0  ;;  %5753 = vmatmul.mubr.f32.gmra.mxu1 %v3836_v58 }
 0x247   : > { %v3743_v4 = vadd.f32 %v7889_v10, %v3704_v40  ;;  %v3707_v11 = vadd.f32 %v5683_v45, %v3426_v1  ;;  %v3837_v13 = vmax.f32 %v3805_v44, 0.0  ;;  %v3808_v62 = vadd.f32 %v3776_v42, %v3744_v14 }
 0x248   : > { %v3659_v3 = vpop.f32.mrf.mxu0 }
 0x249   : > { %v3746_v52 = vadd.f32 %v7889_v10, %v3707_v11  ;;  %v3706_v34 = vadd.f32 %v3659_v3, %v3425_v18  ;;  %5755 = vmatprep.mubr.f32.mxu1 %v3837_v13  ;;  %v3807_v60 = vadd.f32 %v3775_v37, %v3743_v4  ;;  %v3840_v16 = vmax.f32 %v3808_v62, 0.0 }
 0x24a   : > { %v5686_v49 = vpop.f32.mrf.mxu0  ;;  %5756 = vmatmul.mubr.f32.gmra.mxu1 %v3838_v57 }
 0x24b   : > { %v3745_v20 = vadd.f32 %v7889_v10, %v3706_v34  ;;  %v3709_v63 = vadd.f32 %v5686_v49, %v3428_v55  ;;  %v3839_v30 = vmax.f32 %v3807_v60, 0.0  ;;  %v3810_v8 = vadd.f32 %v3778_v24, %v3746_v52 }
 0x24c   : > { %v3669_v9 = vpop.f32.mrf.mxu0 }
 0x24d   : > { %v3748_v0 = vadd.f32 %v7889_v10, %v3709_v63  ;;  %v3708_v39 = vadd.f32 %v3669_v9, %v3427_v2  ;;  %5758 = vmatprep.mubr.f32.mxu1 %v3839_v30  ;;  %v3809_v12 = vadd.f32 %v3777_v61, %v3745_v20  ;;  %v3842_v53 = vmax.f32 %v3810_v8, 0.0 }
 0x24e   : > { %5759 = vmatmul.mubr.f32.gmra.mxu1 %v3840_v16 }
 0x24f   : > { %v3747_v17 = vadd.f32 %v7889_v10, %v3708_v39  ;;  %v3841_v59 = vmax.f32 %v3809_v12, 0.0  ;;  %v3812_v54 = vadd.f32 %v3780_v33, %v3748_v0 }
 0x251   : > { %5761 = vmatprep.mubr.f32.mxu1 %v3841_v59  ;;  %v3811_v23 = vadd.f32 %v3779_v25, %v3747_v17  ;;  %v3844_v31 = vmax.f32 %v3812_v54, 0.0 }
 0x252   : > { %5762 = vmatmul.mubr.f32.gmra.mxu1 %v3842_v53 }
 0x253   : > { %v3843_v47 = vmax.f32 %v3811_v23, 0.0 }
 0x255   : > { %5764 = vmatprep.mubr.f32.mxu1 %v3843_v47 }
 0x256   : > { %5765 = vmatmul.mubr.f32.gmra.mxu1 %v3844_v31 }
 0x2da   : > { %v5721_v27 = vpop.f32.mrf.mxu1 }
 0x2db   : > { %v3940_v10 = vadd.f32 %v5721_v27, %v8082_v26 }
 0x2dc   : > { %v3934_v50 = vpop.f32.mrf.mxu1 }
 0x2dd   : > { %v4094_v21 = vmax.f32 %v3940_v10, 0.0  ;;  %v3935_v38 = vadd.f32 %v8082_v26, %v3934_v50 }
 0x2de   : > { %v5724_v22 = vpop.f32.mrf.mxu1 }
 0x2df   : > { %4126 = vst [vmem:[%s5898_s19 + $0x8] sm:$0xff] %v4094_v21  ;;  %v4093_v35 = vmax.f32 %v3935_v38, 0.0  ;;  %v3950_v48 = vadd.f32 %v5724_v22, %v8082_v26 }
 0x2e0   : > { %v3944_v32 = vpop.f32.mrf.mxu1 }
 0x2e1   : > { %4125 = vst [vmem:[%s5898_s19] sm:$0xff] %v4093_v35  ;;  %v4096_v29 = vmax.f32 %v3950_v48, 0.0  ;;  %v3945_v51 = vadd.f32 %v8082_v26, %v3944_v32 }
 0x2e2   : > { %v5727_v5 = vpop.f32.mrf.mxu1 }
 0x2e3   : > { %4128 = vst [vmem:[%s5898_s19 + $0x18] sm:$0xff] %v4096_v29  ;;  %v4095_v7 = vmax.f32 %v3945_v51, 0.0  ;;  %v3960_v46 = vadd.f32 %v5727_v5, %v8082_v26 }
 0x2e4   : > { %v3954_v19 = vpop.f32.mrf.mxu1 }
 0x2e5   : > { %4127 = vst [vmem:[%s5898_s19 + $0x10] sm:$0xff] %v4095_v7  ;;  %v4098_v1 = vmax.f32 %v3960_v46, 0.0  ;;  %v3955_v43 = vadd.f32 %v8082_v26, %v3954_v19 }
 0x2e6   : > { %v5730_v58 = vpop.f32.mrf.mxu1 }
 0x2e7   : > { %4130 = vst [vmem:[%s5898_s19 + $0x28] sm:$0xff] %v4098_v1  ;;  %v4097_v28 = vmax.f32 %v3955_v43, 0.0  ;;  %v3970_v15 = vadd.f32 %v5730_v58, %v8082_v26 }
 0x2e8   : > { %v3964_v6 = vpop.f32.mrf.mxu1 }
 0x2e9   : > { %4129 = vst [vmem:[%s5898_s19 + $0x20] sm:$0xff] %v4097_v28  ;;  %v4100_v14 = vmax.f32 %v3970_v15, 0.0  ;;  %v3965_v42 = vadd.f32 %v8082_v26, %v3964_v6 }
 0x2ea   : > { %v5733_v40 = vpop.f32.mrf.mxu1 }
 0x2eb   : > { %4132 = vst [vmem:[%s5898_s19 + $0x38] sm:$0xff] %v4100_v14  ;;  %v4099_v44 = vmax.f32 %v3965_v42, 0.0  ;;  %v3980_v18 = vadd.f32 %v5733_v40, %v8082_v26 }
 0x2ec   : > { %v3974_v45 = vpop.f32.mrf.mxu1 }
 0x2ed   : > { %4131 = vst [vmem:[%s5898_s19 + $0x30] sm:$0xff] %v4099_v44  ;;  %v4102_v37 = vmax.f32 %v3980_v18, 0.0  ;;  %v3975_v36 = vadd.f32 %v8082_v26, %v3974_v45 }
 0x2ee   : > { %v5736_v41 = vpop.f32.mrf.mxu1 }
 0x2ef   : > { %4134 = vst [vmem:[%s5898_s19 + $0x48] sm:$0xff] %v4102_v37  ;;  %v4101_v4 = vmax.f32 %v3975_v36, 0.0  ;;  %v3990_v11 = vadd.f32 %v5736_v41, %v8082_v26 }
 0x2f0   : > { %v3984_v13 = vpop.f32.mrf.mxu1 }
 0x2f1   : > { %4133 = vst [vmem:[%s5898_s19 + $0x40] sm:$0xff] %v4101_v4  ;;  %v4104_v56 = vmax.f32 %v3990_v11, 0.0  ;;  %v3985_v57 = vadd.f32 %v8082_v26, %v3984_v13 }
 0x2f2   : > { %v5739_v62 = vpop.f32.mrf.mxu1 }
 0x2f3   : > { %4136 = vst [vmem:[%s5898_s19 + $0x58] sm:$0xff] %v4104_v56  ;;  %v4103_v3 = vmax.f32 %v3985_v57, 0.0  ;;  %v4000_v55 = vadd.f32 %v5739_v62, %v8082_v26 }
 0x2f4   : > { %v3994_v52 = vpop.f32.mrf.mxu1 }
 0x2f5   : > { %4135 = vst [vmem:[%s5898_s19 + $0x50] sm:$0xff] %v4103_v3  ;;  %v4106_v24 = vmax.f32 %v4000_v55, 0.0  ;;  %v3995_v34 = vadd.f32 %v8082_v26, %v3994_v52 }
 0x2f6   : > { %v5742_v60 = vpop.f32.mrf.mxu1 }
 0x2f7   : > { %4138 = vst [vmem:[%s5898_s19 + $0x68] sm:$0xff] %v4106_v24  ;;  %v4105_v49 = vmax.f32 %v3995_v34, 0.0  ;;  %v4010_v61 = vadd.f32 %v5742_v60, %v8082_v26 }
 0x2f8   : > { %v4004_v2 = vpop.f32.mrf.mxu1 }
 0x2f9   : > { %4137 = vst [vmem:[%s5898_s19 + $0x60] sm:$0xff] %v4105_v49  ;;  %v4108_v20 = vmax.f32 %v4010_v61, 0.0  ;;  %v4005_v63 = vadd.f32 %v8082_v26, %v4004_v2 }
 0x2fa   : > { %v5745_v30 = vpop.f32.mrf.mxu1 }
 0x2fb   : > { %4140 = vst [vmem:[%s5898_s19 + $0x78] sm:$0xff] %v4108_v20  ;;  %v4107_v16 = vmax.f32 %v4005_v63, 0.0  ;;  %v4020_v8 = vadd.f32 %v5745_v30, %v8082_v26 }
 0x2fc   : > { %v4014_v9 = vpop.f32.mrf.mxu1 }
 0x2fd   : > { %4139 = vst [vmem:[%s5898_s19 + $0x70] sm:$0xff] %v4107_v16  ;;  %v4110_v0 = vmax.f32 %v4020_v8, 0.0  ;;  %v4015_v33 = vadd.f32 %v8082_v26, %v4014_v9 }
 0x2fe   : > { %v5748_v39 = vpop.f32.mrf.mxu1 }
 0x2ff   : > { %4142 = vst [vmem:[%s5898_s19 + $0x88] sm:$0xff] %v4110_v0  ;;  %v4109_v12 = vmax.f32 %v4015_v33, 0.0  ;;  %v4030_v25 = vadd.f32 %v5748_v39, %v8082_v26 }
 0x300   : > { %v4024_v17 = vpop.f32.mrf.mxu1 }
 0x301   : > { %4141 = vst [vmem:[%s5898_s19 + $0x80] sm:$0xff] %v4109_v12  ;;  %v4112_v59 = vmax.f32 %v4030_v25, 0.0  ;;  %v4025_v53 = vadd.f32 %v8082_v26, %v4024_v17 }
 0x302   : > { %v5751_v54 = vpop.f32.mrf.mxu1 }
 0x303   : > { %4144 = vst [vmem:[%s5898_s19 + $0x98] sm:$0xff] %v4112_v59  ;;  %v4111_v23 = vmax.f32 %v4025_v53, 0.0  ;;  %v4040_v47 = vadd.f32 %v5751_v54, %v8082_v26 }
 0x304   : > { %v4034_v31 = vpop.f32.mrf.mxu1 }
 0x305   : > { %4143 = vst [vmem:[%s5898_s19 + $0x90] sm:$0xff] %v4111_v23  ;;  %v4114_v27 = vmax.f32 %v4040_v47, 0.0  ;;  %v4035_v10 = vadd.f32 %v8082_v26, %v4034_v31 }
 0x306   : > { %v5754_v50 = vpop.f32.mrf.mxu1 }
 0x307   : > { %4146 = vst [vmem:[%s5898_s19 + $0xa8] sm:$0xff] %v4114_v27  ;;  %v4113_v21 = vmax.f32 %v4035_v10, 0.0  ;;  %v4050_v38 = vadd.f32 %v5754_v50, %v8082_v26 }
 0x308   : > { %v4044_v22 = vpop.f32.mrf.mxu1 }
 0x309   : > { %4145 = vst [vmem:[%s5898_s19 + $0xa0] sm:$0xff] %v4113_v21  ;;  %v4116_v35 = vmax.f32 %v4050_v38, 0.0  ;;  %v4045_v48 = vadd.f32 %v8082_v26, %v4044_v22 }
 0x30a   : > { %v5757_v32 = vpop.f32.mrf.mxu1 }
 0x30b   : > { %4148 = vst [vmem:[%s5898_s19 + $0xb8] sm:$0xff] %v4116_v35  ;;  %v4115_v29 = vmax.f32 %v4045_v48, 0.0  ;;  %v4060_v51 = vadd.f32 %v5757_v32, %v8082_v26 }
 0x30c   : > { %v4054_v5 = vpop.f32.mrf.mxu1 }
 0x30d   : > { %4147 = vst [vmem:[%s5898_s19 + $0xb0] sm:$0xff] %v4115_v29  ;;  %v4118_v7 = vmax.f32 %v4060_v51, 0.0  ;;  %v4055_v46 = vadd.f32 %v8082_v26, %v4054_v5 }
 0x30e   : > { %v5760_v19 = vpop.f32.mrf.mxu1 }
 0x30f   : > { %4150 = vst [vmem:[%s5898_s19 + $0xc8] sm:$0xff] %v4118_v7  ;;  %v4117_v1 = vmax.f32 %v4055_v46, 0.0  ;;  %v4070_v43 = vadd.f32 %v5760_v19, %v8082_v26 }
 0x310   : > { %v4064_v58 = vpop.f32.mrf.mxu1 }
 0x311   : > { %4149 = vst [vmem:[%s5898_s19 + $0xc0] sm:$0xff] %v4117_v1  ;;  %v4120_v28 = vmax.f32 %v4070_v43, 0.0  ;;  %v4065_v15 = vadd.f32 %v8082_v26, %v4064_v58 }
 0x312   : > { %v5763_v6 = vpop.f32.mrf.mxu1 }
 0x313   : > { %4152 = vst [vmem:[%s5898_s19 + $0xd8] sm:$0xff] %v4120_v28  ;;  %v4119_v14 = vmax.f32 %v4065_v15, 0.0  ;;  %v4080_v42 = vadd.f32 %v5763_v6, %v8082_v26 }
 0x314   : > { %v4074_v40 = vpop.f32.mrf.mxu1 }
 0x315   : > { %4151 = vst [vmem:[%s5898_s19 + $0xd0] sm:$0xff] %v4119_v14  ;;  %v4122_v44 = vmax.f32 %v4080_v42, 0.0  ;;  %v4075_v18 = vadd.f32 %v8082_v26, %v4074_v40 }
 0x316   : > { %v5766_v45 = vpop.f32.mrf.mxu1 }
 0x317   : > { %4154 = vst [vmem:[%s5898_s19 + $0xe8] sm:$0xff] %v4122_v44  ;;  %v4121_v37 = vmax.f32 %v4075_v18, 0.0  ;;  %v4090_v36 = vadd.f32 %v5766_v45, %v8082_v26 }
 0x318   : > { %v4084_v41 = vpop.f32.mrf.mxu1 }
 0x319   : > { %4153 = vst [vmem:[%s5898_s19 + $0xe0] sm:$0xff] %v4121_v37  ;;  %v4124_v4 = vmax.f32 %v4090_v36, 0.0  ;;  %v4085_v11 = vadd.f32 %v8082_v26, %v4084_v41 }
 0x31b   : > { %4156 = vst [vmem:[%s5898_s19 + $0xf8] sm:$0xff] %v4124_v4  ;;  %v4123_v13 = vmax.f32 %v4085_v11, 0.0 }
 0x31d   : > { %4155 = vst [vmem:[%s5898_s19 + $0xf0] sm:$0xff] %v4123_v13 }
 0x31e PF: > { %s18_s29 = sadd.s32 1, %s5818_s29   ;;  %s8533_s27 = smov %s5814_s28 }
 0x31f   : > { %p15_p5 = scmp.ge.s32.totalorder %s18_s29, 4   ;;  %s8534_s28 = smov %s8536_s30 }
 0x321   :  { %17 = sbr.rel (!%p15_p5) target bundleno = 2 (0x2), region = 138 }
 0x326   :  { %4189 = vsyncmov [#allocation3] }
 0x329   :  { %s4190_s16 = vpop.sfrf %4189 }
 0x32a   :  { %p4484_p6 = scmp.ne.s32.totalorder %s4190_s16, 0 }
 0x32c   :  { %4194 = shalt.err (%p4484_p6)  }

</bundles_post_ra>
